<compile_context>
chip_gen: v5e
topology: v5e:2x2
jax: 0.10.0
libtpu: 0.0.40
codegen_flags: <defaults>
</compile_context>

<pallas_src>
import functools

import jax
import jax.numpy as jnp
from jax.experimental import pallas as pl
from jax.experimental.pallas import tpu as pltpu


HIDDEN_DIM = 256
NUM_HERMITIAN_LAYERS = 6
T_TERMS = 20


# ----------------------------------------------------------------------------
# Kernel 1: first (non-hermitian) conv layer -> packed [N, 2F] complex plane
# ----------------------------------------------------------------------------
def _first_layer_kernel(x_ref, w_ref, b_ref, a_ref, o_ref):
    z = jnp.dot(x_ref[...].astype(jnp.bfloat16), w_ref[...].astype(jnp.bfloat16),
                preferred_element_type=jnp.float32) + b_ref[...]
    hr = jnp.dot(a_ref[...].astype(jnp.bfloat16), z.astype(jnp.bfloat16),
                 preferred_element_type=jnp.float32)
    o_ref[...] = jnp.concatenate([hr, jnp.zeros_like(hr)], axis=1)


def first_layer(x, W0, b0, A_hat):
    N, D = x.shape
    F = W0.shape[1]
    return pl.pallas_call(
        _first_layer_kernel,
        out_shape=jax.ShapeDtypeStruct((N, 2 * F), jnp.float32),
        grid=(1,),
        in_specs=[
            pl.BlockSpec((N, D), lambda i: (0, 0)),
            pl.BlockSpec((D, F), lambda i: (0, 0)),
            pl.BlockSpec((1, F), lambda i: (0, 0)),
            pl.BlockSpec((N, N), lambda i: (0, 0)),
        ],
        out_specs=pl.BlockSpec((N, 2 * F), lambda i: (0, 0)),
    )(x.astype(jnp.float32), W0.astype(jnp.float32),
      b0.reshape(1, F).astype(jnp.float32), A_hat.astype(jnp.float32))


# ----------------------------------------------------------------------------
# Kernel 2: all hermitian layers fused (grid axis = layer index)
# ----------------------------------------------------------------------------
def _hermitian_stack_kernel(h0_ref, a_ref, w_ref, b_ref, o_ref, h_scr, *, T, F):
    l = pl.program_id(0)

    @pl.when(l == 0)
    def _():
        h_scr[...] = h0_ref[...]           # seed the resident hidden state

    h = h_scr[...]                         # [N, 2F] f32: [real | imag]
    N = h.shape[0]
    A = a_ref[...].astype(jnp.bfloat16)    # [N, N], resident across all layers
    W = w_ref[0].astype(jnp.bfloat16)      # [F, F], this layer's weight
    b = b_ref[0]                           # [1, F] f32

    # Linear projection z = h @ W + b (same W for real & imag planes, bias on
    # the real plane).  One MXU dot on the row-stacked [2N, F] operand.
    hstk = jnp.concatenate([h[:, :F], h[:, F:]], axis=0).astype(jnp.bfloat16)
    zstk = jnp.dot(hstk, W, preferred_element_type=jnp.float32)     # [2N, F]
    z = jnp.concatenate([zstk[:N, :] + b, zstk[N:, :]], axis=1)     # [N, 2F]

    # h_new = exp(i * A_hat) @ z, Taylor expanded to T terms.
    # One bf16 MXU dot per term; "multiply by i" = swap the two 128-lane-
    # aligned halves and negate the new real half.  T is a static Python int,
    # so this loop fully unrolls at trace time (LLO gets full visibility).
    term = z
    acc = z
    for k in range(1, T):
        p = jnp.dot(A, term.astype(jnp.bfloat16),
                    preferred_element_type=jnp.float32)             # [N, 2F]
        inv = 1.0 / float(k)
        term = jnp.concatenate([p[:, F:] * (-inv), p[:, :F] * inv], axis=1)
        acc = acc + term

    h_scr[...] = acc                       # persists to the next layer

    @pl.when(l == pl.num_programs(0) - 1)
    def _():
        o_ref[...] = acc                   # only the final layer hits HBM


def hermitian_layers(h0, A_hat, W_stack, b_stack, T):
    N = h0.shape[0]
    L, _, F = W_stack.shape
    return pl.pallas_call(
        functools.partial(_hermitian_stack_kernel, T=T, F=F),
        out_shape=jax.ShapeDtypeStruct((N, 2 * F), jnp.float32),
        grid_spec=pltpu.PrefetchScalarGridSpec(
            num_scalar_prefetch=0,
            grid=(L,),
            in_specs=[
                pl.BlockSpec((N, 2 * F), lambda l: (0, 0)),    # h0: fetched once
                pl.BlockSpec((N, N), lambda l: (0, 0)),        # A_hat: resident
                pl.BlockSpec((1, F, F), lambda l: (l, 0, 0)),  # per-layer W
                pl.BlockSpec((1, 1, F), lambda l: (l, 0, 0)),  # per-layer bias
            ],
            out_specs=pl.BlockSpec((N, 2 * F), lambda l: (0, 0)),
            scratch_shapes=[pltpu.VMEM((N, 2 * F), jnp.float32)],
        ),
        compiler_params=pltpu.CompilerParams(
            dimension_semantics=("arbitrary",)),
    )(h0.astype(jnp.float32), A_hat.astype(jnp.float32),
      W_stack.astype(jnp.float32), b_stack.astype(jnp.float32))


# ----------------------------------------------------------------------------
# Kernel 3: epilogue (global mean pool of real part + 2-layer MLP head)
# ----------------------------------------------------------------------------
def _epilogue_kernel(pool_ref, h_ref, wh_ref, bh_ref, wo_ref, bo_ref, o_ref, *, F):
    hr = h_ref[:, :F]                      # real plane of final node features
    pooled = jnp.dot(pool_ref[...], hr, preferred_element_type=jnp.float32)
    hdn = jnp.dot(pooled, wh_ref[...],
                  preferred_element_type=jnp.float32) + bh_ref[...]
    hdn = jnp.maximum(hdn, 0.0)
    o_ref[...] = jnp.dot(hdn, wo_ref[...],
                         preferred_element_type=jnp.float32) + bo_ref[...]


def epilogue(pool_mat, h, Wh, bh, Wo, bo):
    G, N = pool_mat.shape
    F = Wh.shape[0]
    OUT = Wo.shape[1]
    return pl.pallas_call(
        functools.partial(_epilogue_kernel, F=F),
        out_shape=jax.ShapeDtypeStruct((G, OUT), jnp.float32),
        grid=(1,),
        in_specs=[
            pl.BlockSpec((G, N), lambda i: (0, 0)),
            pl.BlockSpec((N, 2 * F), lambda i: (0, 0)),
            pl.BlockSpec((F, F), lambda i: (0, 0)),
            pl.BlockSpec((1, F), lambda i: (0, 0)),
            pl.BlockSpec((F, OUT), lambda i: (0, 0)),
            pl.BlockSpec((1, OUT), lambda i: (0, 0)),
        ],
        out_specs=pl.BlockSpec((G, OUT), lambda i: (0, 0)),
    )(pool_mat.astype(jnp.float32), h, Wh.astype(jnp.float32),
      bh.reshape(1, F).astype(jnp.float32), Wo.astype(jnp.float32),
      bo.reshape(1, OUT).astype(jnp.float32))


# ----------------------------------------------------------------------------
# Model (parameters + forward)
# ----------------------------------------------------------------------------
def init_params(key, input_dim, output_dim):
    params = {"conv": [], "hidden": None, "out": None}

    def dense(key, fan_in, fan_out):
        k1, _ = jax.random.split(key)
        scale = 1.0 / jnp.sqrt(jnp.float32(fan_in))
        w = jax.random.normal(k1, (fan_in, fan_out), jnp.float32) * scale
        b = jnp.zeros((fan_out,), jnp.float32)
        return w, b

    keys = jax.random.split(key, NUM_HERMITIAN_LAYERS + 3)
    params["conv"].append(dense(keys[0], input_dim, HIDDEN_DIM))
    for l in range(NUM_HERMITIAN_LAYERS):
        params["conv"].append(dense(keys[1 + l], HIDDEN_DIM, HIDDEN_DIM))
    params["hidden"] = dense(keys[-2], HIDDEN_DIM, HIDDEN_DIM)
    params["out"] = dense(keys[-1], HIDDEN_DIM, output_dim)
    return params


def unitary_gcn_forward(params, x, A_hat, pool_mat):
    # Layer 0 (no hermitian exponential): h = A_hat @ (x @ W0 + b0); imag = 0
    W0, b0 = params["conv"][0]
    h = first_layer(x, W0, b0, A_hat)

    # 6 hermitian layers fused into a single pallas_call.
    W_stack = jnp.stack([W for W, _ in params["conv"][1:]])                # [L,F,F]
    b_stack = jnp.stack([b.reshape(1, -1) for _, b in params["conv"][1:]]) # [L,1,F]
    h = hermitian_layers(h, A_hat, W_stack, b_stack, T_TERMS)

    # global_mean_pool over real part + ReLU(Linear) + Linear, one kernel.
    Wh, bh = params["hidden"]
    Wo, bo = params["out"]
    out = epilogue(pool_mat, h, Wh, bh, Wo, bo)
    return jnp.squeeze(out)


# ----------------------------------------------------------------------------
# Example graph construction + run
# ----------------------------------------------------------------------------
def build_example(key, num_graphs, nodes_per_graph, input_dim):
    n = num_graphs * nodes_per_graph
    k_x, k_a = jax.random.split(key)

    x = jax.random.normal(k_x, (n, input_dim), jnp.float32)
    batch = jnp.repeat(jnp.arange(num_graphs), nodes_per_graph)

    # Random undirected adjacency, block-diagonal per graph, self loops added,
    # symmetrically normalized: A_hat = D^{-1/2} (A + I) D^{-1/2}
    same_graph = (batch[:, None] == batch[None, :]).astype(jnp.float32)
    rnd = jax.random.uniform(k_a, (n, n))
    a = (rnd < 0.3).astype(jnp.float32)
    a = jnp.maximum(a, a.T) * same_graph
    a = a * (1.0 - jnp.eye(n)) + jnp.eye(n)
    deg = jnp.sum(a, axis=1)
    d_inv_sqrt = 1.0 / jnp.sqrt(deg)
    A_hat = a * d_inv_sqrt[:, None] * d_inv_sqrt[None, :]

    # Pooling matrix for global_mean_pool
    onehot = (batch[None, :] == jnp.arange(num_graphs)[:, None]).astype(jnp.float32)
    counts = jnp.sum(onehot, axis=1, keepdims=True)
    pool_mat = onehot / counts

    return x, A_hat, pool_mat


if __name__ == "__main__":
    INPUT_DIM = 16
    OUTPUT_DIM = 8
    NUM_GRAPHS = 4
    NODES_PER_GRAPH = 16  # total N = 64 nodes

    root = jax.random.PRNGKey(0)
    k_params, k_data = jax.random.split(root)

    params = init_params(k_params, INPUT_DIM, OUTPUT_DIM)
    x, A_hat, pool_mat = build_example(k_data, NUM_GRAPHS, NODES_PER_GRAPH, INPUT_DIM)

    fwd = jax.jit(lambda p, xx, aa, pp: unitary_gcn_forward(p, xx, aa, pp))
    out = fwd(params, x, A_hat, pool_mat)
    jax.block_until_ready(out)

    assert out.shape == (NUM_GRAPHS, OUTPUT_DIM)
    assert jnp.all(jnp.isfinite(out))
    print("KERNEL_OK")
</pallas_src>

<mosaic_0001>
module attributes {stable_mosaic.version = 11 : i64} {
  func.func @_first_layer_kernel(%arg0: i32, %arg1: memref<64x16xf32, #tpu.memory_space<vmem>>, %arg2: memref<16x256xf32, #tpu.memory_space<vmem>>, %arg3: memref<1x256xf32, #tpu.memory_space<vmem>>, %arg4: memref<64x64xf32, #tpu.memory_space<vmem>>, %arg5: memref<64x512xf32, #tpu.memory_space<vmem>>) attributes {dimension_semantics = [#tpu.dimension_semantics<arbitrary>], iteration_bounds = array<i64: 1>, scalar_prefetch = 0 : i64, scratch_operands = 0 : i64, tpu.core_type = #tpu.core_type<tc>, window_params = [{pipeline_mode = #tpu.pipeline_mode<synchronous>, transform_indices = @transform_0, window_bounds = array<i64: 64, 16>}, {pipeline_mode = #tpu.pipeline_mode<synchronous>, transform_indices = @transform_1, window_bounds = array<i64: 16, 256>}, {pipeline_mode = #tpu.pipeline_mode<synchronous>, transform_indices = @transform_2, window_bounds = array<i64: 1, 256>}, {pipeline_mode = #tpu.pipeline_mode<synchronous>, transform_indices = @transform_3, window_bounds = array<i64: 64, 64>}, {pipeline_mode = #tpu.pipeline_mode<synchronous>, transform_indices = @transform_4, window_bounds = array<i64: 64, 512>}]} {
    %c0 = arith.constant 0 : index
    %c0_0 = arith.constant 0 : index
    %0 = vector.load %arg1[%c0, %c0_0] : memref<64x16xf32, #tpu.memory_space<vmem>>, vector<64x16xf32>
    %1 = arith.truncf %0 : vector<64x16xf32> to vector<64x16xbf16>
    %c0_1 = arith.constant 0 : index
    %c0_2 = arith.constant 0 : index
    %2 = vector.load %arg2[%c0_1, %c0_2] : memref<16x256xf32, #tpu.memory_space<vmem>>, vector<16x256xf32>
    %3 = arith.truncf %2 : vector<16x256xf32> to vector<16x256xbf16>
    %cst = arith.constant dense<0.000000e+00> : vector<64x256xf32>
    %4 = tpu.matmul %1, %3, %cst {dimension_numbers = #tpu.dot_dimension_numbers<[1], [0], [0], [1], [0, 0, 1, 1], [], []>} : vector<64x16xbf16>, vector<16x256xbf16>, vector<64x256xf32> -> vector<64x256xf32>
    %c0_3 = arith.constant 0 : index
    %c0_4 = arith.constant 0 : index
    %5 = vector.load %arg3[%c0_3, %c0_4] : memref<1x256xf32, #tpu.memory_space<vmem>>, vector<1x256xf32>
    %6 = vector.broadcast %5 : vector<1x256xf32> to vector<64x256xf32>
    %7 = arith.addf %4, %6 : vector<64x256xf32>
    %c0_5 = arith.constant 0 : index
    %c0_6 = arith.constant 0 : index
    %8 = vector.load %arg4[%c0_5, %c0_6] : memref<64x64xf32, #tpu.memory_space<vmem>>, vector<64x64xf32>
    %9 = arith.truncf %8 : vector<64x64xf32> to vector<64x64xbf16>
    %10 = arith.truncf %7 : vector<64x256xf32> to vector<64x256xbf16>
    %cst_7 = arith.constant dense<0.000000e+00> : vector<64x256xf32>
    %11 = tpu.matmul %9, %10, %cst_7 {dimension_numbers = #tpu.dot_dimension_numbers<[1], [0], [0], [1], [0, 0, 1, 1], [], []>} : vector<64x64xbf16>, vector<64x256xbf16>, vector<64x256xf32> -> vector<64x256xf32>
    %cst_8 = arith.constant 0.000000e+00 : f32
    %12 = vector.broadcast %cst_8 : f32 to vector<64x256xf32>
    %13 = tpu.concatenate %11, %12 in 1 : vector<64x256xf32>, vector<64x256xf32> -> vector<64x512xf32>
    %c0_9 = arith.constant 0 : index
    %c0_10 = arith.constant 0 : index
    %14 = vector.load %arg5[%c0_9, %c0_10] : memref<64x512xf32, #tpu.memory_space<vmem>>, vector<64x512xf32>
    tpu.vector_store %arg5[%c0_9, %c0_10], %13 {strides = array<i32>} : memref<64x512xf32, #tpu.memory_space<vmem>>, vector<64x512xf32>,
    return
  }
  func.func @transform_0(%arg0: i32) -> (i32, i32) {
    %c0_i32 = arith.constant 0 : i32
    %c0_i32_0 = arith.constant 0 : i32
    %c0_i32_1 = arith.constant 0 : i32
    return %c0_i32, %c0_i32_0 : i32, i32
  }
  func.func @transform_1(%arg0: i32) -> (i32, i32) {
    %c0_i32 = arith.constant 0 : i32
    %c0_i32_0 = arith.constant 0 : i32
    %c0_i32_1 = arith.constant 0 : i32
    return %c0_i32, %c0_i32_0 : i32, i32
  }
  func.func @transform_2(%arg0: i32) -> (i32, i32) {
    %c0_i32 = arith.constant 0 : i32
    %c0_i32_0 = arith.constant 0 : i32
    %c0_i32_1 = arith.constant 0 : i32
    return %c0_i32, %c0_i32_0 : i32, i32
  }
  func.func @transform_3(%arg0: i32) -> (i32, i32) {
    %c0_i32 = arith.constant 0 : i32
    %c0_i32_0 = arith.constant 0 : i32
    %c0_i32_1 = arith.constant 0 : i32
    return %c0_i32, %c0_i32_0 : i32, i32
  }
  func.func @transform_4(%arg0: i32) -> (i32, i32) {
    %c0_i32 = arith.constant 0 : i32
    %c0_i32_0 = arith.constant 0 : i32
    %c0_i32_1 = arith.constant 0 : i32
    return %c0_i32, %c0_i32_0 : i32, i32
  }
}

module attributes {stable_mosaic.version = 11 : i64} {
  func.func @_epilogue_kernel(%arg0: i32, %arg1: memref<4x64xf32, #tpu.memory_space<vmem>>, %arg2: memref<64x512xf32, #tpu.memory_space<vmem>>, %arg3: memref<256x256xf32, #tpu.memory_space<vmem>>, %arg4: memref<1x256xf32, #tpu.memory_space<vmem>>, %arg5: memref<256x8xf32, #tpu.memory_space<vmem>>, %arg6: memref<1x8xf32, #tpu.memory_space<vmem>>, %arg7: memref<4x8xf32, #tpu.memory_space<vmem>>) attributes {dimension_semantics = [#tpu.dimension_semantics<arbitrary>], iteration_bounds = array<i64: 1>, scalar_prefetch = 0 : i64, scratch_operands = 0 : i64, tpu.core_type = #tpu.core_type<tc>, window_params = [{pipeline_mode = #tpu.pipeline_mode<synchronous>, transform_indices = @transform_0, window_bounds = array<i64: 4, 64>}, {pipeline_mode = #tpu.pipeline_mode<synchronous>, transform_indices = @transform_1, window_bounds = array<i64: 64, 512>}, {pipeline_mode = #tpu.pipeline_mode<synchronous>, transform_indices = @transform_2, window_bounds = array<i64: 256, 256>}, {pipeline_mode = #tpu.pipeline_mode<synchronous>, transform_indices = @transform_3, window_bounds = array<i64: 1, 256>}, {pipeline_mode = #tpu.pipeline_mode<synchronous>, transform_indices = @transform_4, window_bounds = array<i64: 256, 8>}, {pipeline_mode = #tpu.pipeline_mode<synchronous>, transform_indices = @transform_5, window_bounds = array<i64: 1, 8>}, {pipeline_mode = #tpu.pipeline_mode<synchronous>, transform_indices = @transform_6, window_bounds = array<i64: 4, 8>}]} {
    %c0 = arith.constant 0 : index
    %c0_0 = arith.constant 0 : index
    %0 = vector.load %arg2[%c0, %c0_0] : memref<64x512xf32, #tpu.memory_space<vmem>>, vector<64x256xf32>
    %c0_1 = arith.constant 0 : index
    %c0_2 = arith.constant 0 : index
    %1 = vector.load %arg1[%c0_1, %c0_2] : memref<4x64xf32, #tpu.memory_space<vmem>>, vector<4x64xf32>
    %cst = arith.constant dense<0.000000e+00> : vector<4x256xf32>
    %2 = tpu.matmul %1, %0, %cst {dimension_numbers = #tpu.dot_dimension_numbers<[1], [0], [0], [1], [0, 0, 1, 1], [], []>} : vector<4x64xf32>, vector<64x256xf32>, vector<4x256xf32> -> vector<4x256xf32>
    %c0_3 = arith.constant 0 : index
    %c0_4 = arith.constant 0 : index
    %3 = vector.load %arg3[%c0_3, %c0_4] : memref<256x256xf32, #tpu.memory_space<vmem>>, vector<256x256xf32>
    %cst_5 = arith.constant dense<0.000000e+00> : vector<4x256xf32>
    %4 = tpu.matmul %2, %3, %cst_5 {dimension_numbers = #tpu.dot_dimension_numbers<[1], [0], [0], [1], [0, 0, 1, 1], [], []>} : vector<4x256xf32>, vector<256x256xf32>, vector<4x256xf32> -> vector<4x256xf32>
    %c0_6 = arith.constant 0 : index
    %c0_7 = arith.constant 0 : index
    %5 = vector.load %arg4[%c0_6, %c0_7] : memref<1x256xf32, #tpu.memory_space<vmem>>, vector<1x256xf32>
    %6 = vector.broadcast %5 : vector<1x256xf32> to vector<4x256xf32>
    %7 = arith.addf %4, %6 : vector<4x256xf32>
    %cst_8 = arith.constant 0.000000e+00 : f32
    %8 = vector.broadcast %cst_8 : f32 to vector<4x256xf32>
    %9 = arith.maximumf %7, %8 : vector<4x256xf32>
    %c0_9 = arith.constant 0 : index
    %c0_10 = arith.constant 0 : index
    %10 = vector.load %arg5[%c0_9, %c0_10] : memref<256x8xf32, #tpu.memory_space<vmem>>, vector<256x8xf32>
    %cst_11 = arith.constant dense<0.000000e+00> : vector<4x8xf32>
    %11 = tpu.matmul %9, %10, %cst_11 {dimension_numbers = #tpu.dot_dimension_numbers<[1], [0], [0], [1], [0, 0, 1, 1], [], []>} : vector<4x256xf32>, vector<256x8xf32>, vector<4x8xf32> -> vector<4x8xf32>
    %c0_12 = arith.constant 0 : index
    %c0_13 = arith.constant 0 : index
    %12 = vector.load %arg6[%c0_12, %c0_13] : memref<1x8xf32, #tpu.memory_space<vmem>>, vector<1x8xf32>
    %13 = vector.broadcast %12 : vector<1x8xf32> to vector<4x8xf32>
    %14 = arith.addf %11, %13 : vector<4x8xf32>
    %c0_14 = arith.constant 0 : index
    %c0_15 = arith.constant 0 : index
    %15 = vector.load %arg7[%c0_14, %c0_15] : memref<4x8xf32, #tpu.memory_space<vmem>>, vector<4x8xf32>
    tpu.vector_store %arg7[%c0_14, %c0_15], %14 {strides = array<i32>} : memref<4x8xf32, #tpu.memory_space<vmem>>, vector<4x8xf32>,
    return
  }
  func.func @transform_0(%arg0: i32) -> (i32, i32) {
    %c0_i32 = arith.constant 0 : i32
    %c0_i32_0 = arith.constant 0 : i32
    %c0_i32_1 = arith.constant 0 : i32
    return %c0_i32, %c0_i32_0 : i32, i32
  }
  func.func @transform_1(%arg0: i32) -> (i32, i32) {
    %c0_i32 = arith.constant 0 : i32
    %c0_i32_0 = arith.constant 0 : i32
    %c0_i32_1 = arith.constant 0 : i32
    return %c0_i32, %c0_i32_0 : i32, i32
  }
  func.func @transform_2(%arg0: i32) -> (i32, i32) {
    %c0_i32 = arith.constant 0 : i32
    %c0_i32_0 = arith.constant 0 : i32
    %c0_i32_1 = arith.constant 0 : i32
    return %c0_i32, %c0_i32_0 : i32, i32
  }
  func.func @transform_3(%arg0: i32) -> (i32, i32) {
    %c0_i32 = arith.constant 0 : i32
    %c0_i32_0 = arith.constant 0 : i32
    %c0_i32_1 = arith.constant 0 : i32
    return %c0_i32, %c0_i32_0 : i32, i32
  }
  func.func @transform_4(%arg0: i32) -> (i32, i32) {
    %c0_i32 = arith.constant 0 : i32
    %c0_i32_0 = arith.constant 0 : i32
    %c0_i32_1 = arith.constant 0 : i32
    return %c0_i32, %c0_i32_0 : i32, i32
  }
  func.func @transform_5(%arg0: i32) -> (i32, i32) {
    %c0_i32 = arith.constant 0 : i32
    %c0_i32_0 = arith.constant 0 : i32
    %c0_i32_1 = arith.constant 0 : i32
    return %c0_i32, %c0_i32_0 : i32, i32
  }
  func.func @transform_6(%arg0: i32) -> (i32, i32) {
    %c0_i32 = arith.constant 0 : i32
    %c0_i32_0 = arith.constant 0 : i32
    %c0_i32_1 = arith.constant 0 : i32
    return %c0_i32, %c0_i32_0 : i32, i32
  }
}

module attributes {stable_mosaic.version = 11 : i64} {
  func.func @_hermitian_stack_kernel(%arg0: i32, %arg1: memref<64x512xf32, #tpu.memory_space<vmem>>, %arg2: memref<64x64xf32, #tpu.memory_space<vmem>>, %arg3: memref<1x256x256xf32, #tpu.memory_space<vmem>>, %arg4: memref<1x1x256xf32, #tpu.memory_space<vmem>>, %arg5: memref<64x512xf32, #tpu.memory_space<vmem>>, %arg6: memref<64x512xf32, #tpu.memory_space<vmem>>) attributes {dimension_semantics = [#tpu.dimension_semantics<arbitrary>], iteration_bounds = array<i64: 6>, scalar_prefetch = 0 : i64, scratch_operands = 1 : i64, tpu.core_type = #tpu.core_type<tc>, window_params = [{pipeline_mode = #tpu.pipeline_mode<synchronous>, transform_indices = @transform_0, window_bounds = array<i64: 64, 512>}, {pipeline_mode = #tpu.pipeline_mode<synchronous>, transform_indices = @transform_1, window_bounds = array<i64: 64, 64>}, {transform_indices = @transform_2, window_bounds = array<i64: 1, 256, 256>}, {transform_indices = @transform_3, window_bounds = array<i64: 1, 1, 256>}, {pipeline_mode = #tpu.pipeline_mode<synchronous>, transform_indices = @transform_4, window_bounds = array<i64: 64, 512>}]} {
    %c0_i32 = arith.constant 0 : i32
    %0 = arith.cmpi eq, %arg0, %c0_i32 : i32
    %1 = arith.extui %0 : i1 to i32
    %c0_i32_0 = arith.constant 0 : i32
    %2 = arith.cmpi ne, %1, %c0_i32_0 : i32
    scf.if %2 {
      %c0_70 = arith.constant 0 : index
      %c0_71 = arith.constant 0 : index
      %215 = vector.load %arg1[%c0_70, %c0_71] : memref<64x512xf32, #tpu.memory_space<vmem>>, vector<64x512xf32>
      %c0_72 = arith.constant 0 : index
      %c0_73 = arith.constant 0 : index
      %216 = vector.load %arg6[%c0_72, %c0_73] : memref<64x512xf32, #tpu.memory_space<vmem>>, vector<64x512xf32>
      tpu.vector_store %arg6[%c0_72, %c0_73], %215 {strides = array<i32>} : memref<64x512xf32, #tpu.memory_space<vmem>>, vector<64x512xf32>,
    } else {
    }
    %c0 = arith.constant 0 : index
    %c0_1 = arith.constant 0 : index
    %3 = vector.load %arg6[%c0, %c0_1] : memref<64x512xf32, #tpu.memory_space<vmem>>, vector<64x512xf32>
    %c0_2 = arith.constant 0 : index
    %c0_3 = arith.constant 0 : index
    %4 = vector.load %arg2[%c0_2, %c0_3] : memref<64x64xf32, #tpu.memory_space<vmem>>, vector<64x64xf32>
    %5 = arith.truncf %4 : vector<64x64xf32> to vector<64x64xbf16>
    %c0_4 = arith.constant 0 : index
    %c0_5 = arith.constant 0 : index
    %c0_6 = arith.constant 0 : index
    %6 = vector.load %arg3[%c0_4, %c0_5, %c0_6] : memref<1x256x256xf32, #tpu.memory_space<vmem>>, vector<1x256x256xf32>
    %7 = vector.shape_cast %6 : vector<1x256x256xf32> to vector<256x256xf32>
    %8 = arith.truncf %7 : vector<256x256xf32> to vector<256x256xbf16>
    %c0_7 = arith.constant 0 : index
    %c0_8 = arith.constant 0 : index
    %c0_9 = arith.constant 0 : index
    %9 = vector.load %arg4[%c0_7, %c0_8, %c0_9] : memref<1x1x256xf32, #tpu.memory_space<vmem>>, vector<1x1x256xf32>
    %10 = vector.shape_cast %9 : vector<1x1x256xf32> to vector<1x256xf32>
    %11 = vector.extract_strided_slice %3 {offsets = [0, 0], sizes = [64, 256], strides = [1, 1]} : vector<64x512xf32> to vector<64x256xf32>
    %12 = vector.extract_strided_slice %3 {offsets = [0, 256], sizes = [64, 256], strides = [1, 1]} : vector<64x512xf32> to vector<64x256xf32>
    %13 = tpu.concatenate %11, %12 in 0 : vector<64x256xf32>, vector<64x256xf32> -> vector<128x256xf32>
    %14 = arith.truncf %13 : vector<128x256xf32> to vector<128x256xbf16>
    %cst = arith.constant dense<0.000000e+00> : vector<128x256xf32>
    %15 = tpu.matmul %14, %8, %cst {dimension_numbers = #tpu.dot_dimension_numbers<[1], [0], [0], [1], [0, 0, 1, 1], [], []>} : vector<128x256xbf16>, vector<256x256xbf16>, vector<128x256xf32> -> vector<128x256xf32>
    %16 = vector.extract_strided_slice %15 {offsets = [0, 0], sizes = [64, 256], strides = [1, 1]} : vector<128x256xf32> to vector<64x256xf32>
    %17 = vector.broadcast %10 : vector<1x256xf32> to vector<64x256xf32>
    %18 = arith.addf %16, %17 : vector<64x256xf32>
    %19 = vector.extract_strided_slice %15 {offsets = [64, 0], sizes = [64, 256], strides = [1, 1]} : vector<128x256xf32> to vector<64x256xf32>
    %20 = tpu.concatenate %18, %19 in 1 : vector<64x256xf32>, vector<64x256xf32> -> vector<64x512xf32>
    %21 = arith.truncf %20 : vector<64x512xf32> to vector<64x512xbf16>
    %cst_10 = arith.constant dense<0.000000e+00> : vector<64x512xf32>
    %22 = tpu.matmul %5, %21, %cst_10 {dimension_numbers = #tpu.dot_dimension_numbers<[1], [0], [0], [1], [0, 0, 1, 1], [], []>} : vector<64x64xbf16>, vector<64x512xbf16>, vector<64x512xf32> -> vector<64x512xf32>
    %23 = vector.extract_strided_slice %22 {offsets = [0, 256], sizes = [64, 256], strides = [1, 1]} : vector<64x512xf32> to vector<64x256xf32>
    %cst_11 = arith.constant -1.000000e+00 : f32
    %24 = vector.broadcast %cst_11 : f32 to vector<64x256xf32>
    %25 = arith.mulf %23, %24 : vector<64x256xf32>
    %26 = vector.extract_strided_slice %22 {offsets = [0, 0], sizes = [64, 256], strides = [1, 1]} : vector<64x512xf32> to vector<64x256xf32>
    %cst_12 = arith.constant 1.000000e+00 : f32
    %27 = vector.broadcast %cst_12 : f32 to vector<64x256xf32>
    %28 = arith.mulf %26, %27 : vector<64x256xf32>
    %29 = tpu.concatenate %25, %28 in 1 : vector<64x256xf32>, vector<64x256xf32> -> vector<64x512xf32>
    %30 = arith.addf %20, %29 : vector<64x512xf32>
    %31 = arith.truncf %29 : vector<64x512xf32> to vector<64x512xbf16>
    %cst_13 = arith.constant dense<0.000000e+00> : vector<64x512xf32>
    %32 = tpu.matmul %5, %31, %cst_13 {dimension_numbers = #tpu.dot_dimension_numbers<[1], [0], [0], [1], [0, 0, 1, 1], [], []>} : vector<64x64xbf16>, vector<64x512xbf16>, vector<64x512xf32> -> vector<64x512xf32>
    %33 = vector.extract_strided_slice %32 {offsets = [0, 256], sizes = [64, 256], strides = [1, 1]} : vector<64x512xf32> to vector<64x256xf32>
    %cst_14 = arith.constant -5.000000e-01 : f32
    %34 = vector.broadcast %cst_14 : f32 to vector<64x256xf32>
    %35 = arith.mulf %33, %34 : vector<64x256xf32>
    %36 = vector.extract_strided_slice %32 {offsets = [0, 0], sizes = [64, 256], strides = [1, 1]} : vector<64x512xf32> to vector<64x256xf32>
    %cst_15 = arith.constant 5.000000e-01 : f32
    %37 = vector.broadcast %cst_15 : f32 to vector<64x256xf32>
    %38 = arith.mulf %36, %37 : vector<64x256xf32>
    %39 = tpu.concatenate %35, %38 in 1 : vector<64x256xf32>, vector<64x256xf32> -> vector<64x512xf32>
    %40 = arith.addf %30, %39 : vector<64x512xf32>
    %41 = arith.truncf %39 : vector<64x512xf32> to vector<64x512xbf16>
    %cst_16 = arith.constant dense<0.000000e+00> : vector<64x512xf32>
    %42 = tpu.matmul %5, %41, %cst_16 {dimension_numbers = #tpu.dot_dimension_numbers<[1], [0], [0], [1], [0, 0, 1, 1], [], []>} : vector<64x64xbf16>, vector<64x512xbf16>, vector<64x512xf32> -> vector<64x512xf32>
    %43 = vector.extract_strided_slice %42 {offsets = [0, 256], sizes = [64, 256], strides = [1, 1]} : vector<64x512xf32> to vector<64x256xf32>
    %cst_17 = arith.constant -0.333333343 : f32
    %44 = vector.broadcast %cst_17 : f32 to vector<64x256xf32>
    %45 = arith.mulf %43, %44 : vector<64x256xf32>
    %46 = vector.extract_strided_slice %42 {offsets = [0, 0], sizes = [64, 256], strides = [1, 1]} : vector<64x512xf32> to vector<64x256xf32>
    %cst_18 = arith.constant 0.333333343 : f32
    %47 = vector.broadcast %cst_18 : f32 to vector<64x256xf32>
    %48 = arith.mulf %46, %47 : vector<64x256xf32>
    %49 = tpu.concatenate %45, %48 in 1 : vector<64x256xf32>, vector<64x256xf32> -> vector<64x512xf32>
    %50 = arith.addf %40, %49 : vector<64x512xf32>
    %51 = arith.truncf %49 : vector<64x512xf32> to vector<64x512xbf16>
    %cst_19 = arith.constant dense<0.000000e+00> : vector<64x512xf32>
    %52 = tpu.matmul %5, %51, %cst_19 {dimension_numbers = #tpu.dot_dimension_numbers<[1], [0], [0], [1], [0, 0, 1, 1], [], []>} : vector<64x64xbf16>, vector<64x512xbf16>, vector<64x512xf32> -> vector<64x512xf32>
    %53 = vector.extract_strided_slice %52 {offsets = [0, 256], sizes = [64, 256], strides = [1, 1]} : vector<64x512xf32> to vector<64x256xf32>
    %cst_20 = arith.constant -2.500000e-01 : f32
    %54 = vector.broadcast %cst_20 : f32 to vector<64x256xf32>
    %55 = arith.mulf %53, %54 : vector<64x256xf32>
    %56 = vector.extract_strided_slice %52 {offsets = [0, 0], sizes = [64, 256], strides = [1, 1]} : vector<64x512xf32> to vector<64x256xf32>
    %cst_21 = arith.constant 2.500000e-01 : f32
    %57 = vector.broadcast %cst_21 : f32 to vector<64x256xf32>
    %58 = arith.mulf %56, %57 : vector<64x256xf32>
    %59 = tpu.concatenate %55, %58 in 1 : vector<64x256xf32>, vector<64x256xf32> -> vector<64x512xf32>
    %60 = arith.addf %50, %59 : vector<64x512xf32>
    %61 = arith.truncf %59 : vector<64x512xf32> to vector<64x512xbf16>
    %cst_22 = arith.constant dense<0.000000e+00> : vector<64x512xf32>
    %62 = tpu.matmul %5, %61, %cst_22 {dimension_numbers = #tpu.dot_dimension_numbers<[1], [0], [0], [1], [0, 0, 1, 1], [], []>} : vector<64x64xbf16>, vector<64x512xbf16>, vector<64x512xf32> -> vector<64x512xf32>
    %63 = vector.extract_strided_slice %62 {offsets = [0, 256], sizes = [64, 256], strides = [1, 1]} : vector<64x512xf32> to vector<64x256xf32>
    %cst_23 = arith.constant -2.000000e-01 : f32
    %64 = vector.broadcast %cst_23 : f32 to vector<64x256xf32>
    %65 = arith.mulf %63, %64 : vector<64x256xf32>
    %66 = vector.extract_strided_slice %62 {offsets = [0, 0], sizes = [64, 256], strides = [1, 1]} : vector<64x512xf32> to vector<64x256xf32>
    %cst_24 = arith.constant 2.000000e-01 : f32
    %67 = vector.broadcast %cst_24 : f32 to vector<64x256xf32>
    %68 = arith.mulf %66, %67 : vector<64x256xf32>
    %69 = tpu.concatenate %65, %68 in 1 : vector<64x256xf32>, vector<64x256xf32> -> vector<64x512xf32>
    %70 = arith.addf %60, %69 : vector<64x512xf32>
    %71 = arith.truncf %69 : vector<64x512xf32> to vector<64x512xbf16>
    %cst_25 = arith.constant dense<0.000000e+00> : vector<64x512xf32>
    %72 = tpu.matmul %5, %71, %cst_25 {dimension_numbers = #tpu.dot_dimension_numbers<[1], [0], [0], [1], [0, 0, 1, 1], [], []>} : vector<64x64xbf16>, vector<64x512xbf16>, vector<64x512xf32> -> vector<64x512xf32>
    %73 = vector.extract_strided_slice %72 {offsets = [0, 256], sizes = [64, 256], strides = [1, 1]} : vector<64x512xf32> to vector<64x256xf32>
    %cst_26 = arith.constant -0.166666672 : f32
    %74 = vector.broadcast %cst_26 : f32 to vector<64x256xf32>
    %75 = arith.mulf %73, %74 : vector<64x256xf32>
    %76 = vector.extract_strided_slice %72 {offsets = [0, 0], sizes = [64, 256], strides = [1, 1]} : vector<64x512xf32> to vector<64x256xf32>
    %cst_27 = arith.constant 0.166666672 : f32
    %77 = vector.broadcast %cst_27 : f32 to vector<64x256xf32>
    %78 = arith.mulf %76, %77 : vector<64x256xf32>
    %79 = tpu.concatenate %75, %78 in 1 : vector<64x256xf32>, vector<64x256xf32> -> vector<64x512xf32>
    %80 = arith.addf %70, %79 : vector<64x512xf32>
    %81 = arith.truncf %79 : vector<64x512xf32> to vector<64x512xbf16>
    %cst_28 = arith.constant dense<0.000000e+00> : vector<64x512xf32>
    %82 = tpu.matmul %5, %81, %cst_28 {dimension_numbers = #tpu.dot_dimension_numbers<[1], [0], [0], [1], [0, 0, 1, 1], [], []>} : vector<64x64xbf16>, vector<64x512xbf16>, vector<64x512xf32> -> vector<64x512xf32>
    %83 = vector.extract_strided_slice %82 {offsets = [0, 256], sizes = [64, 256], strides = [1, 1]} : vector<64x512xf32> to vector<64x256xf32>
    %cst_29 = arith.constant -0.142857149 : f32
    %84 = vector.broadcast %cst_29 : f32 to vector<64x256xf32>
    %85 = arith.mulf %83, %84 : vector<64x256xf32>
    %86 = vector.extract_strided_slice %82 {offsets = [0, 0], sizes = [64, 256], strides = [1, 1]} : vector<64x512xf32> to vector<64x256xf32>
    %cst_30 = arith.constant 0.142857149 : f32
    %87 = vector.broadcast %cst_30 : f32 to vector<64x256xf32>
    %88 = arith.mulf %86, %87 : vector<64x256xf32>
    %89 = tpu.concatenate %85, %88 in 1 : vector<64x256xf32>, vector<64x256xf32> -> vector<64x512xf32>
    %90 = arith.addf %80, %89 : vector<64x512xf32>
    %91 = arith.truncf %89 : vector<64x512xf32> to vector<64x512xbf16>
    %cst_31 = arith.constant dense<0.000000e+00> : vector<64x512xf32>
    %92 = tpu.matmul %5, %91, %cst_31 {dimension_numbers = #tpu.dot_dimension_numbers<[1], [0], [0], [1], [0, 0, 1, 1], [], []>} : vector<64x64xbf16>, vector<64x512xbf16>, vector<64x512xf32> -> vector<64x512xf32>
    %93 = vector.extract_strided_slice %92 {offsets = [0, 256], sizes = [64, 256], strides = [1, 1]} : vector<64x512xf32> to vector<64x256xf32>
    %cst_32 = arith.constant -1.250000e-01 : f32
    %94 = vector.broadcast %cst_32 : f32 to vector<64x256xf32>
    %95 = arith.mulf %93, %94 : vector<64x256xf32>
    %96 = vector.extract_strided_slice %92 {offsets = [0, 0], sizes = [64, 256], strides = [1, 1]} : vector<64x512xf32> to vector<64x256xf32>
    %cst_33 = arith.constant 1.250000e-01 : f32
    %97 = vector.broadcast %cst_33 : f32 to vector<64x256xf32>
    %98 = arith.mulf %96, %97 : vector<64x256xf32>
    %99 = tpu.concatenate %95, %98 in 1 : vector<64x256xf32>, vector<64x256xf32> -> vector<64x512xf32>
    %100 = arith.addf %90, %99 : vector<64x512xf32>
    %101 = arith.truncf %99 : vector<64x512xf32> to vector<64x512xbf16>
    %cst_34 = arith.constant dense<0.000000e+00> : vector<64x512xf32>
    %102 = tpu.matmul %5, %101, %cst_34 {dimension_numbers = #tpu.dot_dimension_numbers<[1], [0], [0], [1], [0, 0, 1, 1], [], []>} : vector<64x64xbf16>, vector<64x512xbf16>, vector<64x512xf32> -> vector<64x512xf32>
    %103 = vector.extract_strided_slice %102 {offsets = [0, 256], sizes = [64, 256], strides = [1, 1]} : vector<64x512xf32> to vector<64x256xf32>
    %cst_35 = arith.constant -0.111111112 : f32
    %104 = vector.broadcast %cst_35 : f32 to vector<64x256xf32>
    %105 = arith.mulf %103, %104 : vector<64x256xf32>
    %106 = vector.extract_strided_slice %102 {offsets = [0, 0], sizes = [64, 256], strides = [1, 1]} : vector<64x512xf32> to vector<64x256xf32>
    %cst_36 = arith.constant 0.111111112 : f32
    %107 = vector.broadcast %cst_36 : f32 to vector<64x256xf32>
    %108 = arith.mulf %106, %107 : vector<64x256xf32>
    %109 = tpu.concatenate %105, %108 in 1 : vector<64x256xf32>, vector<64x256xf32> -> vector<64x512xf32>
    %110 = arith.addf %100, %109 : vector<64x512xf32>
    %111 = arith.truncf %109 : vector<64x512xf32> to vector<64x512xbf16>
    %cst_37 = arith.constant dense<0.000000e+00> : vector<64x512xf32>
    %112 = tpu.matmul %5, %111, %cst_37 {dimension_numbers = #tpu.dot_dimension_numbers<[1], [0], [0], [1], [0, 0, 1, 1], [], []>} : vector<64x64xbf16>, vector<64x512xbf16>, vector<64x512xf32> -> vector<64x512xf32>
    %113 = vector.extract_strided_slice %112 {offsets = [0, 256], sizes = [64, 256], strides = [1, 1]} : vector<64x512xf32> to vector<64x256xf32>
    %cst_38 = arith.constant -1.000000e-01 : f32
    %114 = vector.broadcast %cst_38 : f32 to vector<64x256xf32>
    %115 = arith.mulf %113, %114 : vector<64x256xf32>
    %116 = vector.extract_strided_slice %112 {offsets = [0, 0], sizes = [64, 256], strides = [1, 1]} : vector<64x512xf32> to vector<64x256xf32>
    %cst_39 = arith.constant 1.000000e-01 : f32
    %117 = vector.broadcast %cst_39 : f32 to vector<64x256xf32>
    %118 = arith.mulf %116, %117 : vector<64x256xf32>
    %119 = tpu.concatenate %115, %118 in 1 : vector<64x256xf32>, vector<64x256xf32> -> vector<64x512xf32>
    %120 = arith.addf %110, %119 : vector<64x512xf32>
    %121 = arith.truncf %119 : vector<64x512xf32> to vector<64x512xbf16>
    %cst_40 = arith.constant dense<0.000000e+00> : vector<64x512xf32>
    %122 = tpu.matmul %5, %121, %cst_40 {dimension_numbers = #tpu.dot_dimension_numbers<[1], [0], [0], [1], [0, 0, 1, 1], [], []>} : vector<64x64xbf16>, vector<64x512xbf16>, vector<64x512xf32> -> vector<64x512xf32>
    %123 = vector.extract_strided_slice %122 {offsets = [0, 256], sizes = [64, 256], strides = [1, 1]} : vector<64x512xf32> to vector<64x256xf32>
    %cst_41 = arith.constant -0.0909090936 : f32
    %124 = vector.broadcast %cst_41 : f32 to vector<64x256xf32>
    %125 = arith.mulf %123, %124 : vector<64x256xf32>
    %126 = vector.extract_strided_slice %122 {offsets = [0, 0], sizes = [64, 256], strides = [1, 1]} : vector<64x512xf32> to vector<64x256xf32>
    %cst_42 = arith.constant 0.0909090936 : f32
    %127 = vector.broadcast %cst_42 : f32 to vector<64x256xf32>
    %128 = arith.mulf %126, %127 : vector<64x256xf32>
    %129 = tpu.concatenate %125, %128 in 1 : vector<64x256xf32>, vector<64x256xf32> -> vector<64x512xf32>
    %130 = arith.addf %120, %129 : vector<64x512xf32>
    %131 = arith.truncf %129 : vector<64x512xf32> to vector<64x512xbf16>
    %cst_43 = arith.constant dense<0.000000e+00> : vector<64x512xf32>
    %132 = tpu.matmul %5, %131, %cst_43 {dimension_numbers = #tpu.dot_dimension_numbers<[1], [0], [0], [1], [0, 0, 1, 1], [], []>} : vector<64x64xbf16>, vector<64x512xbf16>, vector<64x512xf32> -> vector<64x512xf32>
    %133 = vector.extract_strided_slice %132 {offsets = [0, 256], sizes = [64, 256], strides = [1, 1]} : vector<64x512xf32> to vector<64x256xf32>
    %cst_44 = arith.constant -0.0833333358 : f32
    %134 = vector.broadcast %cst_44 : f32 to vector<64x256xf32>
    %135 = arith.mulf %133, %134 : vector<64x256xf32>
    %136 = vector.extract_strided_slice %132 {offsets = [0, 0], sizes = [64, 256], strides = [1, 1]} : vector<64x512xf32> to vector<64x256xf32>
    %cst_45 = arith.constant 0.0833333358 : f32
    %137 = vector.broadcast %cst_45 : f32 to vector<64x256xf32>
    %138 = arith.mulf %136, %137 : vector<64x256xf32>
    %139 = tpu.concatenate %135, %138 in 1 : vector<64x256xf32>, vector<64x256xf32> -> vector<64x512xf32>
    %140 = arith.addf %130, %139 : vector<64x512xf32>
    %141 = arith.truncf %139 : vector<64x512xf32> to vector<64x512xbf16>
    %cst_46 = arith.constant dense<0.000000e+00> : vector<64x512xf32>
    %142 = tpu.matmul %5, %141, %cst_46 {dimension_numbers = #tpu.dot_dimension_numbers<[1], [0], [0], [1], [0, 0, 1, 1], [], []>} : vector<64x64xbf16>, vector<64x512xbf16>, vector<64x512xf32> -> vector<64x512xf32>
    %143 = vector.extract_strided_slice %142 {offsets = [0, 256], sizes = [64, 256], strides = [1, 1]} : vector<64x512xf32> to vector<64x256xf32>
    %cst_47 = arith.constant -0.0769230798 : f32
    %144 = vector.broadcast %cst_47 : f32 to vector<64x256xf32>
    %145 = arith.mulf %143, %144 : vector<64x256xf32>
    %146 = vector.extract_strided_slice %142 {offsets = [0, 0], sizes = [64, 256], strides = [1, 1]} : vector<64x512xf32> to vector<64x256xf32>
    %cst_48 = arith.constant 0.0769230798 : f32
    %147 = vector.broadcast %cst_48 : f32 to vector<64x256xf32>
    %148 = arith.mulf %146, %147 : vector<64x256xf32>
    %149 = tpu.concatenate %145, %148 in 1 : vector<64x256xf32>, vector<64x256xf32> -> vector<64x512xf32>
    %150 = arith.addf %140, %149 : vector<64x512xf32>
    %151 = arith.truncf %149 : vector<64x512xf32> to vector<64x512xbf16>
    %cst_49 = arith.constant dense<0.000000e+00> : vector<64x512xf32>
    %152 = tpu.matmul %5, %151, %cst_49 {dimension_numbers = #tpu.dot_dimension_numbers<[1], [0], [0], [1], [0, 0, 1, 1], [], []>} : vector<64x64xbf16>, vector<64x512xbf16>, vector<64x512xf32> -> vector<64x512xf32>
    %153 = vector.extract_strided_slice %152 {offsets = [0, 256], sizes = [64, 256], strides = [1, 1]} : vector<64x512xf32> to vector<64x256xf32>
    %cst_50 = arith.constant -0.0714285746 : f32
    %154 = vector.broadcast %cst_50 : f32 to vector<64x256xf32>
    %155 = arith.mulf %153, %154 : vector<64x256xf32>
    %156 = vector.extract_strided_slice %152 {offsets = [0, 0], sizes = [64, 256], strides = [1, 1]} : vector<64x512xf32> to vector<64x256xf32>
    %cst_51 = arith.constant 0.0714285746 : f32
    %157 = vector.broadcast %cst_51 : f32 to vector<64x256xf32>
    %158 = arith.mulf %156, %157 : vector<64x256xf32>
    %159 = tpu.concatenate %155, %158 in 1 : vector<64x256xf32>, vector<64x256xf32> -> vector<64x512xf32>
    %160 = arith.addf %150, %159 : vector<64x512xf32>
    %161 = arith.truncf %159 : vector<64x512xf32> to vector<64x512xbf16>
    %cst_52 = arith.constant dense<0.000000e+00> : vector<64x512xf32>
    %162 = tpu.matmul %5, %161, %cst_52 {dimension_numbers = #tpu.dot_dimension_numbers<[1], [0], [0], [1], [0, 0, 1, 1], [], []>} : vector<64x64xbf16>, vector<64x512xbf16>, vector<64x512xf32> -> vector<64x512xf32>
    %163 = vector.extract_strided_slice %162 {offsets = [0, 256], sizes = [64, 256], strides = [1, 1]} : vector<64x512xf32> to vector<64x256xf32>
    %cst_53 = arith.constant -0.0666666701 : f32
    %164 = vector.broadcast %cst_53 : f32 to vector<64x256xf32>
    %165 = arith.mulf %163, %164 : vector<64x256xf32>
    %166 = vector.extract_strided_slice %162 {offsets = [0, 0], sizes = [64, 256], strides = [1, 1]} : vector<64x512xf32> to vector<64x256xf32>
    %cst_54 = arith.constant 0.0666666701 : f32
    %167 = vector.broadcast %cst_54 : f32 to vector<64x256xf32>
    %168 = arith.mulf %166, %167 : vector<64x256xf32>
    %169 = tpu.concatenate %165, %168 in 1 : vector<64x256xf32>, vector<64x256xf32> -> vector<64x512xf32>
    %170 = arith.addf %160, %169 : vector<64x512xf32>
    %171 = arith.truncf %169 : vector<64x512xf32> to vector<64x512xbf16>
    %cst_55 = arith.constant dense<0.000000e+00> : vector<64x512xf32>
    %172 = tpu.matmul %5, %171, %cst_55 {dimension_numbers = #tpu.dot_dimension_numbers<[1], [0], [0], [1], [0, 0, 1, 1], [], []>} : vector<64x64xbf16>, vector<64x512xbf16>, vector<64x512xf32> -> vector<64x512xf32>
    %173 = vector.extract_strided_slice %172 {offsets = [0, 256], sizes = [64, 256], strides = [1, 1]} : vector<64x512xf32> to vector<64x256xf32>
    %cst_56 = arith.constant -6.250000e-02 : f32
    %174 = vector.broadcast %cst_56 : f32 to vector<64x256xf32>
    %175 = arith.mulf %173, %174 : vector<64x256xf32>
    %176 = vector.extract_strided_slice %172 {offsets = [0, 0], sizes = [64, 256], strides = [1, 1]} : vector<64x512xf32> to vector<64x256xf32>
    %cst_57 = arith.constant 6.250000e-02 : f32
    %177 = vector.broadcast %cst_57 : f32 to vector<64x256xf32>
    %178 = arith.mulf %176, %177 : vector<64x256xf32>
    %179 = tpu.concatenate %175, %178 in 1 : vector<64x256xf32>, vector<64x256xf32> -> vector<64x512xf32>
    %180 = arith.addf %170, %179 : vector<64x512xf32>
    %181 = arith.truncf %179 : vector<64x512xf32> to vector<64x512xbf16>
    %cst_58 = arith.constant dense<0.000000e+00> : vector<64x512xf32>
    %182 = tpu.matmul %5, %181, %cst_58 {dimension_numbers = #tpu.dot_dimension_numbers<[1], [0], [0], [1], [0, 0, 1, 1], [], []>} : vector<64x64xbf16>, vector<64x512xbf16>, vector<64x512xf32> -> vector<64x512xf32>
    %183 = vector.extract_strided_slice %182 {offsets = [0, 256], sizes = [64, 256], strides = [1, 1]} : vector<64x512xf32> to vector<64x256xf32>
    %cst_59 = arith.constant -0.0588235296 : f32
    %184 = vector.broadcast %cst_59 : f32 to vector<64x256xf32>
    %185 = arith.mulf %183, %184 : vector<64x256xf32>
    %186 = vector.extract_strided_slice %182 {offsets = [0, 0], sizes = [64, 256], strides = [1, 1]} : vector<64x512xf32> to vector<64x256xf32>
    %cst_60 = arith.constant 0.0588235296 : f32
    %187 = vector.broadcast %cst_60 : f32 to vector<64x256xf32>
    %188 = arith.mulf %186, %187 : vector<64x256xf32>
    %189 = tpu.concatenate %185, %188 in 1 : vector<64x256xf32>, vector<64x256xf32> -> vector<64x512xf32>
    %190 = arith.addf %180, %189 : vector<64x512xf32>
    %191 = arith.truncf %189 : vector<64x512xf32> to vector<64x512xbf16>
    %cst_61 = arith.constant dense<0.000000e+00> : vector<64x512xf32>
    %192 = tpu.matmul %5, %191, %cst_61 {dimension_numbers = #tpu.dot_dimension_numbers<[1], [0], [0], [1], [0, 0, 1, 1], [], []>} : vector<64x64xbf16>, vector<64x512xbf16>, vector<64x512xf32> -> vector<64x512xf32>
    %193 = vector.extract_strided_slice %192 {offsets = [0, 256], sizes = [64, 256], strides = [1, 1]} : vector<64x512xf32> to vector<64x256xf32>
    %cst_62 = arith.constant -0.055555556 : f32
    %194 = vector.broadcast %cst_62 : f32 to vector<64x256xf32>
    %195 = arith.mulf %193, %194 : vector<64x256xf32>
    %196 = vector.extract_strided_slice %192 {offsets = [0, 0], sizes = [64, 256], strides = [1, 1]} : vector<64x512xf32> to vector<64x256xf32>
    %cst_63 = arith.constant 0.055555556 : f32
    %197 = vector.broadcast %cst_63 : f32 to vector<64x256xf32>
    %198 = arith.mulf %196, %197 : vector<64x256xf32>
    %199 = tpu.concatenate %195, %198 in 1 : vector<64x256xf32>, vector<64x256xf32> -> vector<64x512xf32>
    %200 = arith.addf %190, %199 : vector<64x512xf32>
    %201 = arith.truncf %199 : vector<64x512xf32> to vector<64x512xbf16>
    %cst_64 = arith.constant dense<0.000000e+00> : vector<64x512xf32>
    %202 = tpu.matmul %5, %201, %cst_64 {dimension_numbers = #tpu.dot_dimension_numbers<[1], [0], [0], [1], [0, 0, 1, 1], [], []>} : vector<64x64xbf16>, vector<64x512xbf16>, vector<64x512xf32> -> vector<64x512xf32>
    %203 = vector.extract_strided_slice %202 {offsets = [0, 256], sizes = [64, 256], strides = [1, 1]} : vector<64x512xf32> to vector<64x256xf32>
    %cst_65 = arith.constant -0.0526315793 : f32
    %204 = vector.broadcast %cst_65 : f32 to vector<64x256xf32>
    %205 = arith.mulf %203, %204 : vector<64x256xf32>
    %206 = vector.extract_strided_slice %202 {offsets = [0, 0], sizes = [64, 256], strides = [1, 1]} : vector<64x512xf32> to vector<64x256xf32>
    %cst_66 = arith.constant 0.0526315793 : f32
    %207 = vector.broadcast %cst_66 : f32 to vector<64x256xf32>
    %208 = arith.mulf %206, %207 : vector<64x256xf32>
    %209 = tpu.concatenate %205, %208 in 1 : vector<64x256xf32>, vector<64x256xf32> -> vector<64x512xf32>
    %210 = arith.addf %200, %209 : vector<64x512xf32>
    %c0_67 = arith.constant 0 : index
    %c0_68 = arith.constant 0 : index
    %211 = vector.load %arg6[%c0_67, %c0_68] : memref<64x512xf32, #tpu.memory_space<vmem>>, vector<64x512xf32>
    tpu.vector_store %arg6[%c0_67, %c0_68], %210 {strides = array<i32>} : memref<64x512xf32, #tpu.memory_space<vmem>>, vector<64x512xf32>,
    %c5_i32 = arith.constant 5 : i32
    %212 = arith.cmpi eq, %arg0, %c5_i32 : i32
    %213 = arith.extui %212 : i1 to i32
    %c0_i32_69 = arith.constant 0 : i32
    %214 = arith.cmpi ne, %213, %c0_i32_69 : i32
    scf.if %214 {
      %c0_70 = arith.constant 0 : index
      %c0_71 = arith.constant 0 : index
      %215 = vector.load %arg5[%c0_70, %c0_71] : memref<64x512xf32, #tpu.memory_space<vmem>>, vector<64x512xf32>
      tpu.vector_store %arg5[%c0_70, %c0_71], %210 {strides = array<i32>} : memref<64x512xf32, #tpu.memory_space<vmem>>, vector<64x512xf32>,
    } else {
    }
    return
  }
  func.func @transform_0(%arg0: i32) -> (i32, i32) {
    %c0_i32 = arith.constant 0 : i32
    %c0_i32_0 = arith.constant 0 : i32
    %c0_i32_1 = arith.constant 0 : i32
    return %c0_i32, %c0_i32_0 : i32, i32
  }
  func.func @transform_1(%arg0: i32) -> (i32, i32) {
    %c0_i32 = arith.constant 0 : i32
    %c0_i32_0 = arith.constant 0 : i32
    %c0_i32_1 = arith.constant 0 : i32
    return %c0_i32, %c0_i32_0 : i32, i32
  }
  func.func @transform_2(%arg0: i32) -> (i32, i32, i32) {
    %c0_i32 = arith.constant 0 : i32
    %c0_i32_0 = arith.constant 0 : i32
    %c0_i32_1 = arith.constant 0 : i32
    return %arg0, %c0_i32, %c0_i32_0 : i32, i32, i32
  }
  func.func @transform_3(%arg0: i32) -> (i32, i32, i32) {
    %c0_i32 = arith.constant 0 : i32
    %c0_i32_0 = arith.constant 0 : i32
    %c0_i32_1 = arith.constant 0 : i32
    return %arg0, %c0_i32, %c0_i32_0 : i32, i32, i32
  }
  func.func @transform_4(%arg0: i32) -> (i32, i32) {
    %c0_i32 = arith.constant 0 : i32
    %c0_i32_0 = arith.constant 0 : i32
    %c0_i32_1 = arith.constant 0 : i32
    return %c0_i32, %c0_i32_0 : i32, i32
  }
}

</mosaic_0001>

<bundles_post_ra>
// kernel: _lambda_.3
= control target key start
LH: loop header
LB: loop body
LE: loop exit
PB: predicated region body
PF: predicated region fallthrough
CT: control target
= control target key end

     0   :  { %vm42_vm0 = vcmask 130048   ;;  %vm133_vm1 = vcmask 523264   ;;  %s458_s1 = inlined_call_operand.vmem [shape: f32[16,256], index: 1, kind: input, shape index: {}]   ;;  %s459_s0 = inlined_call_operand.vmem [shape: f32[64,16], index: 0, kind: input, shape index: {}]   ;;  %s460_s2 = inlined_call_operand.vmem [shape: f32[1,256], index: 2, kind: input, shape index: {}]   ;;  %s461_s3 = inlined_call_operand.vmem [shape: f32[64,64], index: 3, kind: input, shape index: {}]   ;;  %s462_s4 = inlined_call_operand.vmem [shape: f32[64,512], index: 4, kind: output, shape index: {}]  }
   0x1   :  { %v30_v0 = vld [vmem:[%s458_s1] sm:$0xff]  ;;  %v32_v1 = vld [vmem:[%s458_s1 + $0x10] sm:$0xff]  ;;  %v31_v2 = vld [vmem:[%s458_s1 + $0x8] sm:$0xff] }
   0x2   :  { %v34_v3 = vpack.c.bf16 %v32_v1, %v30_v0  ;;  %v33_v4 = vld [vmem:[%s458_s1 + $0x18] sm:$0xff]  ;;  %v18_v5 = vld [vmem:[%s459_s0] sm:$0xff]  ;;  %v19_v6 = vld [vmem:[%s459_s0 + $0x8] sm:$0xff] }
   0x3   :  { %v35_v7 = vpack.c.bf16 %v33_v4, %v31_v2  ;;  %v26_v8 = vpack.c.bf16 %v19_v6, %v18_v5  ;;  %v20_v9 = vld [vmem:[%s459_s0 + $0x10] sm:$0xff]  ;;  %v21_v10 = vld [vmem:[%s459_s0 + $0x18] sm:$0xff]  ;;  %v22_v12 = vld [vmem:[%s459_s0 + $0x20] sm:$0xff] }
   0x4   :  { %62 = vmatpush.bf16.msra.mxu0 %v34_v3  ;;  %v27_v11 = vpack.c.bf16 %v21_v10, %v20_v9  ;;  %v23_v13 = vld [vmem:[%s459_s0 + $0x28] sm:$0xff]  ;;  %v24_v15 = vld [vmem:[%s459_s0 + $0x30] sm:$0xff]  ;;  %v25_v16 = vld [vmem:[%s459_s0 + $0x38] sm:$0xff]  ;;  %v257_v9 = vmov 0.0  }
   0x5   :  { %91 = vmatpush.bf16.msra.mxu1 %v35_v7  ;;  %v28_v14 = vpack.c.bf16 %v23_v13, %v22_v12  ;;  %v29_v17 = vpack.c.bf16 %v25_v16, %v24_v15  ;;  %v36_v32 = vld [vmem:[%s460_s2] sm:$0x3]  ;;  %v114_v59 = vld [vmem:[%s461_s3 + $0x8] sm:$0xff]  ;;  %v115_v0 = vld [vmem:[%s461_s3 + $0x10] sm:$0xff]  ;;  %206 = vst [vmem:[%s462_s4 + $0x10] sm:$0xff] %v257_v9 }
   0x6   :  { %v38_v33 = vperm.slane %v36_v32, 0  ;;  %v39_v34 = vperm.slane %v36_v32, 1  ;;  %v113_v58 = vld [vmem:[%s461_s3] sm:$0xff]  ;;  %v116_v1 = vld [vmem:[%s461_s3 + $0x18] sm:$0xff]  ;;  %v118_v4 = vld [vmem:[%s461_s3 + $0x28] sm:$0xff]  ;;  %207 = vst [vmem:[%s462_s4 + $0x18] sm:$0xff] %v257_v9 }
   0x7   :  { %240 = vmatmul.msk.bf16.vlgmr.msra.gmra.mxu0 %vm42_vm0, %v26_v8  ;;  %v121_v63 = vpack.c.bf16 %v114_v59, %v113_v58  ;;  %v122_v2 = vpack.c.bf16 %v116_v1, %v115_v0  ;;  %v117_v3 = vld [vmem:[%s461_s3 + $0x20] sm:$0xff]  ;;  %v119_v6 = vld [vmem:[%s461_s3 + $0x30] sm:$0xff]  ;;  %v120_v7 = vld [vmem:[%s461_s3 + $0x38] sm:$0xff]  ;;  %210 = vst [vmem:[%s462_s4 + $0x30] sm:$0xff] %v257_v9 }
   0x8   :  { %244 = vmatmul.msk.bf16.vlgmr.msra.gmra.mxu1 %vm42_vm0, %v26_v8  ;;  %v123_v5 = vpack.c.bf16 %v118_v4, %v117_v3  ;;  %v124_v8 = vpack.c.bf16 %v120_v7, %v119_v6  ;;  %211 = vst [vmem:[%s462_s4 + $0x38] sm:$0xff] %v257_v9 }
   0x9   :  { %214 = vst [vmem:[%s462_s4 + $0x50] sm:$0xff] %v257_v9 }
   0xa   :  { %215 = vst [vmem:[%s462_s4 + $0x58] sm:$0xff] %v257_v9 }
   0xb   :  { %218 = vst [vmem:[%s462_s4 + $0x70] sm:$0xff] %v257_v9 }
   0xc   :  { %219 = vst [vmem:[%s462_s4 + $0x78] sm:$0xff] %v257_v9 }
   0xd   :  { %222 = vst [vmem:[%s462_s4 + $0x90] sm:$0xff] %v257_v9 }
   0xe   :  { %223 = vst [vmem:[%s462_s4 + $0x98] sm:$0xff] %v257_v9 }
   0xf   :  { %226 = vst [vmem:[%s462_s4 + $0xb0] sm:$0xff] %v257_v9 }
  0x10   :  { %227 = vst [vmem:[%s462_s4 + $0xb8] sm:$0xff] %v257_v9 }
  0x11   :  { %230 = vst [vmem:[%s462_s4 + $0xd0] sm:$0xff] %v257_v9 }
  0x12   :  { %231 = vst [vmem:[%s462_s4 + $0xd8] sm:$0xff] %v257_v9 }
  0x13   :  { %234 = vst [vmem:[%s462_s4 + $0xf0] sm:$0xff] %v257_v9 }
  0x14   :  { %235 = vst [vmem:[%s462_s4 + $0xf8] sm:$0xff] %v257_v9 }
  0x17   :  { %241 = vmatmul.msk.bf16.gmra.mxu0 %vm42_vm0, %v27_v11 }
  0x18   :  { %245 = vmatmul.msk.bf16.gmra.mxu1 %vm42_vm0, %v27_v11 }
  0x27   :  { %242 = vmatmul.msk.bf16.gmra.mxu0 %vm42_vm0, %v28_v14 }
  0x28   :  { %246 = vmatmul.msk.bf16.gmra.mxu1 %vm42_vm0, %v28_v14 }
  0x37   :  { %243 = vmatmul.msk.bf16.gmra.mxu0 %vm42_vm0, %v29_v17 }
  0x38   :  { %247 = vmatmul.msk.bf16.gmra.mxu1 %vm42_vm0, %v29_v17 }
  0x84   :  { %v64_v18 = vpop.f32.mrf.mxu0 }
  0x85   :  { %v93_v19 = vpop.f32.mrf.mxu1  ;;  %v65_v57 = vadd.f32 %v64_v18, %v38_v33 }
  0x86   :  { %v94_v60 = vadd.f32 %v93_v19, %v39_v34 }
  0x8c   :  { %v66_v20 = vpop.f32.mrf.mxu0 }
  0x8d   :  { %v95_v21 = vpop.f32.mrf.mxu1  ;;  %v67_v53 = vadd.f32 %v66_v20, %v38_v33 }
  0x8e   :  { %v96_v55 = vadd.f32 %v95_v21, %v39_v34 }
  0x8f   :  { %v125_v61 = vpack.c.bf16 %v67_v53, %v65_v57 }
  0x90   :  { %v126_v62 = vpack.c.bf16 %v96_v55, %v94_v60 }
  0x94   :  { %v69_v22 = vpop.f32.mrf.mxu0 }
  0x95   :  { %v98_v23 = vpop.f32.mrf.mxu1  ;;  %v70_v51 = vadd.f32 %v69_v22, %v38_v33 }
  0x96   :  { %v99_v52 = vadd.f32 %v98_v23, %v39_v34 }
  0x9c   :  { %v71_v24 = vpop.f32.mrf.mxu0 }
  0x9d   :  { %v100_v25 = vpop.f32.mrf.mxu1  ;;  %v72_v47 = vadd.f32 %v71_v24, %v38_v33 }
  0x9e   :  { %v101_v49 = vadd.f32 %v100_v25, %v39_v34 }
  0x9f   :  { %v127_v54 = vpack.c.bf16 %v72_v47, %v70_v51 }
  0xa0   :  { %v128_v56 = vpack.c.bf16 %v101_v49, %v99_v52 }
  0xa4   :  { %v74_v26 = vpop.f32.mrf.mxu0 }
  0xa5   :  { %v103_v27 = vpop.f32.mrf.mxu1  ;;  %v75_v45 = vadd.f32 %v74_v26, %v38_v33 }
  0xa6   :  { %v104_v46 = vadd.f32 %v103_v27, %v39_v34 }
  0xac   :  { %v76_v28 = vpop.f32.mrf.mxu0 }
  0xad   :  { %v105_v29 = vpop.f32.mrf.mxu1  ;;  %v77_v41 = vadd.f32 %v76_v28, %v38_v33 }
  0xae   :  { %v106_v43 = vadd.f32 %v105_v29, %v39_v34 }
  0xaf   :  { %v129_v48 = vpack.c.bf16 %v77_v41, %v75_v45 }
  0xb0   :  { %v130_v50 = vpack.c.bf16 %v106_v43, %v104_v46 }
  0xb4   :  { %v79_v30 = vpop.f32.mrf.mxu0 }
  0xb5   :  { %v108_v31 = vpop.f32.mrf.mxu1  ;;  %v80_v36 = vadd.f32 %v79_v30, %v38_v33 }
  0xb6   :  { %v109_v39 = vadd.f32 %v108_v31, %v39_v34 }
  0xbc   :  { %v81_v35 = vpop.f32.mrf.mxu0 }
  0xbd   :  { %v82_v37 = vadd.f32 %v81_v35, %v38_v33  ;;  %v110_v38 = vpop.f32.mrf.mxu1 }
  0xbe   :  { %v111_v40 = vadd.f32 %v110_v38, %v39_v34 }
  0xbf   :  { %v131_v42 = vpack.c.bf16 %v82_v37, %v80_v36 }
  0xc0   :  { %v132_v44 = vpack.c.bf16 %v111_v40, %v109_v39 }
  0xc1   :  { %150 = vmatpush.bf16.msra.mxu2 %v131_v42 }
  0xc2   :  { %179 = vmatpush.bf16.msra.mxu3 %v132_v44 }
  0xc5   :  { %151 = vmatpush.bf16.msra.mxu2 %v129_v48 }
  0xc6   :  { %180 = vmatpush.bf16.msra.mxu3 %v130_v50 }
  0xc9   :  { %152 = vmatpush.bf16.msra.mxu2 %v127_v54 }
  0xca   :  { %181 = vmatpush.bf16.msra.mxu3 %v128_v56 }
  0xcd   :  { %153 = vmatpush.bf16.msra.mxu2 %v125_v61 }
  0xce   :  { %182 = vmatpush.bf16.msra.mxu3 %v126_v62 }
  0xd0   :  { %248 = vmatmul.msk.bf16.vlgmr.msra.gmra.mxu2 %vm133_vm1, %v121_v63 }
  0xd1   :  { %252 = vmatmul.msk.bf16.vlgmr.msra.gmra.mxu3 %vm133_vm1, %v121_v63 }
  0xe0   :  { %249 = vmatmul.msk.bf16.gmra.mxu2 %vm133_vm1, %v122_v2 }
  0xe1   :  { %253 = vmatmul.msk.bf16.gmra.mxu3 %vm133_vm1, %v122_v2 }
  0xf0   :  { %250 = vmatmul.msk.bf16.gmra.mxu2 %vm133_vm1, %v123_v5 }
  0xf1   :  { %254 = vmatmul.msk.bf16.gmra.mxu3 %vm133_vm1, %v123_v5 }
 0x100   :  { %251 = vmatmul.msk.bf16.gmra.mxu2 %vm133_vm1, %v124_v8 }
 0x101   :  { %255 = vmatmul.msk.bf16.gmra.mxu3 %vm133_vm1, %v124_v8 }
 0x153   :  { %v155_v10 = vpop.f32.mrf.mxu2 }
 0x154   :  { %204 = vst [vmem:[%s462_s4] sm:$0xff] %v155_v10  ;;  %v184_v11 = vpop.f32.mrf.mxu3 }
 0x155   :  { %205 = vst [vmem:[%s462_s4 + $0x8] sm:$0xff] %v184_v11 }
 0x15b   :  { %v157_v12 = vpop.f32.mrf.mxu2 }
 0x15c   :  { %208 = vst [vmem:[%s462_s4 + $0x20] sm:$0xff] %v157_v12  ;;  %v186_v13 = vpop.f32.mrf.mxu3 }
 0x15d   :  { %209 = vst [vmem:[%s462_s4 + $0x28] sm:$0xff] %v186_v13 }
 0x163   :  { %v160_v14 = vpop.f32.mrf.mxu2 }
 0x164   :  { %212 = vst [vmem:[%s462_s4 + $0x40] sm:$0xff] %v160_v14  ;;  %v189_v15 = vpop.f32.mrf.mxu3 }
 0x165   :  { %213 = vst [vmem:[%s462_s4 + $0x48] sm:$0xff] %v189_v15 }
 0x16b   :  { %v162_v16 = vpop.f32.mrf.mxu2 }
 0x16c   :  { %216 = vst [vmem:[%s462_s4 + $0x60] sm:$0xff] %v162_v16  ;;  %v191_v17 = vpop.f32.mrf.mxu3 }
 0x16d   :  { %217 = vst [vmem:[%s462_s4 + $0x68] sm:$0xff] %v191_v17 }
 0x173   :  { %v165_v18 = vpop.f32.mrf.mxu2 }
 0x174   :  { %220 = vst [vmem:[%s462_s4 + $0x80] sm:$0xff] %v165_v18  ;;  %v194_v19 = vpop.f32.mrf.mxu3 }
 0x175   :  { %221 = vst [vmem:[%s462_s4 + $0x88] sm:$0xff] %v194_v19 }
 0x17b   :  { %v167_v20 = vpop.f32.mrf.mxu2 }
 0x17c   :  { %224 = vst [vmem:[%s462_s4 + $0xa0] sm:$0xff] %v167_v20  ;;  %v196_v21 = vpop.f32.mrf.mxu3 }
 0x17d   :  { %225 = vst [vmem:[%s462_s4 + $0xa8] sm:$0xff] %v196_v21 }
 0x183   :  { %v170_v22 = vpop.f32.mrf.mxu2 }
 0x184   :  { %228 = vst [vmem:[%s462_s4 + $0xc0] sm:$0xff] %v170_v22  ;;  %v199_v23 = vpop.f32.mrf.mxu3 }
 0x185   :  { %229 = vst [vmem:[%s462_s4 + $0xc8] sm:$0xff] %v199_v23 }
 0x18b   :  { %v172_v24 = vpop.f32.mrf.mxu2 }
 0x18c   :  { %232 = vst [vmem:[%s462_s4 + $0xe0] sm:$0xff] %v172_v24  ;;  %v201_v25 = vpop.f32.mrf.mxu3 }
 0x18d   :  { %233 = vst [vmem:[%s462_s4 + $0xe8] sm:$0xff] %v201_v25 }

// kernel: _lambda_.5
= control target key start
LH: loop header
LB: loop body
LE: loop exit
PB: predicated region body
PF: predicated region fallthrough
CT: control target
= control target key end

     0   :  { %vm41_vm0 = vcmask 523264   ;;  %s745_s0 = inlined_call_operand.vmem [shape: f32[4,64], index: 0, kind: input, shape index: {}]   ;;  %s746_s1 = inlined_call_operand.vmem [shape: f32[64,512], index: 1, kind: input, shape index: {}]   ;;  %s747_s2 = inlined_call_operand.vmem [shape: f32[256,256], index: 2, kind: input, shape index: {}]   ;;  %s748_s3 = inlined_call_operand.vmem [shape: f32[1,256], index: 3, kind: input, shape index: {}]   ;;  %s749_s4 = inlined_call_operand.vmem [shape: f32[256,8], index: 4, kind: input, shape index: {}]   ;;  %s750_s5 = inlined_call_operand.vmem [shape: f32[1,8], index: 5, kind: input, shape index: {}]   ;;  %s751_s6 = inlined_call_operand.hbm [shape: f32[4,8], index: 6, kind: output, shape index: {}]  }
   0x1   :  { %v38_v0 = vld [vmem:[%s746_s1 + $0xe0] sm:$0xff]  ;;  %v39_v2 = vld [vmem:[%s746_s1 + $0xe8] sm:$0xff]  ;;  %v115_v9 = vld [vmem:[%s747_s2 + $0xf0] sm:$0xff] }
   0x2   :  { %v36_v1 = vld [vmem:[%s746_s1 + $0xc0] sm:$0xff]  ;;  %53 = vmatpush.msra.mxu0 %v38_v0  ;;  %73 = vmatpush.msra.mxu1 %v39_v2  ;;  %v37_v3 = vld [vmem:[%s746_s1 + $0xc8] sm:$0xff]  ;;  %v147_v12 = vld [vmem:[%s747_s2 + $0x1f0] sm:$0xff] }
   0x3   :  { %v34_v4 = vld [vmem:[%s746_s1 + $0xa0] sm:$0xff]  ;;  %v35_v5 = vld [vmem:[%s746_s1 + $0xa8] sm:$0xff]  ;;  %155 = vmatpush.msra.mxu2 %v115_v9  ;;  %v111_v13 = vld [vmem:[%s747_s2 + $0xd0] sm:$0xff]  ;;  %175 = vmatpush.msra.mxu3 %v147_v12 }
   0x4   :  { %54 = vmatpush.msra.mxu0 %v36_v1  ;;  %74 = vmatpush.msra.mxu1 %v37_v3  ;;  %v32_v6 = vld [vmem:[%s746_s1 + $0x80] sm:$0xff]  ;;  %v33_v7 = vld [vmem:[%s746_s1 + $0x88] sm:$0xff]  ;;  %v143_v18 = vld [vmem:[%s747_s2 + $0x1d0] sm:$0xff] }
   0x5   :  { %v30_v8 = vld [vmem:[%s746_s1 + $0x60] sm:$0xff]  ;;  %v31_v10 = vld [vmem:[%s746_s1 + $0x68] sm:$0xff]  ;;  %v107_v21 = vld [vmem:[%s747_s2 + $0xb0] sm:$0xff] }
   0x6   :  { %55 = vmatpush.msra.mxu0 %v34_v4  ;;  %75 = vmatpush.msra.mxu1 %v35_v5  ;;  %v113_v11 = vld [vmem:[%s747_s2 + $0xe0] sm:$0xff]  ;;  %v29_v15 = vld [vmem:[%s746_s1 + $0x48] sm:$0xff]  ;;  %v116_v26 = vld [vmem:[%s747_s2 + $0xf8] sm:$0xff] }
   0x7   :  { %v28_v14 = vld [vmem:[%s746_s1 + $0x40] sm:$0xff]  ;;  %156 = vmatpush.msra.mxu2 %v113_v11  ;;  %v27_v20 = vld [vmem:[%s746_s1 + $0x28] sm:$0xff]  ;;  %v148_v27 = vld [vmem:[%s747_s2 + $0x1f8] sm:$0xff] }
   0x8   :  { %56 = vmatpush.msra.mxu0 %v32_v6  ;;  %76 = vmatpush.msra.mxu1 %v33_v7  ;;  %v145_v16 = vld [vmem:[%s747_s2 + $0x1e0] sm:$0xff]  ;;  %v25_v24 = vld [vmem:[%s746_s1 + $0x8] sm:$0xff]  ;;  %v139_v29 = vld [vmem:[%s747_s2 + $0x1b0] sm:$0xff] }
   0x9   :  { %v109_v17 = vld [vmem:[%s747_s2 + $0xc0] sm:$0xff]  ;;  %157 = vmatpush.msra.mxu2 %v111_v13  ;;  %176 = vmatpush.msra.mxu3 %v145_v16  ;;  %v114_v30 = vld [vmem:[%s747_s2 + $0xe8] sm:$0xff]  ;;  %v103_v32 = vld [vmem:[%s747_s2 + $0x90] sm:$0xff] }
   0xa   :  { %57 = vmatpush.msra.mxu0 %v30_v8  ;;  %77 = vmatpush.msra.mxu1 %v31_v10  ;;  %v26_v19 = vld [vmem:[%s746_s1 + $0x20] sm:$0xff]  ;;  %v146_v31 = vld [vmem:[%s747_s2 + $0x1e8] sm:$0xff]  ;;  %v112_v34 = vld [vmem:[%s747_s2 + $0xd8] sm:$0xff] }
   0xb   :  { %v141_v22 = vld [vmem:[%s747_s2 + $0x1c0] sm:$0xff]  ;;  %158 = vmatpush.msra.mxu2 %v109_v17  ;;  %177 = vmatpush.msra.mxu3 %v143_v18  ;;  %v144_v35 = vld [vmem:[%s747_s2 + $0x1d8] sm:$0xff]  ;;  %v135_v37 = vld [vmem:[%s747_s2 + $0x190] sm:$0xff] }
   0xc   :  { %58 = vmatpush.msra.mxu0 %v28_v14  ;;  %78 = vmatpush.msra.mxu1 %v29_v15  ;;  %v24_v23 = vld [vmem:[%s746_s1] sm:$0xff]  ;;  %v110_v38 = vld [vmem:[%s747_s2 + $0xc8] sm:$0xff]  ;;  %v99_v40 = vld [vmem:[%s747_s2 + $0x70] sm:$0xff] }
   0xd   :  { %v40_v25 = vld [vmem:[%s745_s0] sm:$0xf]  ;;  %159 = vmatpush.msra.mxu2 %v107_v21  ;;  %178 = vmatpush.msra.mxu3 %v141_v22  ;;  %v142_v39 = vld [vmem:[%s747_s2 + $0x1c8] sm:$0xff]  ;;  %v108_v42 = vld [vmem:[%s747_s2 + $0xb8] sm:$0xff] }
   0xe   :  { %59 = vmatpush.msra.mxu0 %v26_v19  ;;  %79 = vmatpush.msra.mxu1 %v27_v20  ;;  %v105_v28 = vld [vmem:[%s747_s2 + $0xa0] sm:$0xff]  ;;  %v140_v43 = vld [vmem:[%s747_s2 + $0x1b8] sm:$0xff]  ;;  %v131_v45 = vld [vmem:[%s747_s2 + $0x170] sm:$0xff] }
   0xf   :  { %v137_v33 = vld [vmem:[%s747_s2 + $0x1a0] sm:$0xff]  ;;  %160 = vmatpush.msra.mxu2 %v105_v28  ;;  %179 = vmatpush.msra.mxu3 %v139_v29  ;;  %v106_v46 = vld [vmem:[%s747_s2 + $0xa8] sm:$0xff]  ;;  %v95_v48 = vld [vmem:[%s747_s2 + $0x50] sm:$0xff] }
  0x10   :  { %60 = vmatpush.msra.mxu0 %v24_v23  ;;  %80 = vmatpush.msra.mxu1 %v25_v24  ;;  %v101_v36 = vld [vmem:[%s747_s2 + $0x80] sm:$0xff]  ;;  %v138_v47 = vld [vmem:[%s747_s2 + $0x1a8] sm:$0xff] }
  0x11   :  { %331 = vmatmul.msk.f32.vlgmr.msra.gmra.mxu0 %vm41_vm0, %v40_v25  ;;  %332 = vmatmul.msk.f32.vlgmr.msra.gmra.mxu1 %vm41_vm0, %v40_v25  ;;  %v133_v41 = vld [vmem:[%s747_s2 + $0x180] sm:$0xff] }
  0x12   :  { %195 = vmatpush.msrb.mxu0 %v116_v26  ;;  %215 = vmatpush.msrb.mxu1 %v148_v27  ;;  %v97_v44 = vld [vmem:[%s747_s2 + $0x60] sm:$0xff] }
  0x13   :  { %161 = vmatpush.msra.mxu2 %v103_v32  ;;  %180 = vmatpush.msra.mxu3 %v137_v33  ;;  %v129_v49 = vld [vmem:[%s747_s2 + $0x160] sm:$0xff] }
  0x14   :  { %196 = vmatpush.msrb.mxu0 %v114_v30  ;;  %216 = vmatpush.msrb.mxu1 %v146_v31 }
  0x15   :  { %162 = vmatpush.msra.mxu2 %v101_v36  ;;  %181 = vmatpush.msra.mxu3 %v135_v37 }
  0x16   :  { %197 = vmatpush.msrb.mxu0 %v112_v34  ;;  %217 = vmatpush.msrb.mxu1 %v144_v35 }
  0x17   :  { %163 = vmatpush.msra.mxu2 %v99_v40  ;;  %182 = vmatpush.msra.mxu3 %v133_v41 }
  0x18   :  { %198 = vmatpush.msrb.mxu0 %v110_v38  ;;  %218 = vmatpush.msrb.mxu1 %v142_v39 }
  0x1a   :  { %199 = vmatpush.msrb.mxu0 %v108_v42  ;;  %219 = vmatpush.msrb.mxu1 %v140_v43 }
  0x1b   :  { %11 = vsyncpa [#allocation3], 0  ;;  %v104_v50 = vld [vmem:[%s747_s2 + $0x98] sm:$0xff]  ;;  %164 = vmatpush.msra.mxu2 %v97_v44  ;;  %183 = vmatpush.msra.mxu3 %v131_v45  ;;  %v93_v52 = vld [vmem:[%s747_s2 + $0x40] sm:$0xff]  ;;  %s322_s20 = sshll.u32 %s751_s6, 4  ;;  %vm313_vm1 = vcmask 60416   ;;  %s323_s20 = int_to_ptr.hbm [resolvable:$true] %s322_s20 }
  0x1c   :  { %v136_v51 = vld [vmem:[%s747_s2 + $0x198] sm:$0xff]  ;;  %200 = vmatpush.msrb.mxu0 %v106_v46  ;;  %220 = vmatpush.msrb.mxu1 %v138_v47  ;;  %v127_v53 = vld [vmem:[%s747_s2 + $0x150] sm:$0xff]  ;;  %v102_v54 = vld [vmem:[%s747_s2 + $0x88] sm:$0xff] }
  0x1d   :  { %v134_v55 = vld [vmem:[%s747_s2 + $0x188] sm:$0xff]  ;;  %165 = vmatpush.msra.mxu2 %v95_v48  ;;  %184 = vmatpush.msra.mxu3 %v129_v49  ;;  %v91_v56 = vld [vmem:[%s747_s2 + $0x30] sm:$0xff]  ;;  %v125_v57 = vld [vmem:[%s747_s2 + $0x140] sm:$0xff] }
  0x1e   :  { %201 = vmatpush.msrb.mxu0 %v104_v50  ;;  %221 = vmatpush.msrb.mxu1 %v136_v51  ;;  %v100_v58 = vld [vmem:[%s747_s2 + $0x78] sm:$0xff]  ;;  %v89_v60 = vld [vmem:[%s747_s2 + $0x20] sm:$0xff]  ;;  %v123_v61 = vld [vmem:[%s747_s2 + $0x130] sm:$0xff] }
  0x1f   :  { %v132_v59 = vld [vmem:[%s747_s2 + $0x178] sm:$0xff]  ;;  %166 = vmatpush.msra.mxu2 %v93_v52  ;;  %185 = vmatpush.msra.mxu3 %v127_v53  ;;  %v98_v62 = vld [vmem:[%s747_s2 + $0x68] sm:$0xff]  ;;  %v87_v0 = vld [vmem:[%s747_s2 + $0x10] sm:$0xff] }
  0x20   :  { %202 = vmatpush.msrb.mxu0 %v102_v54  ;;  %222 = vmatpush.msrb.mxu1 %v134_v55  ;;  %v130_v63 = vld [vmem:[%s747_s2 + $0x168] sm:$0xff]  ;;  %v121_v1 = vld [vmem:[%s747_s2 + $0x120] sm:$0xff]  ;;  %v96_v2 = vld [vmem:[%s747_s2 + $0x58] sm:$0xff] }
  0x21   :  { %167 = vmatpush.msra.mxu2 %v91_v56  ;;  %186 = vmatpush.msra.mxu3 %v125_v57  ;;  %v128_v3 = vld [vmem:[%s747_s2 + $0x158] sm:$0xff]  ;;  %v94_v4 = vld [vmem:[%s747_s2 + $0x48] sm:$0xff]  ;;  %v85_v11 = vld [vmem:[%s747_s2] sm:$0xff] }
  0x22   :  { %203 = vmatpush.msrb.mxu0 %v100_v58  ;;  %223 = vmatpush.msrb.mxu1 %v132_v59  ;;  %v126_v5 = vld [vmem:[%s747_s2 + $0x148] sm:$0xff]  ;;  %v92_v6 = vld [vmem:[%s747_s2 + $0x38] sm:$0xff]  ;;  %v119_v12 = vld [vmem:[%s747_s2 + $0x110] sm:$0xff] }
  0x23   :  { %168 = vmatpush.msra.mxu2 %v89_v60  ;;  %187 = vmatpush.msra.mxu3 %v123_v61  ;;  %v124_v7 = vld [vmem:[%s747_s2 + $0x138] sm:$0xff]  ;;  %v90_v8 = vld [vmem:[%s747_s2 + $0x28] sm:$0xff]  ;;  %v117_v15 = vld [vmem:[%s747_s2 + $0x100] sm:$0xff] }
  0x24   :  { %204 = vmatpush.msrb.mxu0 %v98_v62  ;;  %224 = vmatpush.msrb.mxu1 %v130_v63  ;;  %v122_v9 = vld [vmem:[%s747_s2 + $0x128] sm:$0xff]  ;;  %v88_v10 = vld [vmem:[%s747_s2 + $0x18] sm:$0xff]  ;;  %v267_v18 = vld [vmem:[%s749_s4 + $0xf0] sm:$0xff] }
  0x25   :  { %169 = vmatpush.msra.mxu2 %v87_v0  ;;  %188 = vmatpush.msra.mxu3 %v121_v1  ;;  %v86_v13 = vld [vmem:[%s747_s2 + $0x8] sm:$0xff]  ;;  %v120_v14 = vld [vmem:[%s747_s2 + $0x118] sm:$0xff]  ;;  %v251_v20 = vld [vmem:[%s749_s4 + $0x70] sm:$0xff] }
  0x26   :  { %205 = vmatpush.msrb.mxu0 %v96_v2  ;;  %225 = vmatpush.msrb.mxu1 %v128_v3  ;;  %v118_v16 = vld [vmem:[%s747_s2 + $0x108] sm:$0xff]  ;;  %v268_v17 = vld [vmem:[%s749_s4 + $0xf8] sm:$0xff]  ;;  %v265_v23 = vld [vmem:[%s749_s4 + $0xe0] sm:$0xff] }
  0x27   :  { %170 = vmatpush.msra.mxu2 %v85_v11  ;;  %189 = vmatpush.msra.mxu3 %v119_v12  ;;  %v252_v19 = vld [vmem:[%s749_s4 + $0x78] sm:$0xff]  ;;  %v266_v21 = vld [vmem:[%s749_s4 + $0xe8] sm:$0xff]  ;;  %v249_v24 = vld [vmem:[%s749_s4 + $0x60] sm:$0xff] }
  0x28   :  { %206 = vmatpush.msrb.mxu0 %v94_v4  ;;  %226 = vmatpush.msrb.mxu1 %v126_v5  ;;  %v250_v22 = vld [vmem:[%s749_s4 + $0x68] sm:$0xff]  ;;  %v264_v25 = vld [vmem:[%s749_s4 + $0xd8] sm:$0xff]  ;;  %v263_v27 = vld [vmem:[%s749_s4 + $0xd0] sm:$0xff] }
  0x29   :  { %190 = vmatpush.msra.mxu3 %v117_v15  ;;  %273 = vmatpush.msrb.mxu2 %v252_v19  ;;  %v248_v26 = vld [vmem:[%s749_s4 + $0x58] sm:$0xff]  ;;  %v247_v28 = vld [vmem:[%s749_s4 + $0x50] sm:$0xff]  ;;  %v262_v29 = vld [vmem:[%s749_s4 + $0xc8] sm:$0xff] }
  0x2a   :  { %207 = vmatpush.msrb.mxu0 %v92_v6  ;;  %227 = vmatpush.msrb.mxu1 %v124_v7  ;;  %v246_v30 = vld [vmem:[%s749_s4 + $0x48] sm:$0xff]  ;;  %v261_v31 = vld [vmem:[%s749_s4 + $0xc0] sm:$0xff]  ;;  %v260_v33 = vld [vmem:[%s749_s4 + $0xb8] sm:$0xff] }
  0x2b   :  { %293 = vmatpush.msrb.mxu3 %v268_v17  ;;  %274 = vmatpush.msrb.mxu2 %v251_v20  ;;  %v245_v32 = vld [vmem:[%s749_s4 + $0x40] sm:$0xff]  ;;  %v244_v34 = vld [vmem:[%s749_s4 + $0x38] sm:$0xff]  ;;  %v259_v35 = vld [vmem:[%s749_s4 + $0xb0] sm:$0xff] }
  0x2c   :  { %208 = vmatpush.msrb.mxu0 %v90_v8  ;;  %228 = vmatpush.msrb.mxu1 %v122_v9  ;;  %v258_v36 = vld [vmem:[%s749_s4 + $0xa8] sm:$0xff]  ;;  %v257_v37 = vld [vmem:[%s749_s4 + $0xa0] sm:$0xff]  ;;  %v243_v40 = vld [vmem:[%s749_s4 + $0x30] sm:$0xff] }
  0x2d   :  { %294 = vmatpush.msrb.mxu3 %v267_v18  ;;  %275 = vmatpush.msrb.mxu2 %v250_v22  ;;  %v256_v41 = vld [vmem:[%s749_s4 + $0x98] sm:$0xff]  ;;  %v242_v42 = vld [vmem:[%s749_s4 + $0x28] sm:$0xff]  ;;  %v255_v43 = vld [vmem:[%s749_s4 + $0x90] sm:$0xff] }
  0x2e   :  { %209 = vmatpush.msrb.mxu0 %v88_v10  ;;  %229 = vmatpush.msrb.mxu1 %v120_v14  ;;  %v241_v44 = vld [vmem:[%s749_s4 + $0x20] sm:$0xff]  ;;  %v254_v45 = vld [vmem:[%s749_s4 + $0x88] sm:$0xff]  ;;  %v240_v46 = vld [vmem:[%s749_s4 + $0x18] sm:$0xff] }
  0x2f   :  { %295 = vmatpush.msrb.mxu3 %v266_v21  ;;  %276 = vmatpush.msrb.mxu2 %v249_v24  ;;  %v253_v47 = vld [vmem:[%s749_s4 + $0x80] sm:$0xff]  ;;  %v239_v48 = vld [vmem:[%s749_s4 + $0x10] sm:$0xff]  ;;  %v238_v49 = vld [vmem:[%s749_s4 + $0x8] sm:$0xff] }
  0x30   :  { %210 = vmatpush.msrb.mxu0 %v86_v13  ;;  %230 = vmatpush.msrb.mxu1 %v118_v16  ;;  %v237_v50 = vld [vmem:[%s749_s4] sm:$0xff] }
  0x31   :  { %296 = vmatpush.msrb.mxu3 %v265_v23  ;;  %277 = vmatpush.msrb.mxu2 %v248_v26  ;;  %v149_v51 = vld [vmem:[%s748_s3] sm:$0x3]  ;;  %s361_s3 = smov [#allocation2]  }
  0x32   :  { %v152_v52 = vperm.slane %v149_v51, 1  ;;  %v151_v57 = vperm.slane %v149_v51, 0  ;;  %v334_v0 = vld [vmem:[%s750_s5] ss:$0 sm:$0xff]  ;;  %s320_s17 = sshll.u32 %s361_s3, 4  ;;  %s321_s17 = int_to_ptr.vmem [resolvable:$true] %s320_s17 }
  0x33   :  { %297 = vmatpush.msrb.mxu3 %v264_v25  ;;  %278 = vmatpush.msrb.mxu2 %v247_v28 }
  0x35   :  { %298 = vmatpush.msrb.mxu3 %v263_v27  ;;  %279 = vmatpush.msrb.mxu2 %v246_v30 }
  0x37   :  { %299 = vmatpush.msrb.mxu3 %v262_v29  ;;  %280 = vmatpush.msrb.mxu2 %v245_v32 }
  0x39   :  { %300 = vmatpush.msrb.mxu3 %v261_v31  ;;  %281 = vmatpush.msrb.mxu2 %v244_v34 }
  0x3b   :  { %301 = vmatpush.msrb.mxu3 %v260_v33  ;;  %282 = vmatpush.msrb.mxu2 %v243_v40 }
  0x3d   :  { %302 = vmatpush.msrb.mxu3 %v259_v35  ;;  %283 = vmatpush.msrb.mxu2 %v242_v42 }
  0x3f   :  { %303 = vmatpush.msrb.mxu3 %v258_v36  ;;  %284 = vmatpush.msrb.mxu2 %v241_v44 }
  0x41   :  { %304 = vmatpush.msrb.mxu3 %v257_v37  ;;  %285 = vmatpush.msrb.mxu2 %v240_v46 }
  0x43   :  { %305 = vmatpush.msrb.mxu3 %v256_v41  ;;  %286 = vmatpush.msrb.mxu2 %v239_v48 }
  0x45   :  { %306 = vmatpush.msrb.mxu3 %v255_v43  ;;  %287 = vmatpush.msrb.mxu2 %v238_v49 }
  0x47   :  { %307 = vmatpush.msrb.mxu3 %v254_v45  ;;  %288 = vmatpush.msrb.mxu2 %v237_v50 }
  0x49   :  { %308 = vmatpush.msrb.mxu3 %v253_v47 }
  0x8e   :  { %v62_v38 = vpop.f32.mrf.mxu0  ;;  %v82_v39 = vpop.f32.mrf.mxu1 }
  0x8f   :  { %171 = vmatmul.f32.vlgmr.msra.gmra.mxu2 %v62_v38  ;;  %211 = vmatmul.f32.vlgmr.msrb.gmra.mxu0 %v62_v38 }
  0x90   :  { %191 = vmatmul.f32.vlgmr.msra.gmra.mxu3 %v82_v39  ;;  %231 = vmatmul.f32.vlgmr.msrb.gmra.mxu1 %v82_v39 }
 0x10c   :  { %v212_v53 = vpop.f32.mrf.mxu0 }
 0x10d   :  { %v213_v54 = vadd.f32 %v212_v53, %v152_v52  ;;  %v232_v55 = vpop.f32.mrf.mxu1 }
 0x10f   :  { %v233_v56 = vadd.f32 %v232_v55, %v213_v54 }
 0x111   :  { %v236_v58 = vmax.f32 %v233_v56, 0.0 }
 0x112   :  { %v172_v59 = vpop.f32.mrf.mxu2 }
 0x113   :  { %v173_v60 = vadd.f32 %v172_v59, %v151_v57  ;;  %309 = vmatmul.f32.vlgmr.msrb.gmra.mxu3 %v236_v58  ;;  %v192_v61 = vpop.f32.mrf.mxu3 }
 0x115   :  { %v193_v62 = vadd.f32 %v192_v61, %v173_v60 }
 0x117   :  { %v235_v63 = vmax.f32 %v193_v62, 0.0 }
 0x119   :  { %289 = vmatmul.f32.vlgmr.msrb.gmra.mxu2 %v235_v63 }
 0x196   :  { %v310_v3 = vpop.f32.mrf.mxu3 }
 0x19c   :  { %v290_v1 = vpop.f32.mrf.mxu2 }
 0x19d   :  { %v291_v2 = vadd.f32 %v334_v0, %v290_v1 }
 0x19f   :  { %v311_v4 = vadd.f32 %v310_v3, %v291_v2 }
 0x1a1   :  { %314 = vst.msk [vmem:[#allocation2] sm:$0xf] %vm313_vm1, %v311_v4 }
 0x1a2   :  { %325 = dma.vmem_to_hbm [thread:$0]  %s321_s17, 64, %s323_s20, [#allocation3]  }
 0x1a3   :  { %359 = dma.done.wait [#allocation3], 64  }
 0x1a4   :  { %360 = vsyncadd [#allocation3], 4294967232 }
 0x1a5   :  { %330 = vsyncpa [#allocation3], 1 }

// kernel: _lambda_.4
= control target key start
LH: loop header
LB: loop body
LE: loop exit
PB: predicated region body
PF: predicated region fallthrough
CT: control target
= control target key end

     0   :  { %s4829_s15 = smov 0   ;;  %s8017_s0 = inlined_call_operand.vmem [shape: f32[64,512], index: 0, kind: input, shape index: {}]   ;;  %s8018_s1 = inlined_call_operand.vmem [shape: f32[64,64], index: 1, kind: input, shape index: {}]   ;;  %s8019_s2 = inlined_call_operand.vmem [shape: f32[6,256,256], index: 2, kind: input, shape index: {}]   ;;  %s8020_s3 = inlined_call_operand.vmem [shape: f32[6,1,256], index: 3, kind: input, shape index: {}]   ;;  %s8021_s4 = inlined_call_operand.vmem [shape: f32[64,512], index: 4, kind: output, shape index: {}]  }
   0x1 LB: > { %s4835_s16 = sadd.s32 4294967295, %s4802_s15   ;;  %p4475_p0 = scmp.ge.s32.totalorder %s4802_s15, 1  ;;  %s4802_s15 = sphi %s4829_s15, %s14_s15  }
   0x2   : > { %p166_p1 = scmp.lt.s32.totalorder %s4802_s15, 7 }
   0x4   : > { %p167_p2 = pnand %p4475_p0, %p166_p1 }
   0x6   : > { %170 = sbr.rel (%p167_p2) target bundleno = 4256 (0x10a0), region = 36 }
   0xb   : > { %p191_p3 = scmp.lt.s32.totalorder %s4835_s16, 5  ;;  %p4479_p4 = scmp.ne.s32.totalorder %s4835_s16, 0 }
   0xd   : > { %s192_s17 = scalar_select %p191_p3, %s4835_s16, 5 }
   0xe   : > { %204 = sbr.rel (%p4479_p4) target bundleno = 52 (0x34), region = 40 }
   0xf   : > { %s4787_s18 = sshll.u32 %s192_s17, 9  ;;  %s4478_s19 = sshll.u32 %s192_s17, 1 }
  0x10   : > { %s4844_s22 = scalar_lea.vmem %s8019_s2, %s4787_s18  ;;  %s4849_s25 = scalar_lea.vmem %s8020_s3, %s4478_s19 }
  0x13   : > { %v205_v0 = vld [vmem:[%s8017_s0] sm:$0xff]  ;;  %v206_v1 = vld [vmem:[%s8017_s0 + $0x8] sm:$0xff]  ;;  %v207_v2 = vld [vmem:[%s8017_s0 + $0x10] sm:$0xff] }
  0x14   : > { %237 = vst [vmem:[#allocation2 + $0xb0] sm:$0xff] %v205_v0  ;;  %v208_v3 = vld [vmem:[%s8017_s0 + $0x18] sm:$0xff]  ;;  %v209_v4 = vld [vmem:[%s8017_s0 + $0x20] sm:$0xff]  ;;  %v210_v5 = vld [vmem:[%s8017_s0 + $0x28] sm:$0xff] }
  0x15   : > { %238 = vst [vmem:[#allocation2] sm:$0xff] %v206_v1  ;;  %v211_v6 = vld [vmem:[%s8017_s0 + $0x30] sm:$0xff]  ;;  %v212_v7 = vld [vmem:[%s8017_s0 + $0x38] sm:$0xff]  ;;  %v213_v8 = vld [vmem:[%s8017_s0 + $0x40] sm:$0xff] }
  0x16   : > { %239 = vst [vmem:[#allocation2 + $0xd8] sm:$0xff] %v207_v2  ;;  %v214_v9 = vld [vmem:[%s8017_s0 + $0x48] sm:$0xff]  ;;  %v215_v10 = vld [vmem:[%s8017_s0 + $0x50] sm:$0xff]  ;;  %v216_v11 = vld [vmem:[%s8017_s0 + $0x58] sm:$0xff] }
  0x17   : > { %240 = vst [vmem:[#allocation2 + $0x18] sm:$0xff] %v208_v3  ;;  %v217_v12 = vld [vmem:[%s8017_s0 + $0x60] sm:$0xff]  ;;  %v218_v13 = vld [vmem:[%s8017_s0 + $0x68] sm:$0xff]  ;;  %v219_v14 = vld [vmem:[%s8017_s0 + $0x70] sm:$0xff] }
  0x18   : > { %241 = vst [vmem:[#allocation2 + $0x50] sm:$0xff] %v209_v4  ;;  %v220_v15 = vld [vmem:[%s8017_s0 + $0x78] sm:$0xff]  ;;  %v221_v16 = vld [vmem:[%s8017_s0 + $0x80] sm:$0xff]  ;;  %v222_v17 = vld [vmem:[%s8017_s0 + $0x88] sm:$0xff] }
  0x19   : > { %242 = vst [vmem:[#allocation2 + $0x68] sm:$0xff] %v210_v5  ;;  %v223_v18 = vld [vmem:[%s8017_s0 + $0x90] sm:$0xff]  ;;  %v224_v19 = vld [vmem:[%s8017_s0 + $0x98] sm:$0xff]  ;;  %v225_v20 = vld [vmem:[%s8017_s0 + $0xa0] sm:$0xff] }
  0x1a   : > { %243 = vst [vmem:[#allocation2 + $0x30] sm:$0xff] %v211_v6  ;;  %v226_v21 = vld [vmem:[%s8017_s0 + $0xa8] sm:$0xff]  ;;  %v227_v22 = vld [vmem:[%s8017_s0 + $0xb0] sm:$0xff]  ;;  %v228_v23 = vld [vmem:[%s8017_s0 + $0xb8] sm:$0xff] }
  0x1b   : > { %244 = vst [vmem:[#allocation2 + $0x48] sm:$0xff] %v212_v7  ;;  %v229_v24 = vld [vmem:[%s8017_s0 + $0xc0] sm:$0xff]  ;;  %v230_v25 = vld [vmem:[%s8017_s0 + $0xc8] sm:$0xff]  ;;  %v231_v26 = vld [vmem:[%s8017_s0 + $0xd0] sm:$0xff] }
  0x1c   : > { %245 = vst [vmem:[#allocation2 + $0x80] sm:$0xff] %v213_v8  ;;  %v232_v27 = vld [vmem:[%s8017_s0 + $0xd8] sm:$0xff]  ;;  %v233_v28 = vld [vmem:[%s8017_s0 + $0xe0] sm:$0xff]  ;;  %v234_v29 = vld [vmem:[%s8017_s0 + $0xe8] sm:$0xff] }
  0x1d   : > { %246 = vst [vmem:[#allocation2 + $0x88] sm:$0xff] %v214_v9  ;;  %v235_v30 = vld [vmem:[%s8017_s0 + $0xf0] sm:$0xff]  ;;  %v236_v31 = vld [vmem:[%s8017_s0 + $0xf8] sm:$0xff] }
  0x1e   : > { %247 = vst [vmem:[#allocation2 + $0xe8] sm:$0xff] %v215_v10 }
  0x1f   : > { %248 = vst [vmem:[#allocation2 + $0xb8] sm:$0xff] %v216_v11 }
  0x20   : > { %249 = vst [vmem:[#allocation2 + $0x60] sm:$0xff] %v217_v12 }
  0x21   : > { %250 = vst [vmem:[#allocation2 + $0xf0] sm:$0xff] %v218_v13 }
  0x22   : > { %251 = vst [vmem:[#allocation2 + $0x8] sm:$0xff] %v219_v14 }
  0x23   : > { %252 = vst [vmem:[#allocation2 + $0x78] sm:$0xff] %v220_v15 }
  0x24   : > { %253 = vst [vmem:[#allocation2 + $0x38] sm:$0xff] %v221_v16 }
  0x25   : > { %254 = vst [vmem:[#allocation2 + $0x58] sm:$0xff] %v222_v17 }
  0x26   : > { %255 = vst [vmem:[#allocation2 + $0x40] sm:$0xff] %v223_v18 }
  0x27   : > { %256 = vst [vmem:[#allocation2 + $0xc8] sm:$0xff] %v224_v19 }
  0x28   : > { %257 = vst [vmem:[#allocation2 + $0xe0] sm:$0xff] %v225_v20 }
  0x29   : > { %258 = vst [vmem:[#allocation2 + $0x90] sm:$0xff] %v226_v21 }
  0x2a   : > { %259 = vst [vmem:[#allocation2 + $0x70] sm:$0xff] %v227_v22 }
  0x2b   : > { %260 = vst [vmem:[#allocation2 + $0xc0] sm:$0xff] %v228_v23 }
  0x2c   : > { %261 = vst [vmem:[#allocation2 + $0xa8] sm:$0xff] %v229_v24 }
  0x2d   : > { %262 = vst [vmem:[#allocation2 + $0xd0] sm:$0xff] %v230_v25 }
  0x2e   : > { %263 = vst [vmem:[#allocation2 + $0x10] sm:$0xff] %v231_v26 }
  0x2f   : > { %264 = vst [vmem:[#allocation2 + $0x28] sm:$0xff] %v232_v27 }
  0x30   : > { %265 = vst [vmem:[#allocation2 + $0xa0] sm:$0xff] %v233_v28 }
  0x31   : > { %266 = vst [vmem:[#allocation2 + $0xf8] sm:$0xff] %v234_v29 }
  0x32   : > { %267 = vst [vmem:[#allocation2 + $0x20] sm:$0xff] %v235_v30 }
  0x33   : > { %268 = vst [vmem:[#allocation2 + $0x98] sm:$0xff] %v236_v31 }
  0x34 PF: > { %v341_v32 = vld [vmem:[%s4844_s22 + $0xe0] sm:$0xff]  ;;  %v343_v33 = vld [vmem:[%s4844_s22 + $0xf0] sm:$0xff]  ;;  %v342_v37 = vld [vmem:[%s4844_s22 + $0xe8] sm:$0xff]  ;;  %vm659_vm0 = vcmask 523264   ;;  %p4784_p5 = scmp.ne.s32.totalorder %s4835_s16, 5 }
  0x35   : > { %v373_v34 = vld [vmem:[%s4844_s22 + $0x1e0] sm:$0xff]  ;;  %v391_v35 = vpack.c.bf16 %v343_v33, %v341_v32  ;;  %v375_v36 = vld [vmem:[%s4844_s22 + $0x1f0] sm:$0xff]  ;;  %v344_v38 = vld [vmem:[%s4844_s22 + $0xf8] sm:$0xff] }
  0x36   : > { %v407_v39 = vpack.c.bf16 %v375_v36, %v373_v34  ;;  %v392_v40 = vpack.c.bf16 %v344_v38, %v342_v37  ;;  %v374_v41 = vld [vmem:[%s4844_s22 + $0x1e8] sm:$0xff]  ;;  %v376_v42 = vld [vmem:[%s4844_s22 + $0x1f8] sm:$0xff]  ;;  %v337_v43 = vld [vmem:[%s4844_s22 + $0xc0] sm:$0xff] }
  0x37   : > { %426 = vmatpush.bf16.msra.mxu0 %v391_v35  ;;  %v408_v44 = vpack.c.bf16 %v376_v42, %v374_v41  ;;  %v339_v45 = vld [vmem:[%s4844_s22 + $0xd0] sm:$0xff]  ;;  %v369_v46 = vld [vmem:[%s4844_s22 + $0x1c0] sm:$0xff]  ;;  %v338_v50 = vld [vmem:[%s4844_s22 + $0xc8] sm:$0xff] }
  0x38   : > { %v371_v47 = vld [vmem:[%s4844_s22 + $0x1d0] sm:$0xff]  ;;  %475 = vmatpush.bf16.msra.mxu1 %v407_v39  ;;  %524 = vmatpush.bf16.msra.mxu2 %v392_v40  ;;  %v389_v48 = vpack.c.bf16 %v339_v45, %v337_v43  ;;  %v340_v51 = vld [vmem:[%s4844_s22 + $0xd8] sm:$0xff]  ;;  %v370_v52 = vld [vmem:[%s4844_s22 + $0x1c8] sm:$0xff] }
  0x39   : > { %v405_v49 = vpack.c.bf16 %v371_v47, %v369_v46  ;;  %573 = vmatpush.bf16.msra.mxu3 %v408_v44  ;;  %v390_v53 = vpack.c.bf16 %v340_v51, %v338_v50  ;;  %v372_v54 = vld [vmem:[%s4844_s22 + $0x1d8] sm:$0xff]  ;;  %v333_v55 = vld [vmem:[%s4844_s22 + $0xa0] sm:$0xff]  ;;  %v335_v56 = vld [vmem:[%s4844_s22 + $0xb0] sm:$0xff] }
  0x3a   : > { %v406_v57 = vpack.c.bf16 %v372_v54, %v370_v52  ;;  %v365_v58 = vld [vmem:[%s4844_s22 + $0x1a0] sm:$0xff]  ;;  %v367_v59 = vld [vmem:[%s4844_s22 + $0x1b0] sm:$0xff]  ;;  %v334_v60 = vld [vmem:[%s4844_s22 + $0xa8] sm:$0xff]  ;;  %v387_v61 = vpack.c.bf16 %v335_v56, %v333_v55 }
  0x3b   : > { %427 = vmatpush.bf16.msra.mxu0 %v389_v48  ;;  %v336_v62 = vld [vmem:[%s4844_s22 + $0xb8] sm:$0xff]  ;;  %v366_v63 = vld [vmem:[%s4844_s22 + $0x1a8] sm:$0xff]  ;;  %v403_v1 = vpack.c.bf16 %v367_v59, %v365_v58  ;;  %v329_v3 = vld [vmem:[%s4844_s22 + $0x80] sm:$0xff] }
  0x3c   : > { %v368_v0 = vld [vmem:[%s4844_s22 + $0x1b8] sm:$0xff]  ;;  %476 = vmatpush.bf16.msra.mxu1 %v405_v49  ;;  %525 = vmatpush.bf16.msra.mxu2 %v390_v53  ;;  %v388_v2 = vpack.c.bf16 %v336_v62, %v334_v60  ;;  %v331_v4 = vld [vmem:[%s4844_s22 + $0x90] sm:$0xff]  ;;  %v361_v5 = vld [vmem:[%s4844_s22 + $0x180] sm:$0xff] }
  0x3d   : > { %574 = vmatpush.bf16.msra.mxu3 %v406_v57  ;;  %v404_v6 = vpack.c.bf16 %v368_v0, %v366_v63  ;;  %v363_v7 = vld [vmem:[%s4844_s22 + $0x190] sm:$0xff]  ;;  %v330_v8 = vld [vmem:[%s4844_s22 + $0x88] sm:$0xff]  ;;  %v332_v9 = vld [vmem:[%s4844_s22 + $0x98] sm:$0xff]  ;;  %v385_v12 = vpack.c.bf16 %v331_v4, %v329_v3 }
  0x3e   : > { %v362_v10 = vld [vmem:[%s4844_s22 + $0x188] sm:$0xff]  ;;  %v364_v11 = vld [vmem:[%s4844_s22 + $0x198] sm:$0xff]  ;;  %v401_v13 = vpack.c.bf16 %v363_v7, %v361_v5  ;;  %v386_v14 = vpack.c.bf16 %v332_v9, %v330_v8  ;;  %v325_v15 = vld [vmem:[%s4844_s22 + $0x60] sm:$0xff] }
  0x3f   : > { %428 = vmatpush.bf16.msra.mxu0 %v387_v61  ;;  %v327_v16 = vld [vmem:[%s4844_s22 + $0x70] sm:$0xff]  ;;  %v357_v17 = vld [vmem:[%s4844_s22 + $0x160] sm:$0xff]  ;;  %v402_v18 = vpack.c.bf16 %v364_v11, %v362_v10  ;;  %v326_v20 = vld [vmem:[%s4844_s22 + $0x68] sm:$0xff] }
  0x40   : > { %477 = vmatpush.bf16.msra.mxu1 %v403_v1  ;;  %526 = vmatpush.bf16.msra.mxu2 %v388_v2  ;;  %v359_v19 = vld [vmem:[%s4844_s22 + $0x170] sm:$0xff]  ;;  %v328_v21 = vld [vmem:[%s4844_s22 + $0x78] sm:$0xff]  ;;  %v358_v22 = vld [vmem:[%s4844_s22 + $0x168] sm:$0xff]  ;;  %v383_v24 = vpack.c.bf16 %v327_v16, %v325_v15 }
  0x41   : > { %575 = vmatpush.bf16.msra.mxu3 %v404_v6  ;;  %v360_v23 = vld [vmem:[%s4844_s22 + $0x178] sm:$0xff]  ;;  %v399_v25 = vpack.c.bf16 %v359_v19, %v357_v17  ;;  %v384_v26 = vpack.c.bf16 %v328_v21, %v326_v20  ;;  %v321_v27 = vld [vmem:[%s4844_s22 + $0x40] sm:$0xff]  ;;  %v323_v28 = vld [vmem:[%s4844_s22 + $0x50] sm:$0xff] }
  0x42   : > { %v353_v29 = vld [vmem:[%s4844_s22 + $0x140] sm:$0xff]  ;;  %v400_v30 = vpack.c.bf16 %v360_v23, %v358_v22  ;;  %v355_v31 = vld [vmem:[%s4844_s22 + $0x150] sm:$0xff]  ;;  %v322_v32 = vld [vmem:[%s4844_s22 + $0x48] sm:$0xff]  ;;  %v381_v36 = vpack.c.bf16 %v323_v28, %v321_v27 }
  0x43   : > { %429 = vmatpush.bf16.msra.mxu0 %v385_v12  ;;  %v324_v33 = vld [vmem:[%s4844_s22 + $0x58] sm:$0xff]  ;;  %v354_v34 = vld [vmem:[%s4844_s22 + $0x148] sm:$0xff]  ;;  %v397_v37 = vpack.c.bf16 %v355_v31, %v353_v29  ;;  %v317_v39 = vld [vmem:[%s4844_s22 + $0x20] sm:$0xff] }
  0x44   : > { %478 = vmatpush.bf16.msra.mxu1 %v401_v13  ;;  %527 = vmatpush.bf16.msra.mxu2 %v386_v14  ;;  %v356_v35 = vld [vmem:[%s4844_s22 + $0x158] sm:$0xff]  ;;  %v382_v38 = vpack.c.bf16 %v324_v33, %v322_v32  ;;  %v319_v40 = vld [vmem:[%s4844_s22 + $0x30] sm:$0xff]  ;;  %v349_v41 = vld [vmem:[%s4844_s22 + $0x120] sm:$0xff] }
  0x45   : > { %576 = vmatpush.bf16.msra.mxu3 %v402_v18  ;;  %v398_v42 = vpack.c.bf16 %v356_v35, %v354_v34  ;;  %v351_v43 = vld [vmem:[%s4844_s22 + $0x130] sm:$0xff]  ;;  %v318_v44 = vld [vmem:[%s4844_s22 + $0x28] sm:$0xff]  ;;  %v320_v45 = vld [vmem:[%s4844_s22 + $0x38] sm:$0xff]  ;;  %v379_v48 = vpack.c.bf16 %v319_v40, %v317_v39 }
  0x46   : > { %v350_v46 = vld [vmem:[%s4844_s22 + $0x128] sm:$0xff]  ;;  %v352_v47 = vld [vmem:[%s4844_s22 + $0x138] sm:$0xff]  ;;  %v395_v49 = vpack.c.bf16 %v351_v43, %v349_v41  ;;  %v380_v50 = vpack.c.bf16 %v320_v45, %v318_v44  ;;  %v313_v51 = vld [vmem:[%s4844_s22] sm:$0xff] }
  0x47   : > { %430 = vmatpush.bf16.msra.mxu0 %v383_v24  ;;  %v315_v52 = vld [vmem:[%s4844_s22 + $0x10] sm:$0xff]  ;;  %v345_v53 = vld [vmem:[%s4844_s22 + $0x100] sm:$0xff]  ;;  %v396_v54 = vpack.c.bf16 %v352_v47, %v350_v46  ;;  %v314_v56 = vld [vmem:[%s4844_s22 + $0x8] sm:$0xff] }
  0x48   : > { %479 = vmatpush.bf16.msra.mxu1 %v399_v25  ;;  %528 = vmatpush.bf16.msra.mxu2 %v384_v26  ;;  %v347_v55 = vld [vmem:[%s4844_s22 + $0x110] sm:$0xff]  ;;  %v316_v57 = vld [vmem:[%s4844_s22 + $0x18] sm:$0xff]  ;;  %v346_v58 = vld [vmem:[%s4844_s22 + $0x108] sm:$0xff]  ;;  %v377_v60 = vpack.c.bf16 %v315_v52, %v313_v51 }
  0x49   : > { %577 = vmatpush.bf16.msra.mxu3 %v400_v30  ;;  %v348_v59 = vld [vmem:[%s4844_s22 + $0x118] sm:$0xff]  ;;  %v269_v61 = vld [vmem:[#allocation2 + $0xb0] sm:$0xff]  ;;  %v393_v63 = vpack.c.bf16 %v347_v55, %v345_v53  ;;  %v378_v0 = vpack.c.bf16 %v316_v57, %v314_v56  ;;  %v270_v1 = vld [vmem:[#allocation2] sm:$0xff] }
  0x4a   : > { %v273_v62 = vld [vmem:[#allocation2 + $0x50] sm:$0xff]  ;;  %v274_v2 = vld [vmem:[#allocation2 + $0x68] sm:$0xff]  ;;  %v394_v3 = vpack.c.bf16 %v348_v59, %v346_v58  ;;  %v277_v6 = vld [vmem:[#allocation2 + $0x80] sm:$0xff] }
  0x4b   : > { %431 = vmatpush.bf16.msra.mxu0 %v381_v36  ;;  %v410_v4 = vpack.c.bf16 %v273_v62, %v269_v61  ;;  %v411_v5 = vpack.c.bf16 %v274_v2, %v270_v1  ;;  %v281_v7 = vld [vmem:[#allocation2 + $0x60] sm:$0xff]  ;;  %v278_v8 = vld [vmem:[#allocation2 + $0x88] sm:$0xff]  ;;  %v282_v9 = vld [vmem:[#allocation2 + $0xf0] sm:$0xff] }
  0x4c   : > { %480 = vmatpush.bf16.msra.mxu1 %v397_v37  ;;  %529 = vmatpush.bf16.msra.mxu2 %v382_v38  ;;  %v412_v10 = vpack.c.bf16 %v281_v7, %v277_v6  ;;  %v413_v11 = vpack.c.bf16 %v282_v9, %v278_v8  ;;  %v285_v12 = vld [vmem:[#allocation2 + $0x38] sm:$0xff]  ;;  %v289_v13 = vld [vmem:[#allocation2 + $0xe0] sm:$0xff]  ;;  %v290_v15 = vld [vmem:[#allocation2 + $0x90] sm:$0xff] }
  0x4d   : > { %578 = vmatpush.bf16.msra.mxu3 %v398_v42  ;;  %v286_v14 = vld [vmem:[#allocation2 + $0x58] sm:$0xff]  ;;  %v414_v16 = vpack.c.bf16 %v289_v13, %v285_v12  ;;  %v293_v18 = vld [vmem:[#allocation2 + $0xa8] sm:$0xff]  ;;  %v297_v19 = vld [vmem:[#allocation2 + $0xa0] sm:$0xff] }
  0x4e   : > { %v415_v17 = vpack.c.bf16 %v290_v15, %v286_v14  ;;  %v294_v20 = vld [vmem:[#allocation2 + $0xd0] sm:$0xff]  ;;  %v298_v21 = vld [vmem:[#allocation2 + $0xf8] sm:$0xff]  ;;  %v416_v22 = vpack.c.bf16 %v297_v19, %v293_v18  ;;  %v276_v27 = vld [vmem:[#allocation2 + $0x48] sm:$0xff] }
  0x4f   : > { %432 = vmatpush.bf16.msra.mxu0 %v379_v48  ;;  %v417_v23 = vpack.c.bf16 %v298_v21, %v294_v20  ;;  %v271_v24 = vld [vmem:[#allocation2 + $0xd8] sm:$0xff]  ;;  %v275_v25 = vld [vmem:[#allocation2 + $0x30] sm:$0xff]  ;;  %v279_v30 = vld [vmem:[#allocation2 + $0xe8] sm:$0xff] }
  0x50   : > { %481 = vmatpush.bf16.msra.mxu1 %v395_v49  ;;  %530 = vmatpush.bf16.msra.mxu2 %v380_v50  ;;  %v272_v26 = vld [vmem:[#allocation2 + $0x18] sm:$0xff]  ;;  %v418_v28 = vpack.c.bf16 %v275_v25, %v271_v24  ;;  %v283_v31 = vld [vmem:[#allocation2 + $0x8] sm:$0xff]  ;;  %v287_v36 = vld [vmem:[#allocation2 + $0x40] sm:$0xff] }
  0x51   : > { %579 = vmatpush.bf16.msra.mxu3 %v396_v54  ;;  %v419_v29 = vpack.c.bf16 %v276_v27, %v272_v26  ;;  %v280_v32 = vld [vmem:[#allocation2 + $0xb8] sm:$0xff]  ;;  %v420_v34 = vpack.c.bf16 %v283_v31, %v279_v30  ;;  %v291_v37 = vld [vmem:[#allocation2 + $0x70] sm:$0xff]  ;;  %v288_v38 = vld [vmem:[#allocation2 + $0xc8] sm:$0xff] }
  0x52   : > { %v284_v33 = vld [vmem:[#allocation2 + $0x78] sm:$0xff]  ;;  %v292_v39 = vld [vmem:[#allocation2 + $0xc0] sm:$0xff]  ;;  %v422_v40 = vpack.c.bf16 %v291_v37, %v287_v36  ;;  %v295_v42 = vld [vmem:[#allocation2 + $0x10] sm:$0xff] }
  0x53   : > { %433 = vmatpush.bf16.msra.mxu0 %v377_v60  ;;  %v421_v35 = vpack.c.bf16 %v284_v33, %v280_v32  ;;  %v423_v41 = vpack.c.bf16 %v292_v39, %v288_v38  ;;  %v299_v43 = vld [vmem:[#allocation2 + $0x20] sm:$0xff]  ;;  %v296_v44 = vld [vmem:[#allocation2 + $0x28] sm:$0xff]  ;;  %v300_v45 = vld [vmem:[#allocation2 + $0x98] sm:$0xff] }
  0x54   : > { %482 = vmatpush.bf16.msra.mxu1 %v393_v63  ;;  %531 = vmatpush.bf16.msra.mxu2 %v378_v0  ;;  %v424_v46 = vpack.c.bf16 %v299_v43, %v295_v42  ;;  %v425_v47 = vpack.c.bf16 %v300_v45, %v296_v44  ;;  %v409_v12 = vld [vmem:[%s4849_s25] sm:$0x3] }
  0x55   : > { %580 = vmatpush.bf16.msra.mxu3 %v394_v3  ;;  %v623_v18 = vperm.slane %v409_v12, 0  ;;  %v624_v33 = vperm.slane %v409_v12, 1 }
  0x56   : > { %434 = vmatmul.bf16.vlgmr.msra.gmra.mxu0 %v410_v4 }
  0x57   : > { %483 = vmatmul.bf16.vlgmr.msra.gmra.mxu1 %v411_v5  ;;  %532 = vmatmul.bf16.vlgmr.msra.gmra.mxu2 %v410_v4 }
  0x58   : > { %581 = vmatmul.bf16.vlgmr.msra.gmra.mxu3 %v411_v5 }
  0x66   : > { %439 = vmatmul.bf16.gmra.mxu0 %v412_v10 }
  0x67   : > { %488 = vmatmul.bf16.gmra.mxu1 %v413_v11  ;;  %537 = vmatmul.bf16.gmra.mxu2 %v412_v10 }
  0x68   : > { %586 = vmatmul.bf16.gmra.mxu3 %v413_v11 }
  0x76   : > { %444 = vmatmul.bf16.gmra.mxu0 %v414_v16 }
  0x77   : > { %493 = vmatmul.bf16.gmra.mxu1 %v415_v17  ;;  %542 = vmatmul.bf16.gmra.mxu2 %v414_v16 }
  0x78   : > { %591 = vmatmul.bf16.gmra.mxu3 %v415_v17 }
  0x86   : > { %449 = vmatmul.bf16.gmra.mxu0 %v416_v22 }
  0x87   : > { %498 = vmatmul.bf16.gmra.mxu1 %v417_v23  ;;  %547 = vmatmul.bf16.gmra.mxu2 %v416_v22 }
  0x88   : > { %596 = vmatmul.bf16.gmra.mxu3 %v417_v23 }
  0x96   : > { %454 = vmatmul.bf16.gmra.mxu0 %v418_v28 }
  0x97   : > { %503 = vmatmul.bf16.gmra.mxu1 %v419_v29  ;;  %552 = vmatmul.bf16.gmra.mxu2 %v418_v28 }
  0x98   : > { %601 = vmatmul.bf16.gmra.mxu3 %v419_v29 }
  0xa6   : > { %459 = vmatmul.bf16.gmra.mxu0 %v420_v34 }
  0xa7   : > { %508 = vmatmul.bf16.gmra.mxu1 %v421_v35  ;;  %557 = vmatmul.bf16.gmra.mxu2 %v420_v34 }
  0xa8   : > { %606 = vmatmul.bf16.gmra.mxu3 %v421_v35 }
  0xb6   : > { %464 = vmatmul.bf16.gmra.mxu0 %v422_v40 }
  0xb7   : > { %513 = vmatmul.bf16.gmra.mxu1 %v423_v41  ;;  %562 = vmatmul.bf16.gmra.mxu2 %v422_v40 }
  0xb8   : > { %611 = vmatmul.bf16.gmra.mxu3 %v423_v41 }
  0xc6   : > { %469 = vmatmul.bf16.gmra.mxu0 %v424_v46 }
  0xc7   : > { %518 = vmatmul.bf16.gmra.mxu1 %v425_v47  ;;  %567 = vmatmul.bf16.gmra.mxu2 %v424_v46 }
  0xc8   : > { %616 = vmatmul.bf16.gmra.mxu3 %v425_v47 }
  0xd3   : > { %v435_v48 = vpop.f32.mrf.mxu0 }
  0xd4   : > { %v484_v49 = vpop.f32.mrf.mxu1 }
  0xd5   : > { %v5012_v50 = vadd.f32 %v484_v49, %v435_v48 }
  0xda   : > { %v533_v51 = vpop.f32.mrf.mxu2 }
  0xdb   : > { %v582_v52 = vpop.f32.mrf.mxu3  ;;  %v437_v53 = vpop.f32.mrf.mxu0 }
  0xdc   : > { %v5014_v54 = vadd.f32 %v582_v52, %v533_v51  ;;  %v486_v55 = vpop.f32.mrf.mxu1 }
  0xdd   : > { %v487_v37 = vadd.f32 %v486_v55, %v437_v53  ;;  %v5054_v55 = vadd.f32 %v623_v18, %v5012_v50 }
  0xdf   : > { %v5049_v49 = vadd.f32 %v623_v18, %v487_v37 }
  0xe2   : > { %v5016_v56 = vpop.f32.mrf.mxu2 }
  0xe3   : > { %v5018_v57 = vpop.f32.mrf.mxu3  ;;  %v440_v58 = vpop.f32.mrf.mxu0 }
  0xe4   : > { %v489_v59 = vpop.f32.mrf.mxu1 }
  0xe5   : > { %v490_v29 = vadd.f32 %v489_v59, %v440_v58 }
  0xe7   : > { %v5041_v44 = vadd.f32 %v623_v18, %v490_v29 }
  0xea   : > { %v538_v60 = vpop.f32.mrf.mxu2 }
  0xeb   : > { %v587_v61 = vpop.f32.mrf.mxu3  ;;  %v442_v62 = vpop.f32.mrf.mxu0 }
  0xec   : > { %v491_v63 = vpop.f32.mrf.mxu1  ;;  %v588_v51 = vadd.f32 %v587_v61, %v538_v60  ;;  %v585_v60 = vadd.f32 %v5018_v57, %v5016_v56 }
  0xed   : > { %v492_v24 = vadd.f32 %v491_v63, %v442_v62  ;;  %v301_v62 = vld [vmem:[%s8018_s1] sm:$0xff]  ;;  %v302_v63 = vld [vmem:[%s8018_s1 + $0x8] sm:$0xff] }
  0xee   : > { %v5082_v57 = vadd.f32 %v624_v33, %v585_v60 }
  0xef   : > { %v5035_v40 = vadd.f32 %v623_v18, %v492_v24 }
  0xf1   : > { %v647_v48 = vpack.c.bf16 %v5035_v40, %v5041_v44 }
  0xf2   : > { %v540_v0 = vpop.f32.mrf.mxu2 }
  0xf3   : > { %v589_v1 = vpop.f32.mrf.mxu3  ;;  %v445_v2 = vpop.f32.mrf.mxu0 }
  0xf4   : > { %v494_v3 = vpop.f32.mrf.mxu1  ;;  %v590_v45 = vadd.f32 %v589_v1, %v540_v0 }
  0xf5   : > { %v495_v21 = vadd.f32 %v494_v3, %v445_v2  ;;  %v643_v2 = vpack.c.bf16 %v5049_v49, %v5054_v55  ;;  %v5076_v3 = vadd.f32 %v624_v33, %v588_v51 }
  0xf6   : > { %v5072_v1 = vadd.f32 %v624_v33, %v590_v45  ;;  %v308_v45 = vld [vmem:[%s8018_s1 + $0x38] sm:$0xff] }
  0xf7   : > { %v5029_v30 = vadd.f32 %v623_v18, %v495_v21 }
  0xf8   : > { %v648_v56 = vpack.c.bf16 %v5072_v1, %v5076_v3 }
  0xfa   : > { %v543_v4 = vpop.f32.mrf.mxu2 }
  0xfb   : > { %v592_v5 = vpop.f32.mrf.mxu3  ;;  %v447_v6 = vpop.f32.mrf.mxu0 }
  0xfc   : > { %v496_v7 = vpop.f32.mrf.mxu1  ;;  %v593_v41 = vadd.f32 %v592_v5, %v543_v4  ;;  %v5078_v4 = vpack.c.bf16 %v302_v63, %v301_v62  ;;  %v5085_v5 = vadd.f32 %v624_v33, %v5014_v54 }
  0xfd   : > { %v497_v19 = vadd.f32 %v496_v7, %v447_v6 }
  0xfe   : > { %v5051_v52 = vadd.f32 %v624_v33, %v593_v41  ;;  %v307_v41 = vld [vmem:[%s8018_s1 + $0x30] sm:$0xff] }
  0xff   : > { %v5027_v26 = vadd.f32 %v623_v18, %v497_v19 }
 0x101   : > { %v651_v39 = vpack.c.bf16 %v5027_v26, %v5029_v30 }
 0x102   : > { %v545_v8 = vpop.f32.mrf.mxu2 }
 0x103   : > { %v594_v9 = vpop.f32.mrf.mxu3  ;;  %v450_v10 = vpop.f32.mrf.mxu0 }
 0x104   : > { %v499_v11 = vpop.f32.mrf.mxu1  ;;  %v595_v34 = vadd.f32 %v594_v9, %v545_v8 }
 0x105   : > { %v500_v14 = vadd.f32 %v499_v11, %v450_v10  ;;  %v644_v10 = vpack.c.bf16 %v5082_v57, %v5085_v5 }
 0x106   : > { %v5045_v47 = vadd.f32 %v624_v33, %v595_v34 }
 0x107   : > { %v5021_v22 = vadd.f32 %v623_v18, %v500_v14  ;;  %v304_v14 = vld [vmem:[%s8018_s1 + $0x18] sm:$0xff] }
 0x108   : > { %v652_v50 = vpack.c.bf16 %v5045_v47, %v5051_v52 }
 0x10a   : > { %v548_v13 = vpop.f32.mrf.mxu2 }
 0x10b   : > { %v597_v15 = vpop.f32.mrf.mxu3  ;;  %v452_v16 = vpop.f32.mrf.mxu0 }
 0x10c   : > { %v501_v17 = vpop.f32.mrf.mxu1  ;;  %v598_v27 = vadd.f32 %v597_v15, %v548_v13  ;;  %v303_v13 = vld [vmem:[%s8018_s1 + $0x10] sm:$0xff] }
 0x10d   : > { %v502_v20 = vadd.f32 %v501_v17, %v452_v16  ;;  %v5103_v16 = vpack.c.bf16 %v304_v14, %v303_v13 }
 0x10e   : > { %v5037_v42 = vadd.f32 %v624_v33, %v598_v27  ;;  %v305_v27 = vld [vmem:[%s8018_s1 + $0x20] sm:$0xff] }
 0x10f   : > { %v5023_v23 = vadd.f32 %v623_v18, %v502_v20 }
 0x111   : > { %v655_v25 = vpack.c.bf16 %v5023_v23, %v5021_v22 }
 0x112   : > { %v550_v28 = vpop.f32.mrf.mxu2 }
 0x113   : > { %v599_v31 = vpop.f32.mrf.mxu3  ;;  %676 = vmatpush.bf16.msrb.mxu0 %v655_v25  ;;  %v455_v32 = vpop.f32.mrf.mxu0 }
 0x114   : > { %v600_v35 = vadd.f32 %v599_v31, %v550_v28  ;;  %v504_v36 = vpop.f32.mrf.mxu1  ;;  %v306_v28 = vld [vmem:[%s8018_s1 + $0x28] sm:$0xff] }
 0x115   : > { %v5031_v38 = vadd.f32 %v504_v36, %v455_v32  ;;  %v5115_v31 = vpack.c.bf16 %v306_v28, %v305_v27 }
 0x116   : > { %v5039_v43 = vadd.f32 %v624_v33, %v600_v35 }
 0x117   : > { %677 = vmatpush.bf16.msrb.mxu0 %v651_v39 }
 0x118   : > { %v656_v46 = vpack.c.bf16 %v5039_v43, %v5037_v42 }
 0x11a   : > { %705 = vmatpush.bf16.msrb.mxu1 %v656_v46  ;;  %v553_v53 = vpop.f32.mrf.mxu2 }
 0x11b   : > { %v602_v58 = vpop.f32.mrf.mxu3  ;;  %678 = vmatpush.bf16.msrb.mxu0 %v647_v48  ;;  %v5056_v59 = vpop.f32.mrf.mxu0 }
 0x11c   : > { %v5066_v61 = vadd.f32 %v602_v58, %v553_v53  ;;  %v5068_v0 = vpop.f32.mrf.mxu1  ;;  %v5131_v53 = vpack.c.bf16 %v308_v45, %v307_v41 }
 0x11e   : > { %706 = vmatpush.bf16.msrb.mxu1 %v652_v50 }
 0x11f   : > { %679 = vmatpush.bf16.msrb.mxu0 %v643_v2 }
 0x122   : > { %707 = vmatpush.bf16.msrb.mxu1 %v648_v56  ;;  %v5087_v6 = vpop.f32.mrf.mxu2  ;;  %4480 = vmatmul.msk.bf16.vlgmr.msrb.gmra.mxu0 %vm659_vm0, %v5078_v4 }
 0x123   : > { %v5091_v7 = vpop.f32.mrf.mxu3  ;;  %v460_v8 = vpop.f32.mrf.mxu0 }
 0x124   : > { %v509_v9 = vpop.f32.mrf.mxu1 }
 0x125   : > { %v5149_v14 = vadd.f32 %v509_v9, %v460_v8 }
 0x126   : > { %708 = vmatpush.bf16.msrb.mxu1 %v644_v10 }
 0x129   : > { %4484 = vmatmul.msk.bf16.vlgmr.msrb.gmra.mxu1 %vm659_vm0, %v5078_v4 }
 0x12a   : > { %v558_v11 = vpop.f32.mrf.mxu2 }
 0x12b   : > { %v607_v54 = vpop.f32.mrf.mxu3  ;;  %v462_v12 = vpop.f32.mrf.mxu0 }
 0x12c   : > { %v511_v15 = vpop.f32.mrf.mxu1 }
 0x12d   : > { %v5141_v50 = vadd.f32 %v511_v15, %v462_v12  ;;  %v5157_v12 = vadd.f32 %v5068_v0, %v5056_v59  ;;  %v5171_v59 = vadd.f32 %v607_v54, %v558_v11  ;;  %v5175_v0 = vadd.f32 %v5091_v7, %v5087_v6 }
 0x12f   : > { %8041 = vst [vmem:[#allocation5_spill] sm:$0xff] %v5141_v50  ;;  %v649_v15 = vpack.c.bf16 %v5141_v50, %v5149_v14  ;;  %v645_v27 = vpack.c.bf16 %v5157_v12, %v5031_v38 }
 0x130   : > { %8044 = vst [vmem:[#allocation8_spill] sm:$0xff] %v5157_v12 }
 0x131   : > { %8046 = vst [vmem:[#allocation10_spill] sm:$0xff] %v5175_v0 }
 0x132   : > { %v560_v17 = vpop.f32.mrf.mxu2  ;;  %4481 = vmatmul.msk.bf16.gmra.mxu0 %vm659_vm0, %v5103_v16 }
 0x133   : > { %v609_v18 = vpop.f32.mrf.mxu3  ;;  %v465_v19 = vpop.f32.mrf.mxu0 }
 0x134   : > { %v514_v20 = vpop.f32.mrf.mxu1  ;;  %v5165_v8 = vadd.f32 %v609_v18, %v560_v17  ;;  %v646_v17 = vpack.c.bf16 %v5175_v0, %v5066_v61 }
 0x135   : > { %v5137_v63 = vadd.f32 %v514_v20, %v465_v19 }
 0x136   : > { %8045 = vst [vmem:[#allocation9_spill] sm:$0xff] %v5165_v8 }
 0x139   : > { %4485 = vmatmul.msk.bf16.gmra.mxu1 %vm659_vm0, %v5103_v16 }
 0x13a   : > { %v563_v21 = vpop.f32.mrf.mxu2 }
 0x13b   : > { %v612_v24 = vpop.f32.mrf.mxu3  ;;  %v467_v25 = vpop.f32.mrf.mxu0 }
 0x13c   : > { %v516_v29 = vpop.f32.mrf.mxu1 }
 0x13d   : > { %v5133_v58 = vadd.f32 %v516_v29, %v467_v25  ;;  %v5161_v25 = vadd.f32 %v612_v24, %v563_v21  ;;  %v650_v21 = vpack.c.bf16 %v5165_v8, %v5171_v59 }
 0x13f   : > { %8040 = vst [vmem:[#allocation4_spill] sm:$0xff] %v5133_v58  ;;  %v653_v56 = vpack.c.bf16 %v5133_v58, %v5137_v63 }
 0x142   : > { %v565_v32 = vpop.f32.mrf.mxu2  ;;  %4482 = vmatmul.msk.bf16.gmra.mxu0 %vm659_vm0, %v5115_v31 }
 0x143   : > { %v614_v33 = vpop.f32.mrf.mxu3  ;;  %v470_v34 = vpop.f32.mrf.mxu0 }
 0x144   : > { %v519_v35 = vpop.f32.mrf.mxu1  ;;  %v5151_v19 = vadd.f32 %v614_v33, %v565_v32 }
 0x145   : > { %v5127_v48 = vadd.f32 %v519_v35, %v470_v34 }
 0x146   : > { %8043 = vst [vmem:[#allocation7_spill] sm:$0xff] %v5151_v19  ;;  %v654_v9 = vpack.c.bf16 %v5151_v19, %v5161_v25 }
 0x149   : > { %4486 = vmatmul.msk.bf16.gmra.mxu1 %vm659_vm0, %v5115_v31 }
 0x14a   : > { %v568_v36 = vpop.f32.mrf.mxu2 }
 0x14b   : > { %v617_v37 = vpop.f32.mrf.mxu3  ;;  %v472_v39 = vpop.f32.mrf.mxu0 }
 0x14c   : > { %v521_v46 = vpop.f32.mrf.mxu1  ;;  %v5145_v10 = vadd.f32 %v617_v37, %v568_v36 }
 0x14d   : > { %v5129_v51 = vadd.f32 %v521_v46, %v472_v39 }
 0x14f   : > { %8039 = vst [vmem:[#allocation3_spill] sm:$0xff] %v5129_v51  ;;  %v657_v62 = vpack.c.bf16 %v5129_v51, %v5127_v48 }
 0x151   : > { %734 = vmatpush.bf16.msrb.mxu2 %v657_v62 }
 0x152   : > { %v570_v60 = vpop.f32.mrf.mxu2  ;;  %4483 = vmatmul.msk.bf16.gmra.mxu0 %vm659_vm0, %v5131_v53 }
 0x153   : > { %v619_v2 = vpop.f32.mrf.mxu3 }
 0x154   : > { %v5147_v13 = vadd.f32 %v619_v2, %v570_v60 }
 0x155   : > { %735 = vmatpush.bf16.msrb.mxu2 %v653_v56 }
 0x156   : > { %8042 = vst [vmem:[#allocation6_spill] sm:$0xff] %v5147_v13  ;;  %v658_v20 = vpack.c.bf16 %v5147_v13, %v5145_v10 }
 0x158   : > { %763 = vmatpush.bf16.msrb.mxu3 %v658_v20 }
 0x159   : > { %4487 = vmatmul.msk.bf16.gmra.mxu1 %vm659_vm0, %v5131_v53  ;;  %736 = vmatpush.bf16.msrb.mxu2 %v649_v15 }
 0x15c   : > { %764 = vmatpush.bf16.msrb.mxu3 %v654_v9 }
 0x15d   : > { %737 = vmatpush.bf16.msrb.mxu2 %v645_v27 }
 0x160   : > { %765 = vmatpush.bf16.msrb.mxu3 %v650_v21  ;;  %4488 = vmatmul.msk.bf16.vlgmr.msrb.gmra.mxu2 %vm659_vm0, %v5078_v4 }
 0x164   : > { %766 = vmatpush.bf16.msrb.mxu3 %v646_v17 }
 0x167   : > { %4492 = vmatmul.msk.bf16.vlgmr.msrb.gmra.mxu3 %vm659_vm0, %v5078_v4 }
 0x170   : > { %4489 = vmatmul.msk.bf16.gmra.mxu2 %vm659_vm0, %v5103_v16 }
 0x177   : > { %4493 = vmatmul.msk.bf16.gmra.mxu3 %vm659_vm0, %v5103_v16 }
 0x180   : > { %4490 = vmatmul.msk.bf16.gmra.mxu2 %vm659_vm0, %v5115_v31 }
 0x187   : > { %4494 = vmatmul.msk.bf16.gmra.mxu3 %vm659_vm0, %v5115_v31 }
 0x190   : > { %4491 = vmatmul.msk.bf16.gmra.mxu2 %vm659_vm0, %v5131_v53 }
 0x197   : > { %4495 = vmatmul.msk.bf16.gmra.mxu3 %vm659_vm0, %v5131_v53 }
 0x19f   : > { %v5197_v6 = vpop.f32.mrf.mxu0 }
 0x1a6   : > { %v5199_v7 = vpop.f32.mrf.mxu1 }
 0x1a7   : > { %v5201_v11 = vpop.f32.mrf.mxu0 }
 0x1a8   : > { %8047 = vst [vmem:[#allocation11_spill] sm:$0xff] %v5201_v11  ;;  %v838_v56 = vpack.c.bf16 %v5201_v11, %v5197_v6 }
 0x1ae   : > { %v5203_v54 = vpop.f32.mrf.mxu1 }
 0x1af   : > { %8048 = vst [vmem:[#allocation12_spill] sm:$0xff] %v5203_v54  ;;  %v5205_v18 = vpop.f32.mrf.mxu0  ;;  %v839_v9 = vpack.c.bf16 %v5203_v54, %v5199_v7 }
 0x1b6   : > { %v5207_v24 = vpop.f32.mrf.mxu1 }
 0x1b7   : > { %v5209_v28 = vpop.f32.mrf.mxu0 }
 0x1b8   : > { %8049 = vst [vmem:[#allocation13_spill] sm:$0xff] %v5209_v28  ;;  %v842_v46 = vpack.c.bf16 %v5209_v28, %v5205_v18 }
 0x1be   : > { %v5211_v29 = vpop.f32.mrf.mxu1 }
 0x1bf   : > { %8050 = vst [vmem:[#allocation14_spill] sm:$0xff] %v5211_v29  ;;  %v5213_v32 = vpop.f32.mrf.mxu0  ;;  %v843_v15 = vpack.c.bf16 %v5211_v29, %v5207_v24 }
 0x1c6   : > { %v5215_v33 = vpop.f32.mrf.mxu1 }
 0x1c7   : > { %v5217_v34 = vpop.f32.mrf.mxu0 }
 0x1c8   : > { %8051 = vst [vmem:[#allocation15_spill] sm:$0xff] %v5217_v34  ;;  %v846_v45 = vpack.c.bf16 %v5217_v34, %v5213_v32 }
 0x1ce   : > { %v5219_v35 = vpop.f32.mrf.mxu1 }
 0x1cf   : > { %8052 = vst [vmem:[#allocation16_spill] sm:$0xff] %v5219_v35  ;;  %v5221_v36 = vpop.f32.mrf.mxu0  ;;  %v847_v2 = vpack.c.bf16 %v5219_v35, %v5215_v33 }
 0x1d6   : > { %v5223_v37 = vpop.f32.mrf.mxu1 }
 0x1d7   : > { %8053 = vst [vmem:[#allocation17_spill] sm:$0xff] %v5223_v37  ;;  %v5225_v39 = vpop.f32.mrf.mxu0 }
 0x1d8   : > { %8054 = vst [vmem:[#allocation18_spill] sm:$0xff] %v5225_v39  ;;  %v850_v41 = vpack.c.bf16 %v5225_v39, %v5221_v36 }
 0x1da   : > { %914 = vmatpush.bf16.msra.mxu2 %v850_v41 }
 0x1de   : > { %v5233_v62 = vpop.f32.mrf.mxu1  ;;  %915 = vmatpush.bf16.msra.mxu2 %v846_v45 }
 0x1df   : > { %8055 = vst [vmem:[#allocation19_spill] sm:$0xff] %v5233_v62  ;;  %v851_v60 = vpack.c.bf16 %v5233_v62, %v5223_v37 }
 0x1e1   : > { %943 = vmatpush.bf16.msra.mxu3 %v851_v60 }
 0x1e2   : > { %916 = vmatpush.bf16.msra.mxu2 %v842_v46 }
 0x1e3   : > { %v739_v20 = vpop.f32.mrf.mxu2 }
 0x1e5   : > { %944 = vmatpush.bf16.msra.mxu3 %v847_v2 }
 0x1e6   : > { %917 = vmatpush.bf16.msra.mxu2 %v838_v56 }
 0x1e9   : > { %945 = vmatpush.bf16.msra.mxu3 %v843_v15  ;;  %4504 = vmatmul.msk.bf16.vlgmr.msra.gmra.mxu2 %vm659_vm0, %v5078_v4 }
 0x1ea   : > { %v768_v27 = vpop.f32.mrf.mxu3 }
 0x1eb   : > { %v741_v21 = vpop.f32.mrf.mxu2 }
 0x1ec   : > { %v790_v54 = vmul.f32 -1.0, %v741_v21 }
 0x1ed   : > { %946 = vmatpush.bf16.msra.mxu3 %v839_v9 }
 0x1f0   : > { %4508 = vmatmul.msk.bf16.vlgmr.msra.gmra.mxu3 %vm659_vm0, %v5078_v4 }
 0x1f2   : > { %v770_v17 = vpop.f32.mrf.mxu3 }
 0x1f3   : > { %v744_v41 = vpop.f32.mrf.mxu2 }
 0x1f9   : > { %4505 = vmatmul.msk.bf16.gmra.mxu2 %vm659_vm0, %v5103_v16 }
 0x1fa   : > { %v773_v45 = vpop.f32.mrf.mxu3 }
 0x1fb   : > { %v746_v46 = vpop.f32.mrf.mxu2  ;;  %v793_v37 = vmul.f32 -1.0, %v773_v45 }
 0x1fc   : > { %v794_v29 = vmul.f32 -1.0, %v746_v46 }
 0x200   : > { %4509 = vmatmul.msk.bf16.gmra.mxu3 %vm659_vm0, %v5103_v16 }
 0x202   : > { %v775_v60 = vpop.f32.mrf.mxu3 }
 0x203   : > { %v749_v2 = vpop.f32.mrf.mxu2  ;;  %v795_v46 = vmul.f32 -1.0, %v775_v60 }
 0x204   : > { %v5267_v58 = vmul.f32 -1.0, %v749_v2 }
 0x209   : > { %4506 = vmatmul.msk.bf16.gmra.mxu2 %vm659_vm0, %v5115_v31 }
 0x20a   : > { %v778_v56 = vpop.f32.mrf.mxu3 }
 0x20b   : > { %v751_v15 = vpop.f32.mrf.mxu2  ;;  %v797_v11 = vmul.f32 -1.0, %v778_v56 }
 0x20c   : > { %v5263_v19 = vmul.f32 -1.0, %v751_v15  ;;  %v792_v15 = vmul.f32 -1.0, %v744_v41  ;;  %v789_v41 = vmul.f32 -1.0, %v768_v27 }
 0x20e   : > { %v844_v8 = vpack.c.bf16 %v5263_v19, %v5267_v58  ;;  %v840_v0 = vpack.c.bf16 %v794_v29, %v792_v15  ;;  %v805_v45 = vadd.f32 %v789_v41, %v5085_v5  ;;  %v812_v5 = vadd.f32 %v792_v15, %v5041_v44 }
 0x20f   : > { %v817_v15 = vadd.f32 %v795_v46, %v5072_v1 }
 0x210   : > { %4510 = vmatmul.msk.bf16.gmra.mxu3 %vm659_vm0, %v5115_v31 }
 0x212   : > { %v780_v9 = vpop.f32.mrf.mxu3 }
 0x213   : > { %v754_v62 = vpop.f32.mrf.mxu2  ;;  %v5277_v50 = vmul.f32 -1.0, %v780_v9  ;;  %v808_v9 = vadd.f32 %v790_v54, %v5049_v49 }
 0x214   : > { %v5259_v51 = vmul.f32 -1.0, %v754_v62 }
 0x215   : > { %v845_v12 = vpack.c.bf16 %v5277_v50, %v797_v11 }
 0x219   : > { %4507 = vmatmul.msk.bf16.gmra.mxu2 %vm659_vm0, %v5131_v53 }
 0x21a   : > { %v783_v13 = vpop.f32.mrf.mxu3 }
 0x21b   : > { %v756_v39 = vpop.f32.mrf.mxu2  ;;  %v5273_v62 = vmul.f32 -1.0, %v783_v13 }
 0x21c   : > { %v5261_v35 = vmul.f32 -1.0, %v756_v39 }
 0x21e   : > { %v848_v34 = vpack.c.bf16 %v5261_v35, %v5259_v51 }
 0x220   : > { %4511 = vmatmul.msk.bf16.gmra.mxu3 %vm659_vm0, %v5131_v53  ;;  %856 = vmatpush.bf16.msra.mxu0 %v848_v34  ;;  %v788_v34 = vmul.f32 -1.0, %v739_v20 }
 0x222   : > { %v785_v28 = vpop.f32.mrf.mxu3  ;;  %v836_v13 = vpack.c.bf16 %v790_v54, %v788_v34 }
 0x223   : > { %v5275_v39 = vmul.f32 -1.0, %v785_v28  ;;  %v791_v28 = vmul.f32 -1.0, %v770_v17 }
 0x224   : > { %857 = vmatpush.bf16.msra.mxu0 %v844_v8  ;;  %v841_v8 = vpack.c.bf16 %v795_v46, %v793_v37 }
 0x225   : > { %v849_v2 = vpack.c.bf16 %v5275_v39, %v5273_v62  ;;  %v837_v21 = vpack.c.bf16 %v791_v28, %v789_v41 }
 0x227   : > { %885 = vmatpush.bf16.msra.mxu1 %v849_v2 }
 0x228   : > { %858 = vmatpush.bf16.msra.mxu0 %v840_v0  ;;  %v804_v0 = vadd.f32 %v788_v34, %v5054_v55 }
 0x22b   : > { %886 = vmatpush.bf16.msra.mxu1 %v845_v12 }
 0x22c   : > { %859 = vmatpush.bf16.msra.mxu0 %v836_v13 }
 0x22f   : > { %887 = vmatpush.bf16.msra.mxu1 %v841_v8  ;;  %4496 = vmatmul.msk.bf16.vlgmr.msra.gmra.mxu0 %vm659_vm0, %v5078_v4  ;;  %v809_v8 = vadd.f32 %v791_v28, %v5082_v57 }
 0x233   : > { %888 = vmatpush.bf16.msra.mxu1 %v837_v21 }
 0x236   : > { %4500 = vmatmul.msk.bf16.vlgmr.msra.gmra.mxu1 %vm659_vm0, %v5078_v4 }
 0x23f   : > { %4497 = vmatmul.msk.bf16.gmra.mxu0 %vm659_vm0, %v5103_v16 }
 0x246   : > { %4501 = vmatmul.msk.bf16.gmra.mxu1 %vm659_vm0, %v5103_v16 }
 0x24f   : > { %4498 = vmatmul.msk.bf16.gmra.mxu0 %vm659_vm0, %v5115_v31 }
 0x256   : > { %4502 = vmatmul.msk.bf16.gmra.mxu1 %vm659_vm0, %v5115_v31 }
 0x25f   : > { %4499 = vmatmul.msk.bf16.gmra.mxu0 %vm659_vm0, %v5131_v53 }
 0x266   : > { %4503 = vmatmul.msk.bf16.gmra.mxu1 %vm659_vm0, %v5131_v53 }
 0x26c   : > { %v919_v12 = vpop.f32.mrf.mxu2 }
 0x26d   : > { %v5299_v20 = vmul.f32 -0.5, %v919_v12 }
 0x26f   : > { %v5302_v27 = vadd.f32 %v5299_v20, %v804_v0 }
 0x273   : > { %v948_v17 = vpop.f32.mrf.mxu3 }
 0x274   : > { %v5305_v60 = vmul.f32 -0.5, %v948_v17  ;;  %v921_v56 = vpop.f32.mrf.mxu2  ;;  %v813_v17 = vadd.f32 %v793_v37, %v5076_v3 }
 0x275   : > { %v5308_v2 = vmul.f32 -0.5, %v921_v56 }
 0x276   : > { %v5311_v13 = vadd.f32 %v5305_v60, %v805_v45 }
 0x277   : > { %v5314_v55 = vadd.f32 %v5308_v2, %v808_v9  ;;  %v816_v9 = vadd.f32 %v794_v29, %v5035_v40  ;;  %v821_v29 = vadd.f32 %v797_v11, %v5051_v52 }
 0x27b   : > { %v950_v34 = vpop.f32.mrf.mxu3 }
 0x27c   : > { %v5317_v21 = vmul.f32 -0.5, %v950_v34  ;;  %v924_v12 = vpop.f32.mrf.mxu2 }
 0x27d   : > { %v972_v41 = vmul.f32 -0.5, %v924_v12 }
 0x27e   : > { %v5321_v0 = vadd.f32 %v5317_v21, %v809_v8 }
 0x27f   : > { %v5323_v49 = vadd.f32 %v972_v41, %v812_v5  ;;  %v820_v5 = vadd.f32 %v5267_v58, %v5029_v30  ;;  %v825_v30 = vadd.f32 %v5277_v50, %v5045_v47 }
 0x283   : > { %v953_v54 = vpop.f32.mrf.mxu3 }
 0x284   : > { %v5326_v45 = vmul.f32 -0.5, %v953_v54  ;;  %v926_v56 = vpop.f32.mrf.mxu2 }
 0x285   : > { %v974_v57 = vmul.f32 -0.5, %v926_v56 }
 0x286   : > { %v5330_v28 = vadd.f32 %v5326_v45, %v813_v17 }
 0x287   : > { %v5332_v34 = vadd.f32 %v974_v57, %v816_v9  ;;  %v824_v9 = vadd.f32 %v5263_v19, %v5027_v26  ;;  %v829_v19 = vadd.f32 %v5273_v62, %v5037_v42  ;;  %v806_v42 = vadd.f32 %v5197_v6, %v5031_v38 }
 0x288   : > { %v1036_v62 = vpack.c.bf16 %v974_v57, %v972_v41  ;;  %v807_v38 = vadd.f32 %v5199_v7, %v5066_v61  ;;  %v814_v7 = vadd.f32 %v5205_v18, %v5149_v14  ;;  %v822_v14 = vadd.f32 %v5213_v32, %v5137_v63 }
 0x289   : > { %8056 = vst [vmem:[#allocation20_spill] sm:$0xff] %v5332_v34  ;;  %v830_v63 = vadd.f32 %v5221_v36, %v5127_v48 }
 0x28b   : > { %v955_v44 = vpop.f32.mrf.mxu3 }
 0x28c   : > { %v975_v8 = vmul.f32 -0.5, %v955_v44  ;;  %v929_v12 = vpop.f32.mrf.mxu2 }
 0x28d   : > { %v976_v3 = vmul.f32 -0.5, %v929_v12  ;;  %v828_v12 = vadd.f32 %v5259_v51, %v5021_v22 }
 0x28e   : > { %v5337_v37 = vadd.f32 %v975_v8, %v817_v15  ;;  %v1037_v6 = vpack.c.bf16 %v975_v8, %v5326_v45 }
 0x28f   : > { %v5339_v54 = vadd.f32 %v976_v3, %v820_v5 }
 0x293   : > { %v958_v40 = vpop.f32.mrf.mxu3 }
 0x294   : > { %v977_v17 = vmul.f32 -0.5, %v958_v40  ;;  %v931_v56 = vpop.f32.mrf.mxu2 }
 0x295   : > { %v978_v34 = vmul.f32 -0.5, %v931_v56  ;;  %v832_v56 = vadd.f32 %v5261_v35, %v5023_v23 }
 0x296   : > { %v5344_v1 = vadd.f32 %v977_v17, %v821_v29 }
 0x297   : > { %v5346_v46 = vadd.f32 %v978_v34, %v824_v9  ;;  %v1040_v51 = vpack.c.bf16 %v978_v34, %v976_v3 }
 0x29b   : > { %v960_v44 = vpop.f32.mrf.mxu3 }
 0x29c   : > { %v979_v58 = vmul.f32 -0.5, %v960_v44  ;;  %v934_v15 = vpop.f32.mrf.mxu2 }
 0x29d   : > { %v980_v52 = vmul.f32 -0.5, %v934_v15 }
 0x29e   : > { %v5352_v11 = vadd.f32 %v979_v58, %v825_v30  ;;  %v833_v30 = vadd.f32 %v5275_v39, %v5039_v43  ;;  %v1041_v34 = vpack.c.bf16 %v979_v58, %v977_v17  ;;  %v1032_v43 = vpack.c.bf16 %v5308_v2, %v5299_v20 }
 0x29f   : > { %v5354_v5 = vadd.f32 %v980_v52, %v828_v12  ;;  %v1033_v17 = vpack.c.bf16 %v5317_v21, %v5305_v60  ;;  %v815_v60 = vadd.f32 %v5207_v24, %v5171_v59  ;;  %v823_v59 = vadd.f32 %v5215_v33, %v5161_v25  ;;  %v8057_v25 = vld [vmem:[#allocation17_spill] sm:$0xff] }
 0x2a0   : > { %v831_v33 = vadd.f32 %v8057_v25, %v5145_v10 }
 0x2a3   : > { %v963_v26 = vpop.f32.mrf.mxu3 }
 0x2a4   : > { %v981_v40 = vmul.f32 -0.5, %v963_v26  ;;  %v936_v29 = vpop.f32.mrf.mxu2 }
 0x2a5   : > { %v982_v47 = vmul.f32 -0.5, %v936_v29 }
 0x2a6   : > { %v5360_v50 = vadd.f32 %v981_v40, %v829_v19 }
 0x2a7   : > { %v5362_v9 = vadd.f32 %v982_v47, %v832_v56  ;;  %v1044_v22 = vpack.c.bf16 %v982_v47, %v980_v52 }
 0x2a9   : > { %1052 = vmatpush.bf16.msrb.mxu0 %v1044_v22 }
 0x2ab   : > { %v965_v44 = vpop.f32.mrf.mxu3 }
 0x2ac   : > { %v983_v15 = vmul.f32 -0.5, %v965_v44  ;;  %v861_v12 = vpop.f32.mrf.mxu0 }
 0x2ad   : > { %v5368_v26 = vmul.f32 0.5, %v861_v12  ;;  %1053 = vmatpush.bf16.msrb.mxu0 %v1040_v51 }
 0x2ae   : > { %v5370_v23 = vadd.f32 %v983_v15, %v833_v30  ;;  %v1045_v35 = vpack.c.bf16 %v983_v15, %v981_v40 }
 0x2af   : > { %v5373_v52 = vadd.f32 %v5368_v26, %v806_v42 }
 0x2b0   : > { %1081 = vmatpush.bf16.msrb.mxu1 %v1045_v35 }
 0x2b1   : > { %1054 = vmatpush.bf16.msrb.mxu0 %v1036_v62 }
 0x2b3   : > { %v890_v39 = vpop.f32.mrf.mxu1 }
 0x2b4   : > { %v5380_v41 = vmul.f32 0.5, %v890_v39  ;;  %1082 = vmatpush.bf16.msrb.mxu1 %v1041_v34  ;;  %v863_v57 = vpop.f32.mrf.mxu0 }
 0x2b5   : > { %1055 = vmatpush.bf16.msrb.mxu0 %v1032_v43 }
 0x2b6   : > { %v5383_v3 = vadd.f32 %v5380_v41, %v807_v38 }
 0x2b8   : > { %1083 = vmatpush.bf16.msrb.mxu1 %v1037_v6  ;;  %4512 = vmatmul.msk.bf16.vlgmr.msrb.gmra.mxu0 %vm659_vm0, %v5078_v4 }
 0x2bb   : > { %v892_v20 = vpop.f32.mrf.mxu1 }
 0x2bc   : > { %1084 = vmatpush.bf16.msrb.mxu1 %v1033_v17  ;;  %v866_v61 = vpop.f32.mrf.mxu0 }
 0x2bd   : > { %v988_v2 = vmul.f32 0.5, %v866_v61  ;;  %v986_v61 = vmul.f32 0.5, %v863_v57 }
 0x2bf   : > { %v5391_v45 = vadd.f32 %v988_v2, %v814_v7  ;;  %4516 = vmatmul.msk.bf16.vlgmr.msrb.gmra.mxu1 %vm659_vm0, %v5078_v4 }
 0x2c3   : > { %v895_v8 = vpop.f32.mrf.mxu1 }
 0x2c4   : > { %v989_v21 = vmul.f32 0.5, %v895_v8  ;;  %v868_v58 = vpop.f32.mrf.mxu0 }
 0x2c5   : > { %v990_v36 = vmul.f32 0.5, %v868_v58  ;;  %v1034_v58 = vpack.c.bf16 %v986_v61, %v5368_v26 }
 0x2c6   : > { %v5397_v19 = vadd.f32 %v989_v21, %v815_v60 }
 0x2c7   : > { %v1038_v7 = vpack.c.bf16 %v990_v36, %v988_v2  ;;  %v8058_v2 = vld [vmem:[#allocation8_spill] sm:$0xff] }
 0x2c8   : > { %4513 = vmatmul.msk.bf16.gmra.mxu0 %vm659_vm0, %v5103_v16 }
 0x2cb   : > { %v897_v40 = vpop.f32.mrf.mxu1 }
 0x2cc   : > { %v871_v29 = vpop.f32.mrf.mxu0  ;;  %v991_v8 = vmul.f32 0.5, %v897_v40 }
 0x2cd   : > { %v992_v18 = vmul.f32 0.5, %v871_v29  ;;  %v987_v29 = vmul.f32 0.5, %v892_v20 }
 0x2cf   : > { %v5403_v56 = vadd.f32 %v992_v18, %v822_v14  ;;  %4517 = vmatmul.msk.bf16.gmra.mxu1 %vm659_vm0, %v5103_v16  ;;  %v1039_v14 = vpack.c.bf16 %v991_v8, %v989_v21  ;;  %v1035_v57 = vpack.c.bf16 %v987_v29, %v5380_v41  ;;  %v8059_v21 = vld [vmem:[#allocation11_spill] sm:$0xff] }
 0x2d0   : > { %v810_v40 = vadd.f32 %v8059_v21, %v8058_v2  ;;  %v8065_v2 = vld [vmem:[#allocation14_spill] sm:$0xff] }
 0x2d3   : > { %v900_v47 = vpop.f32.mrf.mxu1 }
 0x2d4   : > { %v993_v24 = vmul.f32 0.5, %v900_v47  ;;  %v873_v22 = vpop.f32.mrf.mxu0 }
 0x2d5   : > { %v5425_v43 = vmul.f32 0.5, %v873_v22 }
 0x2d6   : > { %v5409_v51 = vadd.f32 %v993_v24, %v823_v59 }
 0x2d7   : > { %v1042_v39 = vpack.c.bf16 %v5425_v43, %v992_v18 }
 0x2d8   : > { %4514 = vmatmul.msk.bf16.gmra.mxu0 %vm659_vm0, %v5115_v31 }
 0x2db   : > { %v902_v44 = vpop.f32.mrf.mxu1 }
 0x2dc   : > { %v876_v30 = vpop.f32.mrf.mxu0  ;;  %v5433_v10 = vmul.f32 0.5, %v902_v44 }
 0x2dd   : > { %v996_v32 = vmul.f32 0.5, %v876_v30 }
 0x2de   : > { %v1043_v60 = vpack.c.bf16 %v5433_v10, %v993_v24  ;;  %v1006_v24 = vadd.f32 %v986_v61, %v810_v40 }
 0x2df   : > { %v5415_v15 = vadd.f32 %v996_v32, %v830_v63  ;;  %4518 = vmatmul.msk.bf16.gmra.mxu1 %vm659_vm0, %v5115_v31  ;;  %v8060_v63 = vld [vmem:[#allocation10_spill] sm:$0xff] }
 0x2e3   : > { %v905_v12 = vpop.f32.mrf.mxu1 }
 0x2e4   : > { %v997_v42 = vmul.f32 0.5, %v905_v12  ;;  %v878_v62 = vpop.f32.mrf.mxu0 }
 0x2e5   : > { %v5421_v35 = vmul.f32 0.5, %v878_v62 }
 0x2e6   : > { %v5423_v34 = vadd.f32 %v997_v42, %v831_v33 }
 0x2e7   : > { %v1046_v48 = vpack.c.bf16 %v5421_v35, %v996_v32 }
 0x2e8   : > { %4515 = vmatmul.msk.bf16.gmra.mxu0 %vm659_vm0, %v5131_v53 }
 0x2e9   : > { %1110 = vmatpush.bf16.msrb.mxu2 %v1046_v48 }
 0x2eb   : > { %v907_v38 = vpop.f32.mrf.mxu1 }
 0x2ec   : > { %v5431_v6 = vmul.f32 0.5, %v907_v38  ;;  %v8063_v38 = vld [vmem:[#allocation13_spill] sm:$0xff] }
 0x2ed   : > { %1111 = vmatpush.bf16.msrb.mxu2 %v1042_v39 }
 0x2ee   : > { %v1047_v17 = vpack.c.bf16 %v5431_v6, %v997_v42 }
 0x2ef   : > { %4519 = vmatmul.msk.bf16.gmra.mxu1 %vm659_vm0, %v5131_v53 }
 0x2f0   : > { %1139 = vmatpush.bf16.msrb.mxu3 %v1047_v17 }
 0x2f1   : > { %1112 = vmatpush.bf16.msrb.mxu2 %v1038_v7 }
 0x2f4   : > { %1140 = vmatpush.bf16.msrb.mxu3 %v1043_v60 }
 0x2f5   : > { %1113 = vmatpush.bf16.msrb.mxu2 %v1034_v58 }
 0x2f8   : > { %1141 = vmatpush.bf16.msrb.mxu3 %v1039_v14  ;;  %4520 = vmatmul.msk.bf16.vlgmr.msrb.gmra.mxu2 %vm659_vm0, %v5078_v4 }
 0x2fc   : > { %1142 = vmatpush.bf16.msrb.mxu3 %v1035_v57 }
 0x2ff   : > { %4524 = vmatmul.msk.bf16.vlgmr.msrb.gmra.mxu3 %vm659_vm0, %v5078_v4 }
 0x308   : > { %4521 = vmatmul.msk.bf16.gmra.mxu2 %vm659_vm0, %v5103_v16 }
 0x30f   : > { %4525 = vmatmul.msk.bf16.gmra.mxu3 %vm659_vm0, %v5103_v16 }
 0x318   : > { %4522 = vmatmul.msk.bf16.gmra.mxu2 %vm659_vm0, %v5115_v31 }
 0x31f   : > { %4526 = vmatmul.msk.bf16.gmra.mxu3 %vm659_vm0, %v5115_v31 }
 0x328   : > { %4523 = vmatmul.msk.bf16.gmra.mxu2 %vm659_vm0, %v5131_v53 }
 0x32f   : > { %4527 = vmatmul.msk.bf16.gmra.mxu3 %vm659_vm0, %v5131_v53 }
 0x335   : > { %v1057_v26 = vpop.f32.mrf.mxu0 }
 0x336   : > { %v5457_v41 = vmul.f32 0.33333334, %v1057_v26  ;;  %v8064_v26 = vld [vmem:[#allocation9_spill] sm:$0xff] }
 0x337   : > { %v819_v21 = vadd.f32 %v8065_v2, %v8064_v26 }
 0x338   : > { %v5461_v20 = vadd.f32 %v5457_v41, %v5373_v52  ;;  %v8061_v52 = vld [vmem:[#allocation12_spill] sm:$0xff] }
 0x339   : > { %v811_v32 = vadd.f32 %v8061_v52, %v8060_v63 }
 0x33b   : > { %v1007_v25 = vadd.f32 %v987_v29, %v811_v32  ;;  %v8067_v32 = vld [vmem:[#allocation15_spill] sm:$0xff] }
 0x33c   : > { %v1086_v18 = vpop.f32.mrf.mxu1 }
 0x33d   : > { %v5465_v47 = vmul.f32 0.33333334, %v1086_v18  ;;  %v1059_v59 = vpop.f32.mrf.mxu0  ;;  %v1015_v18 = vadd.f32 %v991_v8, %v819_v21 }
 0x33e   : > { %v5467_v22 = vmul.f32 0.33333334, %v1059_v59 }
 0x33f   : > { %v5471_v44 = vadd.f32 %v5465_v47, %v5383_v3  ;;  %v8062_v3 = vld [vmem:[#allocation5_spill] sm:$0xff] }
 0x340   : > { %v5474_v30 = vadd.f32 %v5467_v22, %v1006_v24  ;;  %v818_v17 = vadd.f32 %v8063_v38, %v8062_v3 }
 0x342   : > { %v1014_v58 = vadd.f32 %v990_v36, %v818_v17  ;;  %v8066_v36 = vld [vmem:[#allocation4_spill] sm:$0xff] }
 0x344   : > { %v1088_v12 = vpop.f32.mrf.mxu1 }
 0x345   : > { %v5478_v33 = vmul.f32 0.33333334, %v1088_v12  ;;  %v1062_v42 = vpop.f32.mrf.mxu0  ;;  %v826_v12 = vadd.f32 %v8067_v32, %v8066_v36  ;;  %v8072_v36 = vld [vmem:[#allocation18_spill] sm:$0xff] }
 0x346   : > { %v1184_v62 = vmul.f32 0.33333334, %v1062_v42 }
 0x347   : > { %v5481_v48 = vadd.f32 %v5478_v33, %v1007_v25  ;;  %v1022_v3 = vadd.f32 %v5425_v43, %v826_v12  ;;  %v8071_v43 = vld [vmem:[#allocation3_spill] sm:$0xff] }
 0x348   : > { %v5484_v39 = vadd.f32 %v1184_v62, %v5391_v45 }
 0x34c   : > { %v1091_v61 = vpop.f32.mrf.mxu1 }
 0x34d   : > { %v1185_v7 = vmul.f32 0.33333334, %v1091_v61  ;;  %v1064_v60 = vpop.f32.mrf.mxu0  ;;  %v8068_v61 = vld [vmem:[#allocation7_spill] sm:$0xff] }
 0x34e   : > { %v1186_v14 = vmul.f32 0.33333334, %v1064_v60  ;;  %v8069_v60 = vld [vmem:[#allocation16_spill] sm:$0xff] }
 0x34f   : > { %v5489_v29 = vadd.f32 %v1185_v7, %v5397_v19 }
 0x350   : > { %v5491_v57 = vadd.f32 %v1186_v14, %v1014_v58  ;;  %v827_v58 = vadd.f32 %v8069_v60, %v8068_v61 }
 0x354   : > { %v1093_v40 = vpop.f32.mrf.mxu1 }
 0x355   : > { %v1187_v45 = vmul.f32 0.33333334, %v1093_v40  ;;  %v1067_v59 = vpop.f32.mrf.mxu0 }
 0x356   : > { %v1188_v24 = vmul.f32 0.33333334, %v1067_v59 }
 0x357   : > { %v5495_v63 = vadd.f32 %v1187_v45, %v1015_v18 }
 0x358   : > { %v5498_v52 = vadd.f32 %v1188_v24, %v5403_v56  ;;  %v1023_v56 = vadd.f32 %v5433_v10, %v827_v58 }
 0x35c   : > { %v1096_v19 = vpop.f32.mrf.mxu1 }
 0x35d   : > { %v1189_v25 = vmul.f32 0.33333334, %v1096_v19  ;;  %v1069_v42 = vpop.f32.mrf.mxu0 }
 0x35e   : > { %v1190_v38 = vmul.f32 0.33333334, %v1069_v42 }
 0x35f   : > { %v5504_v17 = vadd.f32 %v1189_v25, %v5409_v51  ;;  %v834_v51 = vadd.f32 %v8072_v36, %v8071_v43 }
 0x360   : > { %v5506_v8 = vadd.f32 %v1190_v38, %v1022_v3  ;;  %v1238_v58 = vpack.c.bf16 %v1190_v38, %v1188_v24 }
 0x361   : > { %v1030_v42 = vadd.f32 %v5421_v35, %v834_v51 }
 0x364   : > { %v1098_v26 = vpop.f32.mrf.mxu1 }
 0x365   : > { %v1191_v2 = vmul.f32 0.33333334, %v1098_v26  ;;  %v1072_v21 = vpop.f32.mrf.mxu0  ;;  %v8073_v26 = vld [vmem:[#allocation6_spill] sm:$0xff] }
 0x366   : > { %v1192_v40 = vmul.f32 0.33333334, %v1072_v21 }
 0x367   : > { %v5511_v18 = vadd.f32 %v1191_v2, %v1023_v56  ;;  %v1239_v51 = vpack.c.bf16 %v1191_v2, %v1189_v25 }
 0x368   : > { %v5514_v59 = vadd.f32 %v1192_v40, %v5415_v15  ;;  %v8074_v15 = vld [vmem:[#allocation19_spill] sm:$0xff] }
 0x369   : > { %v835_v56 = vadd.f32 %v8074_v15, %v8073_v26 }
 0x36a   : > { %8070 = vst [vmem:[#allocation17_spill] sm:$0xff] %v5514_v59 }
 0x36b   : > { %v1031_v43 = vadd.f32 %v5431_v6, %v835_v56 }
 0x36c   : > { %v1101_v32 = vpop.f32.mrf.mxu1 }
 0x36d   : > { %v1193_v12 = vmul.f32 0.33333334, %v1101_v32  ;;  %v1074_v19 = vpop.f32.mrf.mxu0  ;;  %v1234_v32 = vpack.c.bf16 %v1186_v14, %v1184_v62  ;;  %v1231_v62 = vpack.c.bf16 %v5478_v33, %v5465_v47 }
 0x36e   : > { %v1194_v3 = vmul.f32 0.33333334, %v1074_v19 }
 0x36f   : > { %v5520_v61 = vadd.f32 %v1193_v12, %v5423_v34  ;;  %v1230_v34 = vpack.c.bf16 %v5467_v22, %v5457_v41 }
 0x370   : > { %v5522_v10 = vadd.f32 %v1194_v3, %v1030_v42  ;;  %v1242_v60 = vpack.c.bf16 %v1194_v3, %v1192_v40  ;;  %v1235_v40 = vpack.c.bf16 %v1187_v45, %v1185_v7 }
 0x372   : > { %1306 = vmatpush.bf16.msra.mxu2 %v1242_v60 }
 0x374   : > { %v1103_v21 = vpop.f32.mrf.mxu1 }
 0x375   : > { %v1195_v36 = vmul.f32 0.33333334, %v1103_v21 }
 0x376   : > { %1307 = vmatpush.bf16.msra.mxu2 %v1238_v58  ;;  %v8075_v58 = vld [vmem:[#allocation20_spill] sm:$0xff] }
 0x377   : > { %v5527_v59 = vadd.f32 %v1195_v36, %v1031_v43  ;;  %v1243_v35 = vpack.c.bf16 %v1195_v36, %v1193_v12 }
 0x379   : > { %1335 = vmatpush.bf16.msra.mxu3 %v1243_v35 }
 0x37a   : > { %1308 = vmatpush.bf16.msra.mxu2 %v1234_v32 }
 0x37b   : > { %v1115_v24 = vpop.f32.mrf.mxu2 }
 0x37c   : > { %v5531_v38 = vmul.f32 -0.33333334, %v1115_v24 }
 0x37d   : > { %1336 = vmatpush.bf16.msra.mxu3 %v1239_v51 }
 0x37e   : > { %v5535_v6 = vadd.f32 %v5531_v38, %v5302_v27  ;;  %1309 = vmatpush.bf16.msra.mxu2 %v1230_v34 }
 0x381   : > { %1337 = vmatpush.bf16.msra.mxu3 %v1235_v40  ;;  %4536 = vmatmul.msk.bf16.vlgmr.msra.gmra.mxu2 %vm659_vm0, %v5078_v4 }
 0x382   : > { %v1144_v14 = vpop.f32.mrf.mxu3 }
 0x383   : > { %v5541_v41 = vmul.f32 -0.33333334, %v1144_v14  ;;  %v1117_v22 = vpop.f32.mrf.mxu2 }
 0x384   : > { %v1166_v25 = vmul.f32 -0.33333334, %v1117_v22 }
 0x385   : > { %v5545_v7 = vadd.f32 %v5541_v41, %v5311_v13  ;;  %1338 = vmatpush.bf16.msra.mxu3 %v1231_v62 }
 0x386   : > { %v5548_v27 = vadd.f32 %v1166_v25, %v5314_v55 }
 0x388   : > { %4540 = vmatmul.msk.bf16.vlgmr.msra.gmra.mxu3 %vm659_vm0, %v5078_v4 }
 0x38a   : > { %v1146_v47 = vpop.f32.mrf.mxu3 }
 0x38b   : > { %v1167_v33 = vmul.f32 -0.33333334, %v1146_v47  ;;  %v1120_v45 = vpop.f32.mrf.mxu2 }
 0x38c   : > { %v1168_v2 = vmul.f32 -0.33333334, %v1120_v45 }
 0x38d   : > { %v5553_v12 = vadd.f32 %v1167_v33, %v5321_v0 }
 0x38e   : > { %v5556_v19 = vadd.f32 %v1168_v2, %v5323_v49 }
 0x391   : > { %4537 = vmatmul.msk.bf16.gmra.mxu2 %vm659_vm0, %v5103_v16 }
 0x392   : > { %v1149_v13 = vpop.f32.mrf.mxu3 }
 0x393   : > { %v1169_v42 = vmul.f32 -0.33333334, %v1149_v13  ;;  %v1122_v55 = vpop.f32.mrf.mxu2 }
 0x394   : > { %v1170_v3 = vmul.f32 -0.33333334, %v1122_v55 }
 0x395   : > { %v5561_v60 = vadd.f32 %v1169_v42, %v5330_v28 }
 0x396   : > { %v5564_v26 = vadd.f32 %v1170_v3, %v8075_v58 }
 0x398   : > { %4541 = vmatmul.msk.bf16.gmra.mxu3 %vm659_vm0, %v5103_v16 }
 0x39a   : > { %v1151_v0 = vpop.f32.mrf.mxu3 }
 0x39b   : > { %v1171_v15 = vmul.f32 -0.33333334, %v1151_v0  ;;  %v1125_v49 = vpop.f32.mrf.mxu2 }
 0x39c   : > { %v1172_v56 = vmul.f32 -0.33333334, %v1125_v49 }
 0x39d   : > { %v5569_v21 = vadd.f32 %v1171_v15, %v5337_v37 }
 0x39e   : > { %v5572_v43 = vadd.f32 %v1172_v56, %v5339_v54 }
 0x3a1   : > { %4538 = vmatmul.msk.bf16.gmra.mxu2 %vm659_vm0, %v5115_v31 }
 0x3a2   : > { %v1154_v28 = vpop.f32.mrf.mxu3 }
 0x3a3   : > { %v1173_v36 = vmul.f32 -0.33333334, %v1154_v28  ;;  %v1127_v32 = vpop.f32.mrf.mxu2  ;;  %v1232_v28 = vpack.c.bf16 %v1170_v3, %v1168_v2 }
 0x3a4   : > { %v1174_v35 = vmul.f32 -0.33333334, %v1127_v32  ;;  %v1233_v32 = vpack.c.bf16 %v1171_v15, %v1169_v42 }
 0x3a5   : > { %v5577_v51 = vadd.f32 %v1173_v36, %v5344_v1 }
 0x3a6   : > { %v5580_v34 = vadd.f32 %v1174_v35, %v5346_v46 }
 0x3a8   : > { %4542 = vmatmul.msk.bf16.gmra.mxu3 %vm659_vm0, %v5115_v31 }
 0x3aa   : > { %v1156_v37 = vpop.f32.mrf.mxu3 }
 0x3ab   : > { %v1175_v24 = vmul.f32 -0.33333334, %v1156_v37  ;;  %v1130_v54 = vpop.f32.mrf.mxu2 }
 0x3ac   : > { %v1176_v40 = vmul.f32 -0.33333334, %v1130_v54 }
 0x3ad   : > { %v5585_v62 = vadd.f32 %v1175_v24, %v5352_v11  ;;  %v1236_v11 = vpack.c.bf16 %v1174_v35, %v1172_v56  ;;  %v1229_v56 = vpack.c.bf16 %v1167_v33, %v5541_v41 }
 0x3ae   : > { %v5588_v14 = vadd.f32 %v1176_v40, %v5354_v5 }
 0x3b1   : > { %4539 = vmatmul.msk.bf16.gmra.mxu2 %vm659_vm0, %v5131_v53 }
 0x3b2   : > { %v1159_v1 = vpop.f32.mrf.mxu3 }
 0x3b3   : > { %v1177_v22 = vmul.f32 -0.33333334, %v1159_v1  ;;  %v1132_v46 = vpop.f32.mrf.mxu2 }
 0x3b4   : > { %v1178_v47 = vmul.f32 -0.33333334, %v1132_v46 }
 0x3b5   : > { %v5593_v45 = vadd.f32 %v1177_v22, %v5360_v50  ;;  %v1237_v50 = vpack.c.bf16 %v1175_v24, %v1173_v36 }
 0x3b6   : > { %v5596_v13 = vadd.f32 %v1178_v47, %v5362_v9  ;;  %v1240_v55 = vpack.c.bf16 %v1178_v47, %v1176_v40  ;;  %v1228_v9 = vpack.c.bf16 %v1166_v25, %v5531_v38 }
 0x3b8   : > { %4543 = vmatmul.msk.bf16.gmra.mxu3 %vm659_vm0, %v5131_v53  ;;  %1248 = vmatpush.bf16.msra.mxu0 %v1240_v55 }
 0x3ba   : > { %v1161_v5 = vpop.f32.mrf.mxu3 }
 0x3bb   : > { %v1179_v58 = vmul.f32 -0.33333334, %v1161_v5 }
 0x3bc   : > { %1249 = vmatpush.bf16.msra.mxu0 %v1236_v11 }
 0x3bd   : > { %v5601_v0 = vadd.f32 %v1179_v58, %v5370_v23  ;;  %v1241_v49 = vpack.c.bf16 %v1179_v58, %v1177_v22 }
 0x3bf   : > { %1277 = vmatpush.bf16.msra.mxu1 %v1241_v49 }
 0x3c0   : > { %1250 = vmatpush.bf16.msra.mxu0 %v1232_v28 }
 0x3c3   : > { %1278 = vmatpush.bf16.msra.mxu1 %v1237_v50 }
 0x3c4   : > { %1251 = vmatpush.bf16.msra.mxu0 %v1228_v9 }
 0x3c7   : > { %1279 = vmatpush.bf16.msra.mxu1 %v1233_v32  ;;  %4528 = vmatmul.msk.bf16.vlgmr.msra.gmra.mxu0 %vm659_vm0, %v5078_v4 }
 0x3cb   : > { %1280 = vmatpush.bf16.msra.mxu1 %v1229_v56 }
 0x3ce   : > { %4532 = vmatmul.msk.bf16.vlgmr.msra.gmra.mxu1 %vm659_vm0, %v5078_v4 }
 0x3d7   : > { %4529 = vmatmul.msk.bf16.gmra.mxu0 %vm659_vm0, %v5103_v16 }
 0x3de   : > { %4533 = vmatmul.msk.bf16.gmra.mxu1 %vm659_vm0, %v5103_v16 }
 0x3e7   : > { %4530 = vmatmul.msk.bf16.gmra.mxu0 %vm659_vm0, %v5115_v31 }
 0x3ee   : > { %4534 = vmatmul.msk.bf16.gmra.mxu1 %vm659_vm0, %v5115_v31 }
 0x3f7   : > { %4531 = vmatmul.msk.bf16.gmra.mxu0 %vm659_vm0, %v5131_v53 }
 0x3fe   : > { %4535 = vmatmul.msk.bf16.gmra.mxu1 %vm659_vm0, %v5131_v53 }
 0x404   : > { %v1311_v23 = vpop.f32.mrf.mxu2 }
 0x405   : > { %v5621_v38 = vmul.f32 -0.25, %v1311_v23 }
 0x407   : > { %v5625_v41 = vadd.f32 %v5621_v38, %v5535_v6 }
 0x40b   : > { %v1340_v25 = vpop.f32.mrf.mxu3 }
 0x40c   : > { %v5627_v33 = vmul.f32 -0.25, %v1340_v25  ;;  %v1313_v2 = vpop.f32.mrf.mxu2 }
 0x40d   : > { %v1362_v42 = vmul.f32 -0.25, %v1313_v2 }
 0x40e   : > { %v5631_v3 = vadd.f32 %v5627_v33, %v5545_v7 }
 0x40f   : > { %v5634_v15 = vadd.f32 %v1362_v42, %v5548_v27 }
 0x413   : > { %v1342_v36 = vpop.f32.mrf.mxu3 }
 0x414   : > { %v5636_v35 = vmul.f32 -0.25, %v1342_v36  ;;  %v1316_v37 = vpop.f32.mrf.mxu2 }
 0x415   : > { %v1364_v24 = vmul.f32 -0.25, %v1316_v37 }
 0x416   : > { %v5640_v6 = vadd.f32 %v5636_v35, %v5553_v12 }
 0x417   : > { %v5643_v54 = vadd.f32 %v1364_v24, %v5556_v19 }
 0x41b   : > { %v1345_v40 = vpop.f32.mrf.mxu3 }
 0x41c   : > { %v1365_v1 = vmul.f32 -0.25, %v1345_v40  ;;  %v1318_v22 = vpop.f32.mrf.mxu2 }
 0x41d   : > { %v1366_v7 = vmul.f32 -0.25, %v1318_v22 }
 0x41e   : > { %v5646_v46 = vadd.f32 %v1365_v1, %v5561_v60 }
 0x41f   : > { %v5649_v27 = vadd.f32 %v1366_v7, %v5564_v26 }
 0x423   : > { %v1347_v47 = vpop.f32.mrf.mxu3 }
 0x424   : > { %v1367_v55 = vmul.f32 -0.25, %v1347_v47  ;;  %v1321_v11 = vpop.f32.mrf.mxu2 }
 0x425   : > { %v1368_v5 = vmul.f32 -0.25, %v1321_v11 }
 0x426   : > { %v5652_v12 = vadd.f32 %v1367_v55, %v5569_v21 }
 0x427   : > { %v5655_v19 = vadd.f32 %v1368_v5, %v5572_v43 }
 0x42b   : > { %v1350_v58 = vpop.f32.mrf.mxu3 }
 0x42c   : > { %v1369_v49 = vmul.f32 -0.25, %v1350_v58  ;;  %v1323_v28 = vpop.f32.mrf.mxu2  ;;  %v1428_v58 = vpack.c.bf16 %v1366_v7, %v1364_v24 }
 0x42d   : > { %v1370_v50 = vmul.f32 -0.25, %v1323_v28 }
 0x42e   : > { %v5658_v60 = vadd.f32 %v1369_v49, %v5577_v51 }
 0x42f   : > { %v5661_v26 = vadd.f32 %v1370_v50, %v5580_v34  ;;  %v1432_v22 = vpack.c.bf16 %v1370_v50, %v1368_v5  ;;  %v1424_v5 = vpack.c.bf16 %v1362_v42, %v5621_v38  ;;  %v1425_v38 = vpack.c.bf16 %v5636_v35, %v5627_v33 }
 0x433   : > { %v1352_v9 = vpop.f32.mrf.mxu3 }
 0x434   : > { %v1371_v32 = vmul.f32 -0.25, %v1352_v9  ;;  %v1326_v56 = vpop.f32.mrf.mxu2 }
 0x435   : > { %v1372_v23 = vmul.f32 -0.25, %v1326_v56  ;;  %v1429_v56 = vpack.c.bf16 %v1367_v55, %v1365_v1 }
 0x436   : > { %v5664_v21 = vadd.f32 %v1371_v32, %v5585_v62 }
 0x437   : > { %v5667_v43 = vadd.f32 %v1372_v23, %v5588_v14 }
 0x43b   : > { %v1355_v25 = vpop.f32.mrf.mxu3 }
 0x43c   : > { %v1373_v2 = vmul.f32 -0.25, %v1355_v25  ;;  %v1328_v36 = vpop.f32.mrf.mxu2 }
 0x43d   : > { %v1374_v37 = vmul.f32 -0.25, %v1328_v36 }
 0x43e   : > { %v5670_v51 = vadd.f32 %v1373_v2, %v5593_v45 }
 0x43f   : > { %v5673_v34 = vadd.f32 %v1374_v37, %v5596_v13  ;;  %v1436_v40 = vpack.c.bf16 %v1374_v37, %v1372_v23  ;;  %v1433_v13 = vpack.c.bf16 %v1371_v32, %v1369_v49 }
 0x441   : > { %1444 = vmatpush.bf16.msrb.mxu0 %v1436_v40 }
 0x443   : > { %v1357_v47 = vpop.f32.mrf.mxu3 }
 0x444   : > { %v1375_v11 = vmul.f32 -0.25, %v1357_v47  ;;  %v1253_v62 = vpop.f32.mrf.mxu0 }
 0x445   : > { %v5675_v28 = vmul.f32 0.25, %v1253_v62  ;;  %1445 = vmatpush.bf16.msrb.mxu0 %v1432_v22 }
 0x446   : > { %v5678_v14 = vadd.f32 %v1375_v11, %v5601_v0  ;;  %v1437_v9 = vpack.c.bf16 %v1375_v11, %v1373_v2 }
 0x447   : > { %v5682_v45 = vadd.f32 %v5675_v28, %v5461_v20 }
 0x448   : > { %1473 = vmatpush.bf16.msrb.mxu1 %v1437_v9 }
 0x449   : > { %1446 = vmatpush.bf16.msrb.mxu0 %v1428_v58 }
 0x44b   : > { %v1282_v50 = vpop.f32.mrf.mxu1 }
 0x44c   : > { %v5685_v23 = vmul.f32 0.25, %v1282_v50  ;;  %1474 = vmatpush.bf16.msrb.mxu1 %v1433_v13  ;;  %v1255_v24 = vpop.f32.mrf.mxu0 }
 0x44d   : > { %v5687_v7 = vmul.f32 0.25, %v1255_v24  ;;  %1447 = vmatpush.bf16.msrb.mxu0 %v1424_v5 }
 0x44e   : > { %v5691_v0 = vadd.f32 %v5685_v23, %v5471_v44 }
 0x44f   : > { %v5695_v20 = vadd.f32 %v5687_v7, %v5474_v30 }
 0x450   : > { %1475 = vmatpush.bf16.msrb.mxu1 %v1429_v56  ;;  %4544 = vmatmul.msk.bf16.vlgmr.msrb.gmra.mxu0 %vm659_vm0, %v5078_v4  ;;  %v8076_v56 = vld [vmem:[#allocation17_spill] sm:$0xff] }
 0x453   : > { %v1284_v42 = vpop.f32.mrf.mxu1 }
 0x454   : > { %v1379_v1 = vmul.f32 0.25, %v1284_v42  ;;  %1476 = vmatpush.bf16.msrb.mxu1 %v1425_v38  ;;  %v1258_v55 = vpop.f32.mrf.mxu0 }
 0x455   : > { %v1380_v49 = vmul.f32 0.25, %v1258_v55 }
 0x456   : > { %v5702_v32 = vadd.f32 %v1379_v1, %v5481_v48 }
 0x457   : > { %v5705_v44 = vadd.f32 %v1380_v49, %v5484_v39  ;;  %4548 = vmatmul.msk.bf16.vlgmr.msrb.gmra.mxu1 %vm659_vm0, %v5078_v4 }
 0x45b   : > { %v1287_v30 = vpop.f32.mrf.mxu1 }
 0x45c   : > { %v1381_v33 = vmul.f32 0.25, %v1287_v30  ;;  %v1260_v35 = vpop.f32.mrf.mxu0 }
 0x45d   : > { %v1382_v25 = vmul.f32 0.25, %v1260_v35 }
 0x45e   : > { %v5710_v2 = vadd.f32 %v1381_v33, %v5489_v29 }
 0x45f   : > { %v5713_v36 = vadd.f32 %v1382_v25, %v5491_v57 }
 0x460   : > { %4545 = vmatmul.msk.bf16.gmra.mxu0 %vm659_vm0, %v5103_v16 }
 0x463   : > { %v1289_v48 = vpop.f32.mrf.mxu1 }
 0x464   : > { %v1383_v37 = vmul.f32 0.25, %v1289_v48  ;;  %v1263_v39 = vpop.f32.mrf.mxu0 }
 0x465   : > { %v1384_v40 = vmul.f32 0.25, %v1263_v39 }
 0x466   : > { %v5718_v22 = vadd.f32 %v1383_v37, %v5495_v63 }
 0x467   : > { %v5721_v47 = vadd.f32 %v1384_v40, %v5498_v52  ;;  %4549 = vmatmul.msk.bf16.gmra.mxu1 %vm659_vm0, %v5103_v16 }
 0x46b   : > { %v1292_v29 = vpop.f32.mrf.mxu1 }
 0x46c   : > { %v1385_v11 = vmul.f32 0.25, %v1292_v29  ;;  %v1265_v57 = vpop.f32.mrf.mxu0 }
 0x46d   : > { %v1386_v62 = vmul.f32 0.25, %v1265_v57 }
 0x46e   : > { %v5726_v58 = vadd.f32 %v1385_v11, %v5504_v17 }
 0x46f   : > { %v5729_v9 = vadd.f32 %v1386_v62, %v5506_v8 }
 0x470   : > { %4546 = vmatmul.msk.bf16.gmra.mxu0 %vm659_vm0, %v5115_v31 }
 0x473   : > { %v1294_v63 = vpop.f32.mrf.mxu1 }
 0x474   : > { %v1387_v13 = vmul.f32 0.25, %v1294_v63  ;;  %v1268_v52 = vpop.f32.mrf.mxu0  ;;  %v1430_v63 = vpack.c.bf16 %v1382_v25, %v1380_v49 }
 0x475   : > { %v1388_v5 = vmul.f32 0.25, %v1268_v52 }
 0x476   : > { %v5734_v50 = vadd.f32 %v1387_v13, %v5511_v18  ;;  %v1434_v18 = vpack.c.bf16 %v1386_v62, %v1384_v40  ;;  %v1431_v40 = vpack.c.bf16 %v1383_v37, %v1381_v33 }
 0x477   : > { %v5737_v24 = vadd.f32 %v1388_v5, %v8076_v56  ;;  %4550 = vmatmul.msk.bf16.gmra.mxu1 %vm659_vm0, %v5115_v31 }
 0x47b   : > { %v1297_v17 = vpop.f32.mrf.mxu1 }
 0x47c   : > { %v1389_v38 = vmul.f32 0.25, %v1297_v17  ;;  %v1270_v8 = vpop.f32.mrf.mxu0 }
 0x47d   : > { %v1390_v42 = vmul.f32 0.25, %v1270_v8 }
 0x47e   : > { %v5742_v55 = vadd.f32 %v1389_v38, %v5520_v61  ;;  %v1435_v61 = vpack.c.bf16 %v1387_v13, %v1385_v11 }
 0x47f   : > { %v5745_v30 = vadd.f32 %v1390_v42, %v5522_v10  ;;  %v1438_v35 = vpack.c.bf16 %v1390_v42, %v1388_v5  ;;  %v1426_v10 = vpack.c.bf16 %v5687_v7, %v5675_v28 }
 0x480   : > { %4547 = vmatmul.msk.bf16.gmra.mxu0 %vm659_vm0, %v5131_v53 }
 0x481   : > { %1502 = vmatpush.bf16.msrb.mxu2 %v1438_v35 }
 0x483   : > { %v1299_v48 = vpop.f32.mrf.mxu1 }
 0x484   : > { %v1391_v39 = vmul.f32 0.25, %v1299_v48 }
 0x485   : > { %1503 = vmatpush.bf16.msrb.mxu2 %v1434_v18 }
 0x486   : > { %v5750_v29 = vadd.f32 %v1391_v39, %v5527_v59  ;;  %v1439_v57 = vpack.c.bf16 %v1391_v39, %v1389_v38  ;;  %v1427_v59 = vpack.c.bf16 %v1379_v1, %v5685_v23 }
 0x487   : > { %4551 = vmatmul.msk.bf16.gmra.mxu1 %vm659_vm0, %v5131_v53 }
 0x488   : > { %1531 = vmatpush.bf16.msrb.mxu3 %v1439_v57 }
 0x489   : > { %1504 = vmatpush.bf16.msrb.mxu2 %v1430_v63 }
 0x48c   : > { %1532 = vmatpush.bf16.msrb.mxu3 %v1435_v61 }
 0x48d   : > { %1505 = vmatpush.bf16.msrb.mxu2 %v1426_v10 }
 0x490   : > { %1533 = vmatpush.bf16.msrb.mxu3 %v1431_v40  ;;  %4552 = vmatmul.msk.bf16.vlgmr.msrb.gmra.mxu2 %vm659_vm0, %v5078_v4 }
 0x494   : > { %1534 = vmatpush.bf16.msrb.mxu3 %v1427_v59 }
 0x497   : > { %4556 = vmatmul.msk.bf16.vlgmr.msrb.gmra.mxu3 %vm659_vm0, %v5078_v4 }
 0x4a0   : > { %4553 = vmatmul.msk.bf16.gmra.mxu2 %vm659_vm0, %v5103_v16 }
 0x4a7   : > { %4557 = vmatmul.msk.bf16.gmra.mxu3 %vm659_vm0, %v5103_v16 }
 0x4b0   : > { %4554 = vmatmul.msk.bf16.gmra.mxu2 %vm659_vm0, %v5115_v31 }
 0x4b7   : > { %4558 = vmatmul.msk.bf16.gmra.mxu3 %vm659_vm0, %v5115_v31 }
 0x4c0   : > { %4555 = vmatmul.msk.bf16.gmra.mxu2 %vm659_vm0, %v5131_v53 }
 0x4c7   : > { %4559 = vmatmul.msk.bf16.gmra.mxu3 %vm659_vm0, %v5131_v53 }
 0x4cd   : > { %v1449_v28 = vpop.f32.mrf.mxu0 }
 0x4ce   : > { %v1572_v23 = vmul.f32 0.2, %v1449_v28 }
 0x4d0   : > { %v5774_v7 = vadd.f32 %v1572_v23, %v5682_v45 }
 0x4d4   : > { %v1478_v1 = vpop.f32.mrf.mxu1 }
 0x4d5   : > { %v5776_v49 = vmul.f32 0.2, %v1478_v1  ;;  %v1451_v33 = vpop.f32.mrf.mxu0 }
 0x4d6   : > { %v1574_v25 = vmul.f32 0.2, %v1451_v33 }
 0x4d7   : > { %v5780_v37 = vadd.f32 %v5776_v49, %v5691_v0 }
 0x4d8   : > { %v5783_v11 = vadd.f32 %v1574_v25, %v5695_v20 }
 0x4dc   : > { %v1480_v62 = vpop.f32.mrf.mxu1 }
 0x4dd   : > { %v1575_v13 = vmul.f32 0.2, %v1480_v62  ;;  %v1454_v52 = vpop.f32.mrf.mxu0 }
 0x4de   : > { %v1576_v5 = vmul.f32 0.2, %v1454_v52 }
 0x4df   : > { %v5786_v56 = vadd.f32 %v1575_v13, %v5702_v32 }
 0x4e0   : > { %v5789_v45 = vadd.f32 %v1576_v5, %v5705_v44 }
 0x4e4   : > { %v1483_v17 = vpop.f32.mrf.mxu1 }
 0x4e5   : > { %v1577_v38 = vmul.f32 0.2, %v1483_v17  ;;  %v1456_v8 = vpop.f32.mrf.mxu0 }
 0x4e6   : > { %v1578_v42 = vmul.f32 0.2, %v1456_v8 }
 0x4e7   : > { %v5792_v0 = vadd.f32 %v1577_v38, %v5710_v2 }
 0x4e8   : > { %v5795_v20 = vadd.f32 %v1578_v42, %v5713_v36 }
 0x4ec   : > { %v1485_v35 = vpop.f32.mrf.mxu1 }
 0x4ed   : > { %v1579_v18 = vmul.f32 0.2, %v1485_v35  ;;  %v1459_v48 = vpop.f32.mrf.mxu0 }
 0x4ee   : > { %v1580_v39 = vmul.f32 0.2, %v1459_v48 }
 0x4ef   : > { %v5798_v32 = vadd.f32 %v1579_v18, %v5718_v22 }
 0x4f0   : > { %v5801_v44 = vadd.f32 %v1580_v39, %v5721_v47 }
 0x4f4   : > { %v1488_v57 = vpop.f32.mrf.mxu1 }
 0x4f5   : > { %v1581_v63 = vmul.f32 0.2, %v1488_v57  ;;  %v1461_v61 = vpop.f32.mrf.mxu0 }
 0x4f6   : > { %v1582_v10 = vmul.f32 0.2, %v1461_v61 }
 0x4f7   : > { %v5804_v2 = vadd.f32 %v1581_v63, %v5726_v58 }
 0x4f8   : > { %v5807_v36 = vadd.f32 %v1582_v10, %v5729_v9  ;;  %v1630_v35 = vpack.c.bf16 %v1582_v10, %v1580_v39 }
 0x4fc   : > { %v1490_v40 = vpop.f32.mrf.mxu1 }
 0x4fd   : > { %v1583_v59 = vmul.f32 0.2, %v1490_v40  ;;  %v1464_v28 = vpop.f32.mrf.mxu0 }
 0x4fe   : > { %v1584_v1 = vmul.f32 0.2, %v1464_v28  ;;  %v1622_v28 = vpack.c.bf16 %v1574_v25, %v1572_v23 }
 0x4ff   : > { %v5810_v22 = vadd.f32 %v1583_v59, %v5734_v50  ;;  %v1626_v50 = vpack.c.bf16 %v1578_v42, %v1576_v5  ;;  %v1631_v40 = vpack.c.bf16 %v1583_v59, %v1581_v63  ;;  %v1623_v5 = vpack.c.bf16 %v1575_v13, %v5776_v49 }
 0x500   : > { %v5813_v47 = vadd.f32 %v1584_v1, %v5737_v24 }
 0x504   : > { %v1493_v33 = vpop.f32.mrf.mxu1 }
 0x505   : > { %v1585_v62 = vmul.f32 0.2, %v1493_v33  ;;  %v1466_v52 = vpop.f32.mrf.mxu0 }
 0x506   : > { %v1586_v17 = vmul.f32 0.2, %v1466_v52 }
 0x507   : > { %v5816_v58 = vadd.f32 %v1585_v62, %v5742_v55 }
 0x508   : > { %v5819_v9 = vadd.f32 %v1586_v17, %v5745_v30  ;;  %v1634_v8 = vpack.c.bf16 %v1586_v17, %v1584_v1  ;;  %v1627_v30 = vpack.c.bf16 %v1579_v18, %v1577_v38 }
 0x50a   : > { %1698 = vmatpush.bf16.msra.mxu2 %v1634_v8 }
 0x50c   : > { %v1495_v48 = vpop.f32.mrf.mxu1 }
 0x50d   : > { %v1587_v57 = vmul.f32 0.2, %v1495_v48 }
 0x50e   : > { %1699 = vmatpush.bf16.msra.mxu2 %v1630_v35 }
 0x50f   : > { %v5822_v24 = vadd.f32 %v1587_v57, %v5750_v29  ;;  %v1635_v61 = vpack.c.bf16 %v1587_v57, %v1585_v62 }
 0x511   : > { %1727 = vmatpush.bf16.msra.mxu3 %v1635_v61 }
 0x512   : > { %1700 = vmatpush.bf16.msra.mxu2 %v1626_v50 }
 0x513   : > { %v1507_v55 = vpop.f32.mrf.mxu2 }
 0x514   : > { %v5824_v33 = vmul.f32 -0.2, %v1507_v55 }
 0x515   : > { %1728 = vmatpush.bf16.msra.mxu3 %v1631_v40 }
 0x516   : > { %v5828_v39 = vadd.f32 %v5824_v33, %v5625_v41  ;;  %1701 = vmatpush.bf16.msra.mxu2 %v1622_v28 }
 0x519   : > { %1729 = vmatpush.bf16.msra.mxu3 %v1627_v30  ;;  %4568 = vmatmul.msk.bf16.vlgmr.msra.gmra.mxu2 %vm659_vm0, %v5078_v4 }
 0x51a   : > { %v1536_v29 = vpop.f32.mrf.mxu3 }
 0x51b   : > { %v5833_v42 = vmul.f32 -0.2, %v1536_v29  ;;  %v1509_v23 = vpop.f32.mrf.mxu2 }
 0x51c   : > { %v1558_v25 = vmul.f32 -0.2, %v1509_v23 }
 0x51d   : > { %v5837_v38 = vadd.f32 %v5833_v42, %v5631_v3  ;;  %1730 = vmatpush.bf16.msra.mxu3 %v1623_v5 }
 0x51e   : > { %v5840_v41 = vadd.f32 %v1558_v25, %v5634_v15 }
 0x520   : > { %4572 = vmatmul.msk.bf16.vlgmr.msra.gmra.mxu3 %vm659_vm0, %v5078_v4 }
 0x522   : > { %v1538_v49 = vpop.f32.mrf.mxu3 }
 0x523   : > { %v1559_v13 = vmul.f32 -0.2, %v1538_v49  ;;  %v1512_v18 = vpop.f32.mrf.mxu2 }
 0x524   : > { %v1560_v63 = vmul.f32 -0.2, %v1512_v18 }
 0x525   : > { %v5845_v10 = vadd.f32 %v1559_v13, %v5640_v6 }
 0x526   : > { %v5848_v59 = vadd.f32 %v1560_v63, %v5643_v54 }
 0x529   : > { %4569 = vmatmul.msk.bf16.gmra.mxu2 %vm659_vm0, %v5103_v16 }
 0x52a   : > { %v1541_v3 = vpop.f32.mrf.mxu3 }
 0x52b   : > { %v1561_v1 = vmul.f32 -0.2, %v1541_v3  ;;  %v1514_v15 = vpop.f32.mrf.mxu2 }
 0x52c   : > { %v1562_v62 = vmul.f32 -0.2, %v1514_v15 }
 0x52d   : > { %v5853_v52 = vadd.f32 %v1561_v1, %v5646_v46 }
 0x52e   : > { %v5856_v17 = vadd.f32 %v1562_v62, %v5649_v27 }
 0x530   : > { %4573 = vmatmul.msk.bf16.gmra.mxu3 %vm659_vm0, %v5103_v16 }
 0x532   : > { %v1543_v6 = vpop.f32.mrf.mxu3 }
 0x533   : > { %v1563_v8 = vmul.f32 -0.2, %v1543_v6  ;;  %v1517_v54 = vpop.f32.mrf.mxu2 }
 0x534   : > { %v1564_v35 = vmul.f32 -0.2, %v1517_v54 }
 0x535   : > { %v5861_v48 = vadd.f32 %v1563_v8, %v5652_v12 }
 0x536   : > { %v5864_v57 = vadd.f32 %v1564_v35, %v5655_v19 }
 0x539   : > { %4570 = vmatmul.msk.bf16.gmra.mxu2 %vm659_vm0, %v5115_v31 }
 0x53a   : > { %v1546_v46 = vpop.f32.mrf.mxu3 }
 0x53b   : > { %v1565_v50 = vmul.f32 -0.2, %v1546_v46  ;;  %v1519_v27 = vpop.f32.mrf.mxu2 }
 0x53c   : > { %v1566_v61 = vmul.f32 -0.2, %v1519_v27  ;;  %v1624_v27 = vpack.c.bf16 %v1562_v62, %v1560_v63 }
 0x53d   : > { %v5869_v40 = vadd.f32 %v1565_v50, %v5658_v60 }
 0x53e   : > { %v5872_v28 = vadd.f32 %v1566_v61, %v5661_v26 }
 0x540   : > { %4574 = vmatmul.msk.bf16.gmra.mxu3 %vm659_vm0, %v5115_v31 }
 0x542   : > { %v1548_v12 = vpop.f32.mrf.mxu3 }
 0x543   : > { %v1567_v55 = vmul.f32 -0.2, %v1548_v12  ;;  %v1522_v19 = vpop.f32.mrf.mxu2  ;;  %v1625_v12 = vpack.c.bf16 %v1563_v8, %v1561_v1 }
 0x544   : > { %v1568_v30 = vmul.f32 -0.2, %v1522_v19 }
 0x545   : > { %v5877_v5 = vadd.f32 %v1567_v55, %v5664_v21  ;;  %v1628_v21 = vpack.c.bf16 %v1566_v61, %v1564_v35  ;;  %v1621_v35 = vpack.c.bf16 %v1559_v13, %v5833_v42 }
 0x546   : > { %v5880_v29 = vadd.f32 %v1568_v30, %v5667_v43 }
 0x549   : > { %4571 = vmatmul.msk.bf16.gmra.mxu2 %vm659_vm0, %v5131_v53 }
 0x54a   : > { %v1551_v60 = vpop.f32.mrf.mxu3 }
 0x54b   : > { %v1569_v23 = vmul.f32 -0.2, %v1551_v60  ;;  %v1524_v26 = vpop.f32.mrf.mxu2 }
 0x54c   : > { %v1570_v49 = vmul.f32 -0.2, %v1524_v26 }
 0x54d   : > { %v5885_v18 = vadd.f32 %v1569_v23, %v5670_v51  ;;  %v1629_v51 = vpack.c.bf16 %v1567_v55, %v1565_v50 }
 0x54e   : > { %v5888_v3 = vadd.f32 %v1570_v49, %v5673_v34  ;;  %v1632_v15 = vpack.c.bf16 %v1570_v49, %v1568_v30  ;;  %v1620_v34 = vpack.c.bf16 %v1558_v25, %v5824_v33 }
 0x550   : > { %4575 = vmatmul.msk.bf16.gmra.mxu3 %vm659_vm0, %v5131_v53  ;;  %1640 = vmatpush.bf16.msra.mxu0 %v1632_v15 }
 0x552   : > { %v1553_v43 = vpop.f32.mrf.mxu3 }
 0x553   : > { %v1571_v6 = vmul.f32 -0.2, %v1553_v43 }
 0x554   : > { %1641 = vmatpush.bf16.msra.mxu0 %v1628_v21 }
 0x555   : > { %v5893_v54 = vadd.f32 %v1571_v6, %v5678_v14  ;;  %v1633_v46 = vpack.c.bf16 %v1571_v6, %v1569_v23 }
 0x557   : > { %1669 = vmatpush.bf16.msra.mxu1 %v1633_v46 }
 0x558   : > { %1642 = vmatpush.bf16.msra.mxu0 %v1624_v27 }
 0x55b   : > { %1670 = vmatpush.bf16.msra.mxu1 %v1629_v51 }
 0x55c   : > { %1643 = vmatpush.bf16.msra.mxu0 %v1620_v34 }
 0x55f   : > { %1671 = vmatpush.bf16.msra.mxu1 %v1625_v12  ;;  %4560 = vmatmul.msk.bf16.vlgmr.msra.gmra.mxu0 %vm659_vm0, %v5078_v4 }
 0x563   : > { %1672 = vmatpush.bf16.msra.mxu1 %v1621_v35 }
 0x566   : > { %4564 = vmatmul.msk.bf16.vlgmr.msra.gmra.mxu1 %vm659_vm0, %v5078_v4 }
 0x56f   : > { %4561 = vmatmul.msk.bf16.gmra.mxu0 %vm659_vm0, %v5103_v16 }
 0x576   : > { %4565 = vmatmul.msk.bf16.gmra.mxu1 %vm659_vm0, %v5103_v16 }
 0x57f   : > { %4562 = vmatmul.msk.bf16.gmra.mxu0 %vm659_vm0, %v5115_v31 }
 0x586   : > { %4566 = vmatmul.msk.bf16.gmra.mxu1 %vm659_vm0, %v5115_v31 }
 0x58f   : > { %4563 = vmatmul.msk.bf16.gmra.mxu0 %vm659_vm0, %v5131_v53 }
 0x596   : > { %4567 = vmatmul.msk.bf16.gmra.mxu1 %vm659_vm0, %v5131_v53 }
 0x59c   : > { %v1703_v14 = vpop.f32.mrf.mxu2 }
 0x59d   : > { %v5913_v33 = vmul.f32 -0.16666667, %v1703_v14 }
 0x59f   : > { %v5917_v42 = vadd.f32 %v5913_v33, %v5828_v39 }
 0x5a3   : > { %v1732_v25 = vpop.f32.mrf.mxu3 }
 0x5a4   : > { %v5919_v13 = vmul.f32 -0.16666667, %v1732_v25  ;;  %v1705_v63 = vpop.f32.mrf.mxu2 }
 0x5a5   : > { %v1754_v1 = vmul.f32 -0.16666667, %v1705_v63 }
 0x5a6   : > { %v5923_v62 = vadd.f32 %v5919_v13, %v5837_v38 }
 0x5a7   : > { %v5926_v8 = vadd.f32 %v1754_v1, %v5840_v41 }
 0x5ab   : > { %v1734_v50 = vpop.f32.mrf.mxu3 }
 0x5ac   : > { %v5928_v61 = vmul.f32 -0.16666667, %v1734_v50  ;;  %v1708_v55 = vpop.f32.mrf.mxu2 }
 0x5ad   : > { %v1756_v19 = vmul.f32 -0.16666667, %v1708_v55 }
 0x5ae   : > { %v5932_v39 = vadd.f32 %v5928_v61, %v5845_v10 }
 0x5af   : > { %v5935_v30 = vadd.f32 %v1756_v19, %v5848_v59 }
 0x5b3   : > { %v1737_v60 = vpop.f32.mrf.mxu3 }
 0x5b4   : > { %v1757_v23 = vmul.f32 -0.16666667, %v1737_v60  ;;  %v1710_v26 = vpop.f32.mrf.mxu2 }
 0x5b5   : > { %v1758_v38 = vmul.f32 -0.16666667, %v1710_v26 }
 0x5b6   : > { %v5938_v49 = vadd.f32 %v1757_v23, %v5853_v52 }
 0x5b7   : > { %v5941_v41 = vadd.f32 %v1758_v38, %v5856_v17 }
 0x5bb   : > { %v1739_v15 = vpop.f32.mrf.mxu3 }
 0x5bc   : > { %v1759_v21 = vmul.f32 -0.16666667, %v1739_v15  ;;  %v1713_v43 = vpop.f32.mrf.mxu2 }
 0x5bd   : > { %v1760_v6 = vmul.f32 -0.16666667, %v1713_v43 }
 0x5be   : > { %v5944_v10 = vadd.f32 %v1759_v21, %v5861_v48 }
 0x5bf   : > { %v5947_v59 = vadd.f32 %v1760_v6, %v5864_v57 }
 0x5c3   : > { %v1742_v46 = vpop.f32.mrf.mxu3 }
 0x5c4   : > { %v1761_v27 = vmul.f32 -0.16666667, %v1742_v46  ;;  %v1715_v51 = vpop.f32.mrf.mxu2 }
 0x5c5   : > { %v1762_v34 = vmul.f32 -0.16666667, %v1715_v51  ;;  %v1820_v51 = vpack.c.bf16 %v1758_v38, %v1756_v19 }
 0x5c6   : > { %v5950_v52 = vadd.f32 %v1761_v27, %v5869_v40 }
 0x5c7   : > { %v5953_v17 = vadd.f32 %v1762_v34, %v5872_v28  ;;  %v1824_v15 = vpack.c.bf16 %v1762_v34, %v1760_v6  ;;  %v1816_v6 = vpack.c.bf16 %v1754_v1, %v5913_v33  ;;  %v1817_v33 = vpack.c.bf16 %v5928_v61, %v5919_v13 }
 0x5cb   : > { %v1744_v12 = vpop.f32.mrf.mxu3 }
 0x5cc   : > { %v1763_v35 = vmul.f32 -0.16666667, %v1744_v12  ;;  %v1718_v14 = vpop.f32.mrf.mxu2 }
 0x5cd   : > { %v1764_v25 = vmul.f32 -0.16666667, %v1718_v14 }
 0x5ce   : > { %v5956_v48 = vadd.f32 %v1763_v35, %v5877_v5 }
 0x5cf   : > { %v5959_v57 = vadd.f32 %v1764_v25, %v5880_v29 }
 0x5d3   : > { %v1747_v63 = vpop.f32.mrf.mxu3 }
 0x5d4   : > { %v1765_v50 = vmul.f32 -0.16666667, %v1747_v63  ;;  %v1720_v55 = vpop.f32.mrf.mxu2 }
 0x5d5   : > { %v1766_v60 = vmul.f32 -0.16666667, %v1720_v55 }
 0x5d6   : > { %v5962_v40 = vadd.f32 %v1765_v50, %v5885_v18 }
 0x5d7   : > { %v5965_v28 = vadd.f32 %v1766_v60, %v5888_v3  ;;  %v1828_v26 = vpack.c.bf16 %v1766_v60, %v1764_v25  ;;  %v1825_v3 = vpack.c.bf16 %v1763_v35, %v1761_v27  ;;  %v1821_v25 = vpack.c.bf16 %v1759_v21, %v1757_v23 }
 0x5d9   : > { %1836 = vmatpush.bf16.msrb.mxu0 %v1828_v26 }
 0x5db   : > { %v1749_v43 = vpop.f32.mrf.mxu3 }
 0x5dc   : > { %v1767_v46 = vmul.f32 -0.16666667, %v1749_v43  ;;  %v1645_v5 = vpop.f32.mrf.mxu0 }
 0x5dd   : > { %v5967_v12 = vmul.f32 0.16666667, %v1645_v5  ;;  %1837 = vmatpush.bf16.msrb.mxu0 %v1824_v15 }
 0x5de   : > { %v5970_v29 = vadd.f32 %v1767_v46, %v5893_v54  ;;  %v1829_v14 = vpack.c.bf16 %v1767_v46, %v1765_v50 }
 0x5df   : > { %v5974_v18 = vadd.f32 %v5967_v12, %v5774_v7 }
 0x5e0   : > { %1865 = vmatpush.bf16.msrb.mxu1 %v1829_v14 }
 0x5e1   : > { %1838 = vmatpush.bf16.msrb.mxu0 %v1820_v51 }
 0x5e3   : > { %v1674_v34 = vpop.f32.mrf.mxu1 }
 0x5e4   : > { %v5977_v63 = vmul.f32 0.16666667, %v1674_v34  ;;  %1866 = vmatpush.bf16.msrb.mxu1 %v1825_v3  ;;  %v1647_v19 = vpop.f32.mrf.mxu0 }
 0x5e5   : > { %v5979_v38 = vmul.f32 0.16666667, %v1647_v19  ;;  %1839 = vmatpush.bf16.msrb.mxu0 %v1816_v6 }
 0x5e6   : > { %v5983_v54 = vadd.f32 %v5977_v63, %v5780_v37 }
 0x5e7   : > { %v5987_v7 = vadd.f32 %v5979_v38, %v5783_v11 }
 0x5e8   : > { %1867 = vmatpush.bf16.msrb.mxu1 %v1821_v25  ;;  %4576 = vmatmul.msk.bf16.vlgmr.msrb.gmra.mxu0 %vm659_vm0, %v5078_v4 }
 0x5eb   : > { %v1676_v1 = vpop.f32.mrf.mxu1 }
 0x5ec   : > { %v1771_v23 = vmul.f32 0.16666667, %v1676_v1  ;;  %1868 = vmatpush.bf16.msrb.mxu1 %v1817_v33  ;;  %v1650_v21 = vpop.f32.mrf.mxu0 }
 0x5ed   : > { %v1772_v27 = vmul.f32 0.16666667, %v1650_v21 }
 0x5ee   : > { %v5994_v35 = vadd.f32 %v1771_v23, %v5786_v56 }
 0x5ef   : > { %v5997_v37 = vadd.f32 %v1772_v27, %v5789_v45  ;;  %4580 = vmatmul.msk.bf16.vlgmr.msrb.gmra.mxu1 %vm659_vm0, %v5078_v4 }
 0x5f3   : > { %v1679_v11 = vpop.f32.mrf.mxu1 }
 0x5f4   : > { %v1773_v13 = vmul.f32 0.16666667, %v1679_v11  ;;  %v1652_v61 = vpop.f32.mrf.mxu0 }
 0x5f5   : > { %v1774_v50 = vmul.f32 0.16666667, %v1652_v61 }
 0x5f6   : > { %v6002_v55 = vadd.f32 %v1773_v13, %v5792_v0 }
 0x5f7   : > { %v6005_v60 = vadd.f32 %v1774_v50, %v5795_v20 }
 0x5f8   : > { %4577 = vmatmul.msk.bf16.gmra.mxu0 %vm659_vm0, %v5103_v16 }
 0x5fb   : > { %v1681_v56 = vpop.f32.mrf.mxu1 }
 0x5fc   : > { %v1775_v26 = vmul.f32 0.16666667, %v1681_v56  ;;  %v1655_v45 = vpop.f32.mrf.mxu0 }
 0x5fd   : > { %v1776_v15 = vmul.f32 0.16666667, %v1655_v45 }
 0x5fe   : > { %v6010_v43 = vadd.f32 %v1775_v26, %v5798_v32 }
 0x5ff   : > { %v6013_v46 = vadd.f32 %v1776_v15, %v5801_v44  ;;  %4581 = vmatmul.msk.bf16.gmra.mxu1 %vm659_vm0, %v5103_v16 }
 0x603   : > { %v1684_v0 = vpop.f32.mrf.mxu1 }
 0x604   : > { %v1777_v5 = vmul.f32 0.16666667, %v1684_v0  ;;  %v1657_v20 = vpop.f32.mrf.mxu0 }
 0x605   : > { %v1778_v51 = vmul.f32 0.16666667, %v1657_v20  ;;  %v1822_v20 = vpack.c.bf16 %v1774_v50, %v1772_v27 }
 0x606   : > { %v6018_v14 = vadd.f32 %v1777_v5, %v5804_v2 }
 0x607   : > { %v6021_v3 = vadd.f32 %v1778_v51, %v5807_v36 }
 0x608   : > { %4578 = vmatmul.msk.bf16.gmra.mxu0 %vm659_vm0, %v5115_v31 }
 0x60b   : > { %v1686_v32 = vpop.f32.mrf.mxu1 }
 0x60c   : > { %v1779_v6 = vmul.f32 0.16666667, %v1686_v32  ;;  %v1660_v44 = vpop.f32.mrf.mxu0 }
 0x60d   : > { %v1780_v34 = vmul.f32 0.16666667, %v1660_v44 }
 0x60e   : > { %v6026_v25 = vadd.f32 %v1779_v6, %v5810_v22  ;;  %v1826_v22 = vpack.c.bf16 %v1778_v51, %v1776_v15  ;;  %v1823_v15 = vpack.c.bf16 %v1775_v26, %v1773_v13 }
 0x60f   : > { %v6029_v19 = vadd.f32 %v1780_v34, %v5813_v47  ;;  %4582 = vmatmul.msk.bf16.gmra.mxu1 %vm659_vm0, %v5115_v31 }
 0x613   : > { %v1689_v2 = vpop.f32.mrf.mxu1 }
 0x614   : > { %v1781_v33 = vmul.f32 0.16666667, %v1689_v2  ;;  %v1662_v36 = vpop.f32.mrf.mxu0 }
 0x615   : > { %v1782_v1 = vmul.f32 0.16666667, %v1662_v36 }
 0x616   : > { %v6034_v21 = vadd.f32 %v1781_v33, %v5816_v58  ;;  %v1827_v58 = vpack.c.bf16 %v1779_v6, %v1777_v5 }
 0x617   : > { %v6037_v11 = vadd.f32 %v1782_v1, %v5819_v9  ;;  %v1830_v61 = vpack.c.bf16 %v1782_v1, %v1780_v34  ;;  %v1818_v9 = vpack.c.bf16 %v5979_v38, %v5967_v12 }
 0x618   : > { %4579 = vmatmul.msk.bf16.gmra.mxu0 %vm659_vm0, %v5131_v53 }
 0x619   : > { %1894 = vmatpush.bf16.msrb.mxu2 %v1830_v61 }
 0x61b   : > { %v1691_v47 = vpop.f32.mrf.mxu1 }
 0x61c   : > { %v1783_v56 = vmul.f32 0.16666667, %v1691_v47 }
 0x61d   : > { %1895 = vmatpush.bf16.msrb.mxu2 %v1826_v22 }
 0x61e   : > { %v6042_v45 = vadd.f32 %v1783_v56, %v5822_v24  ;;  %v1831_v0 = vpack.c.bf16 %v1783_v56, %v1781_v33  ;;  %v1819_v24 = vpack.c.bf16 %v1771_v23, %v5977_v63 }
 0x61f   : > { %4583 = vmatmul.msk.bf16.gmra.mxu1 %vm659_vm0, %v5131_v53 }
 0x620   : > { %1923 = vmatpush.bf16.msrb.mxu3 %v1831_v0 }
 0x621   : > { %1896 = vmatpush.bf16.msrb.mxu2 %v1822_v20 }
 0x624   : > { %1924 = vmatpush.bf16.msrb.mxu3 %v1827_v58 }
 0x625   : > { %1897 = vmatpush.bf16.msrb.mxu2 %v1818_v9 }
 0x628   : > { %1925 = vmatpush.bf16.msrb.mxu3 %v1823_v15  ;;  %4584 = vmatmul.msk.bf16.vlgmr.msrb.gmra.mxu2 %vm659_vm0, %v5078_v4 }
 0x62c   : > { %1926 = vmatpush.bf16.msrb.mxu3 %v1819_v24 }
 0x62f   : > { %4588 = vmatmul.msk.bf16.vlgmr.msrb.gmra.mxu3 %vm659_vm0, %v5078_v4 }
 0x638   : > { %4585 = vmatmul.msk.bf16.gmra.mxu2 %vm659_vm0, %v5103_v16 }
 0x63f   : > { %4589 = vmatmul.msk.bf16.gmra.mxu3 %vm659_vm0, %v5103_v16 }
 0x648   : > { %4586 = vmatmul.msk.bf16.gmra.mxu2 %vm659_vm0, %v5115_v31 }
 0x64f   : > { %4590 = vmatmul.msk.bf16.gmra.mxu3 %vm659_vm0, %v5115_v31 }
 0x658   : > { %4587 = vmatmul.msk.bf16.gmra.mxu2 %vm659_vm0, %v5131_v53 }
 0x65f   : > { %4591 = vmatmul.msk.bf16.gmra.mxu3 %vm659_vm0, %v5131_v53 }
 0x665   : > { %v1841_v12 = vpop.f32.mrf.mxu0 }
 0x666   : > { %v1964_v63 = vmul.f32 0.14285715, %v1841_v12 }
 0x668   : > { %v6066_v38 = vadd.f32 %v1964_v63, %v5974_v18 }
 0x66c   : > { %v1870_v23 = vpop.f32.mrf.mxu1 }
 0x66d   : > { %v6068_v27 = vmul.f32 0.14285715, %v1870_v23  ;;  %v1843_v13 = vpop.f32.mrf.mxu0 }
 0x66e   : > { %v1966_v50 = vmul.f32 0.14285715, %v1843_v13 }
 0x66f   : > { %v6072_v26 = vadd.f32 %v6068_v27, %v5983_v54 }
 0x670   : > { %v6075_v5 = vadd.f32 %v1966_v50, %v5987_v7 }
 0x674   : > { %v1872_v51 = vpop.f32.mrf.mxu1 }
 0x675   : > { %v1967_v32 = vmul.f32 0.14285715, %v1872_v51  ;;  %v1846_v6 = vpop.f32.mrf.mxu0 }
 0x676   : > { %v1968_v44 = vmul.f32 0.14285715, %v1846_v6 }
 0x677   : > { %v6078_v34 = vadd.f32 %v1967_v32, %v5994_v35 }
 0x678   : > { %v6081_v18 = vadd.f32 %v1968_v44, %v5997_v37 }
 0x67c   : > { %v1875_v2 = vpop.f32.mrf.mxu1 }
 0x67d   : > { %v1969_v33 = vmul.f32 0.14285715, %v1875_v2  ;;  %v1848_v36 = vpop.f32.mrf.mxu0 }
 0x67e   : > { %v1970_v1 = vmul.f32 0.14285715, %v1848_v36 }
 0x67f   : > { %v6084_v54 = vadd.f32 %v1969_v33, %v6002_v55 }
 0x680   : > { %v6087_v7 = vadd.f32 %v1970_v1, %v6005_v60 }
 0x684   : > { %v1877_v61 = vpop.f32.mrf.mxu1 }
 0x685   : > { %v1971_v22 = vmul.f32 0.14285715, %v1877_v61  ;;  %v1851_v47 = vpop.f32.mrf.mxu0 }
 0x686   : > { %v1972_v56 = vmul.f32 0.14285715, %v1851_v47 }
 0x687   : > { %v6090_v35 = vadd.f32 %v1971_v22, %v6010_v43 }
 0x688   : > { %v6093_v37 = vadd.f32 %v1972_v56, %v6013_v46 }
 0x68c   : > { %v1880_v0 = vpop.f32.mrf.mxu1 }
 0x68d   : > { %v1973_v20 = vmul.f32 0.14285715, %v1880_v0  ;;  %v1853_v58 = vpop.f32.mrf.mxu0 }
 0x68e   : > { %v1974_v9 = vmul.f32 0.14285715, %v1853_v58 }
 0x68f   : > { %v6096_v55 = vadd.f32 %v1973_v20, %v6018_v14 }
 0x690   : > { %v6099_v60 = vadd.f32 %v1974_v9, %v6021_v3  ;;  %v2022_v61 = vpack.c.bf16 %v1974_v9, %v1972_v56 }
 0x694   : > { %v1882_v15 = vpop.f32.mrf.mxu1 }
 0x695   : > { %v1975_v24 = vmul.f32 0.14285715, %v1882_v15  ;;  %v1856_v12 = vpop.f32.mrf.mxu0 }
 0x696   : > { %v1976_v23 = vmul.f32 0.14285715, %v1856_v12  ;;  %v2014_v12 = vpack.c.bf16 %v1966_v50, %v1964_v63 }
 0x697   : > { %v6102_v43 = vadd.f32 %v1975_v24, %v6026_v25  ;;  %v2018_v25 = vpack.c.bf16 %v1970_v1, %v1968_v44  ;;  %v2023_v15 = vpack.c.bf16 %v1975_v24, %v1973_v20  ;;  %v2015_v44 = vpack.c.bf16 %v1967_v32, %v6068_v27 }
 0x698   : > { %v6105_v46 = vadd.f32 %v1976_v23, %v6029_v19 }
 0x69c   : > { %v1885_v13 = vpop.f32.mrf.mxu1 }
 0x69d   : > { %v1977_v51 = vmul.f32 0.14285715, %v1885_v13  ;;  %v1858_v6 = vpop.f32.mrf.mxu0 }
 0x69e   : > { %v1978_v2 = vmul.f32 0.14285715, %v1858_v6 }
 0x69f   : > { %v6108_v14 = vadd.f32 %v1977_v51, %v6034_v21 }
 0x6a0   : > { %v6111_v3 = vadd.f32 %v1978_v2, %v6037_v11  ;;  %v2026_v36 = vpack.c.bf16 %v1978_v2, %v1976_v23  ;;  %v2019_v11 = vpack.c.bf16 %v1971_v22, %v1969_v33 }
 0x6a2   : > { %2090 = vmatpush.bf16.msra.mxu2 %v2026_v36 }
 0x6a4   : > { %v1887_v47 = vpop.f32.mrf.mxu1 }
 0x6a5   : > { %v1979_v0 = vmul.f32 0.14285715, %v1887_v47 }
 0x6a6   : > { %2091 = vmatpush.bf16.msra.mxu2 %v2022_v61 }
 0x6a7   : > { %v6114_v19 = vadd.f32 %v1979_v0, %v6042_v45  ;;  %v2027_v58 = vpack.c.bf16 %v1979_v0, %v1977_v51 }
 0x6a9   : > { %2119 = vmatpush.bf16.msra.mxu3 %v2027_v58 }
 0x6aa   : > { %2092 = vmatpush.bf16.msra.mxu2 %v2018_v25 }
 0x6ab   : > { %v1899_v21 = vpop.f32.mrf.mxu2 }
 0x6ac   : > { %v6116_v13 = vmul.f32 -0.14285715, %v1899_v21 }
 0x6ad   : > { %2120 = vmatpush.bf16.msra.mxu3 %v2023_v15 }
 0x6ae   : > { %v6120_v56 = vadd.f32 %v6116_v13, %v5917_v42  ;;  %2093 = vmatpush.bf16.msra.mxu2 %v2014_v12 }
 0x6b1   : > { %2121 = vmatpush.bf16.msra.mxu3 %v2019_v11  ;;  %4600 = vmatmul.msk.bf16.vlgmr.msra.gmra.mxu2 %vm659_vm0, %v5078_v4 }
 0x6b2   : > { %v1928_v45 = vpop.f32.mrf.mxu3 }
 0x6b3   : > { %v6125_v1 = vmul.f32 -0.14285715, %v1928_v45  ;;  %v1901_v63 = vpop.f32.mrf.mxu2 }
 0x6b4   : > { %v1950_v50 = vmul.f32 -0.14285715, %v1901_v63 }
 0x6b5   : > { %v6129_v33 = vadd.f32 %v6125_v1, %v5923_v62  ;;  %2122 = vmatpush.bf16.msra.mxu3 %v2015_v44 }
 0x6b6   : > { %v6132_v42 = vadd.f32 %v1950_v50, %v5926_v8 }
 0x6b8   : > { %4604 = vmatmul.msk.bf16.vlgmr.msra.gmra.mxu3 %vm659_vm0, %v5078_v4 }
 0x6ba   : > { %v1930_v27 = vpop.f32.mrf.mxu3 }
 0x6bb   : > { %v1951_v32 = vmul.f32 -0.14285715, %v1930_v27  ;;  %v1904_v22 = vpop.f32.mrf.mxu2 }
 0x6bc   : > { %v1952_v20 = vmul.f32 -0.14285715, %v1904_v22 }
 0x6bd   : > { %v6137_v9 = vadd.f32 %v1951_v32, %v5932_v39 }
 0x6be   : > { %v6140_v24 = vadd.f32 %v1952_v20, %v5935_v30 }
 0x6c1   : > { %4601 = vmatmul.msk.bf16.gmra.mxu2 %vm659_vm0, %v5103_v16 }
 0x6c2   : > { %v1933_v62 = vpop.f32.mrf.mxu3 }
 0x6c3   : > { %v1953_v23 = vmul.f32 -0.14285715, %v1933_v62  ;;  %v1906_v8 = vpop.f32.mrf.mxu2 }
 0x6c4   : > { %v1954_v51 = vmul.f32 -0.14285715, %v1906_v8 }
 0x6c5   : > { %v6145_v6 = vadd.f32 %v1953_v23, %v5938_v49 }
 0x6c6   : > { %v6148_v2 = vadd.f32 %v1954_v51, %v5941_v41 }
 0x6c8   : > { %4605 = vmatmul.msk.bf16.gmra.mxu3 %vm659_vm0, %v5103_v16 }
 0x6ca   : > { %v1935_v39 = vpop.f32.mrf.mxu3 }
 0x6cb   : > { %v1955_v36 = vmul.f32 -0.14285715, %v1935_v39  ;;  %v1909_v30 = vpop.f32.mrf.mxu2 }
 0x6cc   : > { %v1956_v61 = vmul.f32 -0.14285715, %v1909_v30 }
 0x6cd   : > { %v6153_v47 = vadd.f32 %v1955_v36, %v5944_v10 }
 0x6ce   : > { %v6156_v0 = vadd.f32 %v1956_v61, %v5947_v59 }
 0x6d1   : > { %4602 = vmatmul.msk.bf16.gmra.mxu2 %vm659_vm0, %v5115_v31 }
 0x6d2   : > { %v1938_v49 = vpop.f32.mrf.mxu3 }
 0x6d3   : > { %v1957_v25 = vmul.f32 -0.14285715, %v1938_v49  ;;  %v1911_v41 = vpop.f32.mrf.mxu2 }
 0x6d4   : > { %v1958_v58 = vmul.f32 -0.14285715, %v1911_v41  ;;  %v2016_v41 = vpack.c.bf16 %v1954_v51, %v1952_v20 }
 0x6d5   : > { %v6161_v15 = vadd.f32 %v1957_v25, %v5950_v52 }
 0x6d6   : > { %v6164_v12 = vadd.f32 %v1958_v58, %v5953_v17 }
 0x6d8   : > { %4606 = vmatmul.msk.bf16.gmra.mxu3 %vm659_vm0, %v5115_v31 }
 0x6da   : > { %v1940_v10 = vpop.f32.mrf.mxu3 }
 0x6db   : > { %v1959_v21 = vmul.f32 -0.14285715, %v1940_v10  ;;  %v1914_v59 = vpop.f32.mrf.mxu2  ;;  %v2017_v10 = vpack.c.bf16 %v1955_v36, %v1953_v23 }
 0x6dc   : > { %v1960_v11 = vmul.f32 -0.14285715, %v1914_v59 }
 0x6dd   : > { %v6169_v44 = vadd.f32 %v1959_v21, %v5956_v48  ;;  %v2020_v48 = vpack.c.bf16 %v1958_v58, %v1956_v61  ;;  %v2013_v61 = vpack.c.bf16 %v1951_v32, %v6125_v1 }
 0x6de   : > { %v6172_v45 = vadd.f32 %v1960_v11, %v5959_v57 }
 0x6e1   : > { %4603 = vmatmul.msk.bf16.gmra.mxu2 %vm659_vm0, %v5131_v53 }
 0x6e2   : > { %v1943_v52 = vpop.f32.mrf.mxu3 }
 0x6e3   : > { %v1961_v63 = vmul.f32 -0.14285715, %v1943_v52  ;;  %v1916_v17 = vpop.f32.mrf.mxu2 }
 0x6e4   : > { %v1962_v27 = vmul.f32 -0.14285715, %v1916_v17 }
 0x6e5   : > { %v6177_v22 = vadd.f32 %v1961_v63, %v5962_v40  ;;  %v2021_v40 = vpack.c.bf16 %v1959_v21, %v1957_v25 }
 0x6e6   : > { %v6180_v62 = vadd.f32 %v1962_v27, %v5965_v28  ;;  %v2024_v8 = vpack.c.bf16 %v1962_v27, %v1960_v11  ;;  %v2012_v28 = vpack.c.bf16 %v1950_v50, %v6116_v13 }
 0x6e8   : > { %4607 = vmatmul.msk.bf16.gmra.mxu3 %vm659_vm0, %v5131_v53  ;;  %2032 = vmatpush.bf16.msra.mxu0 %v2024_v8 }
 0x6ea   : > { %v1945_v57 = vpop.f32.mrf.mxu3 }
 0x6eb   : > { %v1963_v39 = vmul.f32 -0.14285715, %v1945_v57 }
 0x6ec   : > { %2033 = vmatpush.bf16.msra.mxu0 %v2020_v48 }
 0x6ed   : > { %v6185_v30 = vadd.f32 %v1963_v39, %v5970_v29  ;;  %v2025_v49 = vpack.c.bf16 %v1963_v39, %v1961_v63 }
 0x6ef   : > { %2061 = vmatpush.bf16.msra.mxu1 %v2025_v49 }
 0x6f0   : > { %2034 = vmatpush.bf16.msra.mxu0 %v2016_v41 }
 0x6f3   : > { %2062 = vmatpush.bf16.msra.mxu1 %v2021_v40 }
 0x6f4   : > { %2035 = vmatpush.bf16.msra.mxu0 %v2012_v28 }
 0x6f7   : > { %2063 = vmatpush.bf16.msra.mxu1 %v2017_v10  ;;  %4592 = vmatmul.msk.bf16.vlgmr.msra.gmra.mxu0 %vm659_vm0, %v5078_v4 }
 0x6fb   : > { %2064 = vmatpush.bf16.msra.mxu1 %v2013_v61 }
 0x6fe   : > { %4596 = vmatmul.msk.bf16.vlgmr.msra.gmra.mxu1 %vm659_vm0, %v5078_v4 }
 0x707   : > { %4593 = vmatmul.msk.bf16.gmra.mxu0 %vm659_vm0, %v5103_v16 }
 0x70e   : > { %4597 = vmatmul.msk.bf16.gmra.mxu1 %vm659_vm0, %v5103_v16 }
 0x717   : > { %4594 = vmatmul.msk.bf16.gmra.mxu0 %vm659_vm0, %v5115_v31 }
 0x71e   : > { %4598 = vmatmul.msk.bf16.gmra.mxu1 %vm659_vm0, %v5115_v31 }
 0x727   : > { %4595 = vmatmul.msk.bf16.gmra.mxu0 %vm659_vm0, %v5131_v53 }
 0x72e   : > { %4599 = vmatmul.msk.bf16.gmra.mxu1 %vm659_vm0, %v5131_v53 }
 0x734   : > { %v2095_v29 = vpop.f32.mrf.mxu2 }
 0x735   : > { %v6205_v13 = vmul.f32 -0.125, %v2095_v29 }
 0x737   : > { %v6209_v1 = vadd.f32 %v6205_v13, %v6120_v56 }
 0x73b   : > { %v2124_v50 = vpop.f32.mrf.mxu3 }
 0x73c   : > { %v6211_v32 = vmul.f32 -0.125, %v2124_v50  ;;  %v2097_v20 = vpop.f32.mrf.mxu2 }
 0x73d   : > { %v2146_v23 = vmul.f32 -0.125, %v2097_v20 }
 0x73e   : > { %v6215_v51 = vadd.f32 %v6211_v32, %v6129_v33 }
 0x73f   : > { %v6218_v36 = vadd.f32 %v2146_v23, %v6132_v42 }
 0x743   : > { %v2126_v25 = vpop.f32.mrf.mxu3 }
 0x744   : > { %v6220_v58 = vmul.f32 -0.125, %v2126_v25  ;;  %v2100_v21 = vpop.f32.mrf.mxu2 }
 0x745   : > { %v2148_v59 = vmul.f32 -0.125, %v2100_v21 }
 0x746   : > { %v6224_v56 = vadd.f32 %v6220_v58, %v6137_v9 }
 0x747   : > { %v6227_v11 = vadd.f32 %v2148_v59, %v6140_v24 }
 0x74b   : > { %v2129_v52 = vpop.f32.mrf.mxu3 }
 0x74c   : > { %v2149_v63 = vmul.f32 -0.125, %v2129_v52  ;;  %v2102_v17 = vpop.f32.mrf.mxu2 }
 0x74d   : > { %v2150_v33 = vmul.f32 -0.125, %v2102_v17 }
 0x74e   : > { %v6230_v27 = vadd.f32 %v2149_v63, %v6145_v6 }
 0x74f   : > { %v6233_v42 = vadd.f32 %v2150_v33, %v6148_v2 }
 0x753   : > { %v2131_v8 = vpop.f32.mrf.mxu3 }
 0x754   : > { %v2151_v48 = vmul.f32 -0.125, %v2131_v8  ;;  %v2105_v57 = vpop.f32.mrf.mxu2 }
 0x755   : > { %v2152_v39 = vmul.f32 -0.125, %v2105_v57 }
 0x756   : > { %v6236_v9 = vadd.f32 %v2151_v48, %v6153_v47 }
 0x757   : > { %v6239_v24 = vadd.f32 %v2152_v39, %v6156_v0 }
 0x75b   : > { %v2134_v49 = vpop.f32.mrf.mxu3 }
 0x75c   : > { %v2153_v41 = vmul.f32 -0.125, %v2134_v49  ;;  %v2107_v40 = vpop.f32.mrf.mxu2 }
 0x75d   : > { %v2154_v28 = vmul.f32 -0.125, %v2107_v40  ;;  %v2212_v40 = vpack.c.bf16 %v2150_v33, %v2148_v59 }
 0x75e   : > { %v6242_v6 = vadd.f32 %v2153_v41, %v6161_v15 }
 0x75f   : > { %v6245_v2 = vadd.f32 %v2154_v28, %v6164_v12  ;;  %v2216_v8 = vpack.c.bf16 %v2154_v28, %v2152_v39  ;;  %v2208_v39 = vpack.c.bf16 %v2146_v23, %v6205_v13  ;;  %v2209_v13 = vpack.c.bf16 %v6220_v58, %v6211_v32 }
 0x763   : > { %v2136_v10 = vpop.f32.mrf.mxu3 }
 0x764   : > { %v2155_v61 = vmul.f32 -0.125, %v2136_v10  ;;  %v2110_v29 = vpop.f32.mrf.mxu2 }
 0x765   : > { %v2156_v50 = vmul.f32 -0.125, %v2110_v29 }
 0x766   : > { %v6248_v47 = vadd.f32 %v2155_v61, %v6169_v44 }
 0x767   : > { %v6251_v0 = vadd.f32 %v2156_v50, %v6172_v45 }
 0x76b   : > { %v2139_v20 = vpop.f32.mrf.mxu3 }
 0x76c   : > { %v2157_v25 = vmul.f32 -0.125, %v2139_v20  ;;  %v2112_v21 = vpop.f32.mrf.mxu2 }
 0x76d   : > { %v2158_v52 = vmul.f32 -0.125, %v2112_v21 }
 0x76e   : > { %v6254_v15 = vadd.f32 %v2157_v25, %v6177_v22 }
 0x76f   : > { %v6257_v12 = vadd.f32 %v2158_v52, %v6180_v62  ;;  %v2220_v17 = vpack.c.bf16 %v2158_v52, %v2156_v50  ;;  %v2217_v62 = vpack.c.bf16 %v2155_v61, %v2153_v41  ;;  %v2213_v50 = vpack.c.bf16 %v2151_v48, %v2149_v63 }
 0x771   : > { %2228 = vmatpush.bf16.msrb.mxu0 %v2220_v17 }
 0x773   : > { %v2141_v57 = vpop.f32.mrf.mxu3 }
 0x774   : > { %v2159_v49 = vmul.f32 -0.125, %v2141_v57  ;;  %v2037_v44 = vpop.f32.mrf.mxu0 }
 0x775   : > { %v6259_v10 = vmul.f32 0.125, %v2037_v44  ;;  %2229 = vmatpush.bf16.msrb.mxu0 %v2216_v8 }
 0x776   : > { %v6262_v45 = vadd.f32 %v2159_v49, %v6185_v30  ;;  %v2221_v29 = vpack.c.bf16 %v2159_v49, %v2157_v25 }
 0x777   : > { %v6266_v22 = vadd.f32 %v6259_v10, %v6066_v38 }
 0x778   : > { %2257 = vmatpush.bf16.msrb.mxu1 %v2221_v29 }
 0x779   : > { %2230 = vmatpush.bf16.msrb.mxu0 %v2212_v40 }
 0x77b   : > { %v2066_v28 = vpop.f32.mrf.mxu1 }
 0x77c   : > { %v6269_v20 = vmul.f32 0.125, %v2066_v28  ;;  %2258 = vmatpush.bf16.msrb.mxu1 %v2217_v62  ;;  %v2039_v59 = vpop.f32.mrf.mxu0 }
 0x77d   : > { %v6271_v33 = vmul.f32 0.125, %v2039_v59  ;;  %2231 = vmatpush.bf16.msrb.mxu0 %v2208_v39 }
 0x77e   : > { %v6275_v30 = vadd.f32 %v6269_v20, %v6072_v26 }
 0x77f   : > { %v6279_v38 = vadd.f32 %v6271_v33, %v6075_v5 }
 0x780   : > { %2259 = vmatpush.bf16.msrb.mxu1 %v2213_v50  ;;  %4608 = vmatmul.msk.bf16.vlgmr.msrb.gmra.mxu0 %vm659_vm0, %v5078_v4 }
 0x783   : > { %v2068_v23 = vpop.f32.mrf.mxu1 }
 0x784   : > { %v2163_v63 = vmul.f32 0.125, %v2068_v23  ;;  %2260 = vmatpush.bf16.msrb.mxu1 %v2209_v13  ;;  %v2042_v48 = vpop.f32.mrf.mxu0 }
 0x785   : > { %v2164_v41 = vmul.f32 0.125, %v2042_v48 }
 0x786   : > { %v6286_v61 = vadd.f32 %v2163_v63, %v6078_v34 }
 0x787   : > { %v6289_v26 = vadd.f32 %v2164_v41, %v6081_v18  ;;  %4612 = vmatmul.msk.bf16.vlgmr.msrb.gmra.mxu1 %vm659_vm0, %v5078_v4 }
 0x78b   : > { %v2071_v5 = vpop.f32.mrf.mxu1 }
 0x78c   : > { %v2165_v32 = vmul.f32 0.125, %v2071_v5  ;;  %v2044_v58 = vpop.f32.mrf.mxu0 }
 0x78d   : > { %v2166_v25 = vmul.f32 0.125, %v2044_v58 }
 0x78e   : > { %v6294_v21 = vadd.f32 %v2165_v32, %v6084_v54 }
 0x78f   : > { %v6297_v52 = vadd.f32 %v2166_v25, %v6087_v7 }
 0x790   : > { %4609 = vmatmul.msk.bf16.gmra.mxu0 %vm659_vm0, %v5103_v16 }
 0x793   : > { %v2073_v34 = vpop.f32.mrf.mxu1 }
 0x794   : > { %v2167_v17 = vmul.f32 0.125, %v2073_v34  ;;  %v2047_v18 = vpop.f32.mrf.mxu0 }
 0x795   : > { %v2168_v8 = vmul.f32 0.125, %v2047_v18 }
 0x796   : > { %v6302_v57 = vadd.f32 %v2167_v17, %v6090_v35 }
 0x797   : > { %v6305_v49 = vadd.f32 %v2168_v8, %v6093_v37  ;;  %4613 = vmatmul.msk.bf16.gmra.mxu1 %vm659_vm0, %v5103_v16 }
 0x79b   : > { %v2076_v54 = vpop.f32.mrf.mxu1 }
 0x79c   : > { %v2169_v44 = vmul.f32 0.125, %v2076_v54  ;;  %v2049_v7 = vpop.f32.mrf.mxu0 }
 0x79d   : > { %v2170_v40 = vmul.f32 0.125, %v2049_v7  ;;  %v2214_v7 = vpack.c.bf16 %v2166_v25, %v2164_v41 }
 0x79e   : > { %v6310_v29 = vadd.f32 %v2169_v44, %v6096_v55 }
 0x79f   : > { %v6313_v62 = vadd.f32 %v2170_v40, %v6099_v60 }
 0x7a0   : > { %4610 = vmatmul.msk.bf16.gmra.mxu0 %vm659_vm0, %v5115_v31 }
 0x7a3   : > { %v2078_v35 = vpop.f32.mrf.mxu1 }
 0x7a4   : > { %v2171_v39 = vmul.f32 0.125, %v2078_v35  ;;  %v2052_v37 = vpop.f32.mrf.mxu0 }
 0x7a5   : > { %v2172_v28 = vmul.f32 0.125, %v2052_v37 }
 0x7a6   : > { %v6318_v50 = vadd.f32 %v2171_v39, %v6102_v43  ;;  %v2218_v43 = vpack.c.bf16 %v2170_v40, %v2168_v8  ;;  %v2215_v8 = vpack.c.bf16 %v2167_v17, %v2165_v32 }
 0x7a7   : > { %v6321_v59 = vadd.f32 %v2172_v28, %v6105_v46  ;;  %4614 = vmatmul.msk.bf16.gmra.mxu1 %vm659_vm0, %v5115_v31 }
 0x7ab   : > { %v2081_v55 = vpop.f32.mrf.mxu1 }
 0x7ac   : > { %v2173_v13 = vmul.f32 0.125, %v2081_v55  ;;  %v2054_v60 = vpop.f32.mrf.mxu0 }
 0x7ad   : > { %v2174_v23 = vmul.f32 0.125, %v2054_v60 }
 0x7ae   : > { %v6326_v48 = vadd.f32 %v2173_v13, %v6108_v14  ;;  %v2219_v14 = vpack.c.bf16 %v2171_v39, %v2169_v44 }
 0x7af   : > { %v6329_v5 = vadd.f32 %v2174_v23, %v6111_v3  ;;  %v2222_v58 = vpack.c.bf16 %v2174_v23, %v2172_v28  ;;  %v2210_v3 = vpack.c.bf16 %v6271_v33, %v6259_v10 }
 0x7b0   : > { %4611 = vmatmul.msk.bf16.gmra.mxu0 %vm659_vm0, %v5131_v53 }
 0x7b1   : > { %2286 = vmatpush.bf16.msrb.mxu2 %v2222_v58 }
 0x7b3   : > { %v2083_v46 = vpop.f32.mrf.mxu1 }
 0x7b4   : > { %v2175_v34 = vmul.f32 0.125, %v2083_v46 }
 0x7b5   : > { %2287 = vmatpush.bf16.msrb.mxu2 %v2218_v43 }
 0x7b6   : > { %v6334_v18 = vadd.f32 %v2175_v34, %v6114_v19  ;;  %v2223_v54 = vpack.c.bf16 %v2175_v34, %v2173_v13  ;;  %v2211_v19 = vpack.c.bf16 %v2163_v63, %v6269_v20 }
 0x7b7   : > { %4615 = vmatmul.msk.bf16.gmra.mxu1 %vm659_vm0, %v5131_v53 }
 0x7b8   : > { %2315 = vmatpush.bf16.msrb.mxu3 %v2223_v54 }
 0x7b9   : > { %2288 = vmatpush.bf16.msrb.mxu2 %v2214_v7 }
 0x7bc   : > { %2316 = vmatpush.bf16.msrb.mxu3 %v2219_v14 }
 0x7bd   : > { %2289 = vmatpush.bf16.msrb.mxu2 %v2210_v3 }
 0x7c0   : > { %2317 = vmatpush.bf16.msrb.mxu3 %v2215_v8  ;;  %4616 = vmatmul.msk.bf16.vlgmr.msrb.gmra.mxu2 %vm659_vm0, %v5078_v4 }
 0x7c4   : > { %2318 = vmatpush.bf16.msrb.mxu3 %v2211_v19 }
 0x7c7   : > { %4620 = vmatmul.msk.bf16.vlgmr.msrb.gmra.mxu3 %vm659_vm0, %v5078_v4 }
 0x7d0   : > { %4617 = vmatmul.msk.bf16.gmra.mxu2 %vm659_vm0, %v5103_v16 }
 0x7d7   : > { %4621 = vmatmul.msk.bf16.gmra.mxu3 %vm659_vm0, %v5103_v16 }
 0x7e0   : > { %4618 = vmatmul.msk.bf16.gmra.mxu2 %vm659_vm0, %v5115_v31 }
 0x7e7   : > { %4622 = vmatmul.msk.bf16.gmra.mxu3 %vm659_vm0, %v5115_v31 }
 0x7f0   : > { %4619 = vmatmul.msk.bf16.gmra.mxu2 %vm659_vm0, %v5131_v53 }
 0x7f7   : > { %4623 = vmatmul.msk.bf16.gmra.mxu3 %vm659_vm0, %v5131_v53 }
 0x7fd   : > { %v2233_v10 = vpop.f32.mrf.mxu0 }
 0x7fe   : > { %v2356_v20 = vmul.f32 0.11111111, %v2233_v10 }
 0x800   : > { %v6358_v33 = vadd.f32 %v2356_v20, %v6266_v22 }
 0x804   : > { %v2262_v63 = vpop.f32.mrf.mxu1 }
 0x805   : > { %v6360_v41 = vmul.f32 0.11111111, %v2262_v63  ;;  %v2235_v32 = vpop.f32.mrf.mxu0 }
 0x806   : > { %v2358_v25 = vmul.f32 0.11111111, %v2235_v32 }
 0x807   : > { %v6364_v17 = vadd.f32 %v6360_v41, %v6275_v30 }
 0x808   : > { %v6367_v44 = vadd.f32 %v2358_v25, %v6279_v38 }
 0x80c   : > { %v2264_v40 = vpop.f32.mrf.mxu1 }
 0x80d   : > { %v2359_v35 = vmul.f32 0.11111111, %v2264_v40  ;;  %v2238_v39 = vpop.f32.mrf.mxu0 }
 0x80e   : > { %v2360_v37 = vmul.f32 0.11111111, %v2238_v39 }
 0x80f   : > { %v6370_v28 = vadd.f32 %v2359_v35, %v6286_v61 }
 0x810   : > { %v6373_v22 = vadd.f32 %v2360_v37, %v6289_v26 }
 0x814   : > { %v2267_v55 = vpop.f32.mrf.mxu1 }
 0x815   : > { %v2361_v13 = vmul.f32 0.11111111, %v2267_v55  ;;  %v2240_v60 = vpop.f32.mrf.mxu0 }
 0x816   : > { %v2362_v23 = vmul.f32 0.11111111, %v2240_v60 }
 0x817   : > { %v6376_v30 = vadd.f32 %v2361_v13, %v6294_v21 }
 0x818   : > { %v6379_v38 = vadd.f32 %v2362_v23, %v6297_v52 }
 0x81c   : > { %v2269_v58 = vpop.f32.mrf.mxu1 }
 0x81d   : > { %v2363_v43 = vmul.f32 0.11111111, %v2269_v58  ;;  %v2243_v46 = vpop.f32.mrf.mxu0 }
 0x81e   : > { %v2364_v34 = vmul.f32 0.11111111, %v2243_v46 }
 0x81f   : > { %v6382_v61 = vadd.f32 %v2363_v43, %v6302_v57 }
 0x820   : > { %v6385_v26 = vadd.f32 %v2364_v34, %v6305_v49 }
 0x824   : > { %v2272_v54 = vpop.f32.mrf.mxu1 }
 0x825   : > { %v2365_v7 = vmul.f32 0.11111111, %v2272_v54  ;;  %v2245_v14 = vpop.f32.mrf.mxu0 }
 0x826   : > { %v2366_v3 = vmul.f32 0.11111111, %v2245_v14 }
 0x827   : > { %v6388_v21 = vadd.f32 %v2365_v7, %v6310_v29 }
 0x828   : > { %v6391_v52 = vadd.f32 %v2366_v3, %v6313_v62  ;;  %v2414_v58 = vpack.c.bf16 %v2366_v3, %v2364_v34 }
 0x82c   : > { %v2274_v8 = vpop.f32.mrf.mxu1 }
 0x82d   : > { %v2367_v19 = vmul.f32 0.11111111, %v2274_v8  ;;  %v2248_v10 = vpop.f32.mrf.mxu0 }
 0x82e   : > { %v2368_v63 = vmul.f32 0.11111111, %v2248_v10  ;;  %v2406_v10 = vpack.c.bf16 %v2358_v25, %v2356_v20 }
 0x82f   : > { %v6394_v57 = vadd.f32 %v2367_v19, %v6318_v50  ;;  %v2410_v50 = vpack.c.bf16 %v2362_v23, %v2360_v37  ;;  %v2415_v8 = vpack.c.bf16 %v2367_v19, %v2365_v7  ;;  %v2407_v37 = vpack.c.bf16 %v2359_v35, %v6360_v41 }
 0x830   : > { %v6397_v49 = vadd.f32 %v2368_v63, %v6321_v59 }
 0x834   : > { %v2277_v32 = vpop.f32.mrf.mxu1 }
 0x835   : > { %v2369_v40 = vmul.f32 0.11111111, %v2277_v32  ;;  %v2250_v39 = vpop.f32.mrf.mxu0 }
 0x836   : > { %v2370_v55 = vmul.f32 0.11111111, %v2250_v39 }
 0x837   : > { %v6400_v29 = vadd.f32 %v2369_v40, %v6326_v48 }
 0x838   : > { %v6403_v62 = vadd.f32 %v2370_v55, %v6329_v5  ;;  %v2418_v60 = vpack.c.bf16 %v2370_v55, %v2368_v63  ;;  %v2411_v5 = vpack.c.bf16 %v2363_v43, %v2361_v13 }
 0x83a   : > { %2482 = vmatpush.bf16.msra.mxu2 %v2418_v60 }
 0x83c   : > { %v2279_v46 = vpop.f32.mrf.mxu1 }
 0x83d   : > { %v2371_v54 = vmul.f32 0.11111111, %v2279_v46 }
 0x83e   : > { %2483 = vmatpush.bf16.msra.mxu2 %v2414_v58 }
 0x83f   : > { %v6406_v59 = vadd.f32 %v2371_v54, %v6334_v18  ;;  %v2419_v14 = vpack.c.bf16 %v2371_v54, %v2369_v40 }
 0x841   : > { %2511 = vmatpush.bf16.msra.mxu3 %v2419_v14 }
 0x842   : > { %2484 = vmatpush.bf16.msra.mxu2 %v2410_v50 }
 0x843   : > { %v2291_v48 = vpop.f32.mrf.mxu2 }
 0x844   : > { %v6408_v32 = vmul.f32 -0.11111111, %v2291_v48 }
 0x845   : > { %2512 = vmatpush.bf16.msra.mxu3 %v2415_v8 }
 0x846   : > { %v6412_v34 = vadd.f32 %v6408_v32, %v6209_v1  ;;  %2485 = vmatpush.bf16.msra.mxu2 %v2406_v10 }
 0x849   : > { %2513 = vmatpush.bf16.msra.mxu3 %v2411_v5  ;;  %4632 = vmatmul.msk.bf16.vlgmr.msra.gmra.mxu2 %vm659_vm0, %v5078_v4 }
 0x84a   : > { %v2320_v18 = vpop.f32.mrf.mxu3 }
 0x84b   : > { %v6417_v23 = vmul.f32 -0.11111111, %v2320_v18  ;;  %v2293_v20 = vpop.f32.mrf.mxu2 }
 0x84c   : > { %v2342_v25 = vmul.f32 -0.11111111, %v2293_v20 }
 0x84d   : > { %v6421_v13 = vadd.f32 %v6417_v23, %v6215_v51  ;;  %2514 = vmatpush.bf16.msra.mxu3 %v2407_v37 }
 0x84e   : > { %v6424_v1 = vadd.f32 %v2342_v25, %v6218_v36 }
 0x850   : > { %4636 = vmatmul.msk.bf16.vlgmr.msra.gmra.mxu3 %vm659_vm0, %v5078_v4 }
 0x852   : > { %v2322_v41 = vpop.f32.mrf.mxu3 }
 0x853   : > { %v2343_v35 = vmul.f32 -0.11111111, %v2322_v41  ;;  %v2296_v43 = vpop.f32.mrf.mxu2 }
 0x854   : > { %v2344_v7 = vmul.f32 -0.11111111, %v2296_v43 }
 0x855   : > { %v6429_v3 = vadd.f32 %v2343_v35, %v6224_v56 }
 0x856   : > { %v6432_v19 = vadd.f32 %v2344_v7, %v6227_v11 }
 0x859   : > { %4633 = vmatmul.msk.bf16.gmra.mxu2 %vm659_vm0, %v5103_v16 }
 0x85a   : > { %v2325_v51 = vpop.f32.mrf.mxu3 }
 0x85b   : > { %v2345_v63 = vmul.f32 -0.11111111, %v2325_v51  ;;  %v2298_v36 = vpop.f32.mrf.mxu2 }
 0x85c   : > { %v2346_v40 = vmul.f32 -0.11111111, %v2298_v36 }
 0x85d   : > { %v6437_v39 = vadd.f32 %v2345_v63, %v6230_v27 }
 0x85e   : > { %v6440_v55 = vadd.f32 %v2346_v40, %v6233_v42 }
 0x860   : > { %4637 = vmatmul.msk.bf16.gmra.mxu3 %vm659_vm0, %v5103_v16 }
 0x862   : > { %v2327_v56 = vpop.f32.mrf.mxu3 }
 0x863   : > { %v2347_v60 = vmul.f32 -0.11111111, %v2327_v56  ;;  %v2301_v11 = vpop.f32.mrf.mxu2 }
 0x864   : > { %v2348_v58 = vmul.f32 -0.11111111, %v2301_v11 }
 0x865   : > { %v6445_v46 = vadd.f32 %v2347_v60, %v6236_v9 }
 0x866   : > { %v6448_v54 = vadd.f32 %v2348_v58, %v6239_v24 }
 0x869   : > { %4634 = vmatmul.msk.bf16.gmra.mxu2 %vm659_vm0, %v5115_v31 }
 0x86a   : > { %v2330_v27 = vpop.f32.mrf.mxu3 }
 0x86b   : > { %v2349_v50 = vmul.f32 -0.11111111, %v2330_v27  ;;  %v2303_v42 = vpop.f32.mrf.mxu2 }
 0x86c   : > { %v2350_v14 = vmul.f32 -0.11111111, %v2303_v42  ;;  %v2408_v42 = vpack.c.bf16 %v2346_v40, %v2344_v7 }
 0x86d   : > { %v6453_v8 = vadd.f32 %v2349_v50, %v6242_v6 }
 0x86e   : > { %v6456_v10 = vadd.f32 %v2350_v14, %v6245_v2 }
 0x870   : > { %4638 = vmatmul.msk.bf16.gmra.mxu3 %vm659_vm0, %v5115_v31 }
 0x872   : > { %v2332_v9 = vpop.f32.mrf.mxu3 }
 0x873   : > { %v2351_v48 = vmul.f32 -0.11111111, %v2332_v9  ;;  %v2306_v24 = vpop.f32.mrf.mxu2  ;;  %v2409_v9 = vpack.c.bf16 %v2347_v60, %v2345_v63 }
 0x874   : > { %v2352_v5 = vmul.f32 -0.11111111, %v2306_v24 }
 0x875   : > { %v6461_v37 = vadd.f32 %v2351_v48, %v6248_v47  ;;  %v2412_v47 = vpack.c.bf16 %v2350_v14, %v2348_v58  ;;  %v2405_v58 = vpack.c.bf16 %v2343_v35, %v6417_v23 }
 0x876   : > { %v6464_v18 = vadd.f32 %v2352_v5, %v6251_v0 }
 0x879   : > { %4635 = vmatmul.msk.bf16.gmra.mxu2 %vm659_vm0, %v5131_v53 }
 0x87a   : > { %v2335_v6 = vpop.f32.mrf.mxu3 }
 0x87b   : > { %v2353_v20 = vmul.f32 -0.11111111, %v2335_v6  ;;  %v2308_v2 = vpop.f32.mrf.mxu2 }
 0x87c   : > { %v2354_v41 = vmul.f32 -0.11111111, %v2308_v2 }
 0x87d   : > { %v6469_v43 = vadd.f32 %v2353_v20, %v6254_v15  ;;  %v2413_v15 = vpack.c.bf16 %v2351_v48, %v2349_v50 }
 0x87e   : > { %v6472_v51 = vadd.f32 %v2354_v41, %v6257_v12  ;;  %v2416_v36 = vpack.c.bf16 %v2354_v41, %v2352_v5  ;;  %v2404_v12 = vpack.c.bf16 %v2342_v25, %v6408_v32 }
 0x880   : > { %4639 = vmatmul.msk.bf16.gmra.mxu3 %vm659_vm0, %v5131_v53  ;;  %2424 = vmatpush.bf16.msra.mxu0 %v2416_v36 }
 0x882   : > { %v2337_v0 = vpop.f32.mrf.mxu3 }
 0x883   : > { %v2355_v56 = vmul.f32 -0.11111111, %v2337_v0 }
 0x884   : > { %2425 = vmatpush.bf16.msra.mxu0 %v2412_v47 }
 0x885   : > { %v6477_v11 = vadd.f32 %v2355_v56, %v6262_v45  ;;  %v2417_v27 = vpack.c.bf16 %v2355_v56, %v2353_v20 }
 0x887   : > { %2453 = vmatpush.bf16.msra.mxu1 %v2417_v27 }
 0x888   : > { %2426 = vmatpush.bf16.msra.mxu0 %v2408_v42 }
 0x88b   : > { %2454 = vmatpush.bf16.msra.mxu1 %v2413_v15 }
 0x88c   : > { %2427 = vmatpush.bf16.msra.mxu0 %v2404_v12 }
 0x88f   : > { %2455 = vmatpush.bf16.msra.mxu1 %v2409_v9  ;;  %4624 = vmatmul.msk.bf16.vlgmr.msra.gmra.mxu0 %vm659_vm0, %v5078_v4 }
 0x893   : > { %2456 = vmatpush.bf16.msra.mxu1 %v2405_v58 }
 0x896   : > { %4628 = vmatmul.msk.bf16.vlgmr.msra.gmra.mxu1 %vm659_vm0, %v5078_v4 }
 0x89f   : > { %4625 = vmatmul.msk.bf16.gmra.mxu0 %vm659_vm0, %v5103_v16 }
 0x8a6   : > { %4629 = vmatmul.msk.bf16.gmra.mxu1 %vm659_vm0, %v5103_v16 }
 0x8af   : > { %4626 = vmatmul.msk.bf16.gmra.mxu0 %vm659_vm0, %v5115_v31 }
 0x8b6   : > { %4630 = vmatmul.msk.bf16.gmra.mxu1 %vm659_vm0, %v5115_v31 }
 0x8bf   : > { %4627 = vmatmul.msk.bf16.gmra.mxu0 %vm659_vm0, %v5131_v53 }
 0x8c6   : > { %4631 = vmatmul.msk.bf16.gmra.mxu1 %vm659_vm0, %v5131_v53 }
 0x8cc   : > { %v2487_v45 = vpop.f32.mrf.mxu2 }
 0x8cd   : > { %v6497_v32 = vmul.f32 -0.1, %v2487_v45 }
 0x8cf   : > { %v6501_v23 = vadd.f32 %v6497_v32, %v6412_v34 }
 0x8d3   : > { %v2516_v25 = vpop.f32.mrf.mxu3 }
 0x8d4   : > { %v6503_v35 = vmul.f32 -0.1, %v2516_v25  ;;  %v2489_v7 = vpop.f32.mrf.mxu2 }
 0x8d5   : > { %v2538_v63 = vmul.f32 -0.1, %v2489_v7 }
 0x8d6   : > { %v6507_v40 = vadd.f32 %v6503_v35, %v6421_v13 }
 0x8d7   : > { %v6510_v60 = vadd.f32 %v2538_v63, %v6424_v1 }
 0x8db   : > { %v2518_v50 = vpop.f32.mrf.mxu3 }
 0x8dc   : > { %v6512_v14 = vmul.f32 -0.1, %v2518_v50  ;;  %v2492_v48 = vpop.f32.mrf.mxu2 }
 0x8dd   : > { %v2540_v24 = vmul.f32 -0.1, %v2492_v48 }
 0x8de   : > { %v6516_v34 = vadd.f32 %v6512_v14, %v6429_v3 }
 0x8df   : > { %v6519_v5 = vadd.f32 %v2540_v24, %v6432_v19 }
 0x8e3   : > { %v2521_v6 = vpop.f32.mrf.mxu3 }
 0x8e4   : > { %v2541_v20 = vmul.f32 -0.1, %v2521_v6  ;;  %v2494_v2 = vpop.f32.mrf.mxu2 }
 0x8e5   : > { %v2542_v13 = vmul.f32 -0.1, %v2494_v2 }
 0x8e6   : > { %v6522_v41 = vadd.f32 %v2541_v20, %v6437_v39 }
 0x8e7   : > { %v6525_v1 = vadd.f32 %v2542_v13, %v6440_v55 }
 0x8eb   : > { %v2523_v36 = vpop.f32.mrf.mxu3 }
 0x8ec   : > { %v2543_v47 = vmul.f32 -0.1, %v2523_v36  ;;  %v2497_v0 = vpop.f32.mrf.mxu2 }
 0x8ed   : > { %v2544_v56 = vmul.f32 -0.1, %v2497_v0 }
 0x8ee   : > { %v6528_v3 = vadd.f32 %v2543_v47, %v6445_v46 }
 0x8ef   : > { %v6531_v19 = vadd.f32 %v2544_v56, %v6448_v54 }
 0x8f3   : > { %v2526_v27 = vpop.f32.mrf.mxu3 }
 0x8f4   : > { %v2545_v42 = vmul.f32 -0.1, %v2526_v27  ;;  %v2499_v15 = vpop.f32.mrf.mxu2 }
 0x8f5   : > { %v2546_v12 = vmul.f32 -0.1, %v2499_v15  ;;  %v2604_v15 = vpack.c.bf16 %v2542_v13, %v2540_v24 }
 0x8f6   : > { %v6534_v39 = vadd.f32 %v2545_v42, %v6453_v8 }
 0x8f7   : > { %v6537_v55 = vadd.f32 %v2546_v12, %v6456_v10  ;;  %v2608_v36 = vpack.c.bf16 %v2546_v12, %v2544_v56  ;;  %v2600_v56 = vpack.c.bf16 %v2538_v63, %v6497_v32  ;;  %v2601_v32 = vpack.c.bf16 %v6512_v14, %v6503_v35 }
 0x8fb   : > { %v2528_v9 = vpop.f32.mrf.mxu3 }
 0x8fc   : > { %v2547_v58 = vmul.f32 -0.1, %v2528_v9  ;;  %v2502_v45 = vpop.f32.mrf.mxu2 }
 0x8fd   : > { %v2548_v25 = vmul.f32 -0.1, %v2502_v45 }
 0x8fe   : > { %v6540_v46 = vadd.f32 %v2547_v58, %v6461_v37 }
 0x8ff   : > { %v6543_v54 = vadd.f32 %v2548_v25, %v6464_v18 }
 0x903   : > { %v2531_v7 = vpop.f32.mrf.mxu3 }
 0x904   : > { %v2549_v50 = vmul.f32 -0.1, %v2531_v7  ;;  %v2504_v48 = vpop.f32.mrf.mxu2 }
 0x905   : > { %v2550_v6 = vmul.f32 -0.1, %v2504_v48 }
 0x906   : > { %v6546_v8 = vadd.f32 %v2549_v50, %v6469_v43 }
 0x907   : > { %v6549_v10 = vadd.f32 %v2550_v6, %v6472_v51  ;;  %v2612_v2 = vpack.c.bf16 %v2550_v6, %v2548_v25  ;;  %v2609_v51 = vpack.c.bf16 %v2547_v58, %v2545_v42  ;;  %v2605_v25 = vpack.c.bf16 %v2543_v47, %v2541_v20 }
 0x909   : > { %2620 = vmatpush.bf16.msrb.mxu0 %v2612_v2 }
 0x90b   : > { %v2533_v0 = vpop.f32.mrf.mxu3 }
 0x90c   : > { %v2551_v27 = vmul.f32 -0.1, %v2533_v0  ;;  %v2429_v37 = vpop.f32.mrf.mxu0 }
 0x90d   : > { %v6551_v9 = vmul.f32 0.1, %v2429_v37  ;;  %2621 = vmatpush.bf16.msrb.mxu0 %v2608_v36 }
 0x90e   : > { %v6554_v18 = vadd.f32 %v2551_v27, %v6477_v11  ;;  %v2613_v45 = vpack.c.bf16 %v2551_v27, %v2549_v50 }
 0x90f   : > { %v6558_v43 = vadd.f32 %v6551_v9, %v6358_v33 }
 0x910   : > { %2649 = vmatpush.bf16.msrb.mxu1 %v2613_v45 }
 0x911   : > { %2622 = vmatpush.bf16.msrb.mxu0 %v2604_v15 }
 0x913   : > { %v2458_v12 = vpop.f32.mrf.mxu1 }
 0x914   : > { %v6561_v7 = vmul.f32 0.1, %v2458_v12  ;;  %2650 = vmatpush.bf16.msrb.mxu1 %v2609_v51  ;;  %v2431_v24 = vpop.f32.mrf.mxu0 }
 0x915   : > { %v6563_v13 = vmul.f32 0.1, %v2431_v24  ;;  %2623 = vmatpush.bf16.msrb.mxu0 %v2600_v56 }
 0x916   : > { %v6567_v11 = vadd.f32 %v6561_v7, %v6364_v17 }
 0x917   : > { %v6571_v33 = vadd.f32 %v6563_v13, %v6367_v44 }
 0x918   : > { %2651 = vmatpush.bf16.msrb.mxu1 %v2605_v25  ;;  %4640 = vmatmul.msk.bf16.vlgmr.msrb.gmra.mxu0 %vm659_vm0, %v5078_v4 }
 0x91b   : > { %v2460_v63 = vpop.f32.mrf.mxu1 }
 0x91c   : > { %v2555_v20 = vmul.f32 0.1, %v2460_v63  ;;  %2652 = vmatpush.bf16.msrb.mxu1 %v2601_v32  ;;  %v2434_v47 = vpop.f32.mrf.mxu0 }
 0x91d   : > { %v2556_v42 = vmul.f32 0.1, %v2434_v47 }
 0x91e   : > { %v6578_v58 = vadd.f32 %v2555_v20, %v6370_v28 }
 0x91f   : > { %v6581_v17 = vadd.f32 %v2556_v42, %v6373_v22  ;;  %4644 = vmatmul.msk.bf16.vlgmr.msrb.gmra.mxu1 %vm659_vm0, %v5078_v4 }
 0x923   : > { %v2463_v44 = vpop.f32.mrf.mxu1 }
 0x924   : > { %v2557_v35 = vmul.f32 0.1, %v2463_v44  ;;  %v2436_v14 = vpop.f32.mrf.mxu0 }
 0x925   : > { %v2558_v50 = vmul.f32 0.1, %v2436_v14 }
 0x926   : > { %v6586_v48 = vadd.f32 %v2557_v35, %v6376_v30 }
 0x927   : > { %v6589_v6 = vadd.f32 %v2558_v50, %v6379_v38 }
 0x928   : > { %4641 = vmatmul.msk.bf16.gmra.mxu0 %vm659_vm0, %v5103_v16 }
 0x92b   : > { %v2465_v28 = vpop.f32.mrf.mxu1 }
 0x92c   : > { %v2559_v2 = vmul.f32 0.1, %v2465_v28  ;;  %v2439_v22 = vpop.f32.mrf.mxu0 }
 0x92d   : > { %v2560_v36 = vmul.f32 0.1, %v2439_v22 }
 0x92e   : > { %v6594_v0 = vadd.f32 %v2559_v2, %v6382_v61 }
 0x92f   : > { %v6597_v27 = vadd.f32 %v2560_v36, %v6385_v26  ;;  %4645 = vmatmul.msk.bf16.gmra.mxu1 %vm659_vm0, %v5103_v16 }
 0x933   : > { %v2468_v30 = vpop.f32.mrf.mxu1 }
 0x934   : > { %v2561_v37 = vmul.f32 0.1, %v2468_v30  ;;  %v2441_v38 = vpop.f32.mrf.mxu0 }
 0x935   : > { %v2562_v15 = vmul.f32 0.1, %v2441_v38  ;;  %v2606_v38 = vpack.c.bf16 %v2558_v50, %v2556_v42 }
 0x936   : > { %v6602_v45 = vadd.f32 %v2561_v37, %v6388_v21 }
 0x937   : > { %v6605_v51 = vadd.f32 %v2562_v15, %v6391_v52 }
 0x938   : > { %4642 = vmatmul.msk.bf16.gmra.mxu0 %vm659_vm0, %v5115_v31 }
 0x93b   : > { %v2470_v61 = vpop.f32.mrf.mxu1 }
 0x93c   : > { %v2563_v56 = vmul.f32 0.1, %v2470_v61  ;;  %v2444_v26 = vpop.f32.mrf.mxu0 }
 0x93d   : > { %v2564_v12 = vmul.f32 0.1, %v2444_v26 }
 0x93e   : > { %v6610_v25 = vadd.f32 %v2563_v56, %v6394_v57  ;;  %v2610_v57 = vpack.c.bf16 %v2562_v15, %v2560_v36  ;;  %v2607_v36 = vpack.c.bf16 %v2559_v2, %v2557_v35 }
 0x93f   : > { %v6613_v24 = vadd.f32 %v2564_v12, %v6397_v49  ;;  %4646 = vmatmul.msk.bf16.gmra.mxu1 %vm659_vm0, %v5115_v31 }
 0x943   : > { %v2473_v21 = vpop.f32.mrf.mxu1 }
 0x944   : > { %v2565_v32 = vmul.f32 0.1, %v2473_v21  ;;  %v2446_v52 = vpop.f32.mrf.mxu0 }
 0x945   : > { %v2566_v63 = vmul.f32 0.1, %v2446_v52 }
 0x946   : > { %v6618_v47 = vadd.f32 %v2565_v32, %v6400_v29  ;;  %v2611_v29 = vpack.c.bf16 %v2563_v56, %v2561_v37 }
 0x947   : > { %v6621_v44 = vadd.f32 %v2566_v63, %v6403_v62  ;;  %v2614_v14 = vpack.c.bf16 %v2566_v63, %v2564_v12  ;;  %v2602_v62 = vpack.c.bf16 %v6563_v13, %v6551_v9 }
 0x948   : > { %4643 = vmatmul.msk.bf16.gmra.mxu0 %vm659_vm0, %v5131_v53 }
 0x949   : > { %2678 = vmatpush.bf16.msrb.mxu2 %v2614_v14 }
 0x94b   : > { %v2475_v49 = vpop.f32.mrf.mxu1 }
 0x94c   : > { %v2567_v28 = vmul.f32 0.1, %v2475_v49 }
 0x94d   : > { %2679 = vmatpush.bf16.msrb.mxu2 %v2610_v57 }
 0x94e   : > { %v6626_v22 = vadd.f32 %v2567_v28, %v6406_v59  ;;  %v2615_v30 = vpack.c.bf16 %v2567_v28, %v2565_v32  ;;  %v2603_v59 = vpack.c.bf16 %v2555_v20, %v6561_v7 }
 0x94f   : > { %4647 = vmatmul.msk.bf16.gmra.mxu1 %vm659_vm0, %v5131_v53 }
 0x950   : > { %2707 = vmatpush.bf16.msrb.mxu3 %v2615_v30 }
 0x951   : > { %2680 = vmatpush.bf16.msrb.mxu2 %v2606_v38 }
 0x954   : > { %2708 = vmatpush.bf16.msrb.mxu3 %v2611_v29 }
 0x955   : > { %2681 = vmatpush.bf16.msrb.mxu2 %v2602_v62 }
 0x958   : > { %2709 = vmatpush.bf16.msrb.mxu3 %v2607_v36  ;;  %4648 = vmatmul.msk.bf16.vlgmr.msrb.gmra.mxu2 %vm659_vm0, %v5078_v4 }
 0x95c   : > { %2710 = vmatpush.bf16.msrb.mxu3 %v2603_v59 }
 0x95f   : > { %4652 = vmatmul.msk.bf16.vlgmr.msrb.gmra.mxu3 %vm659_vm0, %v5078_v4 }
 0x968   : > { %4649 = vmatmul.msk.bf16.gmra.mxu2 %vm659_vm0, %v5103_v16 }
 0x96f   : > { %4653 = vmatmul.msk.bf16.gmra.mxu3 %vm659_vm0, %v5103_v16 }
 0x978   : > { %4650 = vmatmul.msk.bf16.gmra.mxu2 %vm659_vm0, %v5115_v31 }
 0x97f   : > { %4654 = vmatmul.msk.bf16.gmra.mxu3 %vm659_vm0, %v5115_v31 }
 0x988   : > { %4651 = vmatmul.msk.bf16.gmra.mxu2 %vm659_vm0, %v5131_v53 }
 0x98f   : > { %4655 = vmatmul.msk.bf16.gmra.mxu3 %vm659_vm0, %v5131_v53 }
 0x995   : > { %v2625_v9 = vpop.f32.mrf.mxu0 }
 0x996   : > { %v2748_v7 = vmul.f32 0.09090909, %v2625_v9 }
 0x998   : > { %v6650_v13 = vadd.f32 %v2748_v7, %v6558_v43 }
 0x99c   : > { %v2654_v20 = vpop.f32.mrf.mxu1 }
 0x99d   : > { %v6652_v42 = vmul.f32 0.09090909, %v2654_v20  ;;  %v2627_v35 = vpop.f32.mrf.mxu0 }
 0x99e   : > { %v2750_v50 = vmul.f32 0.09090909, %v2627_v35 }
 0x99f   : > { %v6656_v2 = vadd.f32 %v6652_v42, %v6567_v11 }
 0x9a0   : > { %v6659_v37 = vadd.f32 %v2750_v50, %v6571_v33 }
 0x9a4   : > { %v2656_v15 = vpop.f32.mrf.mxu1 }
 0x9a5   : > { %v2751_v61 = vmul.f32 0.09090909, %v2656_v15  ;;  %v2630_v56 = vpop.f32.mrf.mxu0 }
 0x9a6   : > { %v2752_v26 = vmul.f32 0.09090909, %v2630_v56 }
 0x9a7   : > { %v6662_v12 = vadd.f32 %v2751_v61, %v6578_v58 }
 0x9a8   : > { %v6665_v43 = vadd.f32 %v2752_v26, %v6581_v17 }
 0x9ac   : > { %v2659_v21 = vpop.f32.mrf.mxu1 }
 0x9ad   : > { %v2753_v32 = vmul.f32 0.09090909, %v2659_v21  ;;  %v2632_v52 = vpop.f32.mrf.mxu0 }
 0x9ae   : > { %v2754_v63 = vmul.f32 0.09090909, %v2632_v52 }
 0x9af   : > { %v6668_v11 = vadd.f32 %v2753_v32, %v6586_v48 }
 0x9b0   : > { %v6671_v33 = vadd.f32 %v2754_v63, %v6589_v6 }
 0x9b4   : > { %v2661_v14 = vpop.f32.mrf.mxu1 }
 0x9b5   : > { %v2755_v57 = vmul.f32 0.09090909, %v2661_v14  ;;  %v2635_v49 = vpop.f32.mrf.mxu0 }
 0x9b6   : > { %v2756_v28 = vmul.f32 0.09090909, %v2635_v49 }
 0x9b7   : > { %v6674_v58 = vadd.f32 %v2755_v57, %v6594_v0 }
 0x9b8   : > { %v6677_v17 = vadd.f32 %v2756_v28, %v6597_v27 }
 0x9bc   : > { %v2664_v30 = vpop.f32.mrf.mxu1 }
 0x9bd   : > { %v2757_v38 = vmul.f32 0.09090909, %v2664_v30  ;;  %v2637_v29 = vpop.f32.mrf.mxu0 }
 0x9be   : > { %v2758_v62 = vmul.f32 0.09090909, %v2637_v29 }
 0x9bf   : > { %v6680_v48 = vadd.f32 %v2757_v38, %v6602_v45 }
 0x9c0   : > { %v6683_v6 = vadd.f32 %v2758_v62, %v6605_v51  ;;  %v2806_v14 = vpack.c.bf16 %v2758_v62, %v2756_v28 }
 0x9c4   : > { %v2666_v36 = vpop.f32.mrf.mxu1 }
 0x9c5   : > { %v2759_v59 = vmul.f32 0.09090909, %v2666_v36  ;;  %v2640_v9 = vpop.f32.mrf.mxu0 }
 0x9c6   : > { %v2760_v20 = vmul.f32 0.09090909, %v2640_v9  ;;  %v2798_v9 = vpack.c.bf16 %v2750_v50, %v2748_v7 }
 0x9c7   : > { %v6686_v0 = vadd.f32 %v2759_v59, %v6610_v25  ;;  %v2802_v25 = vpack.c.bf16 %v2754_v63, %v2752_v26  ;;  %v2807_v36 = vpack.c.bf16 %v2759_v59, %v2757_v38  ;;  %v2799_v26 = vpack.c.bf16 %v2751_v61, %v6652_v42 }
 0x9c8   : > { %v6689_v27 = vadd.f32 %v2760_v20, %v6613_v24 }
 0x9cc   : > { %v2669_v35 = vpop.f32.mrf.mxu1 }
 0x9cd   : > { %v2761_v15 = vmul.f32 0.09090909, %v2669_v35  ;;  %v2642_v56 = vpop.f32.mrf.mxu0 }
 0x9ce   : > { %v2762_v21 = vmul.f32 0.09090909, %v2642_v56 }
 0x9cf   : > { %v6692_v45 = vadd.f32 %v2761_v15, %v6618_v47 }
 0x9d0   : > { %v6695_v51 = vadd.f32 %v2762_v21, %v6621_v44  ;;  %v2810_v52 = vpack.c.bf16 %v2762_v21, %v2760_v20  ;;  %v2803_v44 = vpack.c.bf16 %v2755_v57, %v2753_v32 }
 0x9d2   : > { %2874 = vmatpush.bf16.msra.mxu2 %v2810_v52 }
 0x9d4   : > { %v2671_v49 = vpop.f32.mrf.mxu1 }
 0x9d5   : > { %v2763_v30 = vmul.f32 0.09090909, %v2671_v49 }
 0x9d6   : > { %2875 = vmatpush.bf16.msra.mxu2 %v2806_v14 }
 0x9d7   : > { %v6698_v24 = vadd.f32 %v2763_v30, %v6626_v22  ;;  %v2811_v29 = vpack.c.bf16 %v2763_v30, %v2761_v15 }
 0x9d9   : > { %2903 = vmatpush.bf16.msra.mxu3 %v2811_v29 }
 0x9da   : > { %2876 = vmatpush.bf16.msra.mxu2 %v2802_v25 }
 0x9db   : > { %v2683_v47 = vpop.f32.mrf.mxu2 }
 0x9dc   : > { %v6700_v35 = vmul.f32 -0.09090909, %v2683_v47 }
 0x9dd   : > { %2904 = vmatpush.bf16.msra.mxu3 %v2807_v36 }
 0x9de   : > { %v6704_v28 = vadd.f32 %v6700_v35, %v6501_v23  ;;  %2877 = vmatpush.bf16.msra.mxu2 %v2798_v9 }
 0x9e1   : > { %2905 = vmatpush.bf16.msra.mxu3 %v2803_v44  ;;  %4664 = vmatmul.msk.bf16.vlgmr.msra.gmra.mxu2 %vm659_vm0, %v5078_v4 }
 0x9e2   : > { %v2712_v22 = vpop.f32.mrf.mxu3 }
 0x9e3   : > { %v6709_v63 = vmul.f32 -0.09090909, %v2712_v22  ;;  %v2685_v7 = vpop.f32.mrf.mxu2 }
 0x9e4   : > { %v2734_v50 = vmul.f32 -0.09090909, %v2685_v7 }
 0x9e5   : > { %v6713_v32 = vadd.f32 %v6709_v63, %v6507_v40  ;;  %2906 = vmatpush.bf16.msra.mxu3 %v2799_v26 }
 0x9e6   : > { %v6716_v23 = vadd.f32 %v2734_v50, %v6510_v60 }
 0x9e8   : > { %4668 = vmatmul.msk.bf16.vlgmr.msra.gmra.mxu3 %vm659_vm0, %v5078_v4 }
 0x9ea   : > { %v2714_v42 = vpop.f32.mrf.mxu3 }
 0x9eb   : > { %v2735_v61 = vmul.f32 -0.09090909, %v2714_v42  ;;  %v2688_v57 = vpop.f32.mrf.mxu2 }
 0x9ec   : > { %v2736_v38 = vmul.f32 -0.09090909, %v2688_v57 }
 0x9ed   : > { %v6721_v62 = vadd.f32 %v2735_v61, %v6516_v34 }
 0x9ee   : > { %v6724_v59 = vadd.f32 %v2736_v38, %v6519_v5 }
 0x9f1   : > { %4665 = vmatmul.msk.bf16.gmra.mxu2 %vm659_vm0, %v5103_v16 }
 0x9f2   : > { %v2717_v40 = vpop.f32.mrf.mxu3 }
 0x9f3   : > { %v2737_v20 = vmul.f32 -0.09090909, %v2717_v40  ;;  %v2690_v60 = vpop.f32.mrf.mxu2 }
 0x9f4   : > { %v2738_v15 = vmul.f32 -0.09090909, %v2690_v60 }
 0x9f5   : > { %v6729_v56 = vadd.f32 %v2737_v20, %v6522_v41 }
 0x9f6   : > { %v6732_v21 = vadd.f32 %v2738_v15, %v6525_v1 }
 0x9f8   : > { %4669 = vmatmul.msk.bf16.gmra.mxu3 %vm659_vm0, %v5103_v16 }
 0x9fa   : > { %v2719_v34 = vpop.f32.mrf.mxu3 }
 0x9fb   : > { %v2739_v52 = vmul.f32 -0.09090909, %v2719_v34  ;;  %v2693_v5 = vpop.f32.mrf.mxu2 }
 0x9fc   : > { %v2740_v14 = vmul.f32 -0.09090909, %v2693_v5 }
 0x9fd   : > { %v6737_v49 = vadd.f32 %v2739_v52, %v6528_v3 }
 0x9fe   : > { %v6740_v30 = vadd.f32 %v2740_v14, %v6531_v19 }
 0xa01   : > { %4666 = vmatmul.msk.bf16.gmra.mxu2 %vm659_vm0, %v5115_v31 }
 0xa02   : > { %v2722_v41 = vpop.f32.mrf.mxu3 }
 0xa03   : > { %v2741_v25 = vmul.f32 -0.09090909, %v2722_v41  ;;  %v2695_v1 = vpop.f32.mrf.mxu2 }
 0xa04   : > { %v2742_v29 = vmul.f32 -0.09090909, %v2695_v1  ;;  %v2800_v1 = vpack.c.bf16 %v2738_v15, %v2736_v38 }
 0xa05   : > { %v6745_v36 = vadd.f32 %v2741_v25, %v6534_v39 }
 0xa06   : > { %v6748_v9 = vadd.f32 %v2742_v29, %v6537_v55 }
 0xa08   : > { %4670 = vmatmul.msk.bf16.gmra.mxu3 %vm659_vm0, %v5115_v31 }
 0xa0a   : > { %v2724_v3 = vpop.f32.mrf.mxu3 }
 0xa0b   : > { %v2743_v47 = vmul.f32 -0.09090909, %v2724_v3  ;;  %v2698_v19 = vpop.f32.mrf.mxu2  ;;  %v2801_v3 = vpack.c.bf16 %v2739_v52, %v2737_v20 }
 0xa0c   : > { %v2744_v44 = vmul.f32 -0.09090909, %v2698_v19 }
 0xa0d   : > { %v6753_v26 = vadd.f32 %v2743_v47, %v6540_v46  ;;  %v2804_v46 = vpack.c.bf16 %v2742_v29, %v2740_v14  ;;  %v2797_v14 = vpack.c.bf16 %v2735_v61, %v6709_v63 }
 0xa0e   : > { %v6756_v22 = vadd.f32 %v2744_v44, %v6543_v54 }
 0xa11   : > { %4667 = vmatmul.msk.bf16.gmra.mxu2 %vm659_vm0, %v5131_v53 }
 0xa12   : > { %v2727_v39 = vpop.f32.mrf.mxu3 }
 0xa13   : > { %v2745_v7 = vmul.f32 -0.09090909, %v2727_v39  ;;  %v2700_v55 = vpop.f32.mrf.mxu2 }
 0xa14   : > { %v2746_v42 = vmul.f32 -0.09090909, %v2700_v55 }
 0xa15   : > { %v6761_v57 = vadd.f32 %v2745_v7, %v6546_v8  ;;  %v2805_v8 = vpack.c.bf16 %v2743_v47, %v2741_v25 }
 0xa16   : > { %v6764_v40 = vadd.f32 %v2746_v42, %v6549_v10  ;;  %v2808_v60 = vpack.c.bf16 %v2746_v42, %v2744_v44  ;;  %v2796_v10 = vpack.c.bf16 %v2734_v50, %v6700_v35 }
 0xa18   : > { %4671 = vmatmul.msk.bf16.gmra.mxu3 %vm659_vm0, %v5131_v53  ;;  %2816 = vmatpush.bf16.msra.mxu0 %v2808_v60 }
 0xa1a   : > { %v2729_v54 = vpop.f32.mrf.mxu3 }
 0xa1b   : > { %v2747_v34 = vmul.f32 -0.09090909, %v2729_v54 }
 0xa1c   : > { %2817 = vmatpush.bf16.msra.mxu0 %v2804_v46 }
 0xa1d   : > { %v6769_v5 = vadd.f32 %v2747_v34, %v6554_v18  ;;  %v2809_v41 = vpack.c.bf16 %v2747_v34, %v2745_v7 }
 0xa1f   : > { %2845 = vmatpush.bf16.msra.mxu1 %v2809_v41 }
 0xa20   : > { %2818 = vmatpush.bf16.msra.mxu0 %v2800_v1 }
 0xa23   : > { %2846 = vmatpush.bf16.msra.mxu1 %v2805_v8 }
 0xa24   : > { %2819 = vmatpush.bf16.msra.mxu0 %v2796_v10 }
 0xa27   : > { %2847 = vmatpush.bf16.msra.mxu1 %v2801_v3  ;;  %4656 = vmatmul.msk.bf16.vlgmr.msra.gmra.mxu0 %vm659_vm0, %v5078_v4 }
 0xa2b   : > { %2848 = vmatpush.bf16.msra.mxu1 %v2797_v14 }
 0xa2e   : > { %4660 = vmatmul.msk.bf16.vlgmr.msra.gmra.mxu1 %vm659_vm0, %v5078_v4 }
 0xa37   : > { %4657 = vmatmul.msk.bf16.gmra.mxu0 %vm659_vm0, %v5103_v16 }
 0xa3e   : > { %4661 = vmatmul.msk.bf16.gmra.mxu1 %vm659_vm0, %v5103_v16 }
 0xa47   : > { %4658 = vmatmul.msk.bf16.gmra.mxu0 %vm659_vm0, %v5115_v31 }
 0xa4e   : > { %4662 = vmatmul.msk.bf16.gmra.mxu1 %vm659_vm0, %v5115_v31 }
 0xa57   : > { %4659 = vmatmul.msk.bf16.gmra.mxu0 %vm659_vm0, %v5131_v53 }
 0xa5e   : > { %4663 = vmatmul.msk.bf16.gmra.mxu1 %vm659_vm0, %v5131_v53 }
 0xa64   : > { %v2879_v18 = vpop.f32.mrf.mxu2 }
 0xa65   : > { %v6789_v35 = vmul.f32 -0.083333336, %v2879_v18 }
 0xa67   : > { %v6793_v63 = vadd.f32 %v6789_v35, %v6704_v28 }
 0xa6b   : > { %v2908_v50 = vpop.f32.mrf.mxu3 }
 0xa6c   : > { %v6795_v61 = vmul.f32 -0.083333336, %v2908_v50  ;;  %v2881_v38 = vpop.f32.mrf.mxu2 }
 0xa6d   : > { %v2930_v20 = vmul.f32 -0.083333336, %v2881_v38 }
 0xa6e   : > { %v6799_v15 = vadd.f32 %v6795_v61, %v6713_v32 }
 0xa6f   : > { %v6802_v52 = vadd.f32 %v2930_v20, %v6716_v23 }
 0xa73   : > { %v2910_v25 = vpop.f32.mrf.mxu3 }
 0xa74   : > { %v6804_v29 = vmul.f32 -0.083333336, %v2910_v25  ;;  %v2884_v47 = vpop.f32.mrf.mxu2 }
 0xa75   : > { %v2932_v19 = vmul.f32 -0.083333336, %v2884_v47 }
 0xa76   : > { %v6808_v28 = vadd.f32 %v6804_v29, %v6721_v62 }
 0xa77   : > { %v6811_v44 = vadd.f32 %v2932_v19, %v6724_v59 }
 0xa7b   : > { %v2913_v39 = vpop.f32.mrf.mxu3 }
 0xa7c   : > { %v2933_v7 = vmul.f32 -0.083333336, %v2913_v39  ;;  %v2886_v55 = vpop.f32.mrf.mxu2 }
 0xa7d   : > { %v2934_v32 = vmul.f32 -0.083333336, %v2886_v55 }
 0xa7e   : > { %v6814_v42 = vadd.f32 %v2933_v7, %v6729_v56 }
 0xa7f   : > { %v6817_v23 = vadd.f32 %v2934_v32, %v6732_v21 }
 0xa83   : > { %v2915_v60 = vpop.f32.mrf.mxu3 }
 0xa84   : > { %v2935_v46 = vmul.f32 -0.083333336, %v2915_v60  ;;  %v2889_v54 = vpop.f32.mrf.mxu2 }
 0xa85   : > { %v2936_v34 = vmul.f32 -0.083333336, %v2889_v54 }
 0xa86   : > { %v6820_v62 = vadd.f32 %v2935_v46, %v6737_v49 }
 0xa87   : > { %v6823_v59 = vadd.f32 %v2936_v34, %v6740_v30 }
 0xa8b   : > { %v2918_v41 = vpop.f32.mrf.mxu3 }
 0xa8c   : > { %v2937_v1 = vmul.f32 -0.083333336, %v2918_v41  ;;  %v2891_v8 = vpop.f32.mrf.mxu2 }
 0xa8d   : > { %v2938_v10 = vmul.f32 -0.083333336, %v2891_v8  ;;  %v2996_v8 = vpack.c.bf16 %v2934_v32, %v2932_v19 }
 0xa8e   : > { %v6826_v56 = vadd.f32 %v2937_v1, %v6745_v36 }
 0xa8f   : > { %v6829_v21 = vadd.f32 %v2938_v10, %v6748_v9  ;;  %v3000_v60 = vpack.c.bf16 %v2938_v10, %v2936_v34  ;;  %v2992_v34 = vpack.c.bf16 %v2930_v20, %v6789_v35  ;;  %v2993_v35 = vpack.c.bf16 %v6804_v29, %v6795_v61 }
 0xa93   : > { %v2920_v3 = vpop.f32.mrf.mxu3 }
 0xa94   : > { %v2939_v14 = vmul.f32 -0.083333336, %v2920_v3  ;;  %v2894_v18 = vpop.f32.mrf.mxu2 }
 0xa95   : > { %v2940_v50 = vmul.f32 -0.083333336, %v2894_v18 }
 0xa96   : > { %v6832_v49 = vadd.f32 %v2939_v14, %v6753_v26 }
 0xa97   : > { %v6835_v30 = vadd.f32 %v2940_v50, %v6756_v22 }
 0xa9b   : > { %v2923_v38 = vpop.f32.mrf.mxu3 }
 0xa9c   : > { %v2941_v25 = vmul.f32 -0.083333336, %v2923_v38  ;;  %v2896_v47 = vpop.f32.mrf.mxu2 }
 0xa9d   : > { %v2942_v39 = vmul.f32 -0.083333336, %v2896_v47 }
 0xa9e   : > { %v6838_v36 = vadd.f32 %v2941_v25, %v6761_v57 }
 0xa9f   : > { %v6841_v9 = vadd.f32 %v2942_v39, %v6764_v40  ;;  %v3004_v55 = vpack.c.bf16 %v2942_v39, %v2940_v50  ;;  %v3001_v40 = vpack.c.bf16 %v2939_v14, %v2937_v1  ;;  %v2997_v50 = vpack.c.bf16 %v2935_v46, %v2933_v7 }
 0xaa1   : > { %3012 = vmatpush.bf16.msrb.mxu0 %v3004_v55 }
 0xaa3   : > { %v2925_v54 = vpop.f32.mrf.mxu3 }
 0xaa4   : > { %v2943_v41 = vmul.f32 -0.083333336, %v2925_v54  ;;  %v2821_v26 = vpop.f32.mrf.mxu0 }
 0xaa5   : > { %v6843_v3 = vmul.f32 0.083333336, %v2821_v26  ;;  %3013 = vmatpush.bf16.msrb.mxu0 %v3000_v60 }
 0xaa6   : > { %v6846_v22 = vadd.f32 %v2943_v41, %v6769_v5  ;;  %v3005_v18 = vpack.c.bf16 %v2943_v41, %v2941_v25 }
 0xaa7   : > { %v6850_v57 = vadd.f32 %v6843_v3, %v6650_v13 }
 0xaa8   : > { %3041 = vmatpush.bf16.msrb.mxu1 %v3005_v18 }
 0xaa9   : > { %3014 = vmatpush.bf16.msrb.mxu0 %v2996_v8 }
 0xaab   : > { %v2850_v10 = vpop.f32.mrf.mxu1 }
 0xaac   : > { %v6853_v38 = vmul.f32 0.083333336, %v2850_v10  ;;  %3042 = vmatpush.bf16.msrb.mxu1 %v3001_v40  ;;  %v2823_v19 = vpop.f32.mrf.mxu0 }
 0xaad   : > { %v6855_v32 = vmul.f32 0.083333336, %v2823_v19  ;;  %3015 = vmatpush.bf16.msrb.mxu0 %v2992_v34 }
 0xaae   : > { %v6859_v5 = vadd.f32 %v6853_v38, %v6656_v2 }
 0xaaf   : > { %v6863_v13 = vadd.f32 %v6855_v32, %v6659_v37 }
 0xab0   : > { %3043 = vmatpush.bf16.msrb.mxu1 %v2997_v50  ;;  %4672 = vmatmul.msk.bf16.vlgmr.msrb.gmra.mxu0 %vm659_vm0, %v5078_v4 }
 0xab3   : > { %v2852_v20 = vpop.f32.mrf.mxu1 }
 0xab4   : > { %v2947_v7 = vmul.f32 0.083333336, %v2852_v20  ;;  %3044 = vmatpush.bf16.msrb.mxu1 %v2993_v35  ;;  %v2826_v46 = vpop.f32.mrf.mxu0 }
 0xab5   : > { %v2948_v1 = vmul.f32 0.083333336, %v2826_v46 }
 0xab6   : > { %v6870_v14 = vadd.f32 %v2947_v7, %v6662_v12 }
 0xab7   : > { %v6873_v2 = vadd.f32 %v2948_v1, %v6665_v43  ;;  %4676 = vmatmul.msk.bf16.vlgmr.msrb.gmra.mxu1 %vm659_vm0, %v5078_v4 }
 0xabb   : > { %v2855_v37 = vpop.f32.mrf.mxu1 }
 0xabc   : > { %v2949_v61 = vmul.f32 0.083333336, %v2855_v37  ;;  %v2828_v29 = vpop.f32.mrf.mxu0 }
 0xabd   : > { %v2950_v25 = vmul.f32 0.083333336, %v2828_v29 }
 0xabe   : > { %v6878_v47 = vadd.f32 %v2949_v61, %v6668_v11 }
 0xabf   : > { %v6881_v39 = vadd.f32 %v2950_v25, %v6671_v33 }
 0xac0   : > { %4673 = vmatmul.msk.bf16.gmra.mxu0 %vm659_vm0, %v5103_v16 }
 0xac3   : > { %v2857_v12 = vpop.f32.mrf.mxu1 }
 0xac4   : > { %v2951_v55 = vmul.f32 0.083333336, %v2857_v12  ;;  %v2831_v43 = vpop.f32.mrf.mxu0 }
 0xac5   : > { %v2952_v60 = vmul.f32 0.083333336, %v2831_v43 }
 0xac6   : > { %v6886_v54 = vadd.f32 %v2951_v55, %v6674_v58 }
 0xac7   : > { %v6889_v41 = vadd.f32 %v2952_v60, %v6677_v17  ;;  %4677 = vmatmul.msk.bf16.gmra.mxu1 %vm659_vm0, %v5103_v16 }
 0xacb   : > { %v2860_v11 = vpop.f32.mrf.mxu1 }
 0xacc   : > { %v2953_v26 = vmul.f32 0.083333336, %v2860_v11  ;;  %v2833_v33 = vpop.f32.mrf.mxu0 }
 0xacd   : > { %v2954_v8 = vmul.f32 0.083333336, %v2833_v33  ;;  %v2998_v33 = vpack.c.bf16 %v2950_v25, %v2948_v1 }
 0xace   : > { %v6894_v18 = vadd.f32 %v2953_v26, %v6680_v48 }
 0xacf   : > { %v6897_v40 = vadd.f32 %v2954_v8, %v6683_v6 }
 0xad0   : > { %4674 = vmatmul.msk.bf16.gmra.mxu0 %vm659_vm0, %v5115_v31 }
 0xad3   : > { %v2862_v58 = vpop.f32.mrf.mxu1 }
 0xad4   : > { %v2955_v34 = vmul.f32 0.083333336, %v2862_v58  ;;  %v2836_v17 = vpop.f32.mrf.mxu0 }
 0xad5   : > { %v2956_v10 = vmul.f32 0.083333336, %v2836_v17 }
 0xad6   : > { %v6902_v50 = vadd.f32 %v2955_v34, %v6686_v0  ;;  %v3002_v0 = vpack.c.bf16 %v2954_v8, %v2952_v60  ;;  %v2999_v60 = vpack.c.bf16 %v2951_v55, %v2949_v61 }
 0xad7   : > { %v6905_v19 = vadd.f32 %v2956_v10, %v6689_v27  ;;  %4678 = vmatmul.msk.bf16.gmra.mxu1 %vm659_vm0, %v5115_v31 }
 0xadb   : > { %v2865_v48 = vpop.f32.mrf.mxu1 }
 0xadc   : > { %v2957_v35 = vmul.f32 0.083333336, %v2865_v48  ;;  %v2838_v6 = vpop.f32.mrf.mxu0 }
 0xadd   : > { %v2958_v20 = vmul.f32 0.083333336, %v2838_v6 }
 0xade   : > { %v6910_v46 = vadd.f32 %v2957_v35, %v6692_v45  ;;  %v3003_v45 = vpack.c.bf16 %v2955_v34, %v2953_v26 }
 0xadf   : > { %v6913_v37 = vadd.f32 %v2958_v20, %v6695_v51  ;;  %v3006_v29 = vpack.c.bf16 %v2958_v20, %v2956_v10  ;;  %v2994_v51 = vpack.c.bf16 %v6855_v32, %v6843_v3 }
 0xae0   : > { %4675 = vmatmul.msk.bf16.gmra.mxu0 %vm659_vm0, %v5131_v53 }
 0xae1   : > { %3070 = vmatpush.bf16.msrb.mxu2 %v3006_v29 }
 0xae3   : > { %v2867_v27 = vpop.f32.mrf.mxu1 }
 0xae4   : > { %v2959_v12 = vmul.f32 0.083333336, %v2867_v27 }
 0xae5   : > { %3071 = vmatpush.bf16.msrb.mxu2 %v3002_v0 }
 0xae6   : > { %v6918_v43 = vadd.f32 %v2959_v12, %v6698_v24  ;;  %v3007_v11 = vpack.c.bf16 %v2959_v12, %v2957_v35  ;;  %v2995_v24 = vpack.c.bf16 %v2947_v7, %v6853_v38 }
 0xae7   : > { %4679 = vmatmul.msk.bf16.gmra.mxu1 %vm659_vm0, %v5131_v53 }
 0xae8   : > { %3099 = vmatpush.bf16.msrb.mxu3 %v3007_v11 }
 0xae9   : > { %3072 = vmatpush.bf16.msrb.mxu2 %v2998_v33 }
 0xaec   : > { %3100 = vmatpush.bf16.msrb.mxu3 %v3003_v45 }
 0xaed   : > { %3073 = vmatpush.bf16.msrb.mxu2 %v2994_v51 }
 0xaf0   : > { %3101 = vmatpush.bf16.msrb.mxu3 %v2999_v60  ;;  %4680 = vmatmul.msk.bf16.vlgmr.msrb.gmra.mxu2 %vm659_vm0, %v5078_v4 }
 0xaf4   : > { %3102 = vmatpush.bf16.msrb.mxu3 %v2995_v24 }
 0xaf7   : > { %4684 = vmatmul.msk.bf16.vlgmr.msrb.gmra.mxu3 %vm659_vm0, %v5078_v4 }
 0xb00   : > { %4681 = vmatmul.msk.bf16.gmra.mxu2 %vm659_vm0, %v5103_v16 }
 0xb07   : > { %4685 = vmatmul.msk.bf16.gmra.mxu3 %vm659_vm0, %v5103_v16 }
 0xb10   : > { %4682 = vmatmul.msk.bf16.gmra.mxu2 %vm659_vm0, %v5115_v31 }
 0xb17   : > { %4686 = vmatmul.msk.bf16.gmra.mxu3 %vm659_vm0, %v5115_v31 }
 0xb20   : > { %4683 = vmatmul.msk.bf16.gmra.mxu2 %vm659_vm0, %v5131_v53 }
 0xb27   : > { %4687 = vmatmul.msk.bf16.gmra.mxu3 %vm659_vm0, %v5131_v53 }
 0xb2d   : > { %v3017_v3 = vpop.f32.mrf.mxu0 }
 0xb2e   : > { %v3140_v38 = vmul.f32 0.07692308, %v3017_v3 }
 0xb30   : > { %v6942_v32 = vadd.f32 %v3140_v38, %v6850_v57 }
 0xb34   : > { %v3046_v7 = vpop.f32.mrf.mxu1 }
 0xb35   : > { %v6944_v1 = vmul.f32 0.07692308, %v3046_v7  ;;  %v3019_v61 = vpop.f32.mrf.mxu0 }
 0xb36   : > { %v3142_v25 = vmul.f32 0.07692308, %v3019_v61 }
 0xb37   : > { %v6948_v55 = vadd.f32 %v6944_v1, %v6859_v5 }
 0xb38   : > { %v6951_v26 = vadd.f32 %v3142_v25, %v6863_v13 }
 0xb3c   : > { %v3048_v8 = vpop.f32.mrf.mxu1 }
 0xb3d   : > { %v3143_v58 = vmul.f32 0.07692308, %v3048_v8  ;;  %v3022_v34 = vpop.f32.mrf.mxu0 }
 0xb3e   : > { %v3144_v17 = vmul.f32 0.07692308, %v3022_v34 }
 0xb3f   : > { %v6954_v10 = vadd.f32 %v3143_v58, %v6870_v14 }
 0xb40   : > { %v6957_v57 = vadd.f32 %v3144_v17, %v6873_v2 }
 0xb44   : > { %v3051_v48 = vpop.f32.mrf.mxu1 }
 0xb45   : > { %v3145_v35 = vmul.f32 0.07692308, %v3051_v48  ;;  %v3024_v6 = vpop.f32.mrf.mxu0 }
 0xb46   : > { %v3146_v20 = vmul.f32 0.07692308, %v3024_v6 }
 0xb47   : > { %v6960_v5 = vadd.f32 %v3145_v35, %v6878_v47 }
 0xb48   : > { %v6963_v13 = vadd.f32 %v3146_v20, %v6881_v39 }
 0xb4c   : > { %v3053_v29 = vpop.f32.mrf.mxu1 }
 0xb4d   : > { %v3147_v0 = vmul.f32 0.07692308, %v3053_v29  ;;  %v3027_v27 = vpop.f32.mrf.mxu0 }
 0xb4e   : > { %v3148_v12 = vmul.f32 0.07692308, %v3027_v27 }
 0xb4f   : > { %v6966_v14 = vadd.f32 %v3147_v0, %v6886_v54 }
 0xb50   : > { %v6969_v2 = vadd.f32 %v3148_v12, %v6889_v41 }
 0xb54   : > { %v3056_v11 = vpop.f32.mrf.mxu1 }
 0xb55   : > { %v3149_v33 = vmul.f32 0.07692308, %v3056_v11  ;;  %v3029_v45 = vpop.f32.mrf.mxu0 }
 0xb56   : > { %v3150_v51 = vmul.f32 0.07692308, %v3029_v45 }
 0xb57   : > { %v6972_v47 = vadd.f32 %v3149_v33, %v6894_v18 }
 0xb58   : > { %v6975_v39 = vadd.f32 %v3150_v51, %v6897_v40  ;;  %v3198_v29 = vpack.c.bf16 %v3150_v51, %v3148_v12 }
 0xb5c   : > { %v3058_v60 = vpop.f32.mrf.mxu1 }
 0xb5d   : > { %v3151_v24 = vmul.f32 0.07692308, %v3058_v60  ;;  %v3032_v3 = vpop.f32.mrf.mxu0 }
 0xb5e   : > { %v3152_v7 = vmul.f32 0.07692308, %v3032_v3  ;;  %v3190_v3 = vpack.c.bf16 %v3142_v25, %v3140_v38 }
 0xb5f   : > { %v6978_v54 = vadd.f32 %v3151_v24, %v6902_v50  ;;  %v3194_v50 = vpack.c.bf16 %v3146_v20, %v3144_v17  ;;  %v3199_v60 = vpack.c.bf16 %v3151_v24, %v3149_v33  ;;  %v3191_v17 = vpack.c.bf16 %v3143_v58, %v6944_v1 }
 0xb60   : > { %v6981_v41 = vadd.f32 %v3152_v7, %v6905_v19 }
 0xb64   : > { %v3061_v61 = vpop.f32.mrf.mxu1 }
 0xb65   : > { %v3153_v8 = vmul.f32 0.07692308, %v3061_v61  ;;  %v3034_v34 = vpop.f32.mrf.mxu0 }
 0xb66   : > { %v3154_v48 = vmul.f32 0.07692308, %v3034_v34 }
 0xb67   : > { %v6984_v18 = vadd.f32 %v3153_v8, %v6910_v46 }
 0xb68   : > { %v6987_v40 = vadd.f32 %v3154_v48, %v6913_v37  ;;  %v3202_v6 = vpack.c.bf16 %v3154_v48, %v3152_v7  ;;  %v3195_v37 = vpack.c.bf16 %v3147_v0, %v3145_v35 }
 0xb6a   : > { %3266 = vmatpush.bf16.msra.mxu2 %v3202_v6 }
 0xb6c   : > { %v3063_v27 = vpop.f32.mrf.mxu1 }
 0xb6d   : > { %v3155_v11 = vmul.f32 0.07692308, %v3063_v27 }
 0xb6e   : > { %3267 = vmatpush.bf16.msra.mxu2 %v3198_v29 }
 0xb6f   : > { %v6990_v19 = vadd.f32 %v3155_v11, %v6918_v43  ;;  %v3203_v45 = vpack.c.bf16 %v3155_v11, %v3153_v8 }
 0xb71   : > { %3295 = vmatpush.bf16.msra.mxu3 %v3203_v45 }
 0xb72   : > { %3268 = vmatpush.bf16.msra.mxu2 %v3194_v50 }
 0xb73   : > { %v3075_v46 = vpop.f32.mrf.mxu2 }
 0xb74   : > { %v6992_v61 = vmul.f32 -0.07692308, %v3075_v46 }
 0xb75   : > { %3296 = vmatpush.bf16.msra.mxu3 %v3199_v60 }
 0xb76   : > { %v6996_v12 = vadd.f32 %v6992_v61, %v6793_v63  ;;  %3269 = vmatpush.bf16.msra.mxu2 %v3190_v3 }
 0xb79   : > { %3297 = vmatpush.bf16.msra.mxu3 %v3195_v37  ;;  %4696 = vmatmul.msk.bf16.vlgmr.msra.gmra.mxu2 %vm659_vm0, %v5078_v4 }
 0xb7a   : > { %v3104_v43 = vpop.f32.mrf.mxu3 }
 0xb7b   : > { %v7001_v20 = vmul.f32 -0.07692308, %v3104_v43  ;;  %v3077_v38 = vpop.f32.mrf.mxu2 }
 0xb7c   : > { %v3126_v25 = vmul.f32 -0.07692308, %v3077_v38 }
 0xb7d   : > { %v7005_v35 = vadd.f32 %v7001_v20, %v6799_v15  ;;  %3298 = vmatpush.bf16.msra.mxu3 %v3191_v17 }
 0xb7e   : > { %v7008_v63 = vadd.f32 %v3126_v25, %v6802_v52 }
 0xb80   : > { %4700 = vmatmul.msk.bf16.vlgmr.msra.gmra.mxu3 %vm659_vm0, %v5078_v4 }
 0xb82   : > { %v3106_v1 = vpop.f32.mrf.mxu3 }
 0xb83   : > { %v3127_v58 = vmul.f32 -0.07692308, %v3106_v1  ;;  %v3080_v0 = vpop.f32.mrf.mxu2 }
 0xb84   : > { %v3128_v33 = vmul.f32 -0.07692308, %v3080_v0 }
 0xb85   : > { %v7013_v51 = vadd.f32 %v3127_v58, %v6808_v28 }
 0xb86   : > { %v7016_v24 = vadd.f32 %v3128_v33, %v6811_v44 }
 0xb89   : > { %4697 = vmatmul.msk.bf16.gmra.mxu2 %vm659_vm0, %v5103_v16 }
 0xb8a   : > { %v3109_v15 = vpop.f32.mrf.mxu3 }
 0xb8b   : > { %v3129_v7 = vmul.f32 -0.07692308, %v3109_v15  ;;  %v3082_v52 = vpop.f32.mrf.mxu2 }
 0xb8c   : > { %v3130_v8 = vmul.f32 -0.07692308, %v3082_v52 }
 0xb8d   : > { %v7021_v34 = vadd.f32 %v3129_v7, %v6814_v42 }
 0xb8e   : > { %v7024_v48 = vadd.f32 %v3130_v8, %v6817_v23 }
 0xb90   : > { %4701 = vmatmul.msk.bf16.gmra.mxu3 %vm659_vm0, %v5103_v16 }
 0xb92   : > { %v3111_v28 = vpop.f32.mrf.mxu3 }
 0xb93   : > { %v3131_v6 = vmul.f32 -0.07692308, %v3111_v28  ;;  %v3085_v44 = vpop.f32.mrf.mxu2 }
 0xb94   : > { %v3132_v29 = vmul.f32 -0.07692308, %v3085_v44 }
 0xb95   : > { %v7029_v27 = vadd.f32 %v3131_v6, %v6820_v62 }
 0xb96   : > { %v7032_v11 = vadd.f32 %v3132_v29, %v6823_v59 }
 0xb99   : > { %4698 = vmatmul.msk.bf16.gmra.mxu2 %vm659_vm0, %v5115_v31 }
 0xb9a   : > { %v3114_v42 = vpop.f32.mrf.mxu3 }
 0xb9b   : > { %v3133_v50 = vmul.f32 -0.07692308, %v3114_v42  ;;  %v3087_v23 = vpop.f32.mrf.mxu2 }
 0xb9c   : > { %v3134_v45 = vmul.f32 -0.07692308, %v3087_v23  ;;  %v3192_v23 = vpack.c.bf16 %v3130_v8, %v3128_v33 }
 0xb9d   : > { %v7037_v60 = vadd.f32 %v3133_v50, %v6826_v56 }
 0xb9e   : > { %v7040_v3 = vadd.f32 %v3134_v45, %v6829_v21 }
 0xba0   : > { %4702 = vmatmul.msk.bf16.gmra.mxu3 %vm659_vm0, %v5115_v31 }
 0xba2   : > { %v3116_v62 = vpop.f32.mrf.mxu3 }
 0xba3   : > { %v3135_v46 = vmul.f32 -0.07692308, %v3116_v62  ;;  %v3090_v59 = vpop.f32.mrf.mxu2  ;;  %v3193_v62 = vpack.c.bf16 %v3131_v6, %v3129_v7 }
 0xba4   : > { %v3136_v37 = vmul.f32 -0.07692308, %v3090_v59 }
 0xba5   : > { %v7045_v17 = vadd.f32 %v3135_v46, %v6832_v49  ;;  %v3196_v49 = vpack.c.bf16 %v3134_v45, %v3132_v29  ;;  %v3189_v29 = vpack.c.bf16 %v3127_v58, %v7001_v20 }
 0xba6   : > { %v7048_v43 = vadd.f32 %v3136_v37, %v6835_v30 }
 0xba9   : > { %4699 = vmatmul.msk.bf16.gmra.mxu2 %vm659_vm0, %v5131_v53 }
 0xbaa   : > { %v3119_v56 = vpop.f32.mrf.mxu3 }
 0xbab   : > { %v3137_v38 = vmul.f32 -0.07692308, %v3119_v56  ;;  %v3092_v21 = vpop.f32.mrf.mxu2 }
 0xbac   : > { %v3138_v1 = vmul.f32 -0.07692308, %v3092_v21 }
 0xbad   : > { %v7053_v0 = vadd.f32 %v3137_v38, %v6838_v36  ;;  %v3197_v36 = vpack.c.bf16 %v3135_v46, %v3133_v50 }
 0xbae   : > { %v7056_v15 = vadd.f32 %v3138_v1, %v6841_v9  ;;  %v3200_v52 = vpack.c.bf16 %v3138_v1, %v3136_v37  ;;  %v3188_v9 = vpack.c.bf16 %v3126_v25, %v6992_v61 }
 0xbb0   : > { %4703 = vmatmul.msk.bf16.gmra.mxu3 %vm659_vm0, %v5131_v53  ;;  %3208 = vmatpush.bf16.msra.mxu0 %v3200_v52 }
 0xbb2   : > { %v3121_v30 = vpop.f32.mrf.mxu3 }
 0xbb3   : > { %v3139_v28 = vmul.f32 -0.07692308, %v3121_v30 }
 0xbb4   : > { %3209 = vmatpush.bf16.msra.mxu0 %v3196_v49 }
 0xbb5   : > { %v7061_v44 = vadd.f32 %v3139_v28, %v6846_v22  ;;  %v3201_v42 = vpack.c.bf16 %v3139_v28, %v3137_v38 }
 0xbb7   : > { %3237 = vmatpush.bf16.msra.mxu1 %v3201_v42 }
 0xbb8   : > { %3210 = vmatpush.bf16.msra.mxu0 %v3192_v23 }
 0xbbb   : > { %3238 = vmatpush.bf16.msra.mxu1 %v3197_v36 }
 0xbbc   : > { %3211 = vmatpush.bf16.msra.mxu0 %v3188_v9 }
 0xbbf   : > { %3239 = vmatpush.bf16.msra.mxu1 %v3193_v62  ;;  %4688 = vmatmul.msk.bf16.vlgmr.msra.gmra.mxu0 %vm659_vm0, %v5078_v4 }
 0xbc3   : > { %3240 = vmatpush.bf16.msra.mxu1 %v3189_v29 }
 0xbc6   : > { %4692 = vmatmul.msk.bf16.vlgmr.msra.gmra.mxu1 %vm659_vm0, %v5078_v4 }
 0xbcf   : > { %4689 = vmatmul.msk.bf16.gmra.mxu0 %vm659_vm0, %v5103_v16 }
 0xbd6   : > { %4693 = vmatmul.msk.bf16.gmra.mxu1 %vm659_vm0, %v5103_v16 }
 0xbdf   : > { %4690 = vmatmul.msk.bf16.gmra.mxu0 %vm659_vm0, %v5115_v31 }
 0xbe6   : > { %4694 = vmatmul.msk.bf16.gmra.mxu1 %vm659_vm0, %v5115_v31 }
 0xbef   : > { %4691 = vmatmul.msk.bf16.gmra.mxu0 %vm659_vm0, %v5131_v53 }
 0xbf6   : > { %4695 = vmatmul.msk.bf16.gmra.mxu1 %vm659_vm0, %v5131_v53 }
 0xbfc   : > { %v3271_v22 = vpop.f32.mrf.mxu2 }
 0xbfd   : > { %v7081_v61 = vmul.f32 -0.071428575, %v3271_v22 }
 0xbff   : > { %v7085_v20 = vadd.f32 %v7081_v61, %v6996_v12 }
 0xc03   : > { %v3300_v25 = vpop.f32.mrf.mxu3 }
 0xc04   : > { %v7087_v58 = vmul.f32 -0.071428575, %v3300_v25  ;;  %v3273_v33 = vpop.f32.mrf.mxu2 }
 0xc05   : > { %v3322_v7 = vmul.f32 -0.071428575, %v3273_v33 }
 0xc06   : > { %v7091_v8 = vadd.f32 %v7087_v58, %v7005_v35 }
 0xc07   : > { %v7094_v6 = vadd.f32 %v3322_v7, %v7008_v63 }
 0xc0b   : > { %v3302_v50 = vpop.f32.mrf.mxu3 }
 0xc0c   : > { %v7096_v45 = vmul.f32 -0.071428575, %v3302_v50  ;;  %v3276_v46 = vpop.f32.mrf.mxu2 }
 0xc0d   : > { %v3324_v59 = vmul.f32 -0.071428575, %v3276_v46 }
 0xc0e   : > { %v7100_v12 = vadd.f32 %v7096_v45, %v7013_v51 }
 0xc0f   : > { %v7103_v37 = vadd.f32 %v3324_v59, %v7016_v24 }
 0xc13   : > { %v3305_v56 = vpop.f32.mrf.mxu3 }
 0xc14   : > { %v3325_v38 = vmul.f32 -0.071428575, %v3305_v56  ;;  %v3278_v21 = vpop.f32.mrf.mxu2 }
 0xc15   : > { %v3326_v35 = vmul.f32 -0.071428575, %v3278_v21 }
 0xc16   : > { %v7106_v1 = vadd.f32 %v3325_v38, %v7021_v34 }
 0xc17   : > { %v7109_v63 = vadd.f32 %v3326_v35, %v7024_v48 }
 0xc1b   : > { %v3307_v52 = vpop.f32.mrf.mxu3 }
 0xc1c   : > { %v3327_v49 = vmul.f32 -0.071428575, %v3307_v52  ;;  %v3281_v30 = vpop.f32.mrf.mxu2 }
 0xc1d   : > { %v3328_v28 = vmul.f32 -0.071428575, %v3281_v30 }
 0xc1e   : > { %v7112_v51 = vadd.f32 %v3327_v49, %v7029_v27 }
 0xc1f   : > { %v7115_v24 = vadd.f32 %v3328_v28, %v7032_v11 }
 0xc23   : > { %v3310_v42 = vpop.f32.mrf.mxu3 }
 0xc24   : > { %v3329_v23 = vmul.f32 -0.071428575, %v3310_v42  ;;  %v3283_v36 = vpop.f32.mrf.mxu2 }
 0xc25   : > { %v3330_v9 = vmul.f32 -0.071428575, %v3283_v36  ;;  %v3388_v36 = vpack.c.bf16 %v3326_v35, %v3324_v59 }
 0xc26   : > { %v7118_v34 = vadd.f32 %v3329_v23, %v7037_v60 }
 0xc27   : > { %v7121_v48 = vadd.f32 %v3330_v9, %v7040_v3  ;;  %v3392_v52 = vpack.c.bf16 %v3330_v9, %v3328_v28  ;;  %v3384_v28 = vpack.c.bf16 %v3322_v7, %v7081_v61  ;;  %v3385_v61 = vpack.c.bf16 %v7096_v45, %v7087_v58 }
 0xc2b   : > { %v3312_v62 = vpop.f32.mrf.mxu3 }
 0xc2c   : > { %v3331_v29 = vmul.f32 -0.071428575, %v3312_v62  ;;  %v3286_v22 = vpop.f32.mrf.mxu2 }
 0xc2d   : > { %v3332_v25 = vmul.f32 -0.071428575, %v3286_v22 }
 0xc2e   : > { %v7124_v27 = vadd.f32 %v3331_v29, %v7045_v17 }
 0xc2f   : > { %v7127_v11 = vadd.f32 %v3332_v25, %v7048_v43 }
 0xc33   : > { %v3315_v33 = vpop.f32.mrf.mxu3 }
 0xc34   : > { %v3333_v50 = vmul.f32 -0.071428575, %v3315_v33  ;;  %v3288_v46 = vpop.f32.mrf.mxu2 }
 0xc35   : > { %v3334_v56 = vmul.f32 -0.071428575, %v3288_v46 }
 0xc36   : > { %v7130_v60 = vadd.f32 %v3333_v50, %v7053_v0 }
 0xc37   : > { %v7133_v3 = vadd.f32 %v3334_v56, %v7056_v15  ;;  %v3396_v21 = vpack.c.bf16 %v3334_v56, %v3332_v25  ;;  %v3393_v15 = vpack.c.bf16 %v3331_v29, %v3329_v23  ;;  %v3389_v25 = vpack.c.bf16 %v3327_v49, %v3325_v38 }
 0xc39   : > { %3404 = vmatpush.bf16.msrb.mxu0 %v3396_v21 }
 0xc3b   : > { %v3317_v30 = vpop.f32.mrf.mxu3 }
 0xc3c   : > { %v3335_v42 = vmul.f32 -0.071428575, %v3317_v30  ;;  %v3213_v17 = vpop.f32.mrf.mxu0 }
 0xc3d   : > { %v7135_v62 = vmul.f32 0.071428575, %v3213_v17  ;;  %3405 = vmatpush.bf16.msrb.mxu0 %v3392_v52 }
 0xc3e   : > { %v7138_v43 = vadd.f32 %v3335_v42, %v7061_v44  ;;  %v3397_v22 = vpack.c.bf16 %v3335_v42, %v3333_v50 }
 0xc3f   : > { %v7142_v0 = vadd.f32 %v7135_v62, %v6942_v32 }
 0xc40   : > { %3433 = vmatpush.bf16.msrb.mxu1 %v3397_v22 }
 0xc41   : > { %3406 = vmatpush.bf16.msrb.mxu0 %v3388_v36 }
 0xc43   : > { %v3242_v9 = vpop.f32.mrf.mxu1 }
 0xc44   : > { %v7145_v33 = vmul.f32 0.071428575, %v3242_v9  ;;  %3434 = vmatpush.bf16.msrb.mxu1 %v3393_v15  ;;  %v3215_v59 = vpop.f32.mrf.mxu0 }
 0xc45   : > { %v7147_v35 = vmul.f32 0.071428575, %v3215_v59  ;;  %3407 = vmatpush.bf16.msrb.mxu0 %v3384_v28 }
 0xc46   : > { %v7151_v44 = vadd.f32 %v7145_v33, %v6948_v55 }
 0xc47   : > { %v7155_v32 = vadd.f32 %v7147_v35, %v6951_v26 }
 0xc48   : > { %3435 = vmatpush.bf16.msrb.mxu1 %v3389_v25  ;;  %4704 = vmatmul.msk.bf16.vlgmr.msrb.gmra.mxu0 %vm659_vm0, %v5078_v4 }
 0xc4b   : > { %v3244_v7 = vpop.f32.mrf.mxu1 }
 0xc4c   : > { %v3339_v38 = vmul.f32 0.071428575, %v3244_v7  ;;  %3436 = vmatpush.bf16.msrb.mxu1 %v3385_v61  ;;  %v3218_v49 = vpop.f32.mrf.mxu0 }
 0xc4d   : > { %v3340_v23 = vmul.f32 0.071428575, %v3218_v49 }
 0xc4e   : > { %v7162_v29 = vadd.f32 %v3339_v38, %v6954_v10 }
 0xc4f   : > { %v7165_v55 = vadd.f32 %v3340_v23, %v6957_v57  ;;  %4708 = vmatmul.msk.bf16.vlgmr.msrb.gmra.mxu1 %vm659_vm0, %v5078_v4 }
 0xc53   : > { %v3247_v26 = vpop.f32.mrf.mxu1 }
 0xc54   : > { %v3341_v58 = vmul.f32 0.071428575, %v3247_v26  ;;  %v3220_v45 = vpop.f32.mrf.mxu0 }
 0xc55   : > { %v3342_v50 = vmul.f32 0.071428575, %v3220_v45 }
 0xc56   : > { %v7170_v46 = vadd.f32 %v3341_v58, %v6960_v5 }
 0xc57   : > { %v7173_v56 = vadd.f32 %v3342_v50, %v6963_v13 }
 0xc58   : > { %4705 = vmatmul.msk.bf16.gmra.mxu0 %vm659_vm0, %v5103_v16 }
 0xc5b   : > { %v3249_v10 = vpop.f32.mrf.mxu1 }
 0xc5c   : > { %v3343_v21 = vmul.f32 0.071428575, %v3249_v10  ;;  %v3223_v57 = vpop.f32.mrf.mxu0 }
 0xc5d   : > { %v3344_v52 = vmul.f32 0.071428575, %v3223_v57 }
 0xc5e   : > { %v7178_v30 = vadd.f32 %v3343_v21, %v6966_v14 }
 0xc5f   : > { %v7181_v42 = vadd.f32 %v3344_v52, %v6969_v2  ;;  %4709 = vmatmul.msk.bf16.gmra.mxu1 %vm659_vm0, %v5103_v16 }
 0xc63   : > { %v3252_v5 = vpop.f32.mrf.mxu1 }
 0xc64   : > { %v3345_v17 = vmul.f32 0.071428575, %v3252_v5  ;;  %v3225_v13 = vpop.f32.mrf.mxu0 }
 0xc65   : > { %v3346_v36 = vmul.f32 0.071428575, %v3225_v13  ;;  %v3390_v13 = vpack.c.bf16 %v3342_v50, %v3340_v23 }
 0xc66   : > { %v7186_v22 = vadd.f32 %v3345_v17, %v6972_v47 }
 0xc67   : > { %v7189_v15 = vadd.f32 %v3346_v36, %v6975_v39 }
 0xc68   : > { %4706 = vmatmul.msk.bf16.gmra.mxu0 %vm659_vm0, %v5115_v31 }
 0xc6b   : > { %v3254_v14 = vpop.f32.mrf.mxu1 }
 0xc6c   : > { %v3347_v28 = vmul.f32 0.071428575, %v3254_v14  ;;  %v3228_v2 = vpop.f32.mrf.mxu0 }
 0xc6d   : > { %v3348_v9 = vmul.f32 0.071428575, %v3228_v2 }
 0xc6e   : > { %v7194_v25 = vadd.f32 %v3347_v28, %v6978_v54  ;;  %v3394_v54 = vpack.c.bf16 %v3346_v36, %v3344_v52  ;;  %v3391_v52 = vpack.c.bf16 %v3343_v21, %v3341_v58 }
 0xc6f   : > { %v7197_v59 = vadd.f32 %v3348_v9, %v6981_v41  ;;  %4710 = vmatmul.msk.bf16.gmra.mxu1 %vm659_vm0, %v5115_v31 }
 0xc73   : > { %v3257_v47 = vpop.f32.mrf.mxu1 }
 0xc74   : > { %v3349_v61 = vmul.f32 0.071428575, %v3257_v47  ;;  %v3230_v39 = vpop.f32.mrf.mxu0 }
 0xc75   : > { %v3350_v7 = vmul.f32 0.071428575, %v3230_v39 }
 0xc76   : > { %v7202_v49 = vadd.f32 %v3349_v61, %v6984_v18  ;;  %v3395_v18 = vpack.c.bf16 %v3347_v28, %v3345_v17 }
 0xc77   : > { %v7205_v26 = vadd.f32 %v3350_v7, %v6987_v40  ;;  %v3398_v45 = vpack.c.bf16 %v3350_v7, %v3348_v9  ;;  %v3386_v40 = vpack.c.bf16 %v7147_v35, %v7135_v62 }
 0xc78   : > { %4707 = vmatmul.msk.bf16.gmra.mxu0 %vm659_vm0, %v5131_v53 }
 0xc79   : > { %3462 = vmatpush.bf16.msrb.mxu2 %v3398_v45 }
 0xc7b   : > { %v3259_v41 = vpop.f32.mrf.mxu1 }
 0xc7c   : > { %v3351_v10 = vmul.f32 0.071428575, %v3259_v41 }
 0xc7d   : > { %3463 = vmatpush.bf16.msrb.mxu2 %v3394_v54 }
 0xc7e   : > { %v7210_v57 = vadd.f32 %v3351_v10, %v6990_v19  ;;  %v3399_v5 = vpack.c.bf16 %v3351_v10, %v3349_v61  ;;  %v3387_v19 = vpack.c.bf16 %v3339_v38, %v7145_v33 }
 0xc7f   : > { %4711 = vmatmul.msk.bf16.gmra.mxu1 %vm659_vm0, %v5131_v53 }
 0xc80   : > { %3491 = vmatpush.bf16.msrb.mxu3 %v3399_v5 }
 0xc81   : > { %3464 = vmatpush.bf16.msrb.mxu2 %v3390_v13 }
 0xc84   : > { %3492 = vmatpush.bf16.msrb.mxu3 %v3395_v18 }
 0xc85   : > { %3465 = vmatpush.bf16.msrb.mxu2 %v3386_v40 }
 0xc88   : > { %3493 = vmatpush.bf16.msrb.mxu3 %v3391_v52  ;;  %4712 = vmatmul.msk.bf16.vlgmr.msrb.gmra.mxu2 %vm659_vm0, %v5078_v4 }
 0xc8c   : > { %3494 = vmatpush.bf16.msrb.mxu3 %v3387_v19 }
 0xc8f   : > { %4716 = vmatmul.msk.bf16.vlgmr.msrb.gmra.mxu3 %vm659_vm0, %v5078_v4 }
 0xc98   : > { %4713 = vmatmul.msk.bf16.gmra.mxu2 %vm659_vm0, %v5103_v16 }
 0xc9f   : > { %4717 = vmatmul.msk.bf16.gmra.mxu3 %vm659_vm0, %v5103_v16 }
 0xca8   : > { %4714 = vmatmul.msk.bf16.gmra.mxu2 %vm659_vm0, %v5115_v31 }
 0xcaf   : > { %4718 = vmatmul.msk.bf16.gmra.mxu3 %vm659_vm0, %v5115_v31 }
 0xcb8   : > { %4715 = vmatmul.msk.bf16.gmra.mxu2 %vm659_vm0, %v5131_v53 }
 0xcbf   : > { %4719 = vmatmul.msk.bf16.gmra.mxu3 %vm659_vm0, %v5131_v53 }
 0xcc5   : > { %v3409_v62 = vpop.f32.mrf.mxu0 }
 0xcc6   : > { %v3532_v33 = vmul.f32 0.06666667, %v3409_v62 }
 0xcc8   : > { %v7234_v35 = vadd.f32 %v3532_v33, %v7142_v0 }
 0xccc   : > { %v3438_v38 = vpop.f32.mrf.mxu1 }
 0xccd   : > { %v7236_v23 = vmul.f32 0.06666667, %v3438_v38  ;;  %v3411_v58 = vpop.f32.mrf.mxu0 }
 0xcce   : > { %v3534_v50 = vmul.f32 0.06666667, %v3411_v58 }
 0xccf   : > { %v7240_v21 = vadd.f32 %v7236_v23, %v7151_v44 }
 0xcd0   : > { %v7243_v17 = vadd.f32 %v3534_v50, %v7155_v32 }
 0xcd4   : > { %v3440_v36 = vpop.f32.mrf.mxu1 }
 0xcd5   : > { %v3535_v14 = vmul.f32 0.06666667, %v3440_v36  ;;  %v3414_v28 = vpop.f32.mrf.mxu0 }
 0xcd6   : > { %v3536_v2 = vmul.f32 0.06666667, %v3414_v28 }
 0xcd7   : > { %v7246_v9 = vadd.f32 %v3535_v14, %v7162_v29 }
 0xcd8   : > { %v7249_v0 = vadd.f32 %v3536_v2, %v7165_v55 }
 0xcdc   : > { %v3443_v47 = vpop.f32.mrf.mxu1 }
 0xcdd   : > { %v3537_v61 = vmul.f32 0.06666667, %v3443_v47  ;;  %v3416_v39 = vpop.f32.mrf.mxu0 }
 0xcde   : > { %v3538_v7 = vmul.f32 0.06666667, %v3416_v39 }
 0xcdf   : > { %v7252_v44 = vadd.f32 %v3537_v61, %v7170_v46 }
 0xce0   : > { %v7255_v32 = vadd.f32 %v3538_v7, %v7173_v56 }
 0xce4   : > { %v3445_v45 = vpop.f32.mrf.mxu1 }
 0xce5   : > { %v3539_v54 = vmul.f32 0.06666667, %v3445_v45  ;;  %v3419_v41 = vpop.f32.mrf.mxu0 }
 0xce6   : > { %v3540_v10 = vmul.f32 0.06666667, %v3419_v41 }
 0xce7   : > { %v7258_v29 = vadd.f32 %v3539_v54, %v7178_v30 }
 0xce8   : > { %v7261_v55 = vadd.f32 %v3540_v10, %v7181_v42 }
 0xcec   : > { %v3448_v5 = vpop.f32.mrf.mxu1 }
 0xced   : > { %v3541_v13 = vmul.f32 0.06666667, %v3448_v5  ;;  %v3421_v18 = vpop.f32.mrf.mxu0 }
 0xcee   : > { %v3542_v40 = vmul.f32 0.06666667, %v3421_v18 }
 0xcef   : > { %v7264_v46 = vadd.f32 %v3541_v13, %v7186_v22 }
 0xcf0   : > { %v7267_v56 = vadd.f32 %v3542_v40, %v7189_v15  ;;  %v3590_v45 = vpack.c.bf16 %v3542_v40, %v3540_v10 }
 0xcf4   : > { %v3450_v52 = vpop.f32.mrf.mxu1 }
 0xcf5   : > { %v3543_v19 = vmul.f32 0.06666667, %v3450_v52  ;;  %v3424_v62 = vpop.f32.mrf.mxu0 }
 0xcf6   : > { %v3544_v38 = vmul.f32 0.06666667, %v3424_v62  ;;  %v3582_v62 = vpack.c.bf16 %v3534_v50, %v3532_v33 }
 0xcf7   : > { %v7270_v30 = vadd.f32 %v3543_v19, %v7194_v25  ;;  %v3586_v25 = vpack.c.bf16 %v3538_v7, %v3536_v2  ;;  %v3591_v52 = vpack.c.bf16 %v3543_v19, %v3541_v13  ;;  %v3583_v2 = vpack.c.bf16 %v3535_v14, %v7236_v23 }
 0xcf8   : > { %v7273_v42 = vadd.f32 %v3544_v38, %v7197_v59 }
 0xcfc   : > { %v3453_v58 = vpop.f32.mrf.mxu1 }
 0xcfd   : > { %v3545_v36 = vmul.f32 0.06666667, %v3453_v58  ;;  %v3426_v28 = vpop.f32.mrf.mxu0 }
 0xcfe   : > { %v3546_v47 = vmul.f32 0.06666667, %v3426_v28 }
 0xcff   : > { %v7276_v22 = vadd.f32 %v3545_v36, %v7202_v49 }
 0xd00   : > { %v7279_v15 = vadd.f32 %v3546_v47, %v7205_v26  ;;  %v3594_v39 = vpack.c.bf16 %v3546_v47, %v3544_v38  ;;  %v3587_v26 = vpack.c.bf16 %v3539_v54, %v3537_v61 }
 0xd02   : > { %3658 = vmatpush.bf16.msra.mxu2 %v3594_v39 }
 0xd04   : > { %v3455_v41 = vpop.f32.mrf.mxu1 }
 0xd05   : > { %v3547_v5 = vmul.f32 0.06666667, %v3455_v41 }
 0xd06   : > { %3659 = vmatpush.bf16.msra.mxu2 %v3590_v45 }
 0xd07   : > { %v7282_v59 = vadd.f32 %v3547_v5, %v7210_v57  ;;  %v3595_v18 = vpack.c.bf16 %v3547_v5, %v3545_v36 }
 0xd09   : > { %3687 = vmatpush.bf16.msra.mxu3 %v3595_v18 }
 0xd0a   : > { %3660 = vmatpush.bf16.msra.mxu2 %v3586_v25 }
 0xd0b   : > { %v3467_v49 = vpop.f32.mrf.mxu2 }
 0xd0c   : > { %v7284_v58 = vmul.f32 -0.06666667, %v3467_v49 }
 0xd0d   : > { %3688 = vmatpush.bf16.msra.mxu3 %v3591_v52 }
 0xd0e   : > { %v7288_v10 = vadd.f32 %v7284_v58, %v7085_v20  ;;  %3661 = vmatpush.bf16.msra.mxu2 %v3582_v62 }
 0xd11   : > { %3689 = vmatpush.bf16.msra.mxu3 %v3587_v26  ;;  %4728 = vmatmul.msk.bf16.vlgmr.msra.gmra.mxu2 %vm659_vm0, %v5078_v4 }
 0xd12   : > { %v3496_v57 = vpop.f32.mrf.mxu3 }
 0xd13   : > { %v7293_v7 = vmul.f32 -0.06666667, %v3496_v57  ;;  %v3469_v33 = vpop.f32.mrf.mxu2 }
 0xd14   : > { %v3518_v50 = vmul.f32 -0.06666667, %v3469_v33 }
 0xd15   : > { %v7297_v61 = vadd.f32 %v7293_v7, %v7091_v8  ;;  %3690 = vmatpush.bf16.msra.mxu3 %v3583_v2 }
 0xd16   : > { %v7300_v20 = vadd.f32 %v3518_v50, %v7094_v6 }
 0xd18   : > { %4732 = vmatmul.msk.bf16.vlgmr.msra.gmra.mxu3 %vm659_vm0, %v5078_v4 }
 0xd1a   : > { %v3498_v23 = vpop.f32.mrf.mxu3 }
 0xd1b   : > { %v3519_v14 = vmul.f32 -0.06666667, %v3498_v23  ;;  %v3472_v54 = vpop.f32.mrf.mxu2 }
 0xd1c   : > { %v3520_v13 = vmul.f32 -0.06666667, %v3472_v54 }
 0xd1d   : > { %v7305_v40 = vadd.f32 %v3519_v14, %v7100_v12 }
 0xd1e   : > { %v7308_v19 = vadd.f32 %v3520_v13, %v7103_v37 }
 0xd21   : > { %4729 = vmatmul.msk.bf16.gmra.mxu2 %vm659_vm0, %v5103_v16 }
 0xd22   : > { %v3501_v8 = vpop.f32.mrf.mxu3 }
 0xd23   : > { %v3521_v38 = vmul.f32 -0.06666667, %v3501_v8  ;;  %v3474_v6 = vpop.f32.mrf.mxu2 }
 0xd24   : > { %v3522_v36 = vmul.f32 -0.06666667, %v3474_v6 }
 0xd25   : > { %v7313_v28 = vadd.f32 %v3521_v38, %v7106_v1 }
 0xd26   : > { %v7316_v47 = vadd.f32 %v3522_v36, %v7109_v63 }
 0xd28   : > { %4733 = vmatmul.msk.bf16.gmra.mxu3 %vm659_vm0, %v5103_v16 }
 0xd2a   : > { %v3503_v12 = vpop.f32.mrf.mxu3 }
 0xd2b   : > { %v3523_v39 = vmul.f32 -0.06666667, %v3503_v12  ;;  %v3477_v37 = vpop.f32.mrf.mxu2 }
 0xd2c   : > { %v3524_v45 = vmul.f32 -0.06666667, %v3477_v37 }
 0xd2d   : > { %v7321_v41 = vadd.f32 %v3523_v39, %v7112_v51 }
 0xd2e   : > { %v7324_v5 = vadd.f32 %v3524_v45, %v7115_v24 }
 0xd31   : > { %4730 = vmatmul.msk.bf16.gmra.mxu2 %vm659_vm0, %v5115_v31 }
 0xd32   : > { %v3506_v1 = vpop.f32.mrf.mxu3 }
 0xd33   : > { %v3525_v25 = vmul.f32 -0.06666667, %v3506_v1  ;;  %v3479_v63 = vpop.f32.mrf.mxu2 }
 0xd34   : > { %v3526_v18 = vmul.f32 -0.06666667, %v3479_v63  ;;  %v3584_v63 = vpack.c.bf16 %v3522_v36, %v3520_v13 }
 0xd35   : > { %v7329_v52 = vadd.f32 %v3525_v25, %v7118_v34 }
 0xd36   : > { %v7332_v62 = vadd.f32 %v3526_v18, %v7121_v48 }
 0xd38   : > { %4734 = vmatmul.msk.bf16.gmra.mxu3 %vm659_vm0, %v5115_v31 }
 0xd3a   : > { %v3508_v51 = vpop.f32.mrf.mxu3 }
 0xd3b   : > { %v3527_v49 = vmul.f32 -0.06666667, %v3508_v51  ;;  %v3482_v24 = vpop.f32.mrf.mxu2  ;;  %v3585_v51 = vpack.c.bf16 %v3523_v39, %v3521_v38 }
 0xd3c   : > { %v3528_v26 = vmul.f32 -0.06666667, %v3482_v24 }
 0xd3d   : > { %v7337_v2 = vadd.f32 %v3527_v49, %v7124_v27  ;;  %v3588_v27 = vpack.c.bf16 %v3526_v18, %v3524_v45  ;;  %v3581_v45 = vpack.c.bf16 %v3519_v14, %v7293_v7 }
 0xd3e   : > { %v7340_v57 = vadd.f32 %v3528_v26, %v7127_v11 }
 0xd41   : > { %4731 = vmatmul.msk.bf16.gmra.mxu2 %vm659_vm0, %v5131_v53 }
 0xd42   : > { %v3511_v34 = vpop.f32.mrf.mxu3 }
 0xd43   : > { %v3529_v33 = vmul.f32 -0.06666667, %v3511_v34  ;;  %v3484_v48 = vpop.f32.mrf.mxu2 }
 0xd44   : > { %v3530_v23 = vmul.f32 -0.06666667, %v3484_v48 }
 0xd45   : > { %v7345_v54 = vadd.f32 %v3529_v33, %v7130_v60  ;;  %v3589_v60 = vpack.c.bf16 %v3527_v49, %v3525_v25 }
 0xd46   : > { %v7348_v8 = vadd.f32 %v3530_v23, %v7133_v3  ;;  %v3592_v6 = vpack.c.bf16 %v3530_v23, %v3528_v26  ;;  %v3580_v3 = vpack.c.bf16 %v3518_v50, %v7284_v58 }
 0xd48   : > { %4735 = vmatmul.msk.bf16.gmra.mxu3 %vm659_vm0, %v5131_v53  ;;  %3600 = vmatpush.bf16.msra.mxu0 %v3592_v6 }
 0xd4a   : > { %v3513_v11 = vpop.f32.mrf.mxu3 }
 0xd4b   : > { %v3531_v12 = vmul.f32 -0.06666667, %v3513_v11 }
 0xd4c   : > { %3601 = vmatpush.bf16.msra.mxu0 %v3588_v27 }
 0xd4d   : > { %v7353_v37 = vadd.f32 %v3531_v12, %v7138_v43  ;;  %v3593_v1 = vpack.c.bf16 %v3531_v12, %v3529_v33 }
 0xd4f   : > { %3629 = vmatpush.bf16.msra.mxu1 %v3593_v1 }
 0xd50   : > { %3602 = vmatpush.bf16.msra.mxu0 %v3584_v63 }
 0xd53   : > { %3630 = vmatpush.bf16.msra.mxu1 %v3589_v60 }
 0xd54   : > { %3603 = vmatpush.bf16.msra.mxu0 %v3580_v3 }
 0xd57   : > { %3631 = vmatpush.bf16.msra.mxu1 %v3585_v51  ;;  %4720 = vmatmul.msk.bf16.vlgmr.msra.gmra.mxu0 %vm659_vm0, %v5078_v4 }
 0xd5b   : > { %3632 = vmatpush.bf16.msra.mxu1 %v3581_v45 }
 0xd5e   : > { %4724 = vmatmul.msk.bf16.vlgmr.msra.gmra.mxu1 %vm659_vm0, %v5078_v4 }
 0xd67   : > { %4721 = vmatmul.msk.bf16.gmra.mxu0 %vm659_vm0, %v5103_v16 }
 0xd6e   : > { %4725 = vmatmul.msk.bf16.gmra.mxu1 %vm659_vm0, %v5103_v16 }
 0xd77   : > { %4722 = vmatmul.msk.bf16.gmra.mxu0 %vm659_vm0, %v5115_v31 }
 0xd7e   : > { %4726 = vmatmul.msk.bf16.gmra.mxu1 %vm659_vm0, %v5115_v31 }
 0xd87   : > { %4723 = vmatmul.msk.bf16.gmra.mxu0 %vm659_vm0, %v5131_v53 }
 0xd8e   : > { %4727 = vmatmul.msk.bf16.gmra.mxu1 %vm659_vm0, %v5131_v53 }
 0xd94   : > { %v3663_v43 = vpop.f32.mrf.mxu2 }
 0xd95   : > { %v7373_v58 = vmul.f32 -0.0625, %v3663_v43 }
 0xd97   : > { %v7377_v7 = vadd.f32 %v7373_v58, %v7288_v10 }
 0xd9b   : > { %v3692_v50 = vpop.f32.mrf.mxu3 }
 0xd9c   : > { %v7379_v14 = vmul.f32 -0.0625, %v3692_v50  ;;  %v3665_v13 = vpop.f32.mrf.mxu2 }
 0xd9d   : > { %v3714_v38 = vmul.f32 -0.0625, %v3665_v13 }
 0xd9e   : > { %v7383_v36 = vadd.f32 %v7379_v14, %v7297_v61 }
 0xd9f   : > { %v7386_v39 = vadd.f32 %v3714_v38, %v7300_v20 }
 0xda3   : > { %v3694_v25 = vpop.f32.mrf.mxu3 }
 0xda4   : > { %v7388_v18 = vmul.f32 -0.0625, %v3694_v25  ;;  %v3668_v49 = vpop.f32.mrf.mxu2 }
 0xda5   : > { %v3716_v24 = vmul.f32 -0.0625, %v3668_v49 }
 0xda6   : > { %v7392_v10 = vadd.f32 %v7388_v18, %v7305_v40 }
 0xda7   : > { %v7395_v26 = vadd.f32 %v3716_v24, %v7308_v19 }
 0xdab   : > { %v3697_v34 = vpop.f32.mrf.mxu3 }
 0xdac   : > { %v3717_v33 = vmul.f32 -0.0625, %v3697_v34  ;;  %v3670_v48 = vpop.f32.mrf.mxu2 }
 0xdad   : > { %v3718_v61 = vmul.f32 -0.0625, %v3670_v48 }
 0xdae   : > { %v7398_v23 = vadd.f32 %v3717_v33, %v7313_v28 }
 0xdaf   : > { %v7401_v20 = vadd.f32 %v3718_v61, %v7316_v47 }
 0xdb3   : > { %v3699_v6 = vpop.f32.mrf.mxu3 }
 0xdb4   : > { %v3719_v27 = vmul.f32 -0.0625, %v3699_v6  ;;  %v3673_v11 = vpop.f32.mrf.mxu2 }
 0xdb5   : > { %v3720_v12 = vmul.f32 -0.0625, %v3673_v11 }
 0xdb6   : > { %v7404_v40 = vadd.f32 %v3719_v27, %v7321_v41 }
 0xdb7   : > { %v7407_v19 = vadd.f32 %v3720_v12, %v7324_v5 }
 0xdbb   : > { %v3702_v1 = vpop.f32.mrf.mxu3 }
 0xdbc   : > { %v3721_v63 = vmul.f32 -0.0625, %v3702_v1  ;;  %v3675_v60 = vpop.f32.mrf.mxu2 }
 0xdbd   : > { %v3722_v3 = vmul.f32 -0.0625, %v3675_v60  ;;  %v3780_v60 = vpack.c.bf16 %v3718_v61, %v3716_v24 }
 0xdbe   : > { %v7410_v28 = vadd.f32 %v3721_v63, %v7329_v52 }
 0xdbf   : > { %v7413_v47 = vadd.f32 %v3722_v3, %v7332_v62  ;;  %v3784_v6 = vpack.c.bf16 %v3722_v3, %v3720_v12  ;;  %v3776_v12 = vpack.c.bf16 %v3714_v38, %v7373_v58  ;;  %v3777_v58 = vpack.c.bf16 %v7388_v18, %v7379_v14 }
 0xdc3   : > { %v3704_v51 = vpop.f32.mrf.mxu3 }
 0xdc4   : > { %v3723_v45 = vmul.f32 -0.0625, %v3704_v51  ;;  %v3678_v43 = vpop.f32.mrf.mxu2 }
 0xdc5   : > { %v3724_v50 = vmul.f32 -0.0625, %v3678_v43 }
 0xdc6   : > { %v7416_v41 = vadd.f32 %v3723_v45, %v7337_v2 }
 0xdc7   : > { %v7419_v5 = vadd.f32 %v3724_v50, %v7340_v57 }
 0xdcb   : > { %v3707_v13 = vpop.f32.mrf.mxu3 }
 0xdcc   : > { %v3725_v25 = vmul.f32 -0.0625, %v3707_v13  ;;  %v3680_v49 = vpop.f32.mrf.mxu2 }
 0xdcd   : > { %v3726_v34 = vmul.f32 -0.0625, %v3680_v49 }
 0xdce   : > { %v7422_v52 = vadd.f32 %v3725_v25, %v7345_v54 }
 0xdcf   : > { %v7425_v62 = vadd.f32 %v3726_v34, %v7348_v8  ;;  %v3788_v48 = vpack.c.bf16 %v3726_v34, %v3724_v50  ;;  %v3785_v8 = vpack.c.bf16 %v3723_v45, %v3721_v63  ;;  %v3781_v50 = vpack.c.bf16 %v3719_v27, %v3717_v33 }
 0xdd1   : > { %3796 = vmatpush.bf16.msrb.mxu0 %v3788_v48 }
 0xdd3   : > { %v3709_v11 = vpop.f32.mrf.mxu3 }
 0xdd4   : > { %v3727_v1 = vmul.f32 -0.0625, %v3709_v11  ;;  %v3605_v2 = vpop.f32.mrf.mxu0 }
 0xdd5   : > { %v7427_v51 = vmul.f32 0.0625, %v3605_v2  ;;  %3797 = vmatpush.bf16.msrb.mxu0 %v3784_v6 }
 0xdd6   : > { %v7430_v57 = vadd.f32 %v3727_v1, %v7353_v37  ;;  %v3789_v43 = vpack.c.bf16 %v3727_v1, %v3725_v25 }
 0xdd7   : > { %v7434_v54 = vadd.f32 %v7427_v51, %v7234_v35 }
 0xdd8   : > { %3825 = vmatpush.bf16.msrb.mxu1 %v3789_v43 }
 0xdd9   : > { %3798 = vmatpush.bf16.msrb.mxu0 %v3780_v60 }
 0xddb   : > { %v3634_v3 = vpop.f32.mrf.mxu1 }
 0xddc   : > { %v7437_v13 = vmul.f32 0.0625, %v3634_v3  ;;  %3826 = vmatpush.bf16.msrb.mxu1 %v3785_v8  ;;  %v3607_v24 = vpop.f32.mrf.mxu0 }
 0xddd   : > { %v7439_v61 = vmul.f32 0.0625, %v3607_v24  ;;  %3799 = vmatpush.bf16.msrb.mxu0 %v3776_v12 }
 0xdde   : > { %v7443_v37 = vadd.f32 %v7437_v13, %v7240_v21 }
 0xddf   : > { %v7447_v35 = vadd.f32 %v7439_v61, %v7243_v17 }
 0xde0   : > { %3827 = vmatpush.bf16.msrb.mxu1 %v3781_v50  ;;  %4736 = vmatmul.msk.bf16.vlgmr.msrb.gmra.mxu0 %vm659_vm0, %v5078_v4 }
 0xde3   : > { %v3636_v38 = vpop.f32.mrf.mxu1 }
 0xde4   : > { %v3731_v33 = vmul.f32 0.0625, %v3636_v38  ;;  %3828 = vmatpush.bf16.msrb.mxu1 %v3777_v58  ;;  %v3610_v27 = vpop.f32.mrf.mxu0 }
 0xde5   : > { %v3732_v63 = vmul.f32 0.0625, %v3610_v27 }
 0xde6   : > { %v7454_v45 = vadd.f32 %v3731_v33, %v7246_v9 }
 0xde7   : > { %v7457_v21 = vadd.f32 %v3732_v63, %v7249_v0  ;;  %4740 = vmatmul.msk.bf16.vlgmr.msrb.gmra.mxu1 %vm659_vm0, %v5078_v4 }
 0xdeb   : > { %v3639_v17 = vpop.f32.mrf.mxu1 }
 0xdec   : > { %v3733_v14 = vmul.f32 0.0625, %v3639_v17  ;;  %v3612_v18 = vpop.f32.mrf.mxu0 }
 0xded   : > { %v3734_v25 = vmul.f32 0.0625, %v3612_v18 }
 0xdee   : > { %v7462_v49 = vadd.f32 %v3733_v14, %v7252_v44 }
 0xdef   : > { %v7465_v34 = vadd.f32 %v3734_v25, %v7255_v32 }
 0xdf0   : > { %4737 = vmatmul.msk.bf16.gmra.mxu0 %vm659_vm0, %v5103_v16 }
 0xdf3   : > { %v3641_v9 = vpop.f32.mrf.mxu1 }
 0xdf4   : > { %v3735_v48 = vmul.f32 0.0625, %v3641_v9  ;;  %v3615_v0 = vpop.f32.mrf.mxu0 }
 0xdf5   : > { %v3736_v6 = vmul.f32 0.0625, %v3615_v0 }
 0xdf6   : > { %v7470_v11 = vadd.f32 %v3735_v48, %v7258_v29 }
 0xdf7   : > { %v7473_v1 = vadd.f32 %v3736_v6, %v7261_v55  ;;  %4741 = vmatmul.msk.bf16.gmra.mxu1 %vm659_vm0, %v5103_v16 }
 0xdfb   : > { %v3644_v44 = vpop.f32.mrf.mxu1 }
 0xdfc   : > { %v3737_v2 = vmul.f32 0.0625, %v3644_v44  ;;  %v3617_v32 = vpop.f32.mrf.mxu0 }
 0xdfd   : > { %v3738_v60 = vmul.f32 0.0625, %v3617_v32  ;;  %v3782_v32 = vpack.c.bf16 %v3734_v25, %v3732_v63 }
 0xdfe   : > { %v7478_v43 = vadd.f32 %v3737_v2, %v7264_v46 }
 0xdff   : > { %v7481_v8 = vadd.f32 %v3738_v60, %v7267_v56 }
 0xe00   : > { %4738 = vmatmul.msk.bf16.gmra.mxu0 %vm659_vm0, %v5115_v31 }
 0xe03   : > { %v3646_v29 = vpop.f32.mrf.mxu1 }
 0xe04   : > { %v3739_v12 = vmul.f32 0.0625, %v3646_v29  ;;  %v3620_v55 = vpop.f32.mrf.mxu0 }
 0xe05   : > { %v3740_v3 = vmul.f32 0.0625, %v3620_v55 }
 0xe06   : > { %v7486_v50 = vadd.f32 %v3739_v12, %v7270_v30  ;;  %v3786_v30 = vpack.c.bf16 %v3738_v60, %v3736_v6  ;;  %v3783_v6 = vpack.c.bf16 %v3735_v48, %v3733_v14 }
 0xe07   : > { %v7489_v24 = vadd.f32 %v3740_v3, %v7273_v42  ;;  %4742 = vmatmul.msk.bf16.gmra.mxu1 %vm659_vm0, %v5115_v31 }
 0xe0b   : > { %v3649_v46 = vpop.f32.mrf.mxu1 }
 0xe0c   : > { %v3741_v58 = vmul.f32 0.0625, %v3649_v46  ;;  %v3622_v56 = vpop.f32.mrf.mxu0 }
 0xe0d   : > { %v3742_v38 = vmul.f32 0.0625, %v3622_v56 }
 0xe0e   : > { %v7494_v27 = vadd.f32 %v3741_v58, %v7276_v22  ;;  %v3787_v22 = vpack.c.bf16 %v3739_v12, %v3737_v2 }
 0xe0f   : > { %v7497_v17 = vadd.f32 %v3742_v38, %v7279_v15  ;;  %v3790_v18 = vpack.c.bf16 %v3742_v38, %v3740_v3  ;;  %v3778_v15 = vpack.c.bf16 %v7439_v61, %v7427_v51 }
 0xe10   : > { %4739 = vmatmul.msk.bf16.gmra.mxu0 %vm659_vm0, %v5131_v53 }
 0xe11   : > { %3854 = vmatpush.bf16.msrb.mxu2 %v3790_v18 }
 0xe13   : > { %v3651_v42 = vpop.f32.mrf.mxu1 }
 0xe14   : > { %v3743_v9 = vmul.f32 0.0625, %v3651_v42 }
 0xe15   : > { %3855 = vmatpush.bf16.msrb.mxu2 %v3786_v30 }
 0xe16   : > { %v7502_v0 = vadd.f32 %v3743_v9, %v7282_v59  ;;  %v3791_v44 = vpack.c.bf16 %v3743_v9, %v3741_v58  ;;  %v3779_v59 = vpack.c.bf16 %v3731_v33, %v7437_v13 }
 0xe17   : > { %4743 = vmatmul.msk.bf16.gmra.mxu1 %vm659_vm0, %v5131_v53 }
 0xe18   : > { %3883 = vmatpush.bf16.msrb.mxu3 %v3791_v44 }
 0xe19   : > { %3856 = vmatpush.bf16.msrb.mxu2 %v3782_v32 }
 0xe1c   : > { %3884 = vmatpush.bf16.msrb.mxu3 %v3787_v22 }
 0xe1d   : > { %3857 = vmatpush.bf16.msrb.mxu2 %v3778_v15 }
 0xe20   : > { %3885 = vmatpush.bf16.msrb.mxu3 %v3783_v6  ;;  %4744 = vmatmul.msk.bf16.vlgmr.msrb.gmra.mxu2 %vm659_vm0, %v5078_v4 }
 0xe24   : > { %3886 = vmatpush.bf16.msrb.mxu3 %v3779_v59 }
 0xe27   : > { %4748 = vmatmul.msk.bf16.vlgmr.msrb.gmra.mxu3 %vm659_vm0, %v5078_v4 }
 0xe30   : > { %4745 = vmatmul.msk.bf16.gmra.mxu2 %vm659_vm0, %v5103_v16 }
 0xe37   : > { %4749 = vmatmul.msk.bf16.gmra.mxu3 %vm659_vm0, %v5103_v16 }
 0xe40   : > { %4746 = vmatmul.msk.bf16.gmra.mxu2 %vm659_vm0, %v5115_v31 }
 0xe47   : > { %4750 = vmatmul.msk.bf16.gmra.mxu3 %vm659_vm0, %v5115_v31 }
 0xe50   : > { %4747 = vmatmul.msk.bf16.gmra.mxu2 %vm659_vm0, %v5131_v53 }
 0xe57   : > { %4751 = vmatmul.msk.bf16.gmra.mxu3 %vm659_vm0, %v5131_v53 }
 0xe5d   : > { %v3801_v51 = vpop.f32.mrf.mxu0 }
 0xe5e   : > { %v3924_v13 = vmul.f32 0.05882353, %v3801_v51 }
 0xe60   : > { %v7526_v61 = vadd.f32 %v3924_v13, %v7434_v54 }
 0xe64   : > { %v3830_v33 = vpop.f32.mrf.mxu1 }
 0xe65   : > { %v7528_v63 = vmul.f32 0.05882353, %v3830_v33  ;;  %v3803_v14 = vpop.f32.mrf.mxu0 }
 0xe66   : > { %v3926_v25 = vmul.f32 0.05882353, %v3803_v14 }
 0xe67   : > { %v7532_v48 = vadd.f32 %v7528_v63, %v7443_v37 }
 0xe68   : > { %v7535_v2 = vadd.f32 %v3926_v25, %v7447_v35 }
 0xe6c   : > { %v3832_v60 = vpop.f32.mrf.mxu1 }
 0xe6d   : > { %v3927_v29 = vmul.f32 0.05882353, %v3832_v60  ;;  %v3806_v12 = vpop.f32.mrf.mxu0 }
 0xe6e   : > { %v3928_v55 = vmul.f32 0.05882353, %v3806_v12 }
 0xe6f   : > { %v7538_v3 = vadd.f32 %v3927_v29, %v7454_v45 }
 0xe70   : > { %v7541_v54 = vadd.f32 %v3928_v55, %v7457_v21 }
 0xe74   : > { %v3835_v46 = vpop.f32.mrf.mxu1 }
 0xe75   : > { %v3929_v58 = vmul.f32 0.05882353, %v3835_v46  ;;  %v3808_v56 = vpop.f32.mrf.mxu0 }
 0xe76   : > { %v3930_v38 = vmul.f32 0.05882353, %v3808_v56 }
 0xe77   : > { %v7544_v37 = vadd.f32 %v3929_v58, %v7462_v49 }
 0xe78   : > { %v7547_v35 = vadd.f32 %v3930_v38, %v7465_v34 }
 0xe7c   : > { %v3837_v18 = vpop.f32.mrf.mxu1 }
 0xe7d   : > { %v3931_v30 = vmul.f32 0.05882353, %v3837_v18  ;;  %v3811_v42 = vpop.f32.mrf.mxu0 }
 0xe7e   : > { %v3932_v9 = vmul.f32 0.05882353, %v3811_v42 }
 0xe7f   : > { %v7550_v45 = vadd.f32 %v3931_v30, %v7470_v11 }
 0xe80   : > { %v7553_v21 = vadd.f32 %v3932_v9, %v7473_v1 }
 0xe84   : > { %v3840_v44 = vpop.f32.mrf.mxu1 }
 0xe85   : > { %v3933_v32 = vmul.f32 0.05882353, %v3840_v44  ;;  %v3813_v22 = vpop.f32.mrf.mxu0 }
 0xe86   : > { %v3934_v15 = vmul.f32 0.05882353, %v3813_v22 }
 0xe87   : > { %v7556_v49 = vadd.f32 %v3933_v32, %v7478_v43 }
 0xe88   : > { %v7559_v34 = vadd.f32 %v3934_v15, %v7481_v8  ;;  %v3982_v18 = vpack.c.bf16 %v3934_v15, %v3932_v9 }
 0xe8c   : > { %v3842_v6 = vpop.f32.mrf.mxu1 }
 0xe8d   : > { %v3935_v59 = vmul.f32 0.05882353, %v3842_v6  ;;  %v3816_v51 = vpop.f32.mrf.mxu0 }
 0xe8e   : > { %v3936_v33 = vmul.f32 0.05882353, %v3816_v51  ;;  %v3974_v51 = vpack.c.bf16 %v3926_v25, %v3924_v13 }
 0xe8f   : > { %v7562_v11 = vadd.f32 %v3935_v59, %v7486_v50  ;;  %v3978_v50 = vpack.c.bf16 %v3930_v38, %v3928_v55  ;;  %v3983_v6 = vpack.c.bf16 %v3935_v59, %v3933_v32  ;;  %v3975_v55 = vpack.c.bf16 %v3927_v29, %v7528_v63 }
 0xe90   : > { %v7565_v1 = vadd.f32 %v3936_v33, %v7489_v24 }
 0xe94   : > { %v3845_v14 = vpop.f32.mrf.mxu1 }
 0xe95   : > { %v3937_v60 = vmul.f32 0.05882353, %v3845_v14  ;;  %v3818_v12 = vpop.f32.mrf.mxu0 }
 0xe96   : > { %v3938_v46 = vmul.f32 0.05882353, %v3818_v12 }
 0xe97   : > { %v7568_v43 = vadd.f32 %v3937_v60, %v7494_v27 }
 0xe98   : > { %v7571_v8 = vadd.f32 %v3938_v46, %v7497_v17  ;;  %v3986_v56 = vpack.c.bf16 %v3938_v46, %v3936_v33  ;;  %v3979_v17 = vpack.c.bf16 %v3931_v30, %v3929_v58 }
 0xe9a   : > { %4050 = vmatpush.bf16.msra.mxu2 %v3986_v56 }
 0xe9c   : > { %v3847_v42 = vpop.f32.mrf.mxu1 }
 0xe9d   : > { %v3939_v44 = vmul.f32 0.05882353, %v3847_v42 }
 0xe9e   : > { %4051 = vmatpush.bf16.msra.mxu2 %v3982_v18 }
 0xe9f   : > { %v7574_v24 = vadd.f32 %v3939_v44, %v7502_v0  ;;  %v3987_v22 = vpack.c.bf16 %v3939_v44, %v3937_v60 }
 0xea1   : > { %4079 = vmatpush.bf16.msra.mxu3 %v3987_v22 }
 0xea2   : > { %4052 = vmatpush.bf16.msra.mxu2 %v3978_v50 }
 0xea3   : > { %v3859_v27 = vpop.f32.mrf.mxu2 }
 0xea4   : > { %v7576_v14 = vmul.f32 -0.05882353, %v3859_v27 }
 0xea5   : > { %4080 = vmatpush.bf16.msra.mxu3 %v3983_v6 }
 0xea6   : > { %v7580_v9 = vadd.f32 %v7576_v14, %v7377_v7  ;;  %4053 = vmatpush.bf16.msra.mxu2 %v3974_v51 }
 0xea9   : > { %4081 = vmatpush.bf16.msra.mxu3 %v3979_v17  ;;  %4760 = vmatmul.msk.bf16.vlgmr.msra.gmra.mxu2 %vm659_vm0, %v5078_v4 }
 0xeaa   : > { %v3888_v0 = vpop.f32.mrf.mxu3 }
 0xeab   : > { %v7585_v38 = vmul.f32 -0.05882353, %v3888_v0  ;;  %v3861_v13 = vpop.f32.mrf.mxu2 }
 0xeac   : > { %v3910_v25 = vmul.f32 -0.05882353, %v3861_v13 }
 0xead   : > { %v7589_v58 = vadd.f32 %v7585_v38, %v7383_v36  ;;  %4082 = vmatpush.bf16.msra.mxu3 %v3975_v55 }
 0xeae   : > { %v7592_v7 = vadd.f32 %v3910_v25, %v7386_v39 }
 0xeb0   : > { %4764 = vmatmul.msk.bf16.vlgmr.msra.gmra.mxu3 %vm659_vm0, %v5078_v4 }
 0xeb2   : > { %v3890_v63 = vpop.f32.mrf.mxu3 }
 0xeb3   : > { %v3911_v29 = vmul.f32 -0.05882353, %v3890_v63  ;;  %v3864_v30 = vpop.f32.mrf.mxu2 }
 0xeb4   : > { %v3912_v32 = vmul.f32 -0.05882353, %v3864_v30 }
 0xeb5   : > { %v7597_v15 = vadd.f32 %v3911_v29, %v7392_v10 }
 0xeb6   : > { %v7600_v59 = vadd.f32 %v3912_v32, %v7395_v26 }
 0xeb9   : > { %4761 = vmatmul.msk.bf16.gmra.mxu2 %vm659_vm0, %v5103_v16 }
 0xeba   : > { %v3893_v36 = vpop.f32.mrf.mxu3 }
 0xebb   : > { %v3913_v33 = vmul.f32 -0.05882353, %v3893_v36  ;;  %v3866_v39 = vpop.f32.mrf.mxu2 }
 0xebc   : > { %v3914_v60 = vmul.f32 -0.05882353, %v3866_v39 }
 0xebd   : > { %v7605_v12 = vadd.f32 %v3913_v33, %v7398_v23 }
 0xebe   : > { %v7608_v46 = vadd.f32 %v3914_v60, %v7401_v20 }
 0xec0   : > { %4765 = vmatmul.msk.bf16.gmra.mxu3 %vm659_vm0, %v5103_v16 }
 0xec2   : > { %v3895_v10 = vpop.f32.mrf.mxu3 }
 0xec3   : > { %v3915_v56 = vmul.f32 -0.05882353, %v3895_v10  ;;  %v3869_v26 = vpop.f32.mrf.mxu2 }
 0xec4   : > { %v3916_v18 = vmul.f32 -0.05882353, %v3869_v26 }
 0xec5   : > { %v7613_v42 = vadd.f32 %v3915_v56, %v7404_v40 }
 0xec6   : > { %v7616_v44 = vadd.f32 %v3916_v18, %v7407_v19 }
 0xec9   : > { %4762 = vmatmul.msk.bf16.gmra.mxu2 %vm659_vm0, %v5115_v31 }
 0xeca   : > { %v3898_v23 = vpop.f32.mrf.mxu3 }
 0xecb   : > { %v3917_v50 = vmul.f32 -0.05882353, %v3898_v23  ;;  %v3871_v20 = vpop.f32.mrf.mxu2 }
 0xecc   : > { %v3918_v22 = vmul.f32 -0.05882353, %v3871_v20  ;;  %v3976_v20 = vpack.c.bf16 %v3914_v60, %v3912_v32 }
 0xecd   : > { %v7621_v6 = vadd.f32 %v3917_v50, %v7410_v28 }
 0xece   : > { %v7624_v51 = vadd.f32 %v3918_v22, %v7413_v47 }
 0xed0   : > { %4766 = vmatmul.msk.bf16.gmra.mxu3 %vm659_vm0, %v5115_v31 }
 0xed2   : > { %v3900_v40 = vpop.f32.mrf.mxu3 }
 0xed3   : > { %v3919_v27 = vmul.f32 -0.05882353, %v3900_v40  ;;  %v3874_v19 = vpop.f32.mrf.mxu2  ;;  %v3977_v40 = vpack.c.bf16 %v3915_v56, %v3913_v33 }
 0xed4   : > { %v3920_v17 = vmul.f32 -0.05882353, %v3874_v19 }
 0xed5   : > { %v7629_v55 = vadd.f32 %v3919_v27, %v7416_v41  ;;  %v3980_v41 = vpack.c.bf16 %v3918_v22, %v3916_v18  ;;  %v3973_v18 = vpack.c.bf16 %v3911_v29, %v7585_v38 }
 0xed6   : > { %v7632_v0 = vadd.f32 %v3920_v17, %v7419_v5 }
 0xed9   : > { %4763 = vmatmul.msk.bf16.gmra.mxu2 %vm659_vm0, %v5131_v53 }
 0xeda   : > { %v3903_v28 = vpop.f32.mrf.mxu3 }
 0xedb   : > { %v3921_v13 = vmul.f32 -0.05882353, %v3903_v28  ;;  %v3876_v47 = vpop.f32.mrf.mxu2 }
 0xedc   : > { %v3922_v63 = vmul.f32 -0.05882353, %v3876_v47 }
 0xedd   : > { %v7637_v30 = vadd.f32 %v3921_v13, %v7422_v52  ;;  %v3981_v52 = vpack.c.bf16 %v3919_v27, %v3917_v50 }
 0xede   : > { %v7640_v36 = vadd.f32 %v3922_v63, %v7425_v62  ;;  %v3984_v39 = vpack.c.bf16 %v3922_v63, %v3920_v17  ;;  %v3972_v62 = vpack.c.bf16 %v3910_v25, %v7576_v14 }
 0xee0   : > { %4767 = vmatmul.msk.bf16.gmra.mxu3 %vm659_vm0, %v5131_v53  ;;  %3992 = vmatpush.bf16.msra.mxu0 %v3984_v39 }
 0xee2   : > { %v3905_v5 = vpop.f32.mrf.mxu3 }
 0xee3   : > { %v3923_v10 = vmul.f32 -0.05882353, %v3905_v5 }
 0xee4   : > { %3993 = vmatpush.bf16.msra.mxu0 %v3980_v41 }
 0xee5   : > { %v7645_v26 = vadd.f32 %v3923_v10, %v7430_v57  ;;  %v3985_v23 = vpack.c.bf16 %v3923_v10, %v3921_v13 }
 0xee7   : > { %4021 = vmatpush.bf16.msra.mxu1 %v3985_v23 }
 0xee8   : > { %3994 = vmatpush.bf16.msra.mxu0 %v3976_v20 }
 0xeeb   : > { %4022 = vmatpush.bf16.msra.mxu1 %v3981_v52 }
 0xeec   : > { %3995 = vmatpush.bf16.msra.mxu0 %v3972_v62 }
 0xeef   : > { %4023 = vmatpush.bf16.msra.mxu1 %v3977_v40  ;;  %4752 = vmatmul.msk.bf16.vlgmr.msra.gmra.mxu0 %vm659_vm0, %v5078_v4 }
 0xef3   : > { %4024 = vmatpush.bf16.msra.mxu1 %v3973_v18 }
 0xef6   : > { %4756 = vmatmul.msk.bf16.vlgmr.msra.gmra.mxu1 %vm659_vm0, %v5078_v4 }
 0xeff   : > { %4753 = vmatmul.msk.bf16.gmra.mxu0 %vm659_vm0, %v5103_v16 }
 0xf06   : > { %4757 = vmatmul.msk.bf16.gmra.mxu1 %vm659_vm0, %v5103_v16 }
 0xf0f   : > { %4754 = vmatmul.msk.bf16.gmra.mxu0 %vm659_vm0, %v5115_v31 }
 0xf16   : > { %4758 = vmatmul.msk.bf16.gmra.mxu1 %vm659_vm0, %v5115_v31 }
 0xf1f   : > { %4755 = vmatmul.msk.bf16.gmra.mxu0 %vm659_vm0, %v5131_v53 }
 0xf26   : > { %4759 = vmatmul.msk.bf16.gmra.mxu1 %vm659_vm0, %v5131_v53 }
 0xf2c   : > { %v4055_v57 = vpop.f32.mrf.mxu2 }
 0xf2d   : > { %v7665_v14 = vmul.f32 -0.055555556, %v4055_v57 }
 0xf2f   : > { %v7669_v38 = vadd.f32 %v7665_v14, %v7580_v9 }
 0xf33   : > { %v4084_v25 = vpop.f32.mrf.mxu3 }
 0xf34   : > { %v7671_v29 = vmul.f32 -0.055555556, %v4084_v25  ;;  %v4057_v32 = vpop.f32.mrf.mxu2 }
 0xf35   : > { %v4106_v33 = vmul.f32 -0.055555556, %v4057_v32 }
 0xf36   : > { %v7675_v60 = vadd.f32 %v7671_v29, %v7589_v58 }
 0xf37   : > { %v7678_v56 = vadd.f32 %v4106_v33, %v7592_v7 }
 0xf3b   : > { %v4086_v50 = vpop.f32.mrf.mxu3 }
 0xf3c   : > { %v7680_v22 = vmul.f32 -0.055555556, %v4086_v50  ;;  %v4060_v27 = vpop.f32.mrf.mxu2 }
 0xf3d   : > { %v4108_v19 = vmul.f32 -0.055555556, %v4060_v27 }
 0xf3e   : > { %v7684_v9 = vadd.f32 %v7680_v22, %v7597_v15 }
 0xf3f   : > { %v7687_v17 = vadd.f32 %v4108_v19, %v7600_v59 }
 0xf43   : > { %v4089_v28 = vpop.f32.mrf.mxu3 }
 0xf44   : > { %v4109_v13 = vmul.f32 -0.055555556, %v4089_v28  ;;  %v4062_v47 = vpop.f32.mrf.mxu2 }
 0xf45   : > { %v4110_v58 = vmul.f32 -0.055555556, %v4062_v47 }
 0xf46   : > { %v7690_v63 = vadd.f32 %v4109_v13, %v7605_v12 }
 0xf47   : > { %v7693_v7 = vadd.f32 %v4110_v58, %v7608_v46 }
 0xf4b   : > { %v4091_v39 = vpop.f32.mrf.mxu3 }
 0xf4c   : > { %v4111_v41 = vmul.f32 -0.055555556, %v4091_v39  ;;  %v4065_v5 = vpop.f32.mrf.mxu2 }
 0xf4d   : > { %v4112_v10 = vmul.f32 -0.055555556, %v4065_v5 }
 0xf4e   : > { %v7696_v15 = vadd.f32 %v4111_v41, %v7613_v42 }
 0xf4f   : > { %v7699_v59 = vadd.f32 %v4112_v10, %v7616_v44 }
 0xf53   : > { %v4094_v23 = vpop.f32.mrf.mxu3 }
 0xf54   : > { %v4113_v20 = vmul.f32 -0.055555556, %v4094_v23  ;;  %v4067_v52 = vpop.f32.mrf.mxu2 }
 0xf55   : > { %v4114_v62 = vmul.f32 -0.055555556, %v4067_v52  ;;  %v4172_v52 = vpack.c.bf16 %v4110_v58, %v4108_v19 }
 0xf56   : > { %v7702_v12 = vadd.f32 %v4113_v20, %v7621_v6 }
 0xf57   : > { %v7705_v46 = vadd.f32 %v4114_v62, %v7624_v51  ;;  %v4176_v39 = vpack.c.bf16 %v4114_v62, %v4112_v10  ;;  %v4168_v10 = vpack.c.bf16 %v4106_v33, %v7665_v14  ;;  %v4169_v14 = vpack.c.bf16 %v7680_v22, %v7671_v29 }
 0xf5b   : > { %v4096_v40 = vpop.f32.mrf.mxu3 }
 0xf5c   : > { %v4115_v18 = vmul.f32 -0.055555556, %v4096_v40  ;;  %v4070_v57 = vpop.f32.mrf.mxu2 }
 0xf5d   : > { %v4116_v25 = vmul.f32 -0.055555556, %v4070_v57 }
 0xf5e   : > { %v7708_v42 = vadd.f32 %v4115_v18, %v7629_v55 }
 0xf5f   : > { %v7711_v44 = vadd.f32 %v4116_v25, %v7632_v0 }
 0xf63   : > { %v4099_v32 = vpop.f32.mrf.mxu3 }
 0xf64   : > { %v4117_v50 = vmul.f32 -0.055555556, %v4099_v32  ;;  %v4072_v27 = vpop.f32.mrf.mxu2 }
 0xf65   : > { %v4118_v28 = vmul.f32 -0.055555556, %v4072_v27 }
 0xf66   : > { %v7714_v6 = vadd.f32 %v4117_v50, %v7637_v30 }
 0xf67   : > { %v7717_v51 = vadd.f32 %v4118_v28, %v7640_v36  ;;  %v4180_v47 = vpack.c.bf16 %v4118_v28, %v4116_v25  ;;  %v4177_v36 = vpack.c.bf16 %v4115_v18, %v4113_v20  ;;  %v4173_v25 = vpack.c.bf16 %v4111_v41, %v4109_v13 }
 0xf69   : > { %4188 = vmatpush.bf16.msrb.mxu0 %v4180_v47 }
 0xf6b   : > { %v4101_v5 = vpop.f32.mrf.mxu3 }
 0xf6c   : > { %v4119_v23 = vmul.f32 -0.055555556, %v4101_v5  ;;  %v3997_v55 = vpop.f32.mrf.mxu0 }
 0xf6d   : > { %v7719_v40 = vmul.f32 0.055555556, %v3997_v55  ;;  %4189 = vmatpush.bf16.msrb.mxu0 %v4176_v39 }
 0xf6e   : > { %v7722_v0 = vadd.f32 %v4119_v23, %v7645_v26  ;;  %v4181_v57 = vpack.c.bf16 %v4119_v23, %v4117_v50 }
 0xf6f   : > { %v7726_v30 = vadd.f32 %v7719_v40, %v7526_v61 }
 0xf70   : > { %4217 = vmatpush.bf16.msrb.mxu1 %v4181_v57 }
 0xf71   : > { %4190 = vmatpush.bf16.msrb.mxu0 %v4172_v52 }
 0xf73   : > { %v4026_v62 = vpop.f32.mrf.mxu1 }
 0xf74   : > { %v7729_v32 = vmul.f32 0.055555556, %v4026_v62  ;;  %4218 = vmatpush.bf16.msrb.mxu1 %v4177_v36  ;;  %v3999_v19 = vpop.f32.mrf.mxu0 }
 0xf75   : > { %v7731_v58 = vmul.f32 0.055555556, %v3999_v19  ;;  %4191 = vmatpush.bf16.msrb.mxu0 %v4168_v10 }
 0xf76   : > { %v7735_v26 = vadd.f32 %v7729_v32, %v7532_v48 }
 0xf77   : > { %v7739_v61 = vadd.f32 %v7731_v58, %v7535_v2 }
 0xf78   : > { %4219 = vmatpush.bf16.msrb.mxu1 %v4173_v25  ;;  %4768 = vmatmul.msk.bf16.vlgmr.msrb.gmra.mxu0 %vm659_vm0, %v5078_v4 }
 0xf7b   : > { %v4028_v33 = vpop.f32.mrf.mxu1 }
 0xf7c   : > { %v4123_v13 = vmul.f32 0.055555556, %v4028_v33  ;;  %4220 = vmatpush.bf16.msrb.mxu1 %v4169_v14  ;;  %v4002_v41 = vpop.f32.mrf.mxu0 }
 0xf7d   : > { %v4124_v20 = vmul.f32 0.055555556, %v4002_v41 }
 0xf7e   : > { %v7746_v18 = vadd.f32 %v4123_v13, %v7538_v3 }
 0xf7f   : > { %v7749_v48 = vadd.f32 %v4124_v20, %v7541_v54  ;;  %4772 = vmatmul.msk.bf16.vlgmr.msrb.gmra.mxu1 %vm659_vm0, %v5078_v4 }
 0xf83   : > { %v4031_v2 = vpop.f32.mrf.mxu1 }
 0xf84   : > { %v4125_v29 = vmul.f32 0.055555556, %v4031_v2  ;;  %v4004_v22 = vpop.f32.mrf.mxu0 }
 0xf85   : > { %v4126_v50 = vmul.f32 0.055555556, %v4004_v22 }
 0xf86   : > { %v7754_v27 = vadd.f32 %v4125_v29, %v7544_v37 }
 0xf87   : > { %v7757_v28 = vadd.f32 %v4126_v50, %v7547_v35 }
 0xf88   : > { %4769 = vmatmul.msk.bf16.gmra.mxu0 %vm659_vm0, %v5103_v16 }
 0xf8b   : > { %v4033_v3 = vpop.f32.mrf.mxu1 }
 0xf8c   : > { %v4127_v47 = vmul.f32 0.055555556, %v4033_v3  ;;  %v4007_v54 = vpop.f32.mrf.mxu0 }
 0xf8d   : > { %v4128_v39 = vmul.f32 0.055555556, %v4007_v54 }
 0xf8e   : > { %v7762_v5 = vadd.f32 %v4127_v47, %v7550_v45 }
 0xf8f   : > { %v7765_v23 = vadd.f32 %v4128_v39, %v7553_v21  ;;  %4773 = vmatmul.msk.bf16.gmra.mxu1 %vm659_vm0, %v5103_v16 }
 0xf93   : > { %v4036_v37 = vpop.f32.mrf.mxu1 }
 0xf94   : > { %v4129_v55 = vmul.f32 0.055555556, %v4036_v37  ;;  %v4009_v35 = vpop.f32.mrf.mxu0 }
 0xf95   : > { %v4130_v52 = vmul.f32 0.055555556, %v4009_v35  ;;  %v4174_v35 = vpack.c.bf16 %v4126_v50, %v4124_v20 }
 0xf96   : > { %v7770_v57 = vadd.f32 %v4129_v55, %v7556_v49 }
 0xf97   : > { %v7773_v36 = vadd.f32 %v4130_v52, %v7559_v34 }
 0xf98   : > { %4770 = vmatmul.msk.bf16.gmra.mxu0 %vm659_vm0, %v5115_v31 }
 0xf9b   : > { %v4038_v45 = vpop.f32.mrf.mxu1 }
 0xf9c   : > { %v4131_v10 = vmul.f32 0.055555556, %v4038_v45  ;;  %v4012_v21 = vpop.f32.mrf.mxu0 }
 0xf9d   : > { %v4132_v62 = vmul.f32 0.055555556, %v4012_v21 }
 0xf9e   : > { %v7778_v25 = vadd.f32 %v4131_v10, %v7562_v11  ;;  %v4178_v11 = vpack.c.bf16 %v4130_v52, %v4128_v39  ;;  %v4175_v39 = vpack.c.bf16 %v4127_v47, %v4125_v29 }
 0xf9f   : > { %v7781_v19 = vadd.f32 %v4132_v62, %v7565_v1  ;;  %4774 = vmatmul.msk.bf16.gmra.mxu1 %vm659_vm0, %v5115_v31 }
 0xfa3   : > { %v4041_v49 = vpop.f32.mrf.mxu1 }
 0xfa4   : > { %v4133_v14 = vmul.f32 0.055555556, %v4041_v49  ;;  %v4014_v34 = vpop.f32.mrf.mxu0 }
 0xfa5   : > { %v4134_v33 = vmul.f32 0.055555556, %v4014_v34 }
 0xfa6   : > { %v7786_v41 = vadd.f32 %v4133_v14, %v7568_v43  ;;  %v4179_v43 = vpack.c.bf16 %v4131_v10, %v4129_v55 }
 0xfa7   : > { %v7789_v2 = vadd.f32 %v4134_v33, %v7571_v8  ;;  %v4182_v22 = vpack.c.bf16 %v4134_v33, %v4132_v62  ;;  %v4170_v8 = vpack.c.bf16 %v7731_v58, %v7719_v40 }
 0xfa8   : > { %4771 = vmatmul.msk.bf16.gmra.mxu0 %vm659_vm0, %v5131_v53 }
 0xfa9   : > { %4246 = vmatpush.bf16.msrb.mxu2 %v4182_v22 }
 0xfab   : > { %v4043_v1 = vpop.f32.mrf.mxu1 }
 0xfac   : > { %v4135_v3 = vmul.f32 0.055555556, %v4043_v1 }
 0xfad   : > { %4247 = vmatpush.bf16.msrb.mxu2 %v4178_v11 }
 0xfae   : > { %v7794_v54 = vadd.f32 %v4135_v3, %v7574_v24  ;;  %v4183_v37 = vpack.c.bf16 %v4135_v3, %v4133_v14  ;;  %v4171_v24 = vpack.c.bf16 %v4123_v13, %v7729_v32 }
 0xfaf   : > { %4775 = vmatmul.msk.bf16.gmra.mxu1 %vm659_vm0, %v5131_v53 }
 0xfb0   : > { %4275 = vmatpush.bf16.msrb.mxu3 %v4183_v37 }
 0xfb1   : > { %4248 = vmatpush.bf16.msrb.mxu2 %v4174_v35 }
 0xfb4   : > { %4276 = vmatpush.bf16.msrb.mxu3 %v4179_v43 }
 0xfb5   : > { %4249 = vmatpush.bf16.msrb.mxu2 %v4170_v8 }
 0xfb8   : > { %4277 = vmatpush.bf16.msrb.mxu3 %v4175_v39  ;;  %4776 = vmatmul.msk.bf16.vlgmr.msrb.gmra.mxu2 %vm659_vm0, %v5078_v4 }
 0xfbc   : > { %4278 = vmatpush.bf16.msrb.mxu3 %v4171_v24 }
 0xfbf   : > { %4780 = vmatmul.msk.bf16.vlgmr.msrb.gmra.mxu3 %vm659_vm0, %v5078_v4 }
 0xfc8   : > { %4777 = vmatmul.msk.bf16.gmra.mxu2 %vm659_vm0, %v5103_v16 }
 0xfcf   : > { %4781 = vmatmul.msk.bf16.gmra.mxu3 %vm659_vm0, %v5103_v16 }
 0xfd8   : > { %4778 = vmatmul.msk.bf16.gmra.mxu2 %vm659_vm0, %v5115_v31 }
 0xfdf   : > { %4782 = vmatmul.msk.bf16.gmra.mxu3 %vm659_vm0, %v5115_v31 }
 0xfe8   : > { %4779 = vmatmul.msk.bf16.gmra.mxu2 %vm659_vm0, %v5131_v53 }
 0xfef   : > { %4783 = vmatmul.msk.bf16.gmra.mxu3 %vm659_vm0, %v5131_v53 }
 0xff5   : > { %v4193_v40 = vpop.f32.mrf.mxu0 }
 0xff6   : > { %v4316_v4 = vmul.f32 0.05263158, %v4193_v40 }
 0xff8   : > { %v7818_v32 = vadd.f32 %v4316_v4, %v7726_v30 }
 0xffa   : > { %4366 = vst [vmem:[#allocation2 + $0xd8] sm:$0xff] %v7818_v32 }
 0xffc   : > { %v4222_v16 = vpop.f32.mrf.mxu1 }
 0xffd   : > { %v4317_v58 = vmul.f32 0.05263158, %v4222_v16  ;;  %v4195_v13 = vpop.f32.mrf.mxu0 }
 0xffe   : > { %v4318_v20 = vmul.f32 0.05263158, %v4195_v13 }
 0xfff   : > { %v7822_v29 = vadd.f32 %v4317_v58, %v7735_v26 }
0x1000   : > { %v7825_v31 = vadd.f32 %v4318_v20, %v7739_v61 }
0x1001   : > { %4367 = vst [vmem:[#allocation2 + $0x18] sm:$0xff] %v7822_v29 }
0x1002   : > { %4370 = vst [vmem:[#allocation2 + $0x30] sm:$0xff] %v7825_v31 }
0x1004   : > { %v4224_v53 = vpop.f32.mrf.mxu1 }
0x1005   : > { %v4319_v50 = vmul.f32 0.05263158, %v4224_v53  ;;  %v4198_v30 = vpop.f32.mrf.mxu0 }
0x1006   : > { %v4320_v47 = vmul.f32 0.05263158, %v4198_v30 }
0x1007   : > { %v7830_v55 = vadd.f32 %v4319_v50, %v7746_v18 }
0x1008   : > { %v7833_v52 = vadd.f32 %v4320_v47, %v7749_v48 }
0x1009   : > { %4371 = vst [vmem:[#allocation2 + $0x48] sm:$0xff] %v7830_v55 }
0x100a   : > { %4374 = vst [vmem:[#allocation2 + $0xe8] sm:$0xff] %v7833_v52 }
0x100c   : > { %v4227_v26 = vpop.f32.mrf.mxu1 }
0x100d   : > { %v4321_v61 = vmul.f32 0.05263158, %v4227_v26  ;;  %v4200_v45 = vpop.f32.mrf.mxu0 }
0x100e   : > { %v4322_v10 = vmul.f32 0.05263158, %v4200_v45 }
0x100f   : > { %v7838_v21 = vadd.f32 %v4321_v61, %v7754_v27 }
0x1010   : > { %v7841_v62 = vadd.f32 %v4322_v10, %v7757_v28 }
0x1011   : > { %4375 = vst [vmem:[#allocation2 + $0xb8] sm:$0xff] %v7838_v21 }
0x1012   : > { %4378 = vst [vmem:[#allocation2 + $0x8] sm:$0xff] %v7841_v62 }
0x1014   : > { %v4229_v18 = vpop.f32.mrf.mxu1 }
0x1015   : > { %v4323_v48 = vmul.f32 0.05263158, %v4229_v18  ;;  %v4203_v49 = vpop.f32.mrf.mxu0 }
0x1016   : > { %v4324_v14 = vmul.f32 0.05263158, %v4203_v49 }
0x1017   : > { %v7846_v34 = vadd.f32 %v4323_v48, %v7762_v5 }
0x1018   : > { %v7849_v33 = vadd.f32 %v4324_v14, %v7765_v23 }
0x1019   : > { %4379 = vst [vmem:[#allocation2 + $0x78] sm:$0xff] %v7846_v34 }
0x101a   : > { %4382 = vst [vmem:[#allocation2 + $0x40] sm:$0xff] %v7849_v33 }
0x101c   : > { %v4232_v27 = vpop.f32.mrf.mxu1 }
0x101d   : > { %v4325_v28 = vmul.f32 0.05263158, %v4232_v27  ;;  %v4205_v22 = vpop.f32.mrf.mxu0 }
0x101e   : > { %v4326_v11 = vmul.f32 0.05263158, %v4205_v22 }
0x101f   : > { %v7854_v1 = vadd.f32 %v4325_v28, %v7770_v57 }
0x1020   : > { %v7857_v3 = vadd.f32 %v4326_v11, %v7773_v36 }
0x1021   : > { %4383 = vst [vmem:[#allocation2 + $0xc8] sm:$0xff] %v7854_v1 }
0x1022   : > { %4386 = vst [vmem:[#allocation2 + $0x70] sm:$0xff] %v7857_v3 }
0x1024   : > { %v4234_v5 = vpop.f32.mrf.mxu1 }
0x1025   : > { %v4327_v23 = vmul.f32 0.05263158, %v4234_v5  ;;  %v4208_v37 = vpop.f32.mrf.mxu0 }
0x1026   : > { %v4328_v35 = vmul.f32 0.05263158, %v4208_v37 }
0x1027   : > { %v7862_v43 = vadd.f32 %v4327_v23, %v7778_v25 }
0x1028   : > { %v7865_v8 = vadd.f32 %v4328_v35, %v7781_v19 }
0x1029   : > { %4387 = vst [vmem:[#allocation2 + $0xc0] sm:$0xff] %v7862_v43 }
0x102a   : > { %4390 = vst [vmem:[#allocation2 + $0x10] sm:$0xff] %v7865_v8 }
0x102c   : > { %v4237_v57 = vpop.f32.mrf.mxu1 }
0x102d   : > { %v4329_v36 = vmul.f32 0.05263158, %v4237_v57  ;;  %v4210_v39 = vpop.f32.mrf.mxu0 }
0x102e   : > { %v4330_v24 = vmul.f32 0.05263158, %v4210_v39 }
0x102f   : > { %v7870_v40 = vadd.f32 %v4329_v36, %v7786_v41 }
0x1030   : > { %v7873_v4 = vadd.f32 %v4330_v24, %v7789_v2 }
0x1031   : > { %4391 = vst [vmem:[#allocation2 + $0x28] sm:$0xff] %v7870_v40 }
0x1032   : > { %4394 = vst [vmem:[#allocation2 + $0x20] sm:$0xff] %v7873_v4 }
0x1034   : > { %v4239_v25 = vpop.f32.mrf.mxu1 }
0x1035   : > { %v4331_v19 = vmul.f32 0.05263158, %v4239_v25 }
0x1037   : > { %v7878_v16 = vadd.f32 %v4331_v19, %v7794_v54 }
0x1039   : > { %4395 = vst [vmem:[#allocation2 + $0x98] sm:$0xff] %v7878_v16 }
0x103b   : > { %v4251_v58 = vpop.f32.mrf.mxu2 }
0x103c   : > { %v4300_v13 = vmul.f32 -0.05263158, %v4251_v58 }
0x103e   : > { %v7882_v20 = vadd.f32 %v4300_v13, %v7669_v38 }
0x1040   : > { %4364 = vst [vmem:[#allocation2 + $0xb0] sm:$0xff] %v7882_v20 }
0x1042   : > { %v4280_v41 = vpop.f32.mrf.mxu3 }
0x1043   : > { %v4301_v2 = vmul.f32 -0.05263158, %v4280_v41  ;;  %v4253_v53 = vpop.f32.mrf.mxu2 }
0x1044   : > { %v4302_v50 = vmul.f32 -0.05263158, %v4253_v53 }
0x1045   : > { %v4333_v30 = vadd.f32 %v4301_v2, %v7675_v60 }
0x1046   : > { %v4336_v47 = vadd.f32 %v4302_v50, %v7678_v56 }
0x1047   : > { %4365 = vst [vmem:[#allocation2] sm:$0xff] %v4333_v30 }
0x1048   : > { %4368 = vst [vmem:[#allocation2 + $0x50] sm:$0xff] %v4336_v47 }
0x104a   : > { %v4282_v54 = vpop.f32.mrf.mxu3 }
0x104b   : > { %v4303_v26 = vmul.f32 -0.05263158, %v4282_v54  ;;  %v4256_v61 = vpop.f32.mrf.mxu2 }
0x104c   : > { %v4304_v45 = vmul.f32 -0.05263158, %v4256_v61 }
0x104d   : > { %v4337_v10 = vadd.f32 %v4303_v26, %v7684_v9 }
0x104e   : > { %v4340_v38 = vadd.f32 %v4304_v45, %v7687_v17 }
0x104f   : > { %4369 = vst [vmem:[#allocation2 + $0x68] sm:$0xff] %v4337_v10 }
0x1050   : > { %4372 = vst [vmem:[#allocation2 + $0x80] sm:$0xff] %v4340_v38 }
0x1052   : > { %v4285_v18 = vpop.f32.mrf.mxu3 }
0x1053   : > { %v4305_v48 = vmul.f32 -0.05263158, %v4285_v18  ;;  %v4258_v49 = vpop.f32.mrf.mxu2 }
0x1054   : > { %v4306_v14 = vmul.f32 -0.05263158, %v4258_v49 }
0x1055   : > { %v4341_v60 = vadd.f32 %v4305_v48, %v7690_v63 }
0x1056   : > { %v4344_v56 = vadd.f32 %v4306_v14, %v7693_v7 }
0x1057   : > { %4373 = vst [vmem:[#allocation2 + $0x88] sm:$0xff] %v4341_v60 }
0x1058   : > { %4376 = vst [vmem:[#allocation2 + $0x60] sm:$0xff] %v4344_v56 }
0x105a   : > { %v4287_v27 = vpop.f32.mrf.mxu3 }
0x105b   : > { %v4307_v28 = vmul.f32 -0.05263158, %v4287_v27  ;;  %v4261_v22 = vpop.f32.mrf.mxu2 }
0x105c   : > { %v4308_v11 = vmul.f32 -0.05263158, %v4261_v22 }
0x105d   : > { %v4345_v9 = vadd.f32 %v4307_v28, %v7696_v15 }
0x105e   : > { %v4348_v17 = vadd.f32 %v4308_v11, %v7699_v59 }
0x105f   : > { %4377 = vst [vmem:[#allocation2 + $0xf0] sm:$0xff] %v4345_v9 }
0x1060   : > { %4380 = vst [vmem:[#allocation2 + $0x38] sm:$0xff] %v4348_v17 }
0x1062   : > { %v4290_v5 = vpop.f32.mrf.mxu3 }
0x1063   : > { %v4309_v23 = vmul.f32 -0.05263158, %v4290_v5  ;;  %v4263_v37 = vpop.f32.mrf.mxu2 }
0x1064   : > { %v4310_v35 = vmul.f32 -0.05263158, %v4263_v37 }
0x1065   : > { %v4349_v63 = vadd.f32 %v4309_v23, %v7702_v12 }
0x1066   : > { %v4352_v7 = vadd.f32 %v4310_v35, %v7705_v46 }
0x1067   : > { %4381 = vst [vmem:[#allocation2 + $0x58] sm:$0xff] %v4349_v63 }
0x1068   : > { %4384 = vst [vmem:[#allocation2 + $0xe0] sm:$0xff] %v4352_v7 }
0x106a   : > { %v4292_v57 = vpop.f32.mrf.mxu3 }
0x106b   : > { %v4311_v36 = vmul.f32 -0.05263158, %v4292_v57  ;;  %v4266_v39 = vpop.f32.mrf.mxu2 }
0x106c   : > { %v4312_v24 = vmul.f32 -0.05263158, %v4266_v39 }
0x106d   : > { %v4353_v15 = vadd.f32 %v4311_v36, %v7708_v42 }
0x106e   : > { %v4356_v59 = vadd.f32 %v4312_v24, %v7711_v44 }
0x106f   : > { %4385 = vst [vmem:[#allocation2 + $0x90] sm:$0xff] %v4353_v15 }
0x1070   : > { %4388 = vst [vmem:[#allocation2 + $0xa8] sm:$0xff] %v4356_v59 }
0x1072   : > { %v4295_v25 = vpop.f32.mrf.mxu3 }
0x1073   : > { %v4313_v19 = vmul.f32 -0.05263158, %v4295_v25  ;;  %v4268_v58 = vpop.f32.mrf.mxu2 }
0x1074   : > { %v4314_v13 = vmul.f32 -0.05263158, %v4268_v58 }
0x1075   : > { %v4357_v12 = vadd.f32 %v4313_v19, %v7714_v6 }
0x1076   : > { %v4360_v46 = vadd.f32 %v4314_v13, %v7717_v51 }
0x1077   : > { %4389 = vst [vmem:[#allocation2 + $0xd0] sm:$0xff] %v4357_v12 }
0x1078   : > { %4392 = vst [vmem:[#allocation2 + $0xa0] sm:$0xff] %v4360_v46 }
0x107a   : > { %v4297_v41 = vpop.f32.mrf.mxu3 }
0x107b   : > { %v4315_v2 = vmul.f32 -0.05263158, %v4297_v41  ;;  %4399 = sbr.rel (%p4784_p5) target bundleno = 4256 (0x10a0), region = 44 }
0x107d   : > { %v4361_v53 = vadd.f32 %v4315_v2, %v7722_v0 }
0x107f   : > { %4393 = vst [vmem:[#allocation2 + $0xf8] sm:$0xff] %v4361_v53 }
0x1080   : > { %4400 = vst [vmem:[%s8021_s4] sm:$0xff] %v7882_v20 }
0x1081   : > { %4401 = vst [vmem:[%s8021_s4 + $0x8] sm:$0xff] %v4333_v30 }
0x1082   : > { %4402 = vst [vmem:[%s8021_s4 + $0x10] sm:$0xff] %v7818_v32 }
0x1083   : > { %4403 = vst [vmem:[%s8021_s4 + $0x18] sm:$0xff] %v7822_v29 }
0x1084   : > { %4404 = vst [vmem:[%s8021_s4 + $0x20] sm:$0xff] %v4336_v47 }
0x1085   : > { %4405 = vst [vmem:[%s8021_s4 + $0x28] sm:$0xff] %v4337_v10 }
0x1086   : > { %4406 = vst [vmem:[%s8021_s4 + $0x30] sm:$0xff] %v7825_v31 }
0x1087   : > { %4407 = vst [vmem:[%s8021_s4 + $0x38] sm:$0xff] %v7830_v55 }
0x1088   : > { %4408 = vst [vmem:[%s8021_s4 + $0x40] sm:$0xff] %v4340_v38 }
0x1089   : > { %4409 = vst [vmem:[%s8021_s4 + $0x48] sm:$0xff] %v4341_v60 }
0x108a   : > { %4410 = vst [vmem:[%s8021_s4 + $0x50] sm:$0xff] %v7833_v52 }
0x108b   : > { %4411 = vst [vmem:[%s8021_s4 + $0x58] sm:$0xff] %v7838_v21 }
0x108c   : > { %4412 = vst [vmem:[%s8021_s4 + $0x60] sm:$0xff] %v4344_v56 }
0x108d   : > { %4413 = vst [vmem:[%s8021_s4 + $0x68] sm:$0xff] %v4345_v9 }
0x108e   : > { %4414 = vst [vmem:[%s8021_s4 + $0x70] sm:$0xff] %v7841_v62 }
0x108f   : > { %4415 = vst [vmem:[%s8021_s4 + $0x78] sm:$0xff] %v7846_v34 }
0x1090   : > { %4416 = vst [vmem:[%s8021_s4 + $0x80] sm:$0xff] %v4348_v17 }
0x1091   : > { %4417 = vst [vmem:[%s8021_s4 + $0x88] sm:$0xff] %v4349_v63 }
0x1092   : > { %4418 = vst [vmem:[%s8021_s4 + $0x90] sm:$0xff] %v7849_v33 }
0x1093   : > { %4419 = vst [vmem:[%s8021_s4 + $0x98] sm:$0xff] %v7854_v1 }
0x1094   : > { %4420 = vst [vmem:[%s8021_s4 + $0xa0] sm:$0xff] %v4352_v7 }
0x1095   : > { %4421 = vst [vmem:[%s8021_s4 + $0xa8] sm:$0xff] %v4353_v15 }
0x1096   : > { %4422 = vst [vmem:[%s8021_s4 + $0xb0] sm:$0xff] %v7857_v3 }
0x1097   : > { %4423 = vst [vmem:[%s8021_s4 + $0xb8] sm:$0xff] %v7862_v43 }
0x1098   : > { %4424 = vst [vmem:[%s8021_s4 + $0xc0] sm:$0xff] %v4356_v59 }
0x1099   : > { %4425 = vst [vmem:[%s8021_s4 + $0xc8] sm:$0xff] %v4357_v12 }
0x109a   : > { %4426 = vst [vmem:[%s8021_s4 + $0xd0] sm:$0xff] %v7865_v8 }
0x109b   : > { %4427 = vst [vmem:[%s8021_s4 + $0xd8] sm:$0xff] %v7870_v40 }
0x109c   : > { %4428 = vst [vmem:[%s8021_s4 + $0xe0] sm:$0xff] %v4360_v46 }
0x109d   : > { %4429 = vst [vmem:[%s8021_s4 + $0xe8] sm:$0xff] %v4361_v53 }
0x109e   : > { %4430 = vst [vmem:[%s8021_s4 + $0xf0] sm:$0xff] %v7873_v4 }
0x109f   : > { %4431 = vst [vmem:[%s8021_s4 + $0xf8] sm:$0xff] %v7878_v16 }
0x10a0 PF: > { %s14_s15 = sadd.s32 1, %s4802_s15  }
0x10a1   : > { %p11_p6 = scmp.ge.s32.totalorder %s14_s15, 8  }
0x10a3   :  { %13 = sbr.rel (!%p11_p6) target bundleno = 1 (0x1), region = 73 }

</bundles_post_ra>
